<compile_context>
chip_gen: v5e
topology: v5e:2x2
jax: 0.10.0
libtpu: 0.0.40
codegen_flags: <defaults>
</compile_context>

<pallas_src>
import functools
import math

import jax
import jax.numpy as jnp
import numpy as np
from jax.experimental import pallas as pl
from jax.experimental.pallas import tpu as pltpu

_BF16 = jnp.bfloat16


# ------- kernel 1: self-attn + residual + LN + offset/weight projection -------

def _self_attn_oa_kernel(tgt_ref, pos_ref, wq_ref, bq_ref, wk_ref, bk_ref,
                         wv_ref, bv_ref, wo_ref, bo_ref, g_ref, b_ref,
                         woa_ref, boa_ref, t1_ref, oa_ref, *, nhead):
    t = tgt_ref[0]                                   # (L, d) f32
    pos = pos_ref[0]
    x = t + pos                                      # q = k = tgt + pos
    dh = wq_ref.shape[-1]
    scale = 1.0 / math.sqrt(dh)
    x_b = x.astype(_BF16)
    t_b = t.astype(_BF16)
    heads = []
    for h in range(nhead):                           # static unroll over heads
        # per-head weights indexed on the leading axis (no lane slicing)
        qh = jnp.dot(x_b, wq_ref[h], preferred_element_type=jnp.float32) + bq_ref[h]
        kh = jnp.dot(x_b, wk_ref[h], preferred_element_type=jnp.float32) + bk_ref[h]
        vh = jnp.dot(t_b, wv_ref[h], preferred_element_type=jnp.float32) + bv_ref[h]
        s = jax.lax.dot_general(qh.astype(_BF16), kh.astype(_BF16),
                                (((1,), (1,)), ((), ())),
                                preferred_element_type=jnp.float32) * scale
        s = s - jnp.max(s, axis=-1, keepdims=True)
        p = jnp.exp(s)
        p = p * pl.reciprocal(jnp.sum(p, axis=-1, keepdims=True), approx=True)
        heads.append(jnp.dot(p.astype(_BF16), vh.astype(_BF16),
                             preferred_element_type=jnp.float32))
    o = jnp.concatenate(heads, axis=-1)              # (L, d): one fused out-proj
    attn = jnp.dot(o.astype(_BF16), wo_ref[...],
                   preferred_element_type=jnp.float32) + bo_ref[...]
    z = t + attn
    mu = jnp.mean(z, axis=-1, keepdims=True)
    var = jnp.mean(jnp.square(z - mu), axis=-1, keepdims=True)
    t1 = (z - mu) * jax.lax.rsqrt(var + 1e-5) * g_ref[...] + b_ref[...]
    t1_ref[0] = t1
    # fused sampling-offset + attention-weight projection of the cross-attn query
    q2 = (t1 + pos).astype(_BF16)
    oa_ref[0] = (jnp.dot(q2, woa_ref[...], preferred_element_type=jnp.float32)
                 + boa_ref[...])


def self_attn_oa_block(tgt, pos, p_sa, p_ca, p_norm, nhead):
    bs, L, d = tgt.shape
    dh = d // nhead
    n_oa = p_ca["w_oa"].shape[1]
    wspec3 = pl.BlockSpec((nhead, d, dh), lambda i: (0, 0, 0))
    bspec3 = pl.BlockSpec((nhead, 1, dh), lambda i: (0, 0, 0))
    dspec = pl.BlockSpec((1, d), lambda i: (0, 0))
    return pl.pallas_call(
        functools.partial(_self_attn_oa_kernel, nhead=nhead),
        out_shape=(jax.ShapeDtypeStruct((bs, L, d), jnp.float32),
                   jax.ShapeDtypeStruct((bs, L, n_oa), jnp.float32)),
        grid=(bs,),
        in_specs=[
            pl.BlockSpec((1, L, d), lambda i: (i, 0, 0)),      # tgt
            pl.BlockSpec((1, L, d), lambda i: (i, 0, 0)),      # query_pos
            wspec3, bspec3,                                    # wq, bq
            wspec3, bspec3,                                    # wk, bk
            wspec3, bspec3,                                    # wv, bv
            pl.BlockSpec((d, d), lambda i: (0, 0)),            # wo
            dspec,                                             # bo
            dspec, dspec,                                      # LN gamma, beta
            pl.BlockSpec((d, n_oa), lambda i: (0, 0)),         # w_oa (fused proj)
            pl.BlockSpec((1, n_oa), lambda i: (0, 0)),         # b_oa
        ],
        out_specs=(
            pl.BlockSpec((1, L, d), lambda i: (i, 0, 0)),
            pl.BlockSpec((1, L, n_oa), lambda i: (i, 0, 0)),
        ),
        compiler_params=pltpu.CompilerParams(dimension_semantics=("parallel",)),
    )(tgt, pos,
      p_sa["wq"].astype(_BF16), p_sa["bq"],
      p_sa["wk"].astype(_BF16), p_sa["bk"],
      p_sa["wv"].astype(_BF16), p_sa["bv"],
      p_sa["wo"].astype(_BF16), p_sa["bo"].reshape(1, d),
      p_norm["g"].reshape(1, d), p_norm["b"].reshape(1, d),
      p_ca["w_oa"].astype(_BF16), p_ca["b_oa"].reshape(1, n_oa))


# ------- kernel 2: deformable cross-attn + LN  +  FFN + LN (fully fused) ------

def _cross_ffn_kernel(tgt_ref, src_ref, keep_ref, wmat_ref,
                      wv_ref, bv_ref, wo_ref, bo_ref, g2_ref, b2_ref,
                      w1_ref, b1_ref, w2_ref, b2f_ref, g3_ref, b3_ref,
                      o_ref, *, nhead):
    t = tgt_ref[0]                                   # (Lq, d)  f32
    src = src_ref[0]                                 # (Lin, d) f32
    keep = keep_ref[0]                               # (Lin, 1) 1=valid, 0=padded
    src_b = src.astype(_BF16)
    heads = []
    for h in range(nhead):                           # static unroll over heads
        vh = (jnp.dot(src_b, wv_ref[h], preferred_element_type=jnp.float32)
              + bv_ref[h])
        vh = vh * keep                               # zero padded positions
        wm = wmat_ref[0, h]                          # (Lq, Lin) combined weights
        heads.append(jnp.dot(wm, vh.astype(_BF16),
                             preferred_element_type=jnp.float32))
    o = jnp.concatenate(heads, axis=-1)              # (Lq, d): one fused out-proj
    attn = jnp.dot(o.astype(_BF16), wo_ref[...],
                   preferred_element_type=jnp.float32) + bo_ref[...]
    z = t + attn
    mu = jnp.mean(z, axis=-1, keepdims=True)
    var = jnp.mean(jnp.square(z - mu), axis=-1, keepdims=True)
    t1 = (z - mu) * jax.lax.rsqrt(var + 1e-5) * g2_ref[...] + b2_ref[...]
    # FFN (dff hidden stays in VMEM/vregs)
    h1 = jnp.maximum(jnp.dot(t1.astype(_BF16), w1_ref[...],
                             preferred_element_type=jnp.float32) + b1_ref[...], 0.0)
    y = jnp.dot(h1.astype(_BF16), w2_ref[...],
                preferred_element_type=jnp.float32) + b2f_ref[...]
    z2 = t1 + y
    mu2 = jnp.mean(z2, axis=-1, keepdims=True)
    var2 = jnp.mean(jnp.square(z2 - mu2), axis=-1, keepdims=True)
    o_ref[0] = (z2 - mu2) * jax.lax.rsqrt(var2 + 1e-5) * g3_ref[...] + b3_ref[...]


def cross_ffn_block(tgt, src, keepf, wmat, p_ca, p_norm, p1, p2, p_norm3, nhead):
    bs, Lq, d = tgt.shape
    Lin = src.shape[1]
    dh = d // nhead
    dff = p1["w"].shape[1]
    dspec = pl.BlockSpec((1, d), lambda i: (0, 0))
    return pl.pallas_call(
        functools.partial(_cross_ffn_kernel, nhead=nhead),
        out_shape=jax.ShapeDtypeStruct((bs, Lq, d), jnp.float32),
        grid=(bs,),
        in_specs=[
            pl.BlockSpec((1, Lq, d), lambda i: (i, 0, 0)),          # tgt
            pl.BlockSpec((1, Lin, d), lambda i: (i, 0, 0)),         # src
            pl.BlockSpec((1, Lin, 1), lambda i: (i, 0, 0)),         # keep mask
            pl.BlockSpec((1, nhead, Lq, Lin), lambda i: (i, 0, 0, 0)),  # wmat
            pl.BlockSpec((nhead, d, dh), lambda i: (0, 0, 0)),      # wv (per head)
            pl.BlockSpec((nhead, 1, dh), lambda i: (0, 0, 0)),      # bv
            pl.BlockSpec((d, d), lambda i: (0, 0)),                 # wo
            dspec,                                                  # bo
            dspec, dspec,                                           # LN2 g, b
            pl.BlockSpec((d, dff), lambda i: (0, 0)),               # linear1 w
            pl.BlockSpec((1, dff), lambda i: (0, 0)),               # linear1 b
            pl.BlockSpec((dff, d), lambda i: (0, 0)),               # linear2 w
            dspec,                                                  # linear2 b
            dspec, dspec,                                           # LN3 g, b
        ],
        out_specs=pl.BlockSpec((1, Lq, d), lambda i: (i, 0, 0)),
        compiler_params=pltpu.CompilerParams(dimension_semantics=("parallel",)),
    )(tgt, src, keepf, wmat.astype(_BF16),
      p_ca["wv"].astype(_BF16), p_ca["bv"],
      p_ca["wo"].astype(_BF16), p_ca["bo"].reshape(1, d),
      p_norm["g"].reshape(1, d), p_norm["b"].reshape(1, d),
      p1["w"].astype(_BF16), p1["b"].reshape(1, dff),
      p2["w"].astype(_BF16), p2["b"].reshape(1, d),
      p_norm3["g"].reshape(1, d), p_norm3["b"].reshape(1, d))


# ----------- deformable-attn sampling matrix (bilinear -> matmul) -------------

def build_sampling_matrix(spatial_shapes, sampling_locations, attention_weights,
                          value_len):
    """Combined bilinear*attention weight matrix, (N, M, Lq, value_len).

    grid_sample semantics: bilinear, align_corners=False, zero padding.
    Built with a scatter-add (duplicate columns accumulate additively), then
    consumed as a dense (Lq,Lin)x(Lin,dh) MXU matmul inside the Pallas kernel.
    """
    N, Lq, M, L, P, _ = sampling_locations.shape
    cols_list, wts_list = [], []
    off = 0
    for lid, (H, W) in enumerate(spatial_shapes):
        loc = sampling_locations[:, :, :, lid]           # (N, Lq, M, P, 2)
        aw = attention_weights[:, :, :, lid]             # (N, Lq, M, P)
        x = loc[..., 0] * W - 0.5
        y = loc[..., 1] * H - 0.5
        x0 = jnp.floor(x)
        y0 = jnp.floor(y)
        lx1 = x - x0
        lx0 = 1.0 - lx1
        ly1 = y - y0
        ly0 = 1.0 - ly1
        for dx, dy, wxy in ((0, 0, lx0 * ly0), (1, 0, lx1 * ly0),
                            (0, 1, lx0 * ly1), (1, 1, lx1 * ly1)):
            xi = x0 + dx
            yi = y0 + dy
            valid = (xi >= 0) & (xi <= W - 1) & (yi >= 0) & (yi <= H - 1)
            xc = jnp.clip(xi, 0, W - 1).astype(jnp.int32)
            yc = jnp.clip(yi, 0, H - 1).astype(jnp.int32)
            cols_list.append(off + yc * W + xc)            # (N, Lq, M, P)
            wts_list.append(jnp.where(valid, wxy * aw, 0.0))
        off += H * W
    cols = jnp.stack(cols_list, axis=-1).reshape(N, Lq, M, -1)
    wts = jnp.stack(wts_list, axis=-1).reshape(N, Lq, M, -1)
    bi = jnp.arange(N)[:, None, None, None]
    qi = jnp.arange(Lq)[None, :, None, None]
    mi = jnp.arange(M)[None, None, :, None]
    wmat = jnp.zeros((N, Lq, M, value_len), jnp.float32).at[bi, qi, mi, cols].add(wts)
    return wmat.transpose(0, 2, 1, 3)                      # (N, M, Lq, Lin)


# ------------------------------ encoder helpers -------------------------------

def get_valid_ratio(mask):
    """mask: (bs, nf, H, W) bool -> (bs, nf, 2) [(w, h)]"""
    H, W = mask.shape[2], mask.shape[3]
    valid_H = jnp.sum(~mask[:, :, :, 0], axis=2)
    valid_W = jnp.sum(~mask[:, :, 0, :], axis=2)
    return jnp.stack([valid_W / W, valid_H / H], axis=-1).astype(jnp.float32)


def get_reference_points(self_shape, valid_ratios, ref_valid_ratios):
    """self_shape: (H_t, W_t) python ints; -> (bs, H_t*W_t, nf, 2)"""
    H_, W_ = self_shape
    ref_y, ref_x = jnp.meshgrid(
        jnp.linspace(0.5, H_ - 0.5, H_, dtype=jnp.float32),
        jnp.linspace(0.5, W_ - 0.5, W_, dtype=jnp.float32),
        indexing="ij")
    ref_y = ref_y.reshape(-1)[None] / (valid_ratios[:, None, 1] * H_)
    ref_x = ref_x.reshape(-1)[None] / (valid_ratios[:, None, 0] * W_)
    ref = jnp.stack((ref_x, ref_y), -1)                 # (bs, H_t*W_t, 2)
    return ref[:, :, None] * ref_valid_ratios[:, None]  # (bs, H_t*W_t, nf, 2)


# ------------------------------ layer forward ---------------------------------

def deformable_layer_forward(p, tgt, query_pos, reference_points, src, src_keepf,
                             spatial_shapes, nhead, n_levels, n_points,
                             norm_self, norm_cross):
    # 1) fused self-attention + residual + LN  (+ offset/weight projection)
    tgt1, oa = self_attn_oa_block(tgt, query_pos, p["self_attn"], p["cross_attn"],
                                  p[norm_self], nhead)

    # 2) XLA glue: sampling locations + attention-weight softmax + wmat scatter
    N, Lq, _ = tgt1.shape
    n_off = nhead * n_levels * n_points * 2
    off = oa[..., :n_off].reshape(N, Lq, nhead, n_levels, n_points, 2)
    aw = oa[..., n_off:].reshape(N, Lq, nhead, n_levels * n_points)
    aw = jax.nn.softmax(aw, axis=-1).reshape(N, Lq, nhead, n_levels, n_points)
    shapes_arr = jnp.asarray(spatial_shapes, dtype=jnp.float32)     # rows (H, W)
    offset_normalizer = jnp.stack([shapes_arr[:, 1], shapes_arr[:, 0]], axis=-1)
    sampling_locations = (reference_points[:, :, None, :, None, :]
                          + off / offset_normalizer[None, None, None, :, None, :])
    wmat = build_sampling_matrix(spatial_shapes, sampling_locations, aw,
                                 src.shape[1])

    # 3+4) fused cross-attention + LN + FFN + LN (single pallas_call)
    return cross_ffn_block(tgt1, src, src_keepf, wmat, p["cross_attn"],
                           p[norm_cross], p["linear1"], p["linear2"], p["norm3"],
                           nhead)


def temporal_detr_forward(params, src, reference_src, mask, reference_mask,
                          src_shape, reference_shapes, reference_start_index,
                          query_embeds, query_pos, valid_ratios, cfg):
    del reference_start_index  # implied by reference_shapes (static)
    nhead = cfg["nhead"]

    # -------- TemporalEncoder --------
    H_p, W_p = reference_shapes[0]
    bs = reference_mask.shape[0]
    ref_valid_ratios = get_valid_ratio(reference_mask.reshape(bs, -1, H_p, W_p))
    enc_ref_pts = get_reference_points(src_shape[0], valid_ratios, ref_valid_ratios)
    ref_keepf = (1.0 - reference_mask.astype(jnp.float32))[..., None]
    output = src
    for lp in params["encoder"]:
        output = deformable_layer_forward(
            lp, output, query_pos, enc_ref_pts, reference_src, ref_keepf,
            reference_shapes, nhead, cfg["enc_n_levels"], cfg["enc_n_points"],
            norm_self="norm1", norm_cross="norm2")
    temporal_memory = output

    # -------- decoder head --------
    c = cfg["d_model"]
    qe = query_embeds[:, :c]
    tgt0 = query_embeds[:, c:]
    # degenerate (nq,d)@(d,2) head stays in XLA (review: don't launch a kernel)
    rp = jax.nn.sigmoid(jnp.dot(qe, params["ref_points"]["w"])
                        + params["ref_points"]["b"])
    reference_points = jnp.broadcast_to(rp[None], (bs,) + rp.shape)
    query_embed = jnp.broadcast_to(qe[None], (bs,) + qe.shape)
    out = jnp.broadcast_to(tgt0[None], (bs,) + tgt0.shape)
    src_keepf = (1.0 - mask.astype(jnp.float32))[..., None]
    dec_ref = reference_points[:, :, None] * valid_ratios[:, None, None]  # (bs,nq,1,2)
    for lp in params["decoder"]:
        out = deformable_layer_forward(
            lp, out, query_embed, dec_ref, temporal_memory, src_keepf,
            src_shape, nhead, 1, cfg["dec_n_points"],
            norm_self="norm2", norm_cross="norm1")
    hs = out
    references = reference_points  # return_intermediate_dec=False, no refinement
    return hs, reference_points, references


# ------------------------------ parameter init --------------------------------

class KeyGen:
    def __init__(self, seed):
        self.key = jax.random.PRNGKey(seed)

    def __call__(self):
        self.key, k = jax.random.split(self.key)
        return k


def xavier(key, din, dout):
    a = math.sqrt(6.0 / (din + dout))
    return jax.random.uniform(key, (din, dout), jnp.float32, -a, a)


def split_heads_w(w, nhead):
    """(d, d_out) -> (H, d, dh) per-head weight slabs (leading head axis)."""
    d, dout = w.shape
    dh = dout // nhead
    return w.reshape(d, nhead, dh).transpose(1, 0, 2)


def init_linear_params(kg, din, dout):
    return {"w": xavier(kg(), din, dout), "b": jnp.zeros((dout,), jnp.float32)}


def init_ln(d):
    return {"g": jnp.ones((d,), jnp.float32), "b": jnp.zeros((d,), jnp.float32)}


def init_mha(kg, d, nhead):
    dh = d // nhead
    return {"wq": split_heads_w(xavier(kg(), d, d), nhead),
            "bq": jnp.zeros((nhead, 1, dh), jnp.float32),
            "wk": split_heads_w(xavier(kg(), d, d), nhead),
            "bk": jnp.zeros((nhead, 1, dh), jnp.float32),
            "wv": split_heads_w(xavier(kg(), d, d), nhead),
            "bv": jnp.zeros((nhead, 1, dh), jnp.float32),
            "wo": xavier(kg(), d, d), "bo": jnp.zeros((d,), jnp.float32)}


def init_msda(kg, d, n_levels, n_heads, n_points):
    dh = d // n_heads
    n_off = n_heads * n_levels * n_points * 2
    n_aw = n_heads * n_levels * n_points
    w_off = xavier(kg(), d, n_off)
    w_aw = xavier(kg(), d, n_aw)
    return {"w_oa": jnp.concatenate([w_off, w_aw], axis=1),  # offsets|weights fused
            "b_oa": jnp.zeros((n_off + n_aw,), jnp.float32),
            "wv": split_heads_w(xavier(kg(), d, d), n_heads),
            "bv": jnp.zeros((n_heads, 1, dh), jnp.float32),
            "wo": xavier(kg(), d, d), "bo": jnp.zeros((d,), jnp.float32)}


def init_layer(kg, d, dff, nhead, n_levels, n_points):
    return {"self_attn": init_mha(kg, d, nhead),
            "norm1": init_ln(d), "norm2": init_ln(d), "norm3": init_ln(d),
            "cross_attn": init_msda(kg, d, n_levels, nhead, n_points),
            "linear1": init_linear_params(kg, d, dff),
            "linear2": init_linear_params(kg, dff, d)}


def init_temporal_detr(cfg):
    kg = KeyGen(42)
    return {
        "encoder": [init_layer(kg, cfg["d_model"], cfg["dff"], cfg["nhead"],
                               cfg["enc_n_levels"], cfg["enc_n_points"])
                    for _ in range(cfg["num_encoder_layers"])],
        "decoder": [init_layer(kg, cfg["d_model"], cfg["dff"], cfg["nhead"],
                               1, cfg["dec_n_points"])
                    for _ in range(cfg["num_decoder_layers"])],
        "ref_points": init_linear_params(kg, cfg["d_model"], 2),
    }


# ----------------------------------- main -------------------------------------

if __name__ == "__main__":
    # small config consistent with the module
    bs = 2
    d_model = 32
    nhead = 4
    dff = 64
    n_frames = 2
    fuse = True
    enc_n_levels = 2 * n_frames if fuse else n_frames   # 4
    enc_n_points = 2
    dec_n_points = 2
    num_encoder_layers = 2
    num_decoder_layers = 2
    H_t = W_t = 8
    H_p = W_p = 4
    num_queries = 16

    cfg = dict(d_model=d_model, nhead=nhead, dff=dff,
               enc_n_levels=enc_n_levels, enc_n_points=enc_n_points,
               dec_n_points=dec_n_points,
               num_encoder_layers=num_encoder_layers,
               num_decoder_layers=num_decoder_layers)

    Lt = H_t * W_t
    Lref = enc_n_levels * H_p * W_p

    params = init_temporal_detr(cfg)

    key = jax.random.PRNGKey(0)
    k_src, k_ref, k_qe, k_qp = jax.random.split(key, 4)
    src = jax.random.normal(k_src, (bs, Lt, d_model), jnp.float32)
    reference_src = jax.random.normal(k_ref, (bs, Lref, d_model), jnp.float32)
    query_embeds = jax.random.normal(k_qe, (num_queries, 2 * d_model), jnp.float32)
    query_pos = jax.random.normal(k_qp, (bs, Lt, d_model), jnp.float32)

    # deterministic rectangular padding masks (True = padded)
    mask_img = np.zeros((bs, H_t, W_t), dtype=bool)
    mask_img[1, H_t - 2:, :] = True
    mask_img[1, :, W_t - 1:] = True
    mask = jnp.asarray(mask_img.reshape(bs, -1))
    valid_W = (~mask_img[:, 0, :]).sum(1) / W_t
    valid_H = (~mask_img[:, :, 0]).sum(1) / H_t
    valid_ratios = jnp.asarray(np.stack([valid_W, valid_H], -1), dtype=jnp.float32)

    ref_mask_4d = np.zeros((bs, enc_n_levels, H_p, W_p), dtype=bool)
    for b in range(bs):
        for f in range(enc_n_levels):
            vh = H_p - ((b + f) % 2)
            vw = W_p - ((b + 2 * f) % 3 == 0)
            ref_mask_4d[b, f, vh:, :] = True
            ref_mask_4d[b, f, :, vw:] = True
    reference_mask = jnp.asarray(ref_mask_4d.reshape(bs, -1))

    src_shape = ((H_t, W_t),)                               # (1, 2)
    reference_shapes = tuple((H_p, W_p) for _ in range(enc_n_levels))
    reference_start_index = tuple(f * H_p * W_p for f in range(enc_n_levels))

    @jax.jit
    def run(params, src, reference_src, mask, reference_mask,
            query_embeds, query_pos, valid_ratios):
        return temporal_detr_forward(
            params, src, reference_src, mask, reference_mask,
            src_shape, reference_shapes, reference_start_index,
            query_embeds, query_pos, valid_ratios, cfg)

    hs, reference_points, references = run(
        params, src, reference_src, mask, reference_mask,
        query_embeds, query_pos, valid_ratios)

    jax.block_until_ready(hs)
    jax.block_until_ready(reference_points)
    jax.block_until_ready(references)
    assert hs.shape == (bs, num_queries, d_model)
    assert reference_points.shape == (bs, num_queries, 2)
    assert bool(jnp.all(jnp.isfinite(hs)))
    print("KERNEL_OK")
</pallas_src>

<mosaic_0001>
module attributes {stable_mosaic.version = 11 : i64} {
  func.func @_self_attn_oa_kernel(%arg0: i32, %arg1: memref<1x64x32xf32, #tpu.memory_space<vmem>>, %arg2: memref<1x64x32xf32, #tpu.memory_space<vmem>>, %arg3: memref<4x32x8xbf16, #tpu.memory_space<vmem>>, %arg4: memref<4x1x8xf32, #tpu.memory_space<vmem>>, %arg5: memref<4x32x8xbf16, #tpu.memory_space<vmem>>, %arg6: memref<4x1x8xf32, #tpu.memory_space<vmem>>, %arg7: memref<4x32x8xbf16, #tpu.memory_space<vmem>>, %arg8: memref<4x1x8xf32, #tpu.memory_space<vmem>>, %arg9: memref<32x32xbf16, #tpu.memory_space<vmem>>, %arg10: memref<1x32xf32, #tpu.memory_space<vmem>>, %arg11: memref<1x32xf32, #tpu.memory_space<vmem>>, %arg12: memref<1x32xf32, #tpu.memory_space<vmem>>, %arg13: memref<32x96xbf16, #tpu.memory_space<vmem>>, %arg14: memref<1x96xf32, #tpu.memory_space<vmem>>, %arg15: memref<1x64x32xf32, #tpu.memory_space<vmem>>, %arg16: memref<1x64x96xf32, #tpu.memory_space<vmem>>) attributes {dimension_semantics = [#tpu.dimension_semantics<parallel>], iteration_bounds = array<i64: 2>, scalar_prefetch = 0 : i64, scratch_operands = 0 : i64, tpu.core_type = #tpu.core_type<tc>, window_params = [{transform_indices = @transform_0, window_bounds = array<i64: 1, 64, 32>}, {transform_indices = @transform_1, window_bounds = array<i64: 1, 64, 32>}, {pipeline_mode = #tpu.pipeline_mode<synchronous>, transform_indices = @transform_2, window_bounds = array<i64: 4, 32, 8>}, {pipeline_mode = #tpu.pipeline_mode<synchronous>, transform_indices = @transform_3, window_bounds = array<i64: 4, 1, 8>}, {pipeline_mode = #tpu.pipeline_mode<synchronous>, transform_indices = @transform_4, window_bounds = array<i64: 4, 32, 8>}, {pipeline_mode = #tpu.pipeline_mode<synchronous>, transform_indices = @transform_5, window_bounds = array<i64: 4, 1, 8>}, {pipeline_mode = #tpu.pipeline_mode<synchronous>, transform_indices = @transform_6, window_bounds = array<i64: 4, 32, 8>}, {pipeline_mode = #tpu.pipeline_mode<synchronous>, transform_indices = @transform_7, window_bounds = array<i64: 4, 1, 8>}, {pipeline_mode = #tpu.pipeline_mode<synchronous>, transform_indices = @transform_8, window_bounds = array<i64: 32, 32>}, {pipeline_mode = #tpu.pipeline_mode<synchronous>, transform_indices = @transform_9, window_bounds = array<i64: 1, 32>}, {pipeline_mode = #tpu.pipeline_mode<synchronous>, transform_indices = @transform_10, window_bounds = array<i64: 1, 32>}, {pipeline_mode = #tpu.pipeline_mode<synchronous>, transform_indices = @transform_11, window_bounds = array<i64: 1, 32>}, {pipeline_mode = #tpu.pipeline_mode<synchronous>, transform_indices = @transform_12, window_bounds = array<i64: 32, 96>}, {pipeline_mode = #tpu.pipeline_mode<synchronous>, transform_indices = @transform_13, window_bounds = array<i64: 1, 96>}, {transform_indices = @transform_14, window_bounds = array<i64: 1, 64, 32>}, {transform_indices = @transform_15, window_bounds = array<i64: 1, 64, 96>}]} {
    %c0 = arith.constant 0 : index
    %c0_0 = arith.constant 0 : index
    %c0_1 = arith.constant 0 : index
    %0 = vector.load %arg1[%c0, %c0_0, %c0_1] : memref<1x64x32xf32, #tpu.memory_space<vmem>>, vector<1x64x32xf32>
    %1 = vector.shape_cast %0 : vector<1x64x32xf32> to vector<64x32xf32>
    %c0_2 = arith.constant 0 : index
    %c0_3 = arith.constant 0 : index
    %c0_4 = arith.constant 0 : index
    %2 = vector.load %arg2[%c0_2, %c0_3, %c0_4] : memref<1x64x32xf32, #tpu.memory_space<vmem>>, vector<1x64x32xf32>
    %3 = vector.shape_cast %2 : vector<1x64x32xf32> to vector<64x32xf32>
    %4 = arith.addf %1, %3 : vector<64x32xf32>
    %5 = arith.truncf %4 : vector<64x32xf32> to vector<64x32xbf16>
    %6 = arith.truncf %1 : vector<64x32xf32> to vector<64x32xbf16>
    %c0_5 = arith.constant 0 : index
    %c0_6 = arith.constant 0 : index
    %c0_7 = arith.constant 0 : index
    %7 = vector.load %arg3[%c0_5, %c0_6, %c0_7] : memref<4x32x8xbf16, #tpu.memory_space<vmem>>, vector<1x32x8xbf16>
    %8 = vector.shape_cast %7 : vector<1x32x8xbf16> to vector<32x8xbf16>
    %cst = arith.constant dense<0.000000e+00> : vector<64x8xf32>
    %9 = tpu.matmul %5, %8, %cst {dimension_numbers = #tpu.dot_dimension_numbers<[1], [0], [0], [1], [0, 0, 1, 1], [], []>} : vector<64x32xbf16>, vector<32x8xbf16>, vector<64x8xf32> -> vector<64x8xf32>
    %c0_8 = arith.constant 0 : index
    %c0_9 = arith.constant 0 : index
    %c0_10 = arith.constant 0 : index
    %10 = vector.load %arg4[%c0_8, %c0_9, %c0_10] : memref<4x1x8xf32, #tpu.memory_space<vmem>>, vector<1x1x8xf32>
    %11 = vector.shape_cast %10 : vector<1x1x8xf32> to vector<1x8xf32>
    %12 = vector.broadcast %11 : vector<1x8xf32> to vector<64x8xf32>
    %13 = arith.addf %9, %12 : vector<64x8xf32>
    %c0_11 = arith.constant 0 : index
    %c0_12 = arith.constant 0 : index
    %c0_13 = arith.constant 0 : index
    %14 = vector.load %arg5[%c0_11, %c0_12, %c0_13] : memref<4x32x8xbf16, #tpu.memory_space<vmem>>, vector<1x32x8xbf16>
    %15 = vector.shape_cast %14 : vector<1x32x8xbf16> to vector<32x8xbf16>
    %cst_14 = arith.constant dense<0.000000e+00> : vector<64x8xf32>
    %16 = tpu.matmul %5, %15, %cst_14 {dimension_numbers = #tpu.dot_dimension_numbers<[1], [0], [0], [1], [0, 0, 1, 1], [], []>} : vector<64x32xbf16>, vector<32x8xbf16>, vector<64x8xf32> -> vector<64x8xf32>
    %c0_15 = arith.constant 0 : index
    %c0_16 = arith.constant 0 : index
    %c0_17 = arith.constant 0 : index
    %17 = vector.load %arg6[%c0_15, %c0_16, %c0_17] : memref<4x1x8xf32, #tpu.memory_space<vmem>>, vector<1x1x8xf32>
    %18 = vector.shape_cast %17 : vector<1x1x8xf32> to vector<1x8xf32>
    %19 = vector.broadcast %18 : vector<1x8xf32> to vector<64x8xf32>
    %20 = arith.addf %16, %19 : vector<64x8xf32>
    %c0_18 = arith.constant 0 : index
    %c0_19 = arith.constant 0 : index
    %c0_20 = arith.constant 0 : index
    %21 = vector.load %arg7[%c0_18, %c0_19, %c0_20] : memref<4x32x8xbf16, #tpu.memory_space<vmem>>, vector<1x32x8xbf16>
    %22 = vector.shape_cast %21 : vector<1x32x8xbf16> to vector<32x8xbf16>
    %cst_21 = arith.constant dense<0.000000e+00> : vector<64x8xf32>
    %23 = tpu.matmul %6, %22, %cst_21 {dimension_numbers = #tpu.dot_dimension_numbers<[1], [0], [0], [1], [0, 0, 1, 1], [], []>} : vector<64x32xbf16>, vector<32x8xbf16>, vector<64x8xf32> -> vector<64x8xf32>
    %c0_22 = arith.constant 0 : index
    %c0_23 = arith.constant 0 : index
    %c0_24 = arith.constant 0 : index
    %24 = vector.load %arg8[%c0_22, %c0_23, %c0_24] : memref<4x1x8xf32, #tpu.memory_space<vmem>>, vector<1x1x8xf32>
    %25 = vector.shape_cast %24 : vector<1x1x8xf32> to vector<1x8xf32>
    %26 = vector.broadcast %25 : vector<1x8xf32> to vector<64x8xf32>
    %27 = arith.addf %23, %26 : vector<64x8xf32>
    %28 = arith.truncf %13 : vector<64x8xf32> to vector<64x8xbf16>
    %29 = arith.truncf %20 : vector<64x8xf32> to vector<64x8xbf16>
    %cst_25 = arith.constant dense<0.000000e+00> : vector<64x64xf32>
    %30 = tpu.matmul %28, %29, %cst_25 {dimension_numbers = #tpu.dot_dimension_numbers<[1], [1], [0], [0], [0, 0, 1, 0], [], []>} : vector<64x8xbf16>, vector<64x8xbf16>, vector<64x64xf32> -> vector<64x64xf32>
    %cst_26 = arith.constant 0.353553385 : f32
    %31 = vector.broadcast %cst_26 : f32 to vector<64x64xf32>
    %32 = arith.mulf %30, %31 : vector<64x64xf32>
    %cst_27 = arith.constant dense<0xFF800000> : vector<64xf32>
    %33 = vector.multi_reduction <maximumf>, %32, %cst_27 [1] : vector<64x64xf32> to vector<64xf32>
    %34 = vector.shape_cast %33 : vector<64xf32> to vector<64x1xf32>
    %35 = vector.broadcast %34 : vector<64x1xf32> to vector<64x64xf32>
    %36 = arith.subf %32, %35 : vector<64x64xf32>
    %37 = math.exp %36 : vector<64x64xf32>
    %cst_28 = arith.constant dense<0.000000e+00> : vector<64xf32>
    %38 = vector.multi_reduction <add>, %37, %cst_28 [1] : vector<64x64xf32> to vector<64xf32>
    %39 = vector.shape_cast %38 : vector<64xf32> to vector<64x1xf32>
    %40 = tpu.reciprocal %39 {approx = true} : vector<64x1xf32> -> vector<64x1xf32>
    %41 = vector.broadcast %40 : vector<64x1xf32> to vector<64x64xf32>
    %42 = arith.mulf %37, %41 : vector<64x64xf32>
    %43 = arith.truncf %42 : vector<64x64xf32> to vector<64x64xbf16>
    %44 = arith.truncf %27 : vector<64x8xf32> to vector<64x8xbf16>
    %cst_29 = arith.constant dense<0.000000e+00> : vector<64x8xf32>
    %45 = tpu.matmul %43, %44, %cst_29 {dimension_numbers = #tpu.dot_dimension_numbers<[1], [0], [0], [1], [0, 0, 1, 1], [], []>} : vector<64x64xbf16>, vector<64x8xbf16>, vector<64x8xf32> -> vector<64x8xf32>
    %c1 = arith.constant 1 : index
    %c0_30 = arith.constant 0 : index
    %c0_31 = arith.constant 0 : index
    %46 = vector.load %arg3[%c1, %c0_30, %c0_31] : memref<4x32x8xbf16, #tpu.memory_space<vmem>>, vector<1x32x8xbf16>
    %47 = vector.shape_cast %46 : vector<1x32x8xbf16> to vector<32x8xbf16>
    %cst_32 = arith.constant dense<0.000000e+00> : vector<64x8xf32>
    %48 = tpu.matmul %5, %47, %cst_32 {dimension_numbers = #tpu.dot_dimension_numbers<[1], [0], [0], [1], [0, 0, 1, 1], [], []>} : vector<64x32xbf16>, vector<32x8xbf16>, vector<64x8xf32> -> vector<64x8xf32>
    %c1_33 = arith.constant 1 : index
    %c0_34 = arith.constant 0 : index
    %c0_35 = arith.constant 0 : index
    %49 = vector.load %arg4[%c1_33, %c0_34, %c0_35] : memref<4x1x8xf32, #tpu.memory_space<vmem>>, vector<1x1x8xf32>
    %50 = vector.shape_cast %49 : vector<1x1x8xf32> to vector<1x8xf32>
    %51 = vector.broadcast %50 : vector<1x8xf32> to vector<64x8xf32>
    %52 = arith.addf %48, %51 : vector<64x8xf32>
    %c1_36 = arith.constant 1 : index
    %c0_37 = arith.constant 0 : index
    %c0_38 = arith.constant 0 : index
    %53 = vector.load %arg5[%c1_36, %c0_37, %c0_38] : memref<4x32x8xbf16, #tpu.memory_space<vmem>>, vector<1x32x8xbf16>
    %54 = vector.shape_cast %53 : vector<1x32x8xbf16> to vector<32x8xbf16>
    %cst_39 = arith.constant dense<0.000000e+00> : vector<64x8xf32>
    %55 = tpu.matmul %5, %54, %cst_39 {dimension_numbers = #tpu.dot_dimension_numbers<[1], [0], [0], [1], [0, 0, 1, 1], [], []>} : vector<64x32xbf16>, vector<32x8xbf16>, vector<64x8xf32> -> vector<64x8xf32>
    %c1_40 = arith.constant 1 : index
    %c0_41 = arith.constant 0 : index
    %c0_42 = arith.constant 0 : index
    %56 = vector.load %arg6[%c1_40, %c0_41, %c0_42] : memref<4x1x8xf32, #tpu.memory_space<vmem>>, vector<1x1x8xf32>
    %57 = vector.shape_cast %56 : vector<1x1x8xf32> to vector<1x8xf32>
    %58 = vector.broadcast %57 : vector<1x8xf32> to vector<64x8xf32>
    %59 = arith.addf %55, %58 : vector<64x8xf32>
    %c1_43 = arith.constant 1 : index
    %c0_44 = arith.constant 0 : index
    %c0_45 = arith.constant 0 : index
    %60 = vector.load %arg7[%c1_43, %c0_44, %c0_45] : memref<4x32x8xbf16, #tpu.memory_space<vmem>>, vector<1x32x8xbf16>
    %61 = vector.shape_cast %60 : vector<1x32x8xbf16> to vector<32x8xbf16>
    %cst_46 = arith.constant dense<0.000000e+00> : vector<64x8xf32>
    %62 = tpu.matmul %6, %61, %cst_46 {dimension_numbers = #tpu.dot_dimension_numbers<[1], [0], [0], [1], [0, 0, 1, 1], [], []>} : vector<64x32xbf16>, vector<32x8xbf16>, vector<64x8xf32> -> vector<64x8xf32>
    %c1_47 = arith.constant 1 : index
    %c0_48 = arith.constant 0 : index
    %c0_49 = arith.constant 0 : index
    %63 = vector.load %arg8[%c1_47, %c0_48, %c0_49] : memref<4x1x8xf32, #tpu.memory_space<vmem>>, vector<1x1x8xf32>
    %64 = vector.shape_cast %63 : vector<1x1x8xf32> to vector<1x8xf32>
    %65 = vector.broadcast %64 : vector<1x8xf32> to vector<64x8xf32>
    %66 = arith.addf %62, %65 : vector<64x8xf32>
    %67 = arith.truncf %52 : vector<64x8xf32> to vector<64x8xbf16>
    %68 = arith.truncf %59 : vector<64x8xf32> to vector<64x8xbf16>
    %cst_50 = arith.constant dense<0.000000e+00> : vector<64x64xf32>
    %69 = tpu.matmul %67, %68, %cst_50 {dimension_numbers = #tpu.dot_dimension_numbers<[1], [1], [0], [0], [0, 0, 1, 0], [], []>} : vector<64x8xbf16>, vector<64x8xbf16>, vector<64x64xf32> -> vector<64x64xf32>
    %cst_51 = arith.constant 0.353553385 : f32
    %70 = vector.broadcast %cst_51 : f32 to vector<64x64xf32>
    %71 = arith.mulf %69, %70 : vector<64x64xf32>
    %cst_52 = arith.constant dense<0xFF800000> : vector<64xf32>
    %72 = vector.multi_reduction <maximumf>, %71, %cst_52 [1] : vector<64x64xf32> to vector<64xf32>
    %73 = vector.shape_cast %72 : vector<64xf32> to vector<64x1xf32>
    %74 = vector.broadcast %73 : vector<64x1xf32> to vector<64x64xf32>
    %75 = arith.subf %71, %74 : vector<64x64xf32>
    %76 = math.exp %75 : vector<64x64xf32>
    %cst_53 = arith.constant dense<0.000000e+00> : vector<64xf32>
    %77 = vector.multi_reduction <add>, %76, %cst_53 [1] : vector<64x64xf32> to vector<64xf32>
    %78 = vector.shape_cast %77 : vector<64xf32> to vector<64x1xf32>
    %79 = tpu.reciprocal %78 {approx = true} : vector<64x1xf32> -> vector<64x1xf32>
    %80 = vector.broadcast %79 : vector<64x1xf32> to vector<64x64xf32>
    %81 = arith.mulf %76, %80 : vector<64x64xf32>
    %82 = arith.truncf %81 : vector<64x64xf32> to vector<64x64xbf16>
    %83 = arith.truncf %66 : vector<64x8xf32> to vector<64x8xbf16>
    %cst_54 = arith.constant dense<0.000000e+00> : vector<64x8xf32>
    %84 = tpu.matmul %82, %83, %cst_54 {dimension_numbers = #tpu.dot_dimension_numbers<[1], [0], [0], [1], [0, 0, 1, 1], [], []>} : vector<64x64xbf16>, vector<64x8xbf16>, vector<64x8xf32> -> vector<64x8xf32>
    %c2 = arith.constant 2 : index
    %c0_55 = arith.constant 0 : index
    %c0_56 = arith.constant 0 : index
    %85 = vector.load %arg3[%c2, %c0_55, %c0_56] : memref<4x32x8xbf16, #tpu.memory_space<vmem>>, vector<1x32x8xbf16>
    %86 = vector.shape_cast %85 : vector<1x32x8xbf16> to vector<32x8xbf16>
    %cst_57 = arith.constant dense<0.000000e+00> : vector<64x8xf32>
    %87 = tpu.matmul %5, %86, %cst_57 {dimension_numbers = #tpu.dot_dimension_numbers<[1], [0], [0], [1], [0, 0, 1, 1], [], []>} : vector<64x32xbf16>, vector<32x8xbf16>, vector<64x8xf32> -> vector<64x8xf32>
    %c2_58 = arith.constant 2 : index
    %c0_59 = arith.constant 0 : index
    %c0_60 = arith.constant 0 : index
    %88 = vector.load %arg4[%c2_58, %c0_59, %c0_60] : memref<4x1x8xf32, #tpu.memory_space<vmem>>, vector<1x1x8xf32>
    %89 = vector.shape_cast %88 : vector<1x1x8xf32> to vector<1x8xf32>
    %90 = vector.broadcast %89 : vector<1x8xf32> to vector<64x8xf32>
    %91 = arith.addf %87, %90 : vector<64x8xf32>
    %c2_61 = arith.constant 2 : index
    %c0_62 = arith.constant 0 : index
    %c0_63 = arith.constant 0 : index
    %92 = vector.load %arg5[%c2_61, %c0_62, %c0_63] : memref<4x32x8xbf16, #tpu.memory_space<vmem>>, vector<1x32x8xbf16>
    %93 = vector.shape_cast %92 : vector<1x32x8xbf16> to vector<32x8xbf16>
    %cst_64 = arith.constant dense<0.000000e+00> : vector<64x8xf32>
    %94 = tpu.matmul %5, %93, %cst_64 {dimension_numbers = #tpu.dot_dimension_numbers<[1], [0], [0], [1], [0, 0, 1, 1], [], []>} : vector<64x32xbf16>, vector<32x8xbf16>, vector<64x8xf32> -> vector<64x8xf32>
    %c2_65 = arith.constant 2 : index
    %c0_66 = arith.constant 0 : index
    %c0_67 = arith.constant 0 : index
    %95 = vector.load %arg6[%c2_65, %c0_66, %c0_67] : memref<4x1x8xf32, #tpu.memory_space<vmem>>, vector<1x1x8xf32>
    %96 = vector.shape_cast %95 : vector<1x1x8xf32> to vector<1x8xf32>
    %97 = vector.broadcast %96 : vector<1x8xf32> to vector<64x8xf32>
    %98 = arith.addf %94, %97 : vector<64x8xf32>
    %c2_68 = arith.constant 2 : index
    %c0_69 = arith.constant 0 : index
    %c0_70 = arith.constant 0 : index
    %99 = vector.load %arg7[%c2_68, %c0_69, %c0_70] : memref<4x32x8xbf16, #tpu.memory_space<vmem>>, vector<1x32x8xbf16>
    %100 = vector.shape_cast %99 : vector<1x32x8xbf16> to vector<32x8xbf16>
    %cst_71 = arith.constant dense<0.000000e+00> : vector<64x8xf32>
    %101 = tpu.matmul %6, %100, %cst_71 {dimension_numbers = #tpu.dot_dimension_numbers<[1], [0], [0], [1], [0, 0, 1, 1], [], []>} : vector<64x32xbf16>, vector<32x8xbf16>, vector<64x8xf32> -> vector<64x8xf32>
    %c2_72 = arith.constant 2 : index
    %c0_73 = arith.constant 0 : index
    %c0_74 = arith.constant 0 : index
    %102 = vector.load %arg8[%c2_72, %c0_73, %c0_74] : memref<4x1x8xf32, #tpu.memory_space<vmem>>, vector<1x1x8xf32>
    %103 = vector.shape_cast %102 : vector<1x1x8xf32> to vector<1x8xf32>
    %104 = vector.broadcast %103 : vector<1x8xf32> to vector<64x8xf32>
    %105 = arith.addf %101, %104 : vector<64x8xf32>
    %106 = arith.truncf %91 : vector<64x8xf32> to vector<64x8xbf16>
    %107 = arith.truncf %98 : vector<64x8xf32> to vector<64x8xbf16>
    %cst_75 = arith.constant dense<0.000000e+00> : vector<64x64xf32>
    %108 = tpu.matmul %106, %107, %cst_75 {dimension_numbers = #tpu.dot_dimension_numbers<[1], [1], [0], [0], [0, 0, 1, 0], [], []>} : vector<64x8xbf16>, vector<64x8xbf16>, vector<64x64xf32> -> vector<64x64xf32>
    %cst_76 = arith.constant 0.353553385 : f32
    %109 = vector.broadcast %cst_76 : f32 to vector<64x64xf32>
    %110 = arith.mulf %108, %109 : vector<64x64xf32>
    %cst_77 = arith.constant dense<0xFF800000> : vector<64xf32>
    %111 = vector.multi_reduction <maximumf>, %110, %cst_77 [1] : vector<64x64xf32> to vector<64xf32>
    %112 = vector.shape_cast %111 : vector<64xf32> to vector<64x1xf32>
    %113 = vector.broadcast %112 : vector<64x1xf32> to vector<64x64xf32>
    %114 = arith.subf %110, %113 : vector<64x64xf32>
    %115 = math.exp %114 : vector<64x64xf32>
    %cst_78 = arith.constant dense<0.000000e+00> : vector<64xf32>
    %116 = vector.multi_reduction <add>, %115, %cst_78 [1] : vector<64x64xf32> to vector<64xf32>
    %117 = vector.shape_cast %116 : vector<64xf32> to vector<64x1xf32>
    %118 = tpu.reciprocal %117 {approx = true} : vector<64x1xf32> -> vector<64x1xf32>
    %119 = vector.broadcast %118 : vector<64x1xf32> to vector<64x64xf32>
    %120 = arith.mulf %115, %119 : vector<64x64xf32>
    %121 = arith.truncf %120 : vector<64x64xf32> to vector<64x64xbf16>
    %122 = arith.truncf %105 : vector<64x8xf32> to vector<64x8xbf16>
    %cst_79 = arith.constant dense<0.000000e+00> : vector<64x8xf32>
    %123 = tpu.matmul %121, %122, %cst_79 {dimension_numbers = #tpu.dot_dimension_numbers<[1], [0], [0], [1], [0, 0, 1, 1], [], []>} : vector<64x64xbf16>, vector<64x8xbf16>, vector<64x8xf32> -> vector<64x8xf32>
    %c3 = arith.constant 3 : index
    %c0_80 = arith.constant 0 : index
    %c0_81 = arith.constant 0 : index
    %124 = vector.load %arg3[%c3, %c0_80, %c0_81] : memref<4x32x8xbf16, #tpu.memory_space<vmem>>, vector<1x32x8xbf16>
    %125 = vector.shape_cast %124 : vector<1x32x8xbf16> to vector<32x8xbf16>
    %cst_82 = arith.constant dense<0.000000e+00> : vector<64x8xf32>
    %126 = tpu.matmul %5, %125, %cst_82 {dimension_numbers = #tpu.dot_dimension_numbers<[1], [0], [0], [1], [0, 0, 1, 1], [], []>} : vector<64x32xbf16>, vector<32x8xbf16>, vector<64x8xf32> -> vector<64x8xf32>
    %c3_83 = arith.constant 3 : index
    %c0_84 = arith.constant 0 : index
    %c0_85 = arith.constant 0 : index
    %127 = vector.load %arg4[%c3_83, %c0_84, %c0_85] : memref<4x1x8xf32, #tpu.memory_space<vmem>>, vector<1x1x8xf32>
    %128 = vector.shape_cast %127 : vector<1x1x8xf32> to vector<1x8xf32>
    %129 = vector.broadcast %128 : vector<1x8xf32> to vector<64x8xf32>
    %130 = arith.addf %126, %129 : vector<64x8xf32>
    %c3_86 = arith.constant 3 : index
    %c0_87 = arith.constant 0 : index
    %c0_88 = arith.constant 0 : index
    %131 = vector.load %arg5[%c3_86, %c0_87, %c0_88] : memref<4x32x8xbf16, #tpu.memory_space<vmem>>, vector<1x32x8xbf16>
    %132 = vector.shape_cast %131 : vector<1x32x8xbf16> to vector<32x8xbf16>
    %cst_89 = arith.constant dense<0.000000e+00> : vector<64x8xf32>
    %133 = tpu.matmul %5, %132, %cst_89 {dimension_numbers = #tpu.dot_dimension_numbers<[1], [0], [0], [1], [0, 0, 1, 1], [], []>} : vector<64x32xbf16>, vector<32x8xbf16>, vector<64x8xf32> -> vector<64x8xf32>
    %c3_90 = arith.constant 3 : index
    %c0_91 = arith.constant 0 : index
    %c0_92 = arith.constant 0 : index
    %134 = vector.load %arg6[%c3_90, %c0_91, %c0_92] : memref<4x1x8xf32, #tpu.memory_space<vmem>>, vector<1x1x8xf32>
    %135 = vector.shape_cast %134 : vector<1x1x8xf32> to vector<1x8xf32>
    %136 = vector.broadcast %135 : vector<1x8xf32> to vector<64x8xf32>
    %137 = arith.addf %133, %136 : vector<64x8xf32>
    %c3_93 = arith.constant 3 : index
    %c0_94 = arith.constant 0 : index
    %c0_95 = arith.constant 0 : index
    %138 = vector.load %arg7[%c3_93, %c0_94, %c0_95] : memref<4x32x8xbf16, #tpu.memory_space<vmem>>, vector<1x32x8xbf16>
    %139 = vector.shape_cast %138 : vector<1x32x8xbf16> to vector<32x8xbf16>
    %cst_96 = arith.constant dense<0.000000e+00> : vector<64x8xf32>
    %140 = tpu.matmul %6, %139, %cst_96 {dimension_numbers = #tpu.dot_dimension_numbers<[1], [0], [0], [1], [0, 0, 1, 1], [], []>} : vector<64x32xbf16>, vector<32x8xbf16>, vector<64x8xf32> -> vector<64x8xf32>
    %c3_97 = arith.constant 3 : index
    %c0_98 = arith.constant 0 : index
    %c0_99 = arith.constant 0 : index
    %141 = vector.load %arg8[%c3_97, %c0_98, %c0_99] : memref<4x1x8xf32, #tpu.memory_space<vmem>>, vector<1x1x8xf32>
    %142 = vector.shape_cast %141 : vector<1x1x8xf32> to vector<1x8xf32>
    %143 = vector.broadcast %142 : vector<1x8xf32> to vector<64x8xf32>
    %144 = arith.addf %140, %143 : vector<64x8xf32>
    %145 = arith.truncf %130 : vector<64x8xf32> to vector<64x8xbf16>
    %146 = arith.truncf %137 : vector<64x8xf32> to vector<64x8xbf16>
    %cst_100 = arith.constant dense<0.000000e+00> : vector<64x64xf32>
    %147 = tpu.matmul %145, %146, %cst_100 {dimension_numbers = #tpu.dot_dimension_numbers<[1], [1], [0], [0], [0, 0, 1, 0], [], []>} : vector<64x8xbf16>, vector<64x8xbf16>, vector<64x64xf32> -> vector<64x64xf32>
    %cst_101 = arith.constant 0.353553385 : f32
    %148 = vector.broadcast %cst_101 : f32 to vector<64x64xf32>
    %149 = arith.mulf %147, %148 : vector<64x64xf32>
    %cst_102 = arith.constant dense<0xFF800000> : vector<64xf32>
    %150 = vector.multi_reduction <maximumf>, %149, %cst_102 [1] : vector<64x64xf32> to vector<64xf32>
    %151 = vector.shape_cast %150 : vector<64xf32> to vector<64x1xf32>
    %152 = vector.broadcast %151 : vector<64x1xf32> to vector<64x64xf32>
    %153 = arith.subf %149, %152 : vector<64x64xf32>
    %154 = math.exp %153 : vector<64x64xf32>
    %cst_103 = arith.constant dense<0.000000e+00> : vector<64xf32>
    %155 = vector.multi_reduction <add>, %154, %cst_103 [1] : vector<64x64xf32> to vector<64xf32>
    %156 = vector.shape_cast %155 : vector<64xf32> to vector<64x1xf32>
    %157 = tpu.reciprocal %156 {approx = true} : vector<64x1xf32> -> vector<64x1xf32>
    %158 = vector.broadcast %157 : vector<64x1xf32> to vector<64x64xf32>
    %159 = arith.mulf %154, %158 : vector<64x64xf32>
    %160 = arith.truncf %159 : vector<64x64xf32> to vector<64x64xbf16>
    %161 = arith.truncf %144 : vector<64x8xf32> to vector<64x8xbf16>
    %cst_104 = arith.constant dense<0.000000e+00> : vector<64x8xf32>
    %162 = tpu.matmul %160, %161, %cst_104 {dimension_numbers = #tpu.dot_dimension_numbers<[1], [0], [0], [1], [0, 0, 1, 1], [], []>} : vector<64x64xbf16>, vector<64x8xbf16>, vector<64x8xf32> -> vector<64x8xf32>
    %163 = tpu.concatenate %45, %84, %123, %162 in 1 : vector<64x8xf32>, vector<64x8xf32>, vector<64x8xf32>, vector<64x8xf32> -> vector<64x32xf32>
    %164 = arith.truncf %163 : vector<64x32xf32> to vector<64x32xbf16>
    %c0_105 = arith.constant 0 : index
    %c0_106 = arith.constant 0 : index
    %165 = vector.load %arg9[%c0_105, %c0_106] : memref<32x32xbf16, #tpu.memory_space<vmem>>, vector<32x32xbf16>
    %cst_107 = arith.constant dense<0.000000e+00> : vector<64x32xf32>
    %166 = tpu.matmul %164, %165, %cst_107 {dimension_numbers = #tpu.dot_dimension_numbers<[1], [0], [0], [1], [0, 0, 1, 1], [], []>} : vector<64x32xbf16>, vector<32x32xbf16>, vector<64x32xf32> -> vector<64x32xf32>
    %c0_108 = arith.constant 0 : index
    %c0_109 = arith.constant 0 : index
    %167 = vector.load %arg10[%c0_108, %c0_109] : memref<1x32xf32, #tpu.memory_space<vmem>>, vector<1x32xf32>
    %168 = vector.broadcast %167 : vector<1x32xf32> to vector<64x32xf32>
    %169 = arith.addf %166, %168 : vector<64x32xf32>
    %170 = arith.addf %1, %169 : vector<64x32xf32>
    %cst_110 = arith.constant dense<0.000000e+00> : vector<64xf32>
    %171 = vector.multi_reduction <add>, %170, %cst_110 [1] : vector<64x32xf32> to vector<64xf32>
    %172 = vector.shape_cast %171 : vector<64xf32> to vector<64x1xf32>
    %cst_111 = arith.constant 3.200000e+01 : f32
    %173 = vector.broadcast %cst_111 : f32 to vector<64x1xf32>
    %174 = arith.divf %172, %173 : vector<64x1xf32>
    %175 = vector.broadcast %174 : vector<64x1xf32> to vector<64x32xf32>
    %176 = arith.subf %170, %175 : vector<64x32xf32>
    %177 = arith.mulf %176, %176 : vector<64x32xf32>
    %cst_112 = arith.constant dense<0.000000e+00> : vector<64xf32>
    %178 = vector.multi_reduction <add>, %177, %cst_112 [1] : vector<64x32xf32> to vector<64xf32>
    %179 = vector.shape_cast %178 : vector<64xf32> to vector<64x1xf32>
    %cst_113 = arith.constant 3.200000e+01 : f32
    %180 = vector.broadcast %cst_113 : f32 to vector<64x1xf32>
    %181 = arith.divf %179, %180 : vector<64x1xf32>
    %182 = vector.broadcast %174 : vector<64x1xf32> to vector<64x32xf32>
    %183 = arith.subf %170, %182 : vector<64x32xf32>
    %cst_114 = arith.constant 9.99999974E-6 : f32
    %184 = vector.broadcast %cst_114 : f32 to vector<64x1xf32>
    %185 = arith.addf %181, %184 : vector<64x1xf32>
    %186 = math.rsqrt %185 : vector<64x1xf32>
    %187 = vector.broadcast %186 : vector<64x1xf32> to vector<64x32xf32>
    %188 = arith.mulf %183, %187 : vector<64x32xf32>
    %c0_115 = arith.constant 0 : index
    %c0_116 = arith.constant 0 : index
    %189 = vector.load %arg11[%c0_115, %c0_116] : memref<1x32xf32, #tpu.memory_space<vmem>>, vector<1x32xf32>
    %190 = vector.broadcast %189 : vector<1x32xf32> to vector<64x32xf32>
    %191 = arith.mulf %188, %190 : vector<64x32xf32>
    %c0_117 = arith.constant 0 : index
    %c0_118 = arith.constant 0 : index
    %192 = vector.load %arg12[%c0_117, %c0_118] : memref<1x32xf32, #tpu.memory_space<vmem>>, vector<1x32xf32>
    %193 = vector.broadcast %192 : vector<1x32xf32> to vector<64x32xf32>
    %194 = arith.addf %191, %193 : vector<64x32xf32>
    %c0_119 = arith.constant 0 : index
    %c0_120 = arith.constant 0 : index
    %c0_121 = arith.constant 0 : index
    %195 = vector.load %arg15[%c0_119, %c0_120, %c0_121] : memref<1x64x32xf32, #tpu.memory_space<vmem>>, vector<1x64x32xf32>
    %196 = vector.shape_cast %195 : vector<1x64x32xf32> to vector<64x32xf32>
    %197 = vector.shape_cast %194 : vector<64x32xf32> to vector<1x64x32xf32>
    tpu.vector_store %arg15[%c0_119, %c0_120, %c0_121], %197 {strides = array<i32>} : memref<1x64x32xf32, #tpu.memory_space<vmem>>, vector<1x64x32xf32>,
    %198 = arith.addf %194, %3 : vector<64x32xf32>
    %199 = arith.truncf %198 : vector<64x32xf32> to vector<64x32xbf16>
    %c0_122 = arith.constant 0 : index
    %c0_123 = arith.constant 0 : index
    %200 = vector.load %arg13[%c0_122, %c0_123] : memref<32x96xbf16, #tpu.memory_space<vmem>>, vector<32x96xbf16>
    %cst_124 = arith.constant dense<0.000000e+00> : vector<64x96xf32>
    %201 = tpu.matmul %199, %200, %cst_124 {dimension_numbers = #tpu.dot_dimension_numbers<[1], [0], [0], [1], [0, 0, 1, 1], [], []>} : vector<64x32xbf16>, vector<32x96xbf16>, vector<64x96xf32> -> vector<64x96xf32>
    %c0_125 = arith.constant 0 : index
    %c0_126 = arith.constant 0 : index
    %202 = vector.load %arg14[%c0_125, %c0_126] : memref<1x96xf32, #tpu.memory_space<vmem>>, vector<1x96xf32>
    %203 = vector.broadcast %202 : vector<1x96xf32> to vector<64x96xf32>
    %204 = arith.addf %201, %203 : vector<64x96xf32>
    %c0_127 = arith.constant 0 : index
    %c0_128 = arith.constant 0 : index
    %c0_129 = arith.constant 0 : index
    %205 = vector.load %arg16[%c0_127, %c0_128, %c0_129] : memref<1x64x96xf32, #tpu.memory_space<vmem>>, vector<1x64x96xf32>
    %206 = vector.shape_cast %205 : vector<1x64x96xf32> to vector<64x96xf32>
    %207 = vector.shape_cast %204 : vector<64x96xf32> to vector<1x64x96xf32>
    tpu.vector_store %arg16[%c0_127, %c0_128, %c0_129], %207 {strides = array<i32>} : memref<1x64x96xf32, #tpu.memory_space<vmem>>, vector<1x64x96xf32>,
    return
  }
  func.func @transform_0(%arg0: i32) -> (i32, i32, i32) {
    %c0_i32 = arith.constant 0 : i32
    %c0_i32_0 = arith.constant 0 : i32
    %c0_i32_1 = arith.constant 0 : i32
    return %arg0, %c0_i32, %c0_i32_0 : i32, i32, i32
  }
  func.func @transform_1(%arg0: i32) -> (i32, i32, i32) {
    %c0_i32 = arith.constant 0 : i32
    %c0_i32_0 = arith.constant 0 : i32
    %c0_i32_1 = arith.constant 0 : i32
    return %arg0, %c0_i32, %c0_i32_0 : i32, i32, i32
  }
  func.func @transform_2(%arg0: i32) -> (i32, i32, i32) {
    %c0_i32 = arith.constant 0 : i32
    %c0_i32_0 = arith.constant 0 : i32
    %c0_i32_1 = arith.constant 0 : i32
    %c0_i32_2 = arith.constant 0 : i32
    return %c0_i32, %c0_i32_0, %c0_i32_1 : i32, i32, i32
  }
  func.func @transform_3(%arg0: i32) -> (i32, i32, i32) {
    %c0_i32 = arith.constant 0 : i32
    %c0_i32_0 = arith.constant 0 : i32
    %c0_i32_1 = arith.constant 0 : i32
    %c0_i32_2 = arith.constant 0 : i32
    return %c0_i32, %c0_i32_0, %c0_i32_1 : i32, i32, i32
  }
  func.func @transform_4(%arg0: i32) -> (i32, i32, i32) {
    %c0_i32 = arith.constant 0 : i32
    %c0_i32_0 = arith.constant 0 : i32
    %c0_i32_1 = arith.constant 0 : i32
    %c0_i32_2 = arith.constant 0 : i32
    return %c0_i32, %c0_i32_0, %c0_i32_1 : i32, i32, i32
  }
  func.func @transform_5(%arg0: i32) -> (i32, i32, i32) {
    %c0_i32 = arith.constant 0 : i32
    %c0_i32_0 = arith.constant 0 : i32
    %c0_i32_1 = arith.constant 0 : i32
    %c0_i32_2 = arith.constant 0 : i32
    return %c0_i32, %c0_i32_0, %c0_i32_1 : i32, i32, i32
  }
  func.func @transform_6(%arg0: i32) -> (i32, i32, i32) {
    %c0_i32 = arith.constant 0 : i32
    %c0_i32_0 = arith.constant 0 : i32
    %c0_i32_1 = arith.constant 0 : i32
    %c0_i32_2 = arith.constant 0 : i32
    return %c0_i32, %c0_i32_0, %c0_i32_1 : i32, i32, i32
  }
  func.func @transform_7(%arg0: i32) -> (i32, i32, i32) {
    %c0_i32 = arith.constant 0 : i32
    %c0_i32_0 = arith.constant 0 : i32
    %c0_i32_1 = arith.constant 0 : i32
    %c0_i32_2 = arith.constant 0 : i32
    return %c0_i32, %c0_i32_0, %c0_i32_1 : i32, i32, i32
  }
  func.func @transform_8(%arg0: i32) -> (i32, i32) {
    %c0_i32 = arith.constant 0 : i32
    %c0_i32_0 = arith.constant 0 : i32
    %c0_i32_1 = arith.constant 0 : i32
    return %c0_i32, %c0_i32_0 : i32, i32
  }
  func.func @transform_9(%arg0: i32) -> (i32, i32) {
    %c0_i32 = arith.constant 0 : i32
    %c0_i32_0 = arith.constant 0 : i32
    %c0_i32_1 = arith.constant 0 : i32
    return %c0_i32, %c0_i32_0 : i32, i32
  }
  func.func @transform_10(%arg0: i32) -> (i32, i32) {
    %c0_i32 = arith.constant 0 : i32
    %c0_i32_0 = arith.constant 0 : i32
    %c0_i32_1 = arith.constant 0 : i32
    return %c0_i32, %c0_i32_0 : i32, i32
  }
  func.func @transform_11(%arg0: i32) -> (i32, i32) {
    %c0_i32 = arith.constant 0 : i32
    %c0_i32_0 = arith.constant 0 : i32
    %c0_i32_1 = arith.constant 0 : i32
    return %c0_i32, %c0_i32_0 : i32, i32
  }
  func.func @transform_12(%arg0: i32) -> (i32, i32) {
    %c0_i32 = arith.constant 0 : i32
    %c0_i32_0 = arith.constant 0 : i32
    %c0_i32_1 = arith.constant 0 : i32
    return %c0_i32, %c0_i32_0 : i32, i32
  }
  func.func @transform_13(%arg0: i32) -> (i32, i32) {
    %c0_i32 = arith.constant 0 : i32
    %c0_i32_0 = arith.constant 0 : i32
    %c0_i32_1 = arith.constant 0 : i32
    return %c0_i32, %c0_i32_0 : i32, i32
  }
  func.func @transform_14(%arg0: i32) -> (i32, i32, i32) {
    %c0_i32 = arith.constant 0 : i32
    %c0_i32_0 = arith.constant 0 : i32
    %c0_i32_1 = arith.constant 0 : i32
    return %arg0, %c0_i32, %c0_i32_0 : i32, i32, i32
  }
  func.func @transform_15(%arg0: i32) -> (i32, i32, i32) {
    %c0_i32 = arith.constant 0 : i32
    %c0_i32_0 = arith.constant 0 : i32
    %c0_i32_1 = arith.constant 0 : i32
    return %arg0, %c0_i32, %c0_i32_0 : i32, i32, i32
  }
}

module attributes {stable_mosaic.version = 11 : i64} {
  func.func @_self_attn_oa_kernel(%arg0: i32, %arg1: memref<1x16x32xf32, #tpu.memory_space<vmem>>, %arg2: memref<1x16x32xf32, #tpu.memory_space<vmem>>, %arg3: memref<4x32x8xbf16, #tpu.memory_space<vmem>>, %arg4: memref<4x1x8xf32, #tpu.memory_space<vmem>>, %arg5: memref<4x32x8xbf16, #tpu.memory_space<vmem>>, %arg6: memref<4x1x8xf32, #tpu.memory_space<vmem>>, %arg7: memref<4x32x8xbf16, #tpu.memory_space<vmem>>, %arg8: memref<4x1x8xf32, #tpu.memory_space<vmem>>, %arg9: memref<32x32xbf16, #tpu.memory_space<vmem>>, %arg10: memref<1x32xf32, #tpu.memory_space<vmem>>, %arg11: memref<1x32xf32, #tpu.memory_space<vmem>>, %arg12: memref<1x32xf32, #tpu.memory_space<vmem>>, %arg13: memref<32x24xbf16, #tpu.memory_space<vmem>>, %arg14: memref<1x24xf32, #tpu.memory_space<vmem>>, %arg15: memref<1x16x32xf32, #tpu.memory_space<vmem>>, %arg16: memref<1x16x24xf32, #tpu.memory_space<vmem>>) attributes {dimension_semantics = [#tpu.dimension_semantics<parallel>], iteration_bounds = array<i64: 2>, scalar_prefetch = 0 : i64, scratch_operands = 0 : i64, tpu.core_type = #tpu.core_type<tc>, window_params = [{transform_indices = @transform_0, window_bounds = array<i64: 1, 16, 32>}, {transform_indices = @transform_1, window_bounds = array<i64: 1, 16, 32>}, {pipeline_mode = #tpu.pipeline_mode<synchronous>, transform_indices = @transform_2, window_bounds = array<i64: 4, 32, 8>}, {pipeline_mode = #tpu.pipeline_mode<synchronous>, transform_indices = @transform_3, window_bounds = array<i64: 4, 1, 8>}, {pipeline_mode = #tpu.pipeline_mode<synchronous>, transform_indices = @transform_4, window_bounds = array<i64: 4, 32, 8>}, {pipeline_mode = #tpu.pipeline_mode<synchronous>, transform_indices = @transform_5, window_bounds = array<i64: 4, 1, 8>}, {pipeline_mode = #tpu.pipeline_mode<synchronous>, transform_indices = @transform_6, window_bounds = array<i64: 4, 32, 8>}, {pipeline_mode = #tpu.pipeline_mode<synchronous>, transform_indices = @transform_7, window_bounds = array<i64: 4, 1, 8>}, {pipeline_mode = #tpu.pipeline_mode<synchronous>, transform_indices = @transform_8, window_bounds = array<i64: 32, 32>}, {pipeline_mode = #tpu.pipeline_mode<synchronous>, transform_indices = @transform_9, window_bounds = array<i64: 1, 32>}, {pipeline_mode = #tpu.pipeline_mode<synchronous>, transform_indices = @transform_10, window_bounds = array<i64: 1, 32>}, {pipeline_mode = #tpu.pipeline_mode<synchronous>, transform_indices = @transform_11, window_bounds = array<i64: 1, 32>}, {pipeline_mode = #tpu.pipeline_mode<synchronous>, transform_indices = @transform_12, window_bounds = array<i64: 32, 24>}, {pipeline_mode = #tpu.pipeline_mode<synchronous>, transform_indices = @transform_13, window_bounds = array<i64: 1, 24>}, {transform_indices = @transform_14, window_bounds = array<i64: 1, 16, 32>}, {transform_indices = @transform_15, window_bounds = array<i64: 1, 16, 24>}]} {
    %c0 = arith.constant 0 : index
    %c0_0 = arith.constant 0 : index
    %c0_1 = arith.constant 0 : index
    %0 = vector.load %arg1[%c0, %c0_0, %c0_1] : memref<1x16x32xf32, #tpu.memory_space<vmem>>, vector<1x16x32xf32>
    %1 = vector.shape_cast %0 : vector<1x16x32xf32> to vector<16x32xf32>
    %c0_2 = arith.constant 0 : index
    %c0_3 = arith.constant 0 : index
    %c0_4 = arith.constant 0 : index
    %2 = vector.load %arg2[%c0_2, %c0_3, %c0_4] : memref<1x16x32xf32, #tpu.memory_space<vmem>>, vector<1x16x32xf32>
    %3 = vector.shape_cast %2 : vector<1x16x32xf32> to vector<16x32xf32>
    %4 = arith.addf %1, %3 : vector<16x32xf32>
    %5 = arith.truncf %4 : vector<16x32xf32> to vector<16x32xbf16>
    %6 = arith.truncf %1 : vector<16x32xf32> to vector<16x32xbf16>
    %c0_5 = arith.constant 0 : index
    %c0_6 = arith.constant 0 : index
    %c0_7 = arith.constant 0 : index
    %7 = vector.load %arg3[%c0_5, %c0_6, %c0_7] : memref<4x32x8xbf16, #tpu.memory_space<vmem>>, vector<1x32x8xbf16>
    %8 = vector.shape_cast %7 : vector<1x32x8xbf16> to vector<32x8xbf16>
    %cst = arith.constant dense<0.000000e+00> : vector<16x8xf32>
    %9 = tpu.matmul %5, %8, %cst {dimension_numbers = #tpu.dot_dimension_numbers<[1], [0], [0], [1], [0, 0, 1, 1], [], []>} : vector<16x32xbf16>, vector<32x8xbf16>, vector<16x8xf32> -> vector<16x8xf32>
    %c0_8 = arith.constant 0 : index
    %c0_9 = arith.constant 0 : index
    %c0_10 = arith.constant 0 : index
    %10 = vector.load %arg4[%c0_8, %c0_9, %c0_10] : memref<4x1x8xf32, #tpu.memory_space<vmem>>, vector<1x1x8xf32>
    %11 = vector.shape_cast %10 : vector<1x1x8xf32> to vector<1x8xf32>
    %12 = vector.broadcast %11 : vector<1x8xf32> to vector<16x8xf32>
    %13 = arith.addf %9, %12 : vector<16x8xf32>
    %c0_11 = arith.constant 0 : index
    %c0_12 = arith.constant 0 : index
    %c0_13 = arith.constant 0 : index
    %14 = vector.load %arg5[%c0_11, %c0_12, %c0_13] : memref<4x32x8xbf16, #tpu.memory_space<vmem>>, vector<1x32x8xbf16>
    %15 = vector.shape_cast %14 : vector<1x32x8xbf16> to vector<32x8xbf16>
    %cst_14 = arith.constant dense<0.000000e+00> : vector<16x8xf32>
    %16 = tpu.matmul %5, %15, %cst_14 {dimension_numbers = #tpu.dot_dimension_numbers<[1], [0], [0], [1], [0, 0, 1, 1], [], []>} : vector<16x32xbf16>, vector<32x8xbf16>, vector<16x8xf32> -> vector<16x8xf32>
    %c0_15 = arith.constant 0 : index
    %c0_16 = arith.constant 0 : index
    %c0_17 = arith.constant 0 : index
    %17 = vector.load %arg6[%c0_15, %c0_16, %c0_17] : memref<4x1x8xf32, #tpu.memory_space<vmem>>, vector<1x1x8xf32>
    %18 = vector.shape_cast %17 : vector<1x1x8xf32> to vector<1x8xf32>
    %19 = vector.broadcast %18 : vector<1x8xf32> to vector<16x8xf32>
    %20 = arith.addf %16, %19 : vector<16x8xf32>
    %c0_18 = arith.constant 0 : index
    %c0_19 = arith.constant 0 : index
    %c0_20 = arith.constant 0 : index
    %21 = vector.load %arg7[%c0_18, %c0_19, %c0_20] : memref<4x32x8xbf16, #tpu.memory_space<vmem>>, vector<1x32x8xbf16>
    %22 = vector.shape_cast %21 : vector<1x32x8xbf16> to vector<32x8xbf16>
    %cst_21 = arith.constant dense<0.000000e+00> : vector<16x8xf32>
    %23 = tpu.matmul %6, %22, %cst_21 {dimension_numbers = #tpu.dot_dimension_numbers<[1], [0], [0], [1], [0, 0, 1, 1], [], []>} : vector<16x32xbf16>, vector<32x8xbf16>, vector<16x8xf32> -> vector<16x8xf32>
    %c0_22 = arith.constant 0 : index
    %c0_23 = arith.constant 0 : index
    %c0_24 = arith.constant 0 : index
    %24 = vector.load %arg8[%c0_22, %c0_23, %c0_24] : memref<4x1x8xf32, #tpu.memory_space<vmem>>, vector<1x1x8xf32>
    %25 = vector.shape_cast %24 : vector<1x1x8xf32> to vector<1x8xf32>
    %26 = vector.broadcast %25 : vector<1x8xf32> to vector<16x8xf32>
    %27 = arith.addf %23, %26 : vector<16x8xf32>
    %28 = arith.truncf %13 : vector<16x8xf32> to vector<16x8xbf16>
    %29 = arith.truncf %20 : vector<16x8xf32> to vector<16x8xbf16>
    %cst_25 = arith.constant dense<0.000000e+00> : vector<16x16xf32>
    %30 = tpu.matmul %28, %29, %cst_25 {dimension_numbers = #tpu.dot_dimension_numbers<[1], [1], [0], [0], [0, 0, 1, 0], [], []>} : vector<16x8xbf16>, vector<16x8xbf16>, vector<16x16xf32> -> vector<16x16xf32>
    %cst_26 = arith.constant 0.353553385 : f32
    %31 = vector.broadcast %cst_26 : f32 to vector<16x16xf32>
    %32 = arith.mulf %30, %31 : vector<16x16xf32>
    %cst_27 = arith.constant dense<0xFF800000> : vector<16xf32>
    %33 = vector.multi_reduction <maximumf>, %32, %cst_27 [1] : vector<16x16xf32> to vector<16xf32>
    %34 = vector.shape_cast %33 : vector<16xf32> to vector<16x1xf32>
    %35 = vector.broadcast %34 : vector<16x1xf32> to vector<16x16xf32>
    %36 = arith.subf %32, %35 : vector<16x16xf32>
    %37 = math.exp %36 : vector<16x16xf32>
    %cst_28 = arith.constant dense<0.000000e+00> : vector<16xf32>
    %38 = vector.multi_reduction <add>, %37, %cst_28 [1] : vector<16x16xf32> to vector<16xf32>
    %39 = vector.shape_cast %38 : vector<16xf32> to vector<16x1xf32>
    %40 = tpu.reciprocal %39 {approx = true} : vector<16x1xf32> -> vector<16x1xf32>
    %41 = vector.broadcast %40 : vector<16x1xf32> to vector<16x16xf32>
    %42 = arith.mulf %37, %41 : vector<16x16xf32>
    %43 = arith.truncf %42 : vector<16x16xf32> to vector<16x16xbf16>
    %44 = arith.truncf %27 : vector<16x8xf32> to vector<16x8xbf16>
    %cst_29 = arith.constant dense<0.000000e+00> : vector<16x8xf32>
    %45 = tpu.matmul %43, %44, %cst_29 {dimension_numbers = #tpu.dot_dimension_numbers<[1], [0], [0], [1], [0, 0, 1, 1], [], []>} : vector<16x16xbf16>, vector<16x8xbf16>, vector<16x8xf32> -> vector<16x8xf32>
    %c1 = arith.constant 1 : index
    %c0_30 = arith.constant 0 : index
    %c0_31 = arith.constant 0 : index
    %46 = vector.load %arg3[%c1, %c0_30, %c0_31] : memref<4x32x8xbf16, #tpu.memory_space<vmem>>, vector<1x32x8xbf16>
    %47 = vector.shape_cast %46 : vector<1x32x8xbf16> to vector<32x8xbf16>
    %cst_32 = arith.constant dense<0.000000e+00> : vector<16x8xf32>
    %48 = tpu.matmul %5, %47, %cst_32 {dimension_numbers = #tpu.dot_dimension_numbers<[1], [0], [0], [1], [0, 0, 1, 1], [], []>} : vector<16x32xbf16>, vector<32x8xbf16>, vector<16x8xf32> -> vector<16x8xf32>
    %c1_33 = arith.constant 1 : index
    %c0_34 = arith.constant 0 : index
    %c0_35 = arith.constant 0 : index
    %49 = vector.load %arg4[%c1_33, %c0_34, %c0_35] : memref<4x1x8xf32, #tpu.memory_space<vmem>>, vector<1x1x8xf32>
    %50 = vector.shape_cast %49 : vector<1x1x8xf32> to vector<1x8xf32>
    %51 = vector.broadcast %50 : vector<1x8xf32> to vector<16x8xf32>
    %52 = arith.addf %48, %51 : vector<16x8xf32>
    %c1_36 = arith.constant 1 : index
    %c0_37 = arith.constant 0 : index
    %c0_38 = arith.constant 0 : index
    %53 = vector.load %arg5[%c1_36, %c0_37, %c0_38] : memref<4x32x8xbf16, #tpu.memory_space<vmem>>, vector<1x32x8xbf16>
    %54 = vector.shape_cast %53 : vector<1x32x8xbf16> to vector<32x8xbf16>
    %cst_39 = arith.constant dense<0.000000e+00> : vector<16x8xf32>
    %55 = tpu.matmul %5, %54, %cst_39 {dimension_numbers = #tpu.dot_dimension_numbers<[1], [0], [0], [1], [0, 0, 1, 1], [], []>} : vector<16x32xbf16>, vector<32x8xbf16>, vector<16x8xf32> -> vector<16x8xf32>
    %c1_40 = arith.constant 1 : index
    %c0_41 = arith.constant 0 : index
    %c0_42 = arith.constant 0 : index
    %56 = vector.load %arg6[%c1_40, %c0_41, %c0_42] : memref<4x1x8xf32, #tpu.memory_space<vmem>>, vector<1x1x8xf32>
    %57 = vector.shape_cast %56 : vector<1x1x8xf32> to vector<1x8xf32>
    %58 = vector.broadcast %57 : vector<1x8xf32> to vector<16x8xf32>
    %59 = arith.addf %55, %58 : vector<16x8xf32>
    %c1_43 = arith.constant 1 : index
    %c0_44 = arith.constant 0 : index
    %c0_45 = arith.constant 0 : index
    %60 = vector.load %arg7[%c1_43, %c0_44, %c0_45] : memref<4x32x8xbf16, #tpu.memory_space<vmem>>, vector<1x32x8xbf16>
    %61 = vector.shape_cast %60 : vector<1x32x8xbf16> to vector<32x8xbf16>
    %cst_46 = arith.constant dense<0.000000e+00> : vector<16x8xf32>
    %62 = tpu.matmul %6, %61, %cst_46 {dimension_numbers = #tpu.dot_dimension_numbers<[1], [0], [0], [1], [0, 0, 1, 1], [], []>} : vector<16x32xbf16>, vector<32x8xbf16>, vector<16x8xf32> -> vector<16x8xf32>
    %c1_47 = arith.constant 1 : index
    %c0_48 = arith.constant 0 : index
    %c0_49 = arith.constant 0 : index
    %63 = vector.load %arg8[%c1_47, %c0_48, %c0_49] : memref<4x1x8xf32, #tpu.memory_space<vmem>>, vector<1x1x8xf32>
    %64 = vector.shape_cast %63 : vector<1x1x8xf32> to vector<1x8xf32>
    %65 = vector.broadcast %64 : vector<1x8xf32> to vector<16x8xf32>
    %66 = arith.addf %62, %65 : vector<16x8xf32>
    %67 = arith.truncf %52 : vector<16x8xf32> to vector<16x8xbf16>
    %68 = arith.truncf %59 : vector<16x8xf32> to vector<16x8xbf16>
    %cst_50 = arith.constant dense<0.000000e+00> : vector<16x16xf32>
    %69 = tpu.matmul %67, %68, %cst_50 {dimension_numbers = #tpu.dot_dimension_numbers<[1], [1], [0], [0], [0, 0, 1, 0], [], []>} : vector<16x8xbf16>, vector<16x8xbf16>, vector<16x16xf32> -> vector<16x16xf32>
    %cst_51 = arith.constant 0.353553385 : f32
    %70 = vector.broadcast %cst_51 : f32 to vector<16x16xf32>
    %71 = arith.mulf %69, %70 : vector<16x16xf32>
    %cst_52 = arith.constant dense<0xFF800000> : vector<16xf32>
    %72 = vector.multi_reduction <maximumf>, %71, %cst_52 [1] : vector<16x16xf32> to vector<16xf32>
    %73 = vector.shape_cast %72 : vector<16xf32> to vector<16x1xf32>
    %74 = vector.broadcast %73 : vector<16x1xf32> to vector<16x16xf32>
    %75 = arith.subf %71, %74 : vector<16x16xf32>
    %76 = math.exp %75 : vector<16x16xf32>
    %cst_53 = arith.constant dense<0.000000e+00> : vector<16xf32>
    %77 = vector.multi_reduction <add>, %76, %cst_53 [1] : vector<16x16xf32> to vector<16xf32>
    %78 = vector.shape_cast %77 : vector<16xf32> to vector<16x1xf32>
    %79 = tpu.reciprocal %78 {approx = true} : vector<16x1xf32> -> vector<16x1xf32>
    %80 = vector.broadcast %79 : vector<16x1xf32> to vector<16x16xf32>
    %81 = arith.mulf %76, %80 : vector<16x16xf32>
    %82 = arith.truncf %81 : vector<16x16xf32> to vector<16x16xbf16>
    %83 = arith.truncf %66 : vector<16x8xf32> to vector<16x8xbf16>
    %cst_54 = arith.constant dense<0.000000e+00> : vector<16x8xf32>
    %84 = tpu.matmul %82, %83, %cst_54 {dimension_numbers = #tpu.dot_dimension_numbers<[1], [0], [0], [1], [0, 0, 1, 1], [], []>} : vector<16x16xbf16>, vector<16x8xbf16>, vector<16x8xf32> -> vector<16x8xf32>
    %c2 = arith.constant 2 : index
    %c0_55 = arith.constant 0 : index
    %c0_56 = arith.constant 0 : index
    %85 = vector.load %arg3[%c2, %c0_55, %c0_56] : memref<4x32x8xbf16, #tpu.memory_space<vmem>>, vector<1x32x8xbf16>
    %86 = vector.shape_cast %85 : vector<1x32x8xbf16> to vector<32x8xbf16>
    %cst_57 = arith.constant dense<0.000000e+00> : vector<16x8xf32>
    %87 = tpu.matmul %5, %86, %cst_57 {dimension_numbers = #tpu.dot_dimension_numbers<[1], [0], [0], [1], [0, 0, 1, 1], [], []>} : vector<16x32xbf16>, vector<32x8xbf16>, vector<16x8xf32> -> vector<16x8xf32>
    %c2_58 = arith.constant 2 : index
    %c0_59 = arith.constant 0 : index
    %c0_60 = arith.constant 0 : index
    %88 = vector.load %arg4[%c2_58, %c0_59, %c0_60] : memref<4x1x8xf32, #tpu.memory_space<vmem>>, vector<1x1x8xf32>
    %89 = vector.shape_cast %88 : vector<1x1x8xf32> to vector<1x8xf32>
    %90 = vector.broadcast %89 : vector<1x8xf32> to vector<16x8xf32>
    %91 = arith.addf %87, %90 : vector<16x8xf32>
    %c2_61 = arith.constant 2 : index
    %c0_62 = arith.constant 0 : index
    %c0_63 = arith.constant 0 : index
    %92 = vector.load %arg5[%c2_61, %c0_62, %c0_63] : memref<4x32x8xbf16, #tpu.memory_space<vmem>>, vector<1x32x8xbf16>
    %93 = vector.shape_cast %92 : vector<1x32x8xbf16> to vector<32x8xbf16>
    %cst_64 = arith.constant dense<0.000000e+00> : vector<16x8xf32>
    %94 = tpu.matmul %5, %93, %cst_64 {dimension_numbers = #tpu.dot_dimension_numbers<[1], [0], [0], [1], [0, 0, 1, 1], [], []>} : vector<16x32xbf16>, vector<32x8xbf16>, vector<16x8xf32> -> vector<16x8xf32>
    %c2_65 = arith.constant 2 : index
    %c0_66 = arith.constant 0 : index
    %c0_67 = arith.constant 0 : index
    %95 = vector.load %arg6[%c2_65, %c0_66, %c0_67] : memref<4x1x8xf32, #tpu.memory_space<vmem>>, vector<1x1x8xf32>
    %96 = vector.shape_cast %95 : vector<1x1x8xf32> to vector<1x8xf32>
    %97 = vector.broadcast %96 : vector<1x8xf32> to vector<16x8xf32>
    %98 = arith.addf %94, %97 : vector<16x8xf32>
    %c2_68 = arith.constant 2 : index
    %c0_69 = arith.constant 0 : index
    %c0_70 = arith.constant 0 : index
    %99 = vector.load %arg7[%c2_68, %c0_69, %c0_70] : memref<4x32x8xbf16, #tpu.memory_space<vmem>>, vector<1x32x8xbf16>
    %100 = vector.shape_cast %99 : vector<1x32x8xbf16> to vector<32x8xbf16>
    %cst_71 = arith.constant dense<0.000000e+00> : vector<16x8xf32>
    %101 = tpu.matmul %6, %100, %cst_71 {dimension_numbers = #tpu.dot_dimension_numbers<[1], [0], [0], [1], [0, 0, 1, 1], [], []>} : vector<16x32xbf16>, vector<32x8xbf16>, vector<16x8xf32> -> vector<16x8xf32>
    %c2_72 = arith.constant 2 : index
    %c0_73 = arith.constant 0 : index
    %c0_74 = arith.constant 0 : index
    %102 = vector.load %arg8[%c2_72, %c0_73, %c0_74] : memref<4x1x8xf32, #tpu.memory_space<vmem>>, vector<1x1x8xf32>
    %103 = vector.shape_cast %102 : vector<1x1x8xf32> to vector<1x8xf32>
    %104 = vector.broadcast %103 : vector<1x8xf32> to vector<16x8xf32>
    %105 = arith.addf %101, %104 : vector<16x8xf32>
    %106 = arith.truncf %91 : vector<16x8xf32> to vector<16x8xbf16>
    %107 = arith.truncf %98 : vector<16x8xf32> to vector<16x8xbf16>
    %cst_75 = arith.constant dense<0.000000e+00> : vector<16x16xf32>
    %108 = tpu.matmul %106, %107, %cst_75 {dimension_numbers = #tpu.dot_dimension_numbers<[1], [1], [0], [0], [0, 0, 1, 0], [], []>} : vector<16x8xbf16>, vector<16x8xbf16>, vector<16x16xf32> -> vector<16x16xf32>
    %cst_76 = arith.constant 0.353553385 : f32
    %109 = vector.broadcast %cst_76 : f32 to vector<16x16xf32>
    %110 = arith.mulf %108, %109 : vector<16x16xf32>
    %cst_77 = arith.constant dense<0xFF800000> : vector<16xf32>
    %111 = vector.multi_reduction <maximumf>, %110, %cst_77 [1] : vector<16x16xf32> to vector<16xf32>
    %112 = vector.shape_cast %111 : vector<16xf32> to vector<16x1xf32>
    %113 = vector.broadcast %112 : vector<16x1xf32> to vector<16x16xf32>
    %114 = arith.subf %110, %113 : vector<16x16xf32>
    %115 = math.exp %114 : vector<16x16xf32>
    %cst_78 = arith.constant dense<0.000000e+00> : vector<16xf32>
    %116 = vector.multi_reduction <add>, %115, %cst_78 [1] : vector<16x16xf32> to vector<16xf32>
    %117 = vector.shape_cast %116 : vector<16xf32> to vector<16x1xf32>
    %118 = tpu.reciprocal %117 {approx = true} : vector<16x1xf32> -> vector<16x1xf32>
    %119 = vector.broadcast %118 : vector<16x1xf32> to vector<16x16xf32>
    %120 = arith.mulf %115, %119 : vector<16x16xf32>
    %121 = arith.truncf %120 : vector<16x16xf32> to vector<16x16xbf16>
    %122 = arith.truncf %105 : vector<16x8xf32> to vector<16x8xbf16>
    %cst_79 = arith.constant dense<0.000000e+00> : vector<16x8xf32>
    %123 = tpu.matmul %121, %122, %cst_79 {dimension_numbers = #tpu.dot_dimension_numbers<[1], [0], [0], [1], [0, 0, 1, 1], [], []>} : vector<16x16xbf16>, vector<16x8xbf16>, vector<16x8xf32> -> vector<16x8xf32>
    %c3 = arith.constant 3 : index
    %c0_80 = arith.constant 0 : index
    %c0_81 = arith.constant 0 : index
    %124 = vector.load %arg3[%c3, %c0_80, %c0_81] : memref<4x32x8xbf16, #tpu.memory_space<vmem>>, vector<1x32x8xbf16>
    %125 = vector.shape_cast %124 : vector<1x32x8xbf16> to vector<32x8xbf16>
    %cst_82 = arith.constant dense<0.000000e+00> : vector<16x8xf32>
    %126 = tpu.matmul %5, %125, %cst_82 {dimension_numbers = #tpu.dot_dimension_numbers<[1], [0], [0], [1], [0, 0, 1, 1], [], []>} : vector<16x32xbf16>, vector<32x8xbf16>, vector<16x8xf32> -> vector<16x8xf32>
    %c3_83 = arith.constant 3 : index
    %c0_84 = arith.constant 0 : index
    %c0_85 = arith.constant 0 : index
    %127 = vector.load %arg4[%c3_83, %c0_84, %c0_85] : memref<4x1x8xf32, #tpu.memory_space<vmem>>, vector<1x1x8xf32>
    %128 = vector.shape_cast %127 : vector<1x1x8xf32> to vector<1x8xf32>
    %129 = vector.broadcast %128 : vector<1x8xf32> to vector<16x8xf32>
    %130 = arith.addf %126, %129 : vector<16x8xf32>
    %c3_86 = arith.constant 3 : index
    %c0_87 = arith.constant 0 : index
    %c0_88 = arith.constant 0 : index
    %131 = vector.load %arg5[%c3_86, %c0_87, %c0_88] : memref<4x32x8xbf16, #tpu.memory_space<vmem>>, vector<1x32x8xbf16>
    %132 = vector.shape_cast %131 : vector<1x32x8xbf16> to vector<32x8xbf16>
    %cst_89 = arith.constant dense<0.000000e+00> : vector<16x8xf32>
    %133 = tpu.matmul %5, %132, %cst_89 {dimension_numbers = #tpu.dot_dimension_numbers<[1], [0], [0], [1], [0, 0, 1, 1], [], []>} : vector<16x32xbf16>, vector<32x8xbf16>, vector<16x8xf32> -> vector<16x8xf32>
    %c3_90 = arith.constant 3 : index
    %c0_91 = arith.constant 0 : index
    %c0_92 = arith.constant 0 : index
    %134 = vector.load %arg6[%c3_90, %c0_91, %c0_92] : memref<4x1x8xf32, #tpu.memory_space<vmem>>, vector<1x1x8xf32>
    %135 = vector.shape_cast %134 : vector<1x1x8xf32> to vector<1x8xf32>
    %136 = vector.broadcast %135 : vector<1x8xf32> to vector<16x8xf32>
    %137 = arith.addf %133, %136 : vector<16x8xf32>
    %c3_93 = arith.constant 3 : index
    %c0_94 = arith.constant 0 : index
    %c0_95 = arith.constant 0 : index
    %138 = vector.load %arg7[%c3_93, %c0_94, %c0_95] : memref<4x32x8xbf16, #tpu.memory_space<vmem>>, vector<1x32x8xbf16>
    %139 = vector.shape_cast %138 : vector<1x32x8xbf16> to vector<32x8xbf16>
    %cst_96 = arith.constant dense<0.000000e+00> : vector<16x8xf32>
    %140 = tpu.matmul %6, %139, %cst_96 {dimension_numbers = #tpu.dot_dimension_numbers<[1], [0], [0], [1], [0, 0, 1, 1], [], []>} : vector<16x32xbf16>, vector<32x8xbf16>, vector<16x8xf32> -> vector<16x8xf32>
    %c3_97 = arith.constant 3 : index
    %c0_98 = arith.constant 0 : index
    %c0_99 = arith.constant 0 : index
    %141 = vector.load %arg8[%c3_97, %c0_98, %c0_99] : memref<4x1x8xf32, #tpu.memory_space<vmem>>, vector<1x1x8xf32>
    %142 = vector.shape_cast %141 : vector<1x1x8xf32> to vector<1x8xf32>
    %143 = vector.broadcast %142 : vector<1x8xf32> to vector<16x8xf32>
    %144 = arith.addf %140, %143 : vector<16x8xf32>
    %145 = arith.truncf %130 : vector<16x8xf32> to vector<16x8xbf16>
    %146 = arith.truncf %137 : vector<16x8xf32> to vector<16x8xbf16>
    %cst_100 = arith.constant dense<0.000000e+00> : vector<16x16xf32>
    %147 = tpu.matmul %145, %146, %cst_100 {dimension_numbers = #tpu.dot_dimension_numbers<[1], [1], [0], [0], [0, 0, 1, 0], [], []>} : vector<16x8xbf16>, vector<16x8xbf16>, vector<16x16xf32> -> vector<16x16xf32>
    %cst_101 = arith.constant 0.353553385 : f32
    %148 = vector.broadcast %cst_101 : f32 to vector<16x16xf32>
    %149 = arith.mulf %147, %148 : vector<16x16xf32>
    %cst_102 = arith.constant dense<0xFF800000> : vector<16xf32>
    %150 = vector.multi_reduction <maximumf>, %149, %cst_102 [1] : vector<16x16xf32> to vector<16xf32>
    %151 = vector.shape_cast %150 : vector<16xf32> to vector<16x1xf32>
    %152 = vector.broadcast %151 : vector<16x1xf32> to vector<16x16xf32>
    %153 = arith.subf %149, %152 : vector<16x16xf32>
    %154 = math.exp %153 : vector<16x16xf32>
    %cst_103 = arith.constant dense<0.000000e+00> : vector<16xf32>
    %155 = vector.multi_reduction <add>, %154, %cst_103 [1] : vector<16x16xf32> to vector<16xf32>
    %156 = vector.shape_cast %155 : vector<16xf32> to vector<16x1xf32>
    %157 = tpu.reciprocal %156 {approx = true} : vector<16x1xf32> -> vector<16x1xf32>
    %158 = vector.broadcast %157 : vector<16x1xf32> to vector<16x16xf32>
    %159 = arith.mulf %154, %158 : vector<16x16xf32>
    %160 = arith.truncf %159 : vector<16x16xf32> to vector<16x16xbf16>
    %161 = arith.truncf %144 : vector<16x8xf32> to vector<16x8xbf16>
    %cst_104 = arith.constant dense<0.000000e+00> : vector<16x8xf32>
    %162 = tpu.matmul %160, %161, %cst_104 {dimension_numbers = #tpu.dot_dimension_numbers<[1], [0], [0], [1], [0, 0, 1, 1], [], []>} : vector<16x16xbf16>, vector<16x8xbf16>, vector<16x8xf32> -> vector<16x8xf32>
    %163 = tpu.concatenate %45, %84, %123, %162 in 1 : vector<16x8xf32>, vector<16x8xf32>, vector<16x8xf32>, vector<16x8xf32> -> vector<16x32xf32>
    %164 = arith.truncf %163 : vector<16x32xf32> to vector<16x32xbf16>
    %c0_105 = arith.constant 0 : index
    %c0_106 = arith.constant 0 : index
    %165 = vector.load %arg9[%c0_105, %c0_106] : memref<32x32xbf16, #tpu.memory_space<vmem>>, vector<32x32xbf16>
    %cst_107 = arith.constant dense<0.000000e+00> : vector<16x32xf32>
    %166 = tpu.matmul %164, %165, %cst_107 {dimension_numbers = #tpu.dot_dimension_numbers<[1], [0], [0], [1], [0, 0, 1, 1], [], []>} : vector<16x32xbf16>, vector<32x32xbf16>, vector<16x32xf32> -> vector<16x32xf32>
    %c0_108 = arith.constant 0 : index
    %c0_109 = arith.constant 0 : index
    %167 = vector.load %arg10[%c0_108, %c0_109] : memref<1x32xf32, #tpu.memory_space<vmem>>, vector<1x32xf32>
    %168 = vector.broadcast %167 : vector<1x32xf32> to vector<16x32xf32>
    %169 = arith.addf %166, %168 : vector<16x32xf32>
    %170 = arith.addf %1, %169 : vector<16x32xf32>
    %cst_110 = arith.constant dense<0.000000e+00> : vector<16xf32>
    %171 = vector.multi_reduction <add>, %170, %cst_110 [1] : vector<16x32xf32> to vector<16xf32>
    %172 = vector.shape_cast %171 : vector<16xf32> to vector<16x1xf32>
    %cst_111 = arith.constant 3.200000e+01 : f32
    %173 = vector.broadcast %cst_111 : f32 to vector<16x1xf32>
    %174 = arith.divf %172, %173 : vector<16x1xf32>
    %175 = vector.broadcast %174 : vector<16x1xf32> to vector<16x32xf32>
    %176 = arith.subf %170, %175 : vector<16x32xf32>
    %177 = arith.mulf %176, %176 : vector<16x32xf32>
    %cst_112 = arith.constant dense<0.000000e+00> : vector<16xf32>
    %178 = vector.multi_reduction <add>, %177, %cst_112 [1] : vector<16x32xf32> to vector<16xf32>
    %179 = vector.shape_cast %178 : vector<16xf32> to vector<16x1xf32>
    %cst_113 = arith.constant 3.200000e+01 : f32
    %180 = vector.broadcast %cst_113 : f32 to vector<16x1xf32>
    %181 = arith.divf %179, %180 : vector<16x1xf32>
    %182 = vector.broadcast %174 : vector<16x1xf32> to vector<16x32xf32>
    %183 = arith.subf %170, %182 : vector<16x32xf32>
    %cst_114 = arith.constant 9.99999974E-6 : f32
    %184 = vector.broadcast %cst_114 : f32 to vector<16x1xf32>
    %185 = arith.addf %181, %184 : vector<16x1xf32>
    %186 = math.rsqrt %185 : vector<16x1xf32>
    %187 = vector.broadcast %186 : vector<16x1xf32> to vector<16x32xf32>
    %188 = arith.mulf %183, %187 : vector<16x32xf32>
    %c0_115 = arith.constant 0 : index
    %c0_116 = arith.constant 0 : index
    %189 = vector.load %arg11[%c0_115, %c0_116] : memref<1x32xf32, #tpu.memory_space<vmem>>, vector<1x32xf32>
    %190 = vector.broadcast %189 : vector<1x32xf32> to vector<16x32xf32>
    %191 = arith.mulf %188, %190 : vector<16x32xf32>
    %c0_117 = arith.constant 0 : index
    %c0_118 = arith.constant 0 : index
    %192 = vector.load %arg12[%c0_117, %c0_118] : memref<1x32xf32, #tpu.memory_space<vmem>>, vector<1x32xf32>
    %193 = vector.broadcast %192 : vector<1x32xf32> to vector<16x32xf32>
    %194 = arith.addf %191, %193 : vector<16x32xf32>
    %c0_119 = arith.constant 0 : index
    %c0_120 = arith.constant 0 : index
    %c0_121 = arith.constant 0 : index
    %195 = vector.load %arg15[%c0_119, %c0_120, %c0_121] : memref<1x16x32xf32, #tpu.memory_space<vmem>>, vector<1x16x32xf32>
    %196 = vector.shape_cast %195 : vector<1x16x32xf32> to vector<16x32xf32>
    %197 = vector.shape_cast %194 : vector<16x32xf32> to vector<1x16x32xf32>
    tpu.vector_store %arg15[%c0_119, %c0_120, %c0_121], %197 {strides = array<i32>} : memref<1x16x32xf32, #tpu.memory_space<vmem>>, vector<1x16x32xf32>,
    %198 = arith.addf %194, %3 : vector<16x32xf32>
    %199 = arith.truncf %198 : vector<16x32xf32> to vector<16x32xbf16>
    %c0_122 = arith.constant 0 : index
    %c0_123 = arith.constant 0 : index
    %200 = vector.load %arg13[%c0_122, %c0_123] : memref<32x24xbf16, #tpu.memory_space<vmem>>, vector<32x24xbf16>
    %cst_124 = arith.constant dense<0.000000e+00> : vector<16x24xf32>
    %201 = tpu.matmul %199, %200, %cst_124 {dimension_numbers = #tpu.dot_dimension_numbers<[1], [0], [0], [1], [0, 0, 1, 1], [], []>} : vector<16x32xbf16>, vector<32x24xbf16>, vector<16x24xf32> -> vector<16x24xf32>
    %c0_125 = arith.constant 0 : index
    %c0_126 = arith.constant 0 : index
    %202 = vector.load %arg14[%c0_125, %c0_126] : memref<1x24xf32, #tpu.memory_space<vmem>>, vector<1x24xf32>
    %203 = vector.broadcast %202 : vector<1x24xf32> to vector<16x24xf32>
    %204 = arith.addf %201, %203 : vector<16x24xf32>
    %c0_127 = arith.constant 0 : index
    %c0_128 = arith.constant 0 : index
    %c0_129 = arith.constant 0 : index
    %205 = vector.load %arg16[%c0_127, %c0_128, %c0_129] : memref<1x16x24xf32, #tpu.memory_space<vmem>>, vector<1x16x24xf32>
    %206 = vector.shape_cast %205 : vector<1x16x24xf32> to vector<16x24xf32>
    %207 = vector.shape_cast %204 : vector<16x24xf32> to vector<1x16x24xf32>
    tpu.vector_store %arg16[%c0_127, %c0_128, %c0_129], %207 {strides = array<i32>} : memref<1x16x24xf32, #tpu.memory_space<vmem>>, vector<1x16x24xf32>,
    return
  }
  func.func @transform_0(%arg0: i32) -> (i32, i32, i32) {
    %c0_i32 = arith.constant 0 : i32
    %c0_i32_0 = arith.constant 0 : i32
    %c0_i32_1 = arith.constant 0 : i32
    return %arg0, %c0_i32, %c0_i32_0 : i32, i32, i32
  }
  func.func @transform_1(%arg0: i32) -> (i32, i32, i32) {
    %c0_i32 = arith.constant 0 : i32
    %c0_i32_0 = arith.constant 0 : i32
    %c0_i32_1 = arith.constant 0 : i32
    return %arg0, %c0_i32, %c0_i32_0 : i32, i32, i32
  }
  func.func @transform_2(%arg0: i32) -> (i32, i32, i32) {
    %c0_i32 = arith.constant 0 : i32
    %c0_i32_0 = arith.constant 0 : i32
    %c0_i32_1 = arith.constant 0 : i32
    %c0_i32_2 = arith.constant 0 : i32
    return %c0_i32, %c0_i32_0, %c0_i32_1 : i32, i32, i32
  }
  func.func @transform_3(%arg0: i32) -> (i32, i32, i32) {
    %c0_i32 = arith.constant 0 : i32
    %c0_i32_0 = arith.constant 0 : i32
    %c0_i32_1 = arith.constant 0 : i32
    %c0_i32_2 = arith.constant 0 : i32
    return %c0_i32, %c0_i32_0, %c0_i32_1 : i32, i32, i32
  }
  func.func @transform_4(%arg0: i32) -> (i32, i32, i32) {
    %c0_i32 = arith.constant 0 : i32
    %c0_i32_0 = arith.constant 0 : i32
    %c0_i32_1 = arith.constant 0 : i32
    %c0_i32_2 = arith.constant 0 : i32
    return %c0_i32, %c0_i32_0, %c0_i32_1 : i32, i32, i32
  }
  func.func @transform_5(%arg0: i32) -> (i32, i32, i32) {
    %c0_i32 = arith.constant 0 : i32
    %c0_i32_0 = arith.constant 0 : i32
    %c0_i32_1 = arith.constant 0 : i32
    %c0_i32_2 = arith.constant 0 : i32
    return %c0_i32, %c0_i32_0, %c0_i32_1 : i32, i32, i32
  }
  func.func @transform_6(%arg0: i32) -> (i32, i32, i32) {
    %c0_i32 = arith.constant 0 : i32
    %c0_i32_0 = arith.constant 0 : i32
    %c0_i32_1 = arith.constant 0 : i32
    %c0_i32_2 = arith.constant 0 : i32
    return %c0_i32, %c0_i32_0, %c0_i32_1 : i32, i32, i32
  }
  func.func @transform_7(%arg0: i32) -> (i32, i32, i32) {
    %c0_i32 = arith.constant 0 : i32
    %c0_i32_0 = arith.constant 0 : i32
    %c0_i32_1 = arith.constant 0 : i32
    %c0_i32_2 = arith.constant 0 : i32
    return %c0_i32, %c0_i32_0, %c0_i32_1 : i32, i32, i32
  }
  func.func @transform_8(%arg0: i32) -> (i32, i32) {
    %c0_i32 = arith.constant 0 : i32
    %c0_i32_0 = arith.constant 0 : i32
    %c0_i32_1 = arith.constant 0 : i32
    return %c0_i32, %c0_i32_0 : i32, i32
  }
  func.func @transform_9(%arg0: i32) -> (i32, i32) {
    %c0_i32 = arith.constant 0 : i32
    %c0_i32_0 = arith.constant 0 : i32
    %c0_i32_1 = arith.constant 0 : i32
    return %c0_i32, %c0_i32_0 : i32, i32
  }
  func.func @transform_10(%arg0: i32) -> (i32, i32) {
    %c0_i32 = arith.constant 0 : i32
    %c0_i32_0 = arith.constant 0 : i32
    %c0_i32_1 = arith.constant 0 : i32
    return %c0_i32, %c0_i32_0 : i32, i32
  }
  func.func @transform_11(%arg0: i32) -> (i32, i32) {
    %c0_i32 = arith.constant 0 : i32
    %c0_i32_0 = arith.constant 0 : i32
    %c0_i32_1 = arith.constant 0 : i32
    return %c0_i32, %c0_i32_0 : i32, i32
  }
  func.func @transform_12(%arg0: i32) -> (i32, i32) {
    %c0_i32 = arith.constant 0 : i32
    %c0_i32_0 = arith.constant 0 : i32
    %c0_i32_1 = arith.constant 0 : i32
    return %c0_i32, %c0_i32_0 : i32, i32
  }
  func.func @transform_13(%arg0: i32) -> (i32, i32) {
    %c0_i32 = arith.constant 0 : i32
    %c0_i32_0 = arith.constant 0 : i32
    %c0_i32_1 = arith.constant 0 : i32
    return %c0_i32, %c0_i32_0 : i32, i32
  }
  func.func @transform_14(%arg0: i32) -> (i32, i32, i32) {
    %c0_i32 = arith.constant 0 : i32
    %c0_i32_0 = arith.constant 0 : i32
    %c0_i32_1 = arith.constant 0 : i32
    return %arg0, %c0_i32, %c0_i32_0 : i32, i32, i32
  }
  func.func @transform_15(%arg0: i32) -> (i32, i32, i32) {
    %c0_i32 = arith.constant 0 : i32
    %c0_i32_0 = arith.constant 0 : i32
    %c0_i32_1 = arith.constant 0 : i32
    return %arg0, %c0_i32, %c0_i32_0 : i32, i32, i32
  }
}

module attributes {stable_mosaic.version = 11 : i64} {
  func.func @_cross_ffn_kernel(%arg0: i32, %arg1: memref<1x64x32xf32, #tpu.memory_space<vmem>>, %arg2: memref<1x64x32xf32, #tpu.memory_space<vmem>>, %arg3: memref<1x64x1xf32, #tpu.memory_space<vmem>>, %arg4: memref<1x4x64x64xbf16, #tpu.memory_space<vmem>>, %arg5: memref<4x32x8xbf16, #tpu.memory_space<vmem>>, %arg6: memref<4x1x8xf32, #tpu.memory_space<vmem>>, %arg7: memref<32x32xbf16, #tpu.memory_space<vmem>>, %arg8: memref<1x32xf32, #tpu.memory_space<vmem>>, %arg9: memref<1x32xf32, #tpu.memory_space<vmem>>, %arg10: memref<1x32xf32, #tpu.memory_space<vmem>>, %arg11: memref<32x64xbf16, #tpu.memory_space<vmem>>, %arg12: memref<1x64xf32, #tpu.memory_space<vmem>>, %arg13: memref<64x32xbf16, #tpu.memory_space<vmem>>, %arg14: memref<1x32xf32, #tpu.memory_space<vmem>>, %arg15: memref<1x32xf32, #tpu.memory_space<vmem>>, %arg16: memref<1x32xf32, #tpu.memory_space<vmem>>, %arg17: memref<1x64x32xf32, #tpu.memory_space<vmem>>) attributes {dimension_semantics = [#tpu.dimension_semantics<parallel>], iteration_bounds = array<i64: 2>, scalar_prefetch = 0 : i64, scratch_operands = 0 : i64, tpu.core_type = #tpu.core_type<tc>, window_params = [{transform_indices = @transform_0, window_bounds = array<i64: 1, 64, 32>}, {transform_indices = @transform_1, window_bounds = array<i64: 1, 64, 32>}, {transform_indices = @transform_2, window_bounds = array<i64: 1, 64, 1>}, {transform_indices = @transform_3, window_bounds = array<i64: 1, 4, 64, 64>}, {pipeline_mode = #tpu.pipeline_mode<synchronous>, transform_indices = @transform_4, window_bounds = array<i64: 4, 32, 8>}, {pipeline_mode = #tpu.pipeline_mode<synchronous>, transform_indices = @transform_5, window_bounds = array<i64: 4, 1, 8>}, {pipeline_mode = #tpu.pipeline_mode<synchronous>, transform_indices = @transform_6, window_bounds = array<i64: 32, 32>}, {pipeline_mode = #tpu.pipeline_mode<synchronous>, transform_indices = @transform_7, window_bounds = array<i64: 1, 32>}, {pipeline_mode = #tpu.pipeline_mode<synchronous>, transform_indices = @transform_8, window_bounds = array<i64: 1, 32>}, {pipeline_mode = #tpu.pipeline_mode<synchronous>, transform_indices = @transform_9, window_bounds = array<i64: 1, 32>}, {pipeline_mode = #tpu.pipeline_mode<synchronous>, transform_indices = @transform_10, window_bounds = array<i64: 32, 64>}, {pipeline_mode = #tpu.pipeline_mode<synchronous>, transform_indices = @transform_11, window_bounds = array<i64: 1, 64>}, {pipeline_mode = #tpu.pipeline_mode<synchronous>, transform_indices = @transform_12, window_bounds = array<i64: 64, 32>}, {pipeline_mode = #tpu.pipeline_mode<synchronous>, transform_indices = @transform_13, window_bounds = array<i64: 1, 32>}, {pipeline_mode = #tpu.pipeline_mode<synchronous>, transform_indices = @transform_14, window_bounds = array<i64: 1, 32>}, {pipeline_mode = #tpu.pipeline_mode<synchronous>, transform_indices = @transform_15, window_bounds = array<i64: 1, 32>}, {transform_indices = @transform_16, window_bounds = array<i64: 1, 64, 32>}]} {
    %c0 = arith.constant 0 : index
    %c0_0 = arith.constant 0 : index
    %c0_1 = arith.constant 0 : index
    %0 = vector.load %arg1[%c0, %c0_0, %c0_1] : memref<1x64x32xf32, #tpu.memory_space<vmem>>, vector<1x64x32xf32>
    %1 = vector.shape_cast %0 : vector<1x64x32xf32> to vector<64x32xf32>
    %c0_2 = arith.constant 0 : index
    %c0_3 = arith.constant 0 : index
    %c0_4 = arith.constant 0 : index
    %2 = vector.load %arg2[%c0_2, %c0_3, %c0_4] : memref<1x64x32xf32, #tpu.memory_space<vmem>>, vector<1x64x32xf32>
    %3 = vector.shape_cast %2 : vector<1x64x32xf32> to vector<64x32xf32>
    %c0_5 = arith.constant 0 : index
    %c0_6 = arith.constant 0 : index
    %c0_7 = arith.constant 0 : index
    %4 = vector.load %arg3[%c0_5, %c0_6, %c0_7] : memref<1x64x1xf32, #tpu.memory_space<vmem>>, vector<1x64x1xf32>
    %5 = vector.shape_cast %4 : vector<1x64x1xf32> to vector<64x1xf32>
    %6 = arith.truncf %3 : vector<64x32xf32> to vector<64x32xbf16>
    %c0_8 = arith.constant 0 : index
    %c0_9 = arith.constant 0 : index
    %c0_10 = arith.constant 0 : index
    %7 = vector.load %arg5[%c0_8, %c0_9, %c0_10] : memref<4x32x8xbf16, #tpu.memory_space<vmem>>, vector<1x32x8xbf16>
    %8 = vector.shape_cast %7 : vector<1x32x8xbf16> to vector<32x8xbf16>
    %cst = arith.constant dense<0.000000e+00> : vector<64x8xf32>
    %9 = tpu.matmul %6, %8, %cst {dimension_numbers = #tpu.dot_dimension_numbers<[1], [0], [0], [1], [0, 0, 1, 1], [], []>} : vector<64x32xbf16>, vector<32x8xbf16>, vector<64x8xf32> -> vector<64x8xf32>
    %c0_11 = arith.constant 0 : index
    %c0_12 = arith.constant 0 : index
    %c0_13 = arith.constant 0 : index
    %10 = vector.load %arg6[%c0_11, %c0_12, %c0_13] : memref<4x1x8xf32, #tpu.memory_space<vmem>>, vector<1x1x8xf32>
    %11 = vector.shape_cast %10 : vector<1x1x8xf32> to vector<1x8xf32>
    %12 = vector.broadcast %11 : vector<1x8xf32> to vector<64x8xf32>
    %13 = arith.addf %9, %12 : vector<64x8xf32>
    %14 = vector.broadcast %5 : vector<64x1xf32> to vector<64x8xf32>
    %15 = arith.mulf %13, %14 : vector<64x8xf32>
    %c0_14 = arith.constant 0 : index
    %c0_15 = arith.constant 0 : index
    %c0_16 = arith.constant 0 : index
    %c0_17 = arith.constant 0 : index
    %16 = vector.load %arg4[%c0_14, %c0_15, %c0_16, %c0_17] : memref<1x4x64x64xbf16, #tpu.memory_space<vmem>>, vector<1x1x64x64xbf16>
    %17 = vector.shape_cast %16 : vector<1x1x64x64xbf16> to vector<64x64xbf16>
    %18 = arith.truncf %15 : vector<64x8xf32> to vector<64x8xbf16>
    %cst_18 = arith.constant dense<0.000000e+00> : vector<64x8xf32>
    %19 = tpu.matmul %17, %18, %cst_18 {dimension_numbers = #tpu.dot_dimension_numbers<[1], [0], [0], [1], [0, 0, 1, 1], [], []>} : vector<64x64xbf16>, vector<64x8xbf16>, vector<64x8xf32> -> vector<64x8xf32>
    %c1 = arith.constant 1 : index
    %c0_19 = arith.constant 0 : index
    %c0_20 = arith.constant 0 : index
    %20 = vector.load %arg5[%c1, %c0_19, %c0_20] : memref<4x32x8xbf16, #tpu.memory_space<vmem>>, vector<1x32x8xbf16>
    %21 = vector.shape_cast %20 : vector<1x32x8xbf16> to vector<32x8xbf16>
    %cst_21 = arith.constant dense<0.000000e+00> : vector<64x8xf32>
    %22 = tpu.matmul %6, %21, %cst_21 {dimension_numbers = #tpu.dot_dimension_numbers<[1], [0], [0], [1], [0, 0, 1, 1], [], []>} : vector<64x32xbf16>, vector<32x8xbf16>, vector<64x8xf32> -> vector<64x8xf32>
    %c1_22 = arith.constant 1 : index
    %c0_23 = arith.constant 0 : index
    %c0_24 = arith.constant 0 : index
    %23 = vector.load %arg6[%c1_22, %c0_23, %c0_24] : memref<4x1x8xf32, #tpu.memory_space<vmem>>, vector<1x1x8xf32>
    %24 = vector.shape_cast %23 : vector<1x1x8xf32> to vector<1x8xf32>
    %25 = vector.broadcast %24 : vector<1x8xf32> to vector<64x8xf32>
    %26 = arith.addf %22, %25 : vector<64x8xf32>
    %27 = vector.broadcast %5 : vector<64x1xf32> to vector<64x8xf32>
    %28 = arith.mulf %26, %27 : vector<64x8xf32>
    %c0_25 = arith.constant 0 : index
    %c1_26 = arith.constant 1 : index
    %c0_27 = arith.constant 0 : index
    %c0_28 = arith.constant 0 : index
    %29 = vector.load %arg4[%c0_25, %c1_26, %c0_27, %c0_28] : memref<1x4x64x64xbf16, #tpu.memory_space<vmem>>, vector<1x1x64x64xbf16>
    %30 = vector.shape_cast %29 : vector<1x1x64x64xbf16> to vector<64x64xbf16>
    %31 = arith.truncf %28 : vector<64x8xf32> to vector<64x8xbf16>
    %cst_29 = arith.constant dense<0.000000e+00> : vector<64x8xf32>
    %32 = tpu.matmul %30, %31, %cst_29 {dimension_numbers = #tpu.dot_dimension_numbers<[1], [0], [0], [1], [0, 0, 1, 1], [], []>} : vector<64x64xbf16>, vector<64x8xbf16>, vector<64x8xf32> -> vector<64x8xf32>
    %c2 = arith.constant 2 : index
    %c0_30 = arith.constant 0 : index
    %c0_31 = arith.constant 0 : index
    %33 = vector.load %arg5[%c2, %c0_30, %c0_31] : memref<4x32x8xbf16, #tpu.memory_space<vmem>>, vector<1x32x8xbf16>
    %34 = vector.shape_cast %33 : vector<1x32x8xbf16> to vector<32x8xbf16>
    %cst_32 = arith.constant dense<0.000000e+00> : vector<64x8xf32>
    %35 = tpu.matmul %6, %34, %cst_32 {dimension_numbers = #tpu.dot_dimension_numbers<[1], [0], [0], [1], [0, 0, 1, 1], [], []>} : vector<64x32xbf16>, vector<32x8xbf16>, vector<64x8xf32> -> vector<64x8xf32>
    %c2_33 = arith.constant 2 : index
    %c0_34 = arith.constant 0 : index
    %c0_35 = arith.constant 0 : index
    %36 = vector.load %arg6[%c2_33, %c0_34, %c0_35] : memref<4x1x8xf32, #tpu.memory_space<vmem>>, vector<1x1x8xf32>
    %37 = vector.shape_cast %36 : vector<1x1x8xf32> to vector<1x8xf32>
    %38 = vector.broadcast %37 : vector<1x8xf32> to vector<64x8xf32>
    %39 = arith.addf %35, %38 : vector<64x8xf32>
    %40 = vector.broadcast %5 : vector<64x1xf32> to vector<64x8xf32>
    %41 = arith.mulf %39, %40 : vector<64x8xf32>
    %c0_36 = arith.constant 0 : index
    %c2_37 = arith.constant 2 : index
    %c0_38 = arith.constant 0 : index
    %c0_39 = arith.constant 0 : index
    %42 = vector.load %arg4[%c0_36, %c2_37, %c0_38, %c0_39] : memref<1x4x64x64xbf16, #tpu.memory_space<vmem>>, vector<1x1x64x64xbf16>
    %43 = vector.shape_cast %42 : vector<1x1x64x64xbf16> to vector<64x64xbf16>
    %44 = arith.truncf %41 : vector<64x8xf32> to vector<64x8xbf16>
    %cst_40 = arith.constant dense<0.000000e+00> : vector<64x8xf32>
    %45 = tpu.matmul %43, %44, %cst_40 {dimension_numbers = #tpu.dot_dimension_numbers<[1], [0], [0], [1], [0, 0, 1, 1], [], []>} : vector<64x64xbf16>, vector<64x8xbf16>, vector<64x8xf32> -> vector<64x8xf32>
    %c3 = arith.constant 3 : index
    %c0_41 = arith.constant 0 : index
    %c0_42 = arith.constant 0 : index
    %46 = vector.load %arg5[%c3, %c0_41, %c0_42] : memref<4x32x8xbf16, #tpu.memory_space<vmem>>, vector<1x32x8xbf16>
    %47 = vector.shape_cast %46 : vector<1x32x8xbf16> to vector<32x8xbf16>
    %cst_43 = arith.constant dense<0.000000e+00> : vector<64x8xf32>
    %48 = tpu.matmul %6, %47, %cst_43 {dimension_numbers = #tpu.dot_dimension_numbers<[1], [0], [0], [1], [0, 0, 1, 1], [], []>} : vector<64x32xbf16>, vector<32x8xbf16>, vector<64x8xf32> -> vector<64x8xf32>
    %c3_44 = arith.constant 3 : index
    %c0_45 = arith.constant 0 : index
    %c0_46 = arith.constant 0 : index
    %49 = vector.load %arg6[%c3_44, %c0_45, %c0_46] : memref<4x1x8xf32, #tpu.memory_space<vmem>>, vector<1x1x8xf32>
    %50 = vector.shape_cast %49 : vector<1x1x8xf32> to vector<1x8xf32>
    %51 = vector.broadcast %50 : vector<1x8xf32> to vector<64x8xf32>
    %52 = arith.addf %48, %51 : vector<64x8xf32>
    %53 = vector.broadcast %5 : vector<64x1xf32> to vector<64x8xf32>
    %54 = arith.mulf %52, %53 : vector<64x8xf32>
    %c0_47 = arith.constant 0 : index
    %c3_48 = arith.constant 3 : index
    %c0_49 = arith.constant 0 : index
    %c0_50 = arith.constant 0 : index
    %55 = vector.load %arg4[%c0_47, %c3_48, %c0_49, %c0_50] : memref<1x4x64x64xbf16, #tpu.memory_space<vmem>>, vector<1x1x64x64xbf16>
    %56 = vector.shape_cast %55 : vector<1x1x64x64xbf16> to vector<64x64xbf16>
    %57 = arith.truncf %54 : vector<64x8xf32> to vector<64x8xbf16>
    %cst_51 = arith.constant dense<0.000000e+00> : vector<64x8xf32>
    %58 = tpu.matmul %56, %57, %cst_51 {dimension_numbers = #tpu.dot_dimension_numbers<[1], [0], [0], [1], [0, 0, 1, 1], [], []>} : vector<64x64xbf16>, vector<64x8xbf16>, vector<64x8xf32> -> vector<64x8xf32>
    %59 = tpu.concatenate %19, %32, %45, %58 in 1 : vector<64x8xf32>, vector<64x8xf32>, vector<64x8xf32>, vector<64x8xf32> -> vector<64x32xf32>
    %60 = arith.truncf %59 : vector<64x32xf32> to vector<64x32xbf16>
    %c0_52 = arith.constant 0 : index
    %c0_53 = arith.constant 0 : index
    %61 = vector.load %arg7[%c0_52, %c0_53] : memref<32x32xbf16, #tpu.memory_space<vmem>>, vector<32x32xbf16>
    %cst_54 = arith.constant dense<0.000000e+00> : vector<64x32xf32>
    %62 = tpu.matmul %60, %61, %cst_54 {dimension_numbers = #tpu.dot_dimension_numbers<[1], [0], [0], [1], [0, 0, 1, 1], [], []>} : vector<64x32xbf16>, vector<32x32xbf16>, vector<64x32xf32> -> vector<64x32xf32>
    %c0_55 = arith.constant 0 : index
    %c0_56 = arith.constant 0 : index
    %63 = vector.load %arg8[%c0_55, %c0_56] : memref<1x32xf32, #tpu.memory_space<vmem>>, vector<1x32xf32>
    %64 = vector.broadcast %63 : vector<1x32xf32> to vector<64x32xf32>
    %65 = arith.addf %62, %64 : vector<64x32xf32>
    %66 = arith.addf %1, %65 : vector<64x32xf32>
    %cst_57 = arith.constant dense<0.000000e+00> : vector<64xf32>
    %67 = vector.multi_reduction <add>, %66, %cst_57 [1] : vector<64x32xf32> to vector<64xf32>
    %68 = vector.shape_cast %67 : vector<64xf32> to vector<64x1xf32>
    %cst_58 = arith.constant 3.200000e+01 : f32
    %69 = vector.broadcast %cst_58 : f32 to vector<64x1xf32>
    %70 = arith.divf %68, %69 : vector<64x1xf32>
    %71 = vector.broadcast %70 : vector<64x1xf32> to vector<64x32xf32>
    %72 = arith.subf %66, %71 : vector<64x32xf32>
    %73 = arith.mulf %72, %72 : vector<64x32xf32>
    %cst_59 = arith.constant dense<0.000000e+00> : vector<64xf32>
    %74 = vector.multi_reduction <add>, %73, %cst_59 [1] : vector<64x32xf32> to vector<64xf32>
    %75 = vector.shape_cast %74 : vector<64xf32> to vector<64x1xf32>
    %cst_60 = arith.constant 3.200000e+01 : f32
    %76 = vector.broadcast %cst_60 : f32 to vector<64x1xf32>
    %77 = arith.divf %75, %76 : vector<64x1xf32>
    %78 = vector.broadcast %70 : vector<64x1xf32> to vector<64x32xf32>
    %79 = arith.subf %66, %78 : vector<64x32xf32>
    %cst_61 = arith.constant 9.99999974E-6 : f32
    %80 = vector.broadcast %cst_61 : f32 to vector<64x1xf32>
    %81 = arith.addf %77, %80 : vector<64x1xf32>
    %82 = math.rsqrt %81 : vector<64x1xf32>
    %83 = vector.broadcast %82 : vector<64x1xf32> to vector<64x32xf32>
    %84 = arith.mulf %79, %83 : vector<64x32xf32>
    %c0_62 = arith.constant 0 : index
    %c0_63 = arith.constant 0 : index
    %85 = vector.load %arg9[%c0_62, %c0_63] : memref<1x32xf32, #tpu.memory_space<vmem>>, vector<1x32xf32>
    %86 = vector.broadcast %85 : vector<1x32xf32> to vector<64x32xf32>
    %87 = arith.mulf %84, %86 : vector<64x32xf32>
    %c0_64 = arith.constant 0 : index
    %c0_65 = arith.constant 0 : index
    %88 = vector.load %arg10[%c0_64, %c0_65] : memref<1x32xf32, #tpu.memory_space<vmem>>, vector<1x32xf32>
    %89 = vector.broadcast %88 : vector<1x32xf32> to vector<64x32xf32>
    %90 = arith.addf %87, %89 : vector<64x32xf32>
    %91 = arith.truncf %90 : vector<64x32xf32> to vector<64x32xbf16>
    %c0_66 = arith.constant 0 : index
    %c0_67 = arith.constant 0 : index
    %92 = vector.load %arg11[%c0_66, %c0_67] : memref<32x64xbf16, #tpu.memory_space<vmem>>, vector<32x64xbf16>
    %cst_68 = arith.constant dense<0.000000e+00> : vector<64x64xf32>
    %93 = tpu.matmul %91, %92, %cst_68 {dimension_numbers = #tpu.dot_dimension_numbers<[1], [0], [0], [1], [0, 0, 1, 1], [], []>} : vector<64x32xbf16>, vector<32x64xbf16>, vector<64x64xf32> -> vector<64x64xf32>
    %c0_69 = arith.constant 0 : index
    %c0_70 = arith.constant 0 : index
    %94 = vector.load %arg12[%c0_69, %c0_70] : memref<1x64xf32, #tpu.memory_space<vmem>>, vector<1x64xf32>
    %95 = vector.broadcast %94 : vector<1x64xf32> to vector<64x64xf32>
    %96 = arith.addf %93, %95 : vector<64x64xf32>
    %cst_71 = arith.constant 0.000000e+00 : f32
    %97 = vector.broadcast %cst_71 : f32 to vector<64x64xf32>
    %98 = arith.maximumf %96, %97 : vector<64x64xf32>
    %99 = arith.truncf %98 : vector<64x64xf32> to vector<64x64xbf16>
    %c0_72 = arith.constant 0 : index
    %c0_73 = arith.constant 0 : index
    %100 = vector.load %arg13[%c0_72, %c0_73] : memref<64x32xbf16, #tpu.memory_space<vmem>>, vector<64x32xbf16>
    %cst_74 = arith.constant dense<0.000000e+00> : vector<64x32xf32>
    %101 = tpu.matmul %99, %100, %cst_74 {dimension_numbers = #tpu.dot_dimension_numbers<[1], [0], [0], [1], [0, 0, 1, 1], [], []>} : vector<64x64xbf16>, vector<64x32xbf16>, vector<64x32xf32> -> vector<64x32xf32>
    %c0_75 = arith.constant 0 : index
    %c0_76 = arith.constant 0 : index
    %102 = vector.load %arg14[%c0_75, %c0_76] : memref<1x32xf32, #tpu.memory_space<vmem>>, vector<1x32xf32>
    %103 = vector.broadcast %102 : vector<1x32xf32> to vector<64x32xf32>
    %104 = arith.addf %101, %103 : vector<64x32xf32>
    %105 = arith.addf %90, %104 : vector<64x32xf32>
    %cst_77 = arith.constant dense<0.000000e+00> : vector<64xf32>
    %106 = vector.multi_reduction <add>, %105, %cst_77 [1] : vector<64x32xf32> to vector<64xf32>
    %107 = vector.shape_cast %106 : vector<64xf32> to vector<64x1xf32>
    %cst_78 = arith.constant 3.200000e+01 : f32
    %108 = vector.broadcast %cst_78 : f32 to vector<64x1xf32>
    %109 = arith.divf %107, %108 : vector<64x1xf32>
    %110 = vector.broadcast %109 : vector<64x1xf32> to vector<64x32xf32>
    %111 = arith.subf %105, %110 : vector<64x32xf32>
    %112 = arith.mulf %111, %111 : vector<64x32xf32>
    %cst_79 = arith.constant dense<0.000000e+00> : vector<64xf32>
    %113 = vector.multi_reduction <add>, %112, %cst_79 [1] : vector<64x32xf32> to vector<64xf32>
    %114 = vector.shape_cast %113 : vector<64xf32> to vector<64x1xf32>
    %cst_80 = arith.constant 3.200000e+01 : f32
    %115 = vector.broadcast %cst_80 : f32 to vector<64x1xf32>
    %116 = arith.divf %114, %115 : vector<64x1xf32>
    %117 = vector.broadcast %109 : vector<64x1xf32> to vector<64x32xf32>
    %118 = arith.subf %105, %117 : vector<64x32xf32>
    %cst_81 = arith.constant 9.99999974E-6 : f32
    %119 = vector.broadcast %cst_81 : f32 to vector<64x1xf32>
    %120 = arith.addf %116, %119 : vector<64x1xf32>
    %121 = math.rsqrt %120 : vector<64x1xf32>
    %122 = vector.broadcast %121 : vector<64x1xf32> to vector<64x32xf32>
    %123 = arith.mulf %118, %122 : vector<64x32xf32>
    %c0_82 = arith.constant 0 : index
    %c0_83 = arith.constant 0 : index
    %124 = vector.load %arg15[%c0_82, %c0_83] : memref<1x32xf32, #tpu.memory_space<vmem>>, vector<1x32xf32>
    %125 = vector.broadcast %124 : vector<1x32xf32> to vector<64x32xf32>
    %126 = arith.mulf %123, %125 : vector<64x32xf32>
    %c0_84 = arith.constant 0 : index
    %c0_85 = arith.constant 0 : index
    %127 = vector.load %arg16[%c0_84, %c0_85] : memref<1x32xf32, #tpu.memory_space<vmem>>, vector<1x32xf32>
    %128 = vector.broadcast %127 : vector<1x32xf32> to vector<64x32xf32>
    %129 = arith.addf %126, %128 : vector<64x32xf32>
    %c0_86 = arith.constant 0 : index
    %c0_87 = arith.constant 0 : index
    %c0_88 = arith.constant 0 : index
    %130 = vector.load %arg17[%c0_86, %c0_87, %c0_88] : memref<1x64x32xf32, #tpu.memory_space<vmem>>, vector<1x64x32xf32>
    %131 = vector.shape_cast %130 : vector<1x64x32xf32> to vector<64x32xf32>
    %132 = vector.shape_cast %129 : vector<64x32xf32> to vector<1x64x32xf32>
    tpu.vector_store %arg17[%c0_86, %c0_87, %c0_88], %132 {strides = array<i32>} : memref<1x64x32xf32, #tpu.memory_space<vmem>>, vector<1x64x32xf32>,
    return
  }
  func.func @transform_0(%arg0: i32) -> (i32, i32, i32) {
    %c0_i32 = arith.constant 0 : i32
    %c0_i32_0 = arith.constant 0 : i32
    %c0_i32_1 = arith.constant 0 : i32
    return %arg0, %c0_i32, %c0_i32_0 : i32, i32, i32
  }
  func.func @transform_1(%arg0: i32) -> (i32, i32, i32) {
    %c0_i32 = arith.constant 0 : i32
    %c0_i32_0 = arith.constant 0 : i32
    %c0_i32_1 = arith.constant 0 : i32
    return %arg0, %c0_i32, %c0_i32_0 : i32, i32, i32
  }
  func.func @transform_2(%arg0: i32) -> (i32, i32, i32) {
    %c0_i32 = arith.constant 0 : i32
    %c0_i32_0 = arith.constant 0 : i32
    %c0_i32_1 = arith.constant 0 : i32
    return %arg0, %c0_i32, %c0_i32_0 : i32, i32, i32
  }
  func.func @transform_3(%arg0: i32) -> (i32, i32, i32, i32) {
    %c0_i32 = arith.constant 0 : i32
    %c0_i32_0 = arith.constant 0 : i32
    %c0_i32_1 = arith.constant 0 : i32
    %c0_i32_2 = arith.constant 0 : i32
    return %arg0, %c0_i32, %c0_i32_0, %c0_i32_1 : i32, i32, i32, i32
  }
  func.func @transform_4(%arg0: i32) -> (i32, i32, i32) {
    %c0_i32 = arith.constant 0 : i32
    %c0_i32_0 = arith.constant 0 : i32
    %c0_i32_1 = arith.constant 0 : i32
    %c0_i32_2 = arith.constant 0 : i32
    return %c0_i32, %c0_i32_0, %c0_i32_1 : i32, i32, i32
  }
  func.func @transform_5(%arg0: i32) -> (i32, i32, i32) {
    %c0_i32 = arith.constant 0 : i32
    %c0_i32_0 = arith.constant 0 : i32
    %c0_i32_1 = arith.constant 0 : i32
    %c0_i32_2 = arith.constant 0 : i32
    return %c0_i32, %c0_i32_0, %c0_i32_1 : i32, i32, i32
  }
  func.func @transform_6(%arg0: i32) -> (i32, i32) {
    %c0_i32 = arith.constant 0 : i32
    %c0_i32_0 = arith.constant 0 : i32
    %c0_i32_1 = arith.constant 0 : i32
    return %c0_i32, %c0_i32_0 : i32, i32
  }
  func.func @transform_7(%arg0: i32) -> (i32, i32) {
    %c0_i32 = arith.constant 0 : i32
    %c0_i32_0 = arith.constant 0 : i32
    %c0_i32_1 = arith.constant 0 : i32
    return %c0_i32, %c0_i32_0 : i32, i32
  }
  func.func @transform_8(%arg0: i32) -> (i32, i32) {
    %c0_i32 = arith.constant 0 : i32
    %c0_i32_0 = arith.constant 0 : i32
    %c0_i32_1 = arith.constant 0 : i32
    return %c0_i32, %c0_i32_0 : i32, i32
  }
  func.func @transform_9(%arg0: i32) -> (i32, i32) {
    %c0_i32 = arith.constant 0 : i32
    %c0_i32_0 = arith.constant 0 : i32
    %c0_i32_1 = arith.constant 0 : i32
    return %c0_i32, %c0_i32_0 : i32, i32
  }
  func.func @transform_10(%arg0: i32) -> (i32, i32) {
    %c0_i32 = arith.constant 0 : i32
    %c0_i32_0 = arith.constant 0 : i32
    %c0_i32_1 = arith.constant 0 : i32
    return %c0_i32, %c0_i32_0 : i32, i32
  }
  func.func @transform_11(%arg0: i32) -> (i32, i32) {
    %c0_i32 = arith.constant 0 : i32
    %c0_i32_0 = arith.constant 0 : i32
    %c0_i32_1 = arith.constant 0 : i32
    return %c0_i32, %c0_i32_0 : i32, i32
  }
  func.func @transform_12(%arg0: i32) -> (i32, i32) {
    %c0_i32 = arith.constant 0 : i32
    %c0_i32_0 = arith.constant 0 : i32
    %c0_i32_1 = arith.constant 0 : i32
    return %c0_i32, %c0_i32_0 : i32, i32
  }
  func.func @transform_13(%arg0: i32) -> (i32, i32) {
    %c0_i32 = arith.constant 0 : i32
    %c0_i32_0 = arith.constant 0 : i32
    %c0_i32_1 = arith.constant 0 : i32
    return %c0_i32, %c0_i32_0 : i32, i32
  }
  func.func @transform_14(%arg0: i32) -> (i32, i32) {
    %c0_i32 = arith.constant 0 : i32
    %c0_i32_0 = arith.constant 0 : i32
    %c0_i32_1 = arith.constant 0 : i32
    return %c0_i32, %c0_i32_0 : i32, i32
  }
  func.func @transform_15(%arg0: i32) -> (i32, i32) {
    %c0_i32 = arith.constant 0 : i32
    %c0_i32_0 = arith.constant 0 : i32
    %c0_i32_1 = arith.constant 0 : i32
    return %c0_i32, %c0_i32_0 : i32, i32
  }
  func.func @transform_16(%arg0: i32) -> (i32, i32, i32) {
    %c0_i32 = arith.constant 0 : i32
    %c0_i32_0 = arith.constant 0 : i32
    %c0_i32_1 = arith.constant 0 : i32
    return %arg0, %c0_i32, %c0_i32_0 : i32, i32, i32
  }
}

module attributes {stable_mosaic.version = 11 : i64} {
  func.func @_cross_ffn_kernel(%arg0: i32, %arg1: memref<1x16x32xf32, #tpu.memory_space<vmem>>, %arg2: memref<1x64x32xf32, #tpu.memory_space<vmem>>, %arg3: memref<1x64x1xf32, #tpu.memory_space<vmem>>, %arg4: memref<1x4x16x64xbf16, #tpu.memory_space<vmem>>, %arg5: memref<4x32x8xbf16, #tpu.memory_space<vmem>>, %arg6: memref<4x1x8xf32, #tpu.memory_space<vmem>>, %arg7: memref<32x32xbf16, #tpu.memory_space<vmem>>, %arg8: memref<1x32xf32, #tpu.memory_space<vmem>>, %arg9: memref<1x32xf32, #tpu.memory_space<vmem>>, %arg10: memref<1x32xf32, #tpu.memory_space<vmem>>, %arg11: memref<32x64xbf16, #tpu.memory_space<vmem>>, %arg12: memref<1x64xf32, #tpu.memory_space<vmem>>, %arg13: memref<64x32xbf16, #tpu.memory_space<vmem>>, %arg14: memref<1x32xf32, #tpu.memory_space<vmem>>, %arg15: memref<1x32xf32, #tpu.memory_space<vmem>>, %arg16: memref<1x32xf32, #tpu.memory_space<vmem>>, %arg17: memref<1x16x32xf32, #tpu.memory_space<vmem>>) attributes {dimension_semantics = [#tpu.dimension_semantics<parallel>], iteration_bounds = array<i64: 2>, scalar_prefetch = 0 : i64, scratch_operands = 0 : i64, tpu.core_type = #tpu.core_type<tc>, window_params = [{transform_indices = @transform_0, window_bounds = array<i64: 1, 16, 32>}, {transform_indices = @transform_1, window_bounds = array<i64: 1, 64, 32>}, {transform_indices = @transform_2, window_bounds = array<i64: 1, 64, 1>}, {transform_indices = @transform_3, window_bounds = array<i64: 1, 4, 16, 64>}, {pipeline_mode = #tpu.pipeline_mode<synchronous>, transform_indices = @transform_4, window_bounds = array<i64: 4, 32, 8>}, {pipeline_mode = #tpu.pipeline_mode<synchronous>, transform_indices = @transform_5, window_bounds = array<i64: 4, 1, 8>}, {pipeline_mode = #tpu.pipeline_mode<synchronous>, transform_indices = @transform_6, window_bounds = array<i64: 32, 32>}, {pipeline_mode = #tpu.pipeline_mode<synchronous>, transform_indices = @transform_7, window_bounds = array<i64: 1, 32>}, {pipeline_mode = #tpu.pipeline_mode<synchronous>, transform_indices = @transform_8, window_bounds = array<i64: 1, 32>}, {pipeline_mode = #tpu.pipeline_mode<synchronous>, transform_indices = @transform_9, window_bounds = array<i64: 1, 32>}, {pipeline_mode = #tpu.pipeline_mode<synchronous>, transform_indices = @transform_10, window_bounds = array<i64: 32, 64>}, {pipeline_mode = #tpu.pipeline_mode<synchronous>, transform_indices = @transform_11, window_bounds = array<i64: 1, 64>}, {pipeline_mode = #tpu.pipeline_mode<synchronous>, transform_indices = @transform_12, window_bounds = array<i64: 64, 32>}, {pipeline_mode = #tpu.pipeline_mode<synchronous>, transform_indices = @transform_13, window_bounds = array<i64: 1, 32>}, {pipeline_mode = #tpu.pipeline_mode<synchronous>, transform_indices = @transform_14, window_bounds = array<i64: 1, 32>}, {pipeline_mode = #tpu.pipeline_mode<synchronous>, transform_indices = @transform_15, window_bounds = array<i64: 1, 32>}, {transform_indices = @transform_16, window_bounds = array<i64: 1, 16, 32>}]} {
    %c0 = arith.constant 0 : index
    %c0_0 = arith.constant 0 : index
    %c0_1 = arith.constant 0 : index
    %0 = vector.load %arg1[%c0, %c0_0, %c0_1] : memref<1x16x32xf32, #tpu.memory_space<vmem>>, vector<1x16x32xf32>
    %1 = vector.shape_cast %0 : vector<1x16x32xf32> to vector<16x32xf32>
    %c0_2 = arith.constant 0 : index
    %c0_3 = arith.constant 0 : index
    %c0_4 = arith.constant 0 : index
    %2 = vector.load %arg2[%c0_2, %c0_3, %c0_4] : memref<1x64x32xf32, #tpu.memory_space<vmem>>, vector<1x64x32xf32>
    %3 = vector.shape_cast %2 : vector<1x64x32xf32> to vector<64x32xf32>
    %c0_5 = arith.constant 0 : index
    %c0_6 = arith.constant 0 : index
    %c0_7 = arith.constant 0 : index
    %4 = vector.load %arg3[%c0_5, %c0_6, %c0_7] : memref<1x64x1xf32, #tpu.memory_space<vmem>>, vector<1x64x1xf32>
    %5 = vector.shape_cast %4 : vector<1x64x1xf32> to vector<64x1xf32>
    %6 = arith.truncf %3 : vector<64x32xf32> to vector<64x32xbf16>
    %c0_8 = arith.constant 0 : index
    %c0_9 = arith.constant 0 : index
    %c0_10 = arith.constant 0 : index
    %7 = vector.load %arg5[%c0_8, %c0_9, %c0_10] : memref<4x32x8xbf16, #tpu.memory_space<vmem>>, vector<1x32x8xbf16>
    %8 = vector.shape_cast %7 : vector<1x32x8xbf16> to vector<32x8xbf16>
    %cst = arith.constant dense<0.000000e+00> : vector<64x8xf32>
    %9 = tpu.matmul %6, %8, %cst {dimension_numbers = #tpu.dot_dimension_numbers<[1], [0], [0], [1], [0, 0, 1, 1], [], []>} : vector<64x32xbf16>, vector<32x8xbf16>, vector<64x8xf32> -> vector<64x8xf32>
    %c0_11 = arith.constant 0 : index
    %c0_12 = arith.constant 0 : index
    %c0_13 = arith.constant 0 : index
    %10 = vector.load %arg6[%c0_11, %c0_12, %c0_13] : memref<4x1x8xf32, #tpu.memory_space<vmem>>, vector<1x1x8xf32>
    %11 = vector.shape_cast %10 : vector<1x1x8xf32> to vector<1x8xf32>
    %12 = vector.broadcast %11 : vector<1x8xf32> to vector<64x8xf32>
    %13 = arith.addf %9, %12 : vector<64x8xf32>
    %14 = vector.broadcast %5 : vector<64x1xf32> to vector<64x8xf32>
    %15 = arith.mulf %13, %14 : vector<64x8xf32>
    %c0_14 = arith.constant 0 : index
    %c0_15 = arith.constant 0 : index
    %c0_16 = arith.constant 0 : index
    %c0_17 = arith.constant 0 : index
    %16 = vector.load %arg4[%c0_14, %c0_15, %c0_16, %c0_17] : memref<1x4x16x64xbf16, #tpu.memory_space<vmem>>, vector<1x1x16x64xbf16>
    %17 = vector.shape_cast %16 : vector<1x1x16x64xbf16> to vector<16x64xbf16>
    %18 = arith.truncf %15 : vector<64x8xf32> to vector<64x8xbf16>
    %cst_18 = arith.constant dense<0.000000e+00> : vector<16x8xf32>
    %19 = tpu.matmul %17, %18, %cst_18 {dimension_numbers = #tpu.dot_dimension_numbers<[1], [0], [0], [1], [0, 0, 1, 1], [], []>} : vector<16x64xbf16>, vector<64x8xbf16>, vector<16x8xf32> -> vector<16x8xf32>
    %c1 = arith.constant 1 : index
    %c0_19 = arith.constant 0 : index
    %c0_20 = arith.constant 0 : index
    %20 = vector.load %arg5[%c1, %c0_19, %c0_20] : memref<4x32x8xbf16, #tpu.memory_space<vmem>>, vector<1x32x8xbf16>
    %21 = vector.shape_cast %20 : vector<1x32x8xbf16> to vector<32x8xbf16>
    %cst_21 = arith.constant dense<0.000000e+00> : vector<64x8xf32>
    %22 = tpu.matmul %6, %21, %cst_21 {dimension_numbers = #tpu.dot_dimension_numbers<[1], [0], [0], [1], [0, 0, 1, 1], [], []>} : vector<64x32xbf16>, vector<32x8xbf16>, vector<64x8xf32> -> vector<64x8xf32>
    %c1_22 = arith.constant 1 : index
    %c0_23 = arith.constant 0 : index
    %c0_24 = arith.constant 0 : index
    %23 = vector.load %arg6[%c1_22, %c0_23, %c0_24] : memref<4x1x8xf32, #tpu.memory_space<vmem>>, vector<1x1x8xf32>
    %24 = vector.shape_cast %23 : vector<1x1x8xf32> to vector<1x8xf32>
    %25 = vector.broadcast %24 : vector<1x8xf32> to vector<64x8xf32>
    %26 = arith.addf %22, %25 : vector<64x8xf32>
    %27 = vector.broadcast %5 : vector<64x1xf32> to vector<64x8xf32>
    %28 = arith.mulf %26, %27 : vector<64x8xf32>
    %c0_25 = arith.constant 0 : index
    %c1_26 = arith.constant 1 : index
    %c0_27 = arith.constant 0 : index
    %c0_28 = arith.constant 0 : index
    %29 = vector.load %arg4[%c0_25, %c1_26, %c0_27, %c0_28] : memref<1x4x16x64xbf16, #tpu.memory_space<vmem>>, vector<1x1x16x64xbf16>
    %30 = vector.shape_cast %29 : vector<1x1x16x64xbf16> to vector<16x64xbf16>
    %31 = arith.truncf %28 : vector<64x8xf32> to vector<64x8xbf16>
    %cst_29 = arith.constant dense<0.000000e+00> : vector<16x8xf32>
    %32 = tpu.matmul %30, %31, %cst_29 {dimension_numbers = #tpu.dot_dimension_numbers<[1], [0], [0], [1], [0, 0, 1, 1], [], []>} : vector<16x64xbf16>, vector<64x8xbf16>, vector<16x8xf32> -> vector<16x8xf32>
    %c2 = arith.constant 2 : index
    %c0_30 = arith.constant 0 : index
    %c0_31 = arith.constant 0 : index
    %33 = vector.load %arg5[%c2, %c0_30, %c0_31] : memref<4x32x8xbf16, #tpu.memory_space<vmem>>, vector<1x32x8xbf16>
    %34 = vector.shape_cast %33 : vector<1x32x8xbf16> to vector<32x8xbf16>
    %cst_32 = arith.constant dense<0.000000e+00> : vector<64x8xf32>
    %35 = tpu.matmul %6, %34, %cst_32 {dimension_numbers = #tpu.dot_dimension_numbers<[1], [0], [0], [1], [0, 0, 1, 1], [], []>} : vector<64x32xbf16>, vector<32x8xbf16>, vector<64x8xf32> -> vector<64x8xf32>
    %c2_33 = arith.constant 2 : index
    %c0_34 = arith.constant 0 : index
    %c0_35 = arith.constant 0 : index
    %36 = vector.load %arg6[%c2_33, %c0_34, %c0_35] : memref<4x1x8xf32, #tpu.memory_space<vmem>>, vector<1x1x8xf32>
    %37 = vector.shape_cast %36 : vector<1x1x8xf32> to vector<1x8xf32>
    %38 = vector.broadcast %37 : vector<1x8xf32> to vector<64x8xf32>
    %39 = arith.addf %35, %38 : vector<64x8xf32>
    %40 = vector.broadcast %5 : vector<64x1xf32> to vector<64x8xf32>
    %41 = arith.mulf %39, %40 : vector<64x8xf32>
    %c0_36 = arith.constant 0 : index
    %c2_37 = arith.constant 2 : index
    %c0_38 = arith.constant 0 : index
    %c0_39 = arith.constant 0 : index
    %42 = vector.load %arg4[%c0_36, %c2_37, %c0_38, %c0_39] : memref<1x4x16x64xbf16, #tpu.memory_space<vmem>>, vector<1x1x16x64xbf16>
    %43 = vector.shape_cast %42 : vector<1x1x16x64xbf16> to vector<16x64xbf16>
    %44 = arith.truncf %41 : vector<64x8xf32> to vector<64x8xbf16>
    %cst_40 = arith.constant dense<0.000000e+00> : vector<16x8xf32>
    %45 = tpu.matmul %43, %44, %cst_40 {dimension_numbers = #tpu.dot_dimension_numbers<[1], [0], [0], [1], [0, 0, 1, 1], [], []>} : vector<16x64xbf16>, vector<64x8xbf16>, vector<16x8xf32> -> vector<16x8xf32>
    %c3 = arith.constant 3 : index
    %c0_41 = arith.constant 0 : index
    %c0_42 = arith.constant 0 : index
    %46 = vector.load %arg5[%c3, %c0_41, %c0_42] : memref<4x32x8xbf16, #tpu.memory_space<vmem>>, vector<1x32x8xbf16>
    %47 = vector.shape_cast %46 : vector<1x32x8xbf16> to vector<32x8xbf16>
    %cst_43 = arith.constant dense<0.000000e+00> : vector<64x8xf32>
    %48 = tpu.matmul %6, %47, %cst_43 {dimension_numbers = #tpu.dot_dimension_numbers<[1], [0], [0], [1], [0, 0, 1, 1], [], []>} : vector<64x32xbf16>, vector<32x8xbf16>, vector<64x8xf32> -> vector<64x8xf32>
    %c3_44 = arith.constant 3 : index
    %c0_45 = arith.constant 0 : index
    %c0_46 = arith.constant 0 : index
    %49 = vector.load %arg6[%c3_44, %c0_45, %c0_46] : memref<4x1x8xf32, #tpu.memory_space<vmem>>, vector<1x1x8xf32>
    %50 = vector.shape_cast %49 : vector<1x1x8xf32> to vector<1x8xf32>
    %51 = vector.broadcast %50 : vector<1x8xf32> to vector<64x8xf32>
    %52 = arith.addf %48, %51 : vector<64x8xf32>
    %53 = vector.broadcast %5 : vector<64x1xf32> to vector<64x8xf32>
    %54 = arith.mulf %52, %53 : vector<64x8xf32>
    %c0_47 = arith.constant 0 : index
    %c3_48 = arith.constant 3 : index
    %c0_49 = arith.constant 0 : index
    %c0_50 = arith.constant 0 : index
    %55 = vector.load %arg4[%c0_47, %c3_48, %c0_49, %c0_50] : memref<1x4x16x64xbf16, #tpu.memory_space<vmem>>, vector<1x1x16x64xbf16>
    %56 = vector.shape_cast %55 : vector<1x1x16x64xbf16> to vector<16x64xbf16>
    %57 = arith.truncf %54 : vector<64x8xf32> to vector<64x8xbf16>
    %cst_51 = arith.constant dense<0.000000e+00> : vector<16x8xf32>
    %58 = tpu.matmul %56, %57, %cst_51 {dimension_numbers = #tpu.dot_dimension_numbers<[1], [0], [0], [1], [0, 0, 1, 1], [], []>} : vector<16x64xbf16>, vector<64x8xbf16>, vector<16x8xf32> -> vector<16x8xf32>
    %59 = tpu.concatenate %19, %32, %45, %58 in 1 : vector<16x8xf32>, vector<16x8xf32>, vector<16x8xf32>, vector<16x8xf32> -> vector<16x32xf32>
    %60 = arith.truncf %59 : vector<16x32xf32> to vector<16x32xbf16>
    %c0_52 = arith.constant 0 : index
    %c0_53 = arith.constant 0 : index
    %61 = vector.load %arg7[%c0_52, %c0_53] : memref<32x32xbf16, #tpu.memory_space<vmem>>, vector<32x32xbf16>
    %cst_54 = arith.constant dense<0.000000e+00> : vector<16x32xf32>
    %62 = tpu.matmul %60, %61, %cst_54 {dimension_numbers = #tpu.dot_dimension_numbers<[1], [0], [0], [1], [0, 0, 1, 1], [], []>} : vector<16x32xbf16>, vector<32x32xbf16>, vector<16x32xf32> -> vector<16x32xf32>
    %c0_55 = arith.constant 0 : index
    %c0_56 = arith.constant 0 : index
    %63 = vector.load %arg8[%c0_55, %c0_56] : memref<1x32xf32, #tpu.memory_space<vmem>>, vector<1x32xf32>
    %64 = vector.broadcast %63 : vector<1x32xf32> to vector<16x32xf32>
    %65 = arith.addf %62, %64 : vector<16x32xf32>
    %66 = arith.addf %1, %65 : vector<16x32xf32>
    %cst_57 = arith.constant dense<0.000000e+00> : vector<16xf32>
    %67 = vector.multi_reduction <add>, %66, %cst_57 [1] : vector<16x32xf32> to vector<16xf32>
    %68 = vector.shape_cast %67 : vector<16xf32> to vector<16x1xf32>
    %cst_58 = arith.constant 3.200000e+01 : f32
    %69 = vector.broadcast %cst_58 : f32 to vector<16x1xf32>
    %70 = arith.divf %68, %69 : vector<16x1xf32>
    %71 = vector.broadcast %70 : vector<16x1xf32> to vector<16x32xf32>
    %72 = arith.subf %66, %71 : vector<16x32xf32>
    %73 = arith.mulf %72, %72 : vector<16x32xf32>
    %cst_59 = arith.constant dense<0.000000e+00> : vector<16xf32>
    %74 = vector.multi_reduction <add>, %73, %cst_59 [1] : vector<16x32xf32> to vector<16xf32>
    %75 = vector.shape_cast %74 : vector<16xf32> to vector<16x1xf32>
    %cst_60 = arith.constant 3.200000e+01 : f32
    %76 = vector.broadcast %cst_60 : f32 to vector<16x1xf32>
    %77 = arith.divf %75, %76 : vector<16x1xf32>
    %78 = vector.broadcast %70 : vector<16x1xf32> to vector<16x32xf32>
    %79 = arith.subf %66, %78 : vector<16x32xf32>
    %cst_61 = arith.constant 9.99999974E-6 : f32
    %80 = vector.broadcast %cst_61 : f32 to vector<16x1xf32>
    %81 = arith.addf %77, %80 : vector<16x1xf32>
    %82 = math.rsqrt %81 : vector<16x1xf32>
    %83 = vector.broadcast %82 : vector<16x1xf32> to vector<16x32xf32>
    %84 = arith.mulf %79, %83 : vector<16x32xf32>
    %c0_62 = arith.constant 0 : index
    %c0_63 = arith.constant 0 : index
    %85 = vector.load %arg9[%c0_62, %c0_63] : memref<1x32xf32, #tpu.memory_space<vmem>>, vector<1x32xf32>
    %86 = vector.broadcast %85 : vector<1x32xf32> to vector<16x32xf32>
    %87 = arith.mulf %84, %86 : vector<16x32xf32>
    %c0_64 = arith.constant 0 : index
    %c0_65 = arith.constant 0 : index
    %88 = vector.load %arg10[%c0_64, %c0_65] : memref<1x32xf32, #tpu.memory_space<vmem>>, vector<1x32xf32>
    %89 = vector.broadcast %88 : vector<1x32xf32> to vector<16x32xf32>
    %90 = arith.addf %87, %89 : vector<16x32xf32>
    %91 = arith.truncf %90 : vector<16x32xf32> to vector<16x32xbf16>
    %c0_66 = arith.constant 0 : index
    %c0_67 = arith.constant 0 : index
    %92 = vector.load %arg11[%c0_66, %c0_67] : memref<32x64xbf16, #tpu.memory_space<vmem>>, vector<32x64xbf16>
    %cst_68 = arith.constant dense<0.000000e+00> : vector<16x64xf32>
    %93 = tpu.matmul %91, %92, %cst_68 {dimension_numbers = #tpu.dot_dimension_numbers<[1], [0], [0], [1], [0, 0, 1, 1], [], []>} : vector<16x32xbf16>, vector<32x64xbf16>, vector<16x64xf32> -> vector<16x64xf32>
    %c0_69 = arith.constant 0 : index
    %c0_70 = arith.constant 0 : index
    %94 = vector.load %arg12[%c0_69, %c0_70] : memref<1x64xf32, #tpu.memory_space<vmem>>, vector<1x64xf32>
    %95 = vector.broadcast %94 : vector<1x64xf32> to vector<16x64xf32>
    %96 = arith.addf %93, %95 : vector<16x64xf32>
    %cst_71 = arith.constant 0.000000e+00 : f32
    %97 = vector.broadcast %cst_71 : f32 to vector<16x64xf32>
    %98 = arith.maximumf %96, %97 : vector<16x64xf32>
    %99 = arith.truncf %98 : vector<16x64xf32> to vector<16x64xbf16>
    %c0_72 = arith.constant 0 : index
    %c0_73 = arith.constant 0 : index
    %100 = vector.load %arg13[%c0_72, %c0_73] : memref<64x32xbf16, #tpu.memory_space<vmem>>, vector<64x32xbf16>
    %cst_74 = arith.constant dense<0.000000e+00> : vector<16x32xf32>
    %101 = tpu.matmul %99, %100, %cst_74 {dimension_numbers = #tpu.dot_dimension_numbers<[1], [0], [0], [1], [0, 0, 1, 1], [], []>} : vector<16x64xbf16>, vector<64x32xbf16>, vector<16x32xf32> -> vector<16x32xf32>
    %c0_75 = arith.constant 0 : index
    %c0_76 = arith.constant 0 : index
    %102 = vector.load %arg14[%c0_75, %c0_76] : memref<1x32xf32, #tpu.memory_space<vmem>>, vector<1x32xf32>
    %103 = vector.broadcast %102 : vector<1x32xf32> to vector<16x32xf32>
    %104 = arith.addf %101, %103 : vector<16x32xf32>
    %105 = arith.addf %90, %104 : vector<16x32xf32>
    %cst_77 = arith.constant dense<0.000000e+00> : vector<16xf32>
    %106 = vector.multi_reduction <add>, %105, %cst_77 [1] : vector<16x32xf32> to vector<16xf32>
    %107 = vector.shape_cast %106 : vector<16xf32> to vector<16x1xf32>
    %cst_78 = arith.constant 3.200000e+01 : f32
    %108 = vector.broadcast %cst_78 : f32 to vector<16x1xf32>
    %109 = arith.divf %107, %108 : vector<16x1xf32>
    %110 = vector.broadcast %109 : vector<16x1xf32> to vector<16x32xf32>
    %111 = arith.subf %105, %110 : vector<16x32xf32>
    %112 = arith.mulf %111, %111 : vector<16x32xf32>
    %cst_79 = arith.constant dense<0.000000e+00> : vector<16xf32>
    %113 = vector.multi_reduction <add>, %112, %cst_79 [1] : vector<16x32xf32> to vector<16xf32>
    %114 = vector.shape_cast %113 : vector<16xf32> to vector<16x1xf32>
    %cst_80 = arith.constant 3.200000e+01 : f32
    %115 = vector.broadcast %cst_80 : f32 to vector<16x1xf32>
    %116 = arith.divf %114, %115 : vector<16x1xf32>
    %117 = vector.broadcast %109 : vector<16x1xf32> to vector<16x32xf32>
    %118 = arith.subf %105, %117 : vector<16x32xf32>
    %cst_81 = arith.constant 9.99999974E-6 : f32
    %119 = vector.broadcast %cst_81 : f32 to vector<16x1xf32>
    %120 = arith.addf %116, %119 : vector<16x1xf32>
    %121 = math.rsqrt %120 : vector<16x1xf32>
    %122 = vector.broadcast %121 : vector<16x1xf32> to vector<16x32xf32>
    %123 = arith.mulf %118, %122 : vector<16x32xf32>
    %c0_82 = arith.constant 0 : index
    %c0_83 = arith.constant 0 : index
    %124 = vector.load %arg15[%c0_82, %c0_83] : memref<1x32xf32, #tpu.memory_space<vmem>>, vector<1x32xf32>
    %125 = vector.broadcast %124 : vector<1x32xf32> to vector<16x32xf32>
    %126 = arith.mulf %123, %125 : vector<16x32xf32>
    %c0_84 = arith.constant 0 : index
    %c0_85 = arith.constant 0 : index
    %127 = vector.load %arg16[%c0_84, %c0_85] : memref<1x32xf32, #tpu.memory_space<vmem>>, vector<1x32xf32>
    %128 = vector.broadcast %127 : vector<1x32xf32> to vector<16x32xf32>
    %129 = arith.addf %126, %128 : vector<16x32xf32>
    %c0_86 = arith.constant 0 : index
    %c0_87 = arith.constant 0 : index
    %c0_88 = arith.constant 0 : index
    %130 = vector.load %arg17[%c0_86, %c0_87, %c0_88] : memref<1x16x32xf32, #tpu.memory_space<vmem>>, vector<1x16x32xf32>
    %131 = vector.shape_cast %130 : vector<1x16x32xf32> to vector<16x32xf32>
    %132 = vector.shape_cast %129 : vector<16x32xf32> to vector<1x16x32xf32>
    tpu.vector_store %arg17[%c0_86, %c0_87, %c0_88], %132 {strides = array<i32>} : memref<1x16x32xf32, #tpu.memory_space<vmem>>, vector<1x16x32xf32>,
    return
  }
  func.func @transform_0(%arg0: i32) -> (i32, i32, i32) {
    %c0_i32 = arith.constant 0 : i32
    %c0_i32_0 = arith.constant 0 : i32
    %c0_i32_1 = arith.constant 0 : i32
    return %arg0, %c0_i32, %c0_i32_0 : i32, i32, i32
  }
  func.func @transform_1(%arg0: i32) -> (i32, i32, i32) {
    %c0_i32 = arith.constant 0 : i32
    %c0_i32_0 = arith.constant 0 : i32
    %c0_i32_1 = arith.constant 0 : i32
    return %arg0, %c0_i32, %c0_i32_0 : i32, i32, i32
  }
  func.func @transform_2(%arg0: i32) -> (i32, i32, i32) {
    %c0_i32 = arith.constant 0 : i32
    %c0_i32_0 = arith.constant 0 : i32
    %c0_i32_1 = arith.constant 0 : i32
    return %arg0, %c0_i32, %c0_i32_0 : i32, i32, i32
  }
  func.func @transform_3(%arg0: i32) -> (i32, i32, i32, i32) {
    %c0_i32 = arith.constant 0 : i32
    %c0_i32_0 = arith.constant 0 : i32
    %c0_i32_1 = arith.constant 0 : i32
    %c0_i32_2 = arith.constant 0 : i32
    return %arg0, %c0_i32, %c0_i32_0, %c0_i32_1 : i32, i32, i32, i32
  }
  func.func @transform_4(%arg0: i32) -> (i32, i32, i32) {
    %c0_i32 = arith.constant 0 : i32
    %c0_i32_0 = arith.constant 0 : i32
    %c0_i32_1 = arith.constant 0 : i32
    %c0_i32_2 = arith.constant 0 : i32
    return %c0_i32, %c0_i32_0, %c0_i32_1 : i32, i32, i32
  }
  func.func @transform_5(%arg0: i32) -> (i32, i32, i32) {
    %c0_i32 = arith.constant 0 : i32
    %c0_i32_0 = arith.constant 0 : i32
    %c0_i32_1 = arith.constant 0 : i32
    %c0_i32_2 = arith.constant 0 : i32
    return %c0_i32, %c0_i32_0, %c0_i32_1 : i32, i32, i32
  }
  func.func @transform_6(%arg0: i32) -> (i32, i32) {
    %c0_i32 = arith.constant 0 : i32
    %c0_i32_0 = arith.constant 0 : i32
    %c0_i32_1 = arith.constant 0 : i32
    return %c0_i32, %c0_i32_0 : i32, i32
  }
  func.func @transform_7(%arg0: i32) -> (i32, i32) {
    %c0_i32 = arith.constant 0 : i32
    %c0_i32_0 = arith.constant 0 : i32
    %c0_i32_1 = arith.constant 0 : i32
    return %c0_i32, %c0_i32_0 : i32, i32
  }
  func.func @transform_8(%arg0: i32) -> (i32, i32) {
    %c0_i32 = arith.constant 0 : i32
    %c0_i32_0 = arith.constant 0 : i32
    %c0_i32_1 = arith.constant 0 : i32
    return %c0_i32, %c0_i32_0 : i32, i32
  }
  func.func @transform_9(%arg0: i32) -> (i32, i32) {
    %c0_i32 = arith.constant 0 : i32
    %c0_i32_0 = arith.constant 0 : i32
    %c0_i32_1 = arith.constant 0 : i32
    return %c0_i32, %c0_i32_0 : i32, i32
  }
  func.func @transform_10(%arg0: i32) -> (i32, i32) {
    %c0_i32 = arith.constant 0 : i32
    %c0_i32_0 = arith.constant 0 : i32
    %c0_i32_1 = arith.constant 0 : i32
    return %c0_i32, %c0_i32_0 : i32, i32
  }
  func.func @transform_11(%arg0: i32) -> (i32, i32) {
    %c0_i32 = arith.constant 0 : i32
    %c0_i32_0 = arith.constant 0 : i32
    %c0_i32_1 = arith.constant 0 : i32
    return %c0_i32, %c0_i32_0 : i32, i32
  }
  func.func @transform_12(%arg0: i32) -> (i32, i32) {
    %c0_i32 = arith.constant 0 : i32
    %c0_i32_0 = arith.constant 0 : i32
    %c0_i32_1 = arith.constant 0 : i32
    return %c0_i32, %c0_i32_0 : i32, i32
  }
  func.func @transform_13(%arg0: i32) -> (i32, i32) {
    %c0_i32 = arith.constant 0 : i32
    %c0_i32_0 = arith.constant 0 : i32
    %c0_i32_1 = arith.constant 0 : i32
    return %c0_i32, %c0_i32_0 : i32, i32
  }
  func.func @transform_14(%arg0: i32) -> (i32, i32) {
    %c0_i32 = arith.constant 0 : i32
    %c0_i32_0 = arith.constant 0 : i32
    %c0_i32_1 = arith.constant 0 : i32
    return %c0_i32, %c0_i32_0 : i32, i32
  }
  func.func @transform_15(%arg0: i32) -> (i32, i32) {
    %c0_i32 = arith.constant 0 : i32
    %c0_i32_0 = arith.constant 0 : i32
    %c0_i32_1 = arith.constant 0 : i32
    return %c0_i32, %c0_i32_0 : i32, i32
  }
  func.func @transform_16(%arg0: i32) -> (i32, i32, i32) {
    %c0_i32 = arith.constant 0 : i32
    %c0_i32_0 = arith.constant 0 : i32
    %c0_i32_1 = arith.constant 0 : i32
    return %arg0, %c0_i32, %c0_i32_0 : i32, i32, i32
  }
}

module attributes {stable_mosaic.version = 11 : i64} {
  func.func @_cross_ffn_kernel(%arg0: i32, %arg1: memref<1x16x32xf32, #tpu.memory_space<vmem>>, %arg2: memref<1x64x32xf32, #tpu.memory_space<vmem>>, %arg3: memref<1x64x1xf32, #tpu.memory_space<vmem>>, %arg4: memref<1x4x16x64xbf16, #tpu.memory_space<vmem>>, %arg5: memref<4x32x8xbf16, #tpu.memory_space<vmem>>, %arg6: memref<4x1x8xf32, #tpu.memory_space<vmem>>, %arg7: memref<32x32xbf16, #tpu.memory_space<vmem>>, %arg8: memref<1x32xf32, #tpu.memory_space<vmem>>, %arg9: memref<1x32xf32, #tpu.memory_space<vmem>>, %arg10: memref<1x32xf32, #tpu.memory_space<vmem>>, %arg11: memref<32x64xbf16, #tpu.memory_space<vmem>>, %arg12: memref<1x64xf32, #tpu.memory_space<vmem>>, %arg13: memref<64x32xbf16, #tpu.memory_space<vmem>>, %arg14: memref<1x32xf32, #tpu.memory_space<vmem>>, %arg15: memref<1x32xf32, #tpu.memory_space<vmem>>, %arg16: memref<1x32xf32, #tpu.memory_space<vmem>>, %arg17: memref<1x16x32xf32, #tpu.memory_space<vmem>>) attributes {dimension_semantics = [#tpu.dimension_semantics<parallel>], iteration_bounds = array<i64: 2>, scalar_prefetch = 0 : i64, scratch_operands = 0 : i64, tpu.core_type = #tpu.core_type<tc>, window_params = [{transform_indices = @transform_0, window_bounds = array<i64: 1, 16, 32>}, {transform_indices = @transform_1, window_bounds = array<i64: 1, 64, 32>}, {transform_indices = @transform_2, window_bounds = array<i64: 1, 64, 1>}, {transform_indices = @transform_3, window_bounds = array<i64: 1, 4, 16, 64>}, {pipeline_mode = #tpu.pipeline_mode<synchronous>, transform_indices = @transform_4, window_bounds = array<i64: 4, 32, 8>}, {pipeline_mode = #tpu.pipeline_mode<synchronous>, transform_indices = @transform_5, window_bounds = array<i64: 4, 1, 8>}, {pipeline_mode = #tpu.pipeline_mode<synchronous>, transform_indices = @transform_6, window_bounds = array<i64: 32, 32>}, {pipeline_mode = #tpu.pipeline_mode<synchronous>, transform_indices = @transform_7, window_bounds = array<i64: 1, 32>}, {pipeline_mode = #tpu.pipeline_mode<synchronous>, transform_indices = @transform_8, window_bounds = array<i64: 1, 32>}, {pipeline_mode = #tpu.pipeline_mode<synchronous>, transform_indices = @transform_9, window_bounds = array<i64: 1, 32>}, {pipeline_mode = #tpu.pipeline_mode<synchronous>, transform_indices = @transform_10, window_bounds = array<i64: 32, 64>}, {pipeline_mode = #tpu.pipeline_mode<synchronous>, transform_indices = @transform_11, window_bounds = array<i64: 1, 64>}, {pipeline_mode = #tpu.pipeline_mode<synchronous>, transform_indices = @transform_12, window_bounds = array<i64: 64, 32>}, {pipeline_mode = #tpu.pipeline_mode<synchronous>, transform_indices = @transform_13, window_bounds = array<i64: 1, 32>}, {pipeline_mode = #tpu.pipeline_mode<synchronous>, transform_indices = @transform_14, window_bounds = array<i64: 1, 32>}, {pipeline_mode = #tpu.pipeline_mode<synchronous>, transform_indices = @transform_15, window_bounds = array<i64: 1, 32>}, {transform_indices = @transform_16, window_bounds = array<i64: 1, 16, 32>}]} {
    %c0 = arith.constant 0 : index
    %c0_0 = arith.constant 0 : index
    %c0_1 = arith.constant 0 : index
    %0 = vector.load %arg1[%c0, %c0_0, %c0_1] : memref<1x16x32xf32, #tpu.memory_space<vmem>>, vector<1x16x32xf32>
    %1 = vector.shape_cast %0 : vector<1x16x32xf32> to vector<16x32xf32>
    %c0_2 = arith.constant 0 : index
    %c0_3 = arith.constant 0 : index
    %c0_4 = arith.constant 0 : index
    %2 = vector.load %arg2[%c0_2, %c0_3, %c0_4] : memref<1x64x32xf32, #tpu.memory_space<vmem>>, vector<1x64x32xf32>
    %3 = vector.shape_cast %2 : vector<1x64x32xf32> to vector<64x32xf32>
    %c0_5 = arith.constant 0 : index
    %c0_6 = arith.constant 0 : index
    %c0_7 = arith.constant 0 : index
    %4 = vector.load %arg3[%c0_5, %c0_6, %c0_7] : memref<1x64x1xf32, #tpu.memory_space<vmem>>, vector<1x64x1xf32>
    %5 = vector.shape_cast %4 : vector<1x64x1xf32> to vector<64x1xf32>
    %6 = arith.truncf %3 : vector<64x32xf32> to vector<64x32xbf16>
    %c0_8 = arith.constant 0 : index
    %c0_9 = arith.constant 0 : index
    %c0_10 = arith.constant 0 : index
    %7 = vector.load %arg5[%c0_8, %c0_9, %c0_10] : memref<4x32x8xbf16, #tpu.memory_space<vmem>>, vector<1x32x8xbf16>
    %8 = vector.shape_cast %7 : vector<1x32x8xbf16> to vector<32x8xbf16>
    %cst = arith.constant dense<0.000000e+00> : vector<64x8xf32>
    %9 = tpu.matmul %6, %8, %cst {dimension_numbers = #tpu.dot_dimension_numbers<[1], [0], [0], [1], [0, 0, 1, 1], [], []>} : vector<64x32xbf16>, vector<32x8xbf16>, vector<64x8xf32> -> vector<64x8xf32>
    %c0_11 = arith.constant 0 : index
    %c0_12 = arith.constant 0 : index
    %c0_13 = arith.constant 0 : index
    %10 = vector.load %arg6[%c0_11, %c0_12, %c0_13] : memref<4x1x8xf32, #tpu.memory_space<vmem>>, vector<1x1x8xf32>
    %11 = vector.shape_cast %10 : vector<1x1x8xf32> to vector<1x8xf32>
    %12 = vector.broadcast %11 : vector<1x8xf32> to vector<64x8xf32>
    %13 = arith.addf %9, %12 : vector<64x8xf32>
    %14 = vector.broadcast %5 : vector<64x1xf32> to vector<64x8xf32>
    %15 = arith.mulf %13, %14 : vector<64x8xf32>
    %c0_14 = arith.constant 0 : index
    %c0_15 = arith.constant 0 : index
    %c0_16 = arith.constant 0 : index
    %c0_17 = arith.constant 0 : index
    %16 = vector.load %arg4[%c0_14, %c0_15, %c0_16, %c0_17] : memref<1x4x16x64xbf16, #tpu.memory_space<vmem>>, vector<1x1x16x64xbf16>
    %17 = vector.shape_cast %16 : vector<1x1x16x64xbf16> to vector<16x64xbf16>
    %18 = arith.truncf %15 : vector<64x8xf32> to vector<64x8xbf16>
    %cst_18 = arith.constant dense<0.000000e+00> : vector<16x8xf32>
    %19 = tpu.matmul %17, %18, %cst_18 {dimension_numbers = #tpu.dot_dimension_numbers<[1], [0], [0], [1], [0, 0, 1, 1], [], []>} : vector<16x64xbf16>, vector<64x8xbf16>, vector<16x8xf32> -> vector<16x8xf32>
    %c1 = arith.constant 1 : index
    %c0_19 = arith.constant 0 : index
    %c0_20 = arith.constant 0 : index
    %20 = vector.load %arg5[%c1, %c0_19, %c0_20] : memref<4x32x8xbf16, #tpu.memory_space<vmem>>, vector<1x32x8xbf16>
    %21 = vector.shape_cast %20 : vector<1x32x8xbf16> to vector<32x8xbf16>
    %cst_21 = arith.constant dense<0.000000e+00> : vector<64x8xf32>
    %22 = tpu.matmul %6, %21, %cst_21 {dimension_numbers = #tpu.dot_dimension_numbers<[1], [0], [0], [1], [0, 0, 1, 1], [], []>} : vector<64x32xbf16>, vector<32x8xbf16>, vector<64x8xf32> -> vector<64x8xf32>
    %c1_22 = arith.constant 1 : index
    %c0_23 = arith.constant 0 : index
    %c0_24 = arith.constant 0 : index
    %23 = vector.load %arg6[%c1_22, %c0_23, %c0_24] : memref<4x1x8xf32, #tpu.memory_space<vmem>>, vector<1x1x8xf32>
    %24 = vector.shape_cast %23 : vector<1x1x8xf32> to vector<1x8xf32>
    %25 = vector.broadcast %24 : vector<1x8xf32> to vector<64x8xf32>
    %26 = arith.addf %22, %25 : vector<64x8xf32>
    %27 = vector.broadcast %5 : vector<64x1xf32> to vector<64x8xf32>
    %28 = arith.mulf %26, %27 : vector<64x8xf32>
    %c0_25 = arith.constant 0 : index
    %c1_26 = arith.constant 1 : index
    %c0_27 = arith.constant 0 : index
    %c0_28 = arith.constant 0 : index
    %29 = vector.load %arg4[%c0_25, %c1_26, %c0_27, %c0_28] : memref<1x4x16x64xbf16, #tpu.memory_space<vmem>>, vector<1x1x16x64xbf16>
    %30 = vector.shape_cast %29 : vector<1x1x16x64xbf16> to vector<16x64xbf16>
    %31 = arith.truncf %28 : vector<64x8xf32> to vector<64x8xbf16>
    %cst_29 = arith.constant dense<0.000000e+00> : vector<16x8xf32>
    %32 = tpu.matmul %30, %31, %cst_29 {dimension_numbers = #tpu.dot_dimension_numbers<[1], [0], [0], [1], [0, 0, 1, 1], [], []>} : vector<16x64xbf16>, vector<64x8xbf16>, vector<16x8xf32> -> vector<16x8xf32>
    %c2 = arith.constant 2 : index
    %c0_30 = arith.constant 0 : index
    %c0_31 = arith.constant 0 : index
    %33 = vector.load %arg5[%c2, %c0_30, %c0_31] : memref<4x32x8xbf16, #tpu.memory_space<vmem>>, vector<1x32x8xbf16>
    %34 = vector.shape_cast %33 : vector<1x32x8xbf16> to vector<32x8xbf16>
    %cst_32 = arith.constant dense<0.000000e+00> : vector<64x8xf32>
    %35 = tpu.matmul %6, %34, %cst_32 {dimension_numbers = #tpu.dot_dimension_numbers<[1], [0], [0], [1], [0, 0, 1, 1], [], []>} : vector<64x32xbf16>, vector<32x8xbf16>, vector<64x8xf32> -> vector<64x8xf32>
    %c2_33 = arith.constant 2 : index
    %c0_34 = arith.constant 0 : index
    %c0_35 = arith.constant 0 : index
    %36 = vector.load %arg6[%c2_33, %c0_34, %c0_35] : memref<4x1x8xf32, #tpu.memory_space<vmem>>, vector<1x1x8xf32>
    %37 = vector.shape_cast %36 : vector<1x1x8xf32> to vector<1x8xf32>
    %38 = vector.broadcast %37 : vector<1x8xf32> to vector<64x8xf32>
    %39 = arith.addf %35, %38 : vector<64x8xf32>
    %40 = vector.broadcast %5 : vector<64x1xf32> to vector<64x8xf32>
    %41 = arith.mulf %39, %40 : vector<64x8xf32>
    %c0_36 = arith.constant 0 : index
    %c2_37 = arith.constant 2 : index
    %c0_38 = arith.constant 0 : index
    %c0_39 = arith.constant 0 : index
    %42 = vector.load %arg4[%c0_36, %c2_37, %c0_38, %c0_39] : memref<1x4x16x64xbf16, #tpu.memory_space<vmem>>, vector<1x1x16x64xbf16>
    %43 = vector.shape_cast %42 : vector<1x1x16x64xbf16> to vector<16x64xbf16>
    %44 = arith.truncf %41 : vector<64x8xf32> to vector<64x8xbf16>
    %cst_40 = arith.constant dense<0.000000e+00> : vector<16x8xf32>
    %45 = tpu.matmul %43, %44, %cst_40 {dimension_numbers = #tpu.dot_dimension_numbers<[1], [0], [0], [1], [0, 0, 1, 1], [], []>} : vector<16x64xbf16>, vector<64x8xbf16>, vector<16x8xf32> -> vector<16x8xf32>
    %c3 = arith.constant 3 : index
    %c0_41 = arith.constant 0 : index
    %c0_42 = arith.constant 0 : index
    %46 = vector.load %arg5[%c3, %c0_41, %c0_42] : memref<4x32x8xbf16, #tpu.memory_space<vmem>>, vector<1x32x8xbf16>
    %47 = vector.shape_cast %46 : vector<1x32x8xbf16> to vector<32x8xbf16>
    %cst_43 = arith.constant dense<0.000000e+00> : vector<64x8xf32>
    %48 = tpu.matmul %6, %47, %cst_43 {dimension_numbers = #tpu.dot_dimension_numbers<[1], [0], [0], [1], [0, 0, 1, 1], [], []>} : vector<64x32xbf16>, vector<32x8xbf16>, vector<64x8xf32> -> vector<64x8xf32>
    %c3_44 = arith.constant 3 : index
    %c0_45 = arith.constant 0 : index
    %c0_46 = arith.constant 0 : index
    %49 = vector.load %arg6[%c3_44, %c0_45, %c0_46] : memref<4x1x8xf32, #tpu.memory_space<vmem>>, vector<1x1x8xf32>
    %50 = vector.shape_cast %49 : vector<1x1x8xf32> to vector<1x8xf32>
    %51 = vector.broadcast %50 : vector<1x8xf32> to vector<64x8xf32>
    %52 = arith.addf %48, %51 : vector<64x8xf32>
    %53 = vector.broadcast %5 : vector<64x1xf32> to vector<64x8xf32>
    %54 = arith.mulf %52, %53 : vector<64x8xf32>
    %c0_47 = arith.constant 0 : index
    %c3_48 = arith.constant 3 : index
    %c0_49 = arith.constant 0 : index
    %c0_50 = arith.constant 0 : index
    %55 = vector.load %arg4[%c0_47, %c3_48, %c0_49, %c0_50] : memref<1x4x16x64xbf16, #tpu.memory_space<vmem>>, vector<1x1x16x64xbf16>
    %56 = vector.shape_cast %55 : vector<1x1x16x64xbf16> to vector<16x64xbf16>
    %57 = arith.truncf %54 : vector<64x8xf32> to vector<64x8xbf16>
    %cst_51 = arith.constant dense<0.000000e+00> : vector<16x8xf32>
    %58 = tpu.matmul %56, %57, %cst_51 {dimension_numbers = #tpu.dot_dimension_numbers<[1], [0], [0], [1], [0, 0, 1, 1], [], []>} : vector<16x64xbf16>, vector<64x8xbf16>, vector<16x8xf32> -> vector<16x8xf32>
    %59 = tpu.concatenate %19, %32, %45, %58 in 1 : vector<16x8xf32>, vector<16x8xf32>, vector<16x8xf32>, vector<16x8xf32> -> vector<16x32xf32>
    %60 = arith.truncf %59 : vector<16x32xf32> to vector<16x32xbf16>
    %c0_52 = arith.constant 0 : index
    %c0_53 = arith.constant 0 : index
    %61 = vector.load %arg7[%c0_52, %c0_53] : memref<32x32xbf16, #tpu.memory_space<vmem>>, vector<32x32xbf16>
    %cst_54 = arith.constant dense<0.000000e+00> : vector<16x32xf32>
    %62 = tpu.matmul %60, %61, %cst_54 {dimension_numbers = #tpu.dot_dimension_numbers<[1], [0], [0], [1], [0, 0, 1, 1], [], []>} : vector<16x32xbf16>, vector<32x32xbf16>, vector<16x32xf32> -> vector<16x32xf32>
    %c0_55 = arith.constant 0 : index
    %c0_56 = arith.constant 0 : index
    %63 = vector.load %arg8[%c0_55, %c0_56] : memref<1x32xf32, #tpu.memory_space<vmem>>, vector<1x32xf32>
    %64 = vector.broadcast %63 : vector<1x32xf32> to vector<16x32xf32>
    %65 = arith.addf %62, %64 : vector<16x32xf32>
    %66 = arith.addf %1, %65 : vector<16x32xf32>
    %cst_57 = arith.constant dense<0.000000e+00> : vector<16xf32>
    %67 = vector.multi_reduction <add>, %66, %cst_57 [1] : vector<16x32xf32> to vector<16xf32>
    %68 = vector.shape_cast %67 : vector<16xf32> to vector<16x1xf32>
    %cst_58 = arith.constant 3.200000e+01 : f32
    %69 = vector.broadcast %cst_58 : f32 to vector<16x1xf32>
    %70 = arith.divf %68, %69 : vector<16x1xf32>
    %71 = vector.broadcast %70 : vector<16x1xf32> to vector<16x32xf32>
    %72 = arith.subf %66, %71 : vector<16x32xf32>
    %73 = arith.mulf %72, %72 : vector<16x32xf32>
    %cst_59 = arith.constant dense<0.000000e+00> : vector<16xf32>
    %74 = vector.multi_reduction <add>, %73, %cst_59 [1] : vector<16x32xf32> to vector<16xf32>
    %75 = vector.shape_cast %74 : vector<16xf32> to vector<16x1xf32>
    %cst_60 = arith.constant 3.200000e+01 : f32
    %76 = vector.broadcast %cst_60 : f32 to vector<16x1xf32>
    %77 = arith.divf %75, %76 : vector<16x1xf32>
    %78 = vector.broadcast %70 : vector<16x1xf32> to vector<16x32xf32>
    %79 = arith.subf %66, %78 : vector<16x32xf32>
    %cst_61 = arith.constant 9.99999974E-6 : f32
    %80 = vector.broadcast %cst_61 : f32 to vector<16x1xf32>
    %81 = arith.addf %77, %80 : vector<16x1xf32>
    %82 = math.rsqrt %81 : vector<16x1xf32>
    %83 = vector.broadcast %82 : vector<16x1xf32> to vector<16x32xf32>
    %84 = arith.mulf %79, %83 : vector<16x32xf32>
    %c0_62 = arith.constant 0 : index
    %c0_63 = arith.constant 0 : index
    %85 = vector.load %arg9[%c0_62, %c0_63] : memref<1x32xf32, #tpu.memory_space<vmem>>, vector<1x32xf32>
    %86 = vector.broadcast %85 : vector<1x32xf32> to vector<16x32xf32>
    %87 = arith.mulf %84, %86 : vector<16x32xf32>
    %c0_64 = arith.constant 0 : index
    %c0_65 = arith.constant 0 : index
    %88 = vector.load %arg10[%c0_64, %c0_65] : memref<1x32xf32, #tpu.memory_space<vmem>>, vector<1x32xf32>
    %89 = vector.broadcast %88 : vector<1x32xf32> to vector<16x32xf32>
    %90 = arith.addf %87, %89 : vector<16x32xf32>
    %91 = arith.truncf %90 : vector<16x32xf32> to vector<16x32xbf16>
    %c0_66 = arith.constant 0 : index
    %c0_67 = arith.constant 0 : index
    %92 = vector.load %arg11[%c0_66, %c0_67] : memref<32x64xbf16, #tpu.memory_space<vmem>>, vector<32x64xbf16>
    %cst_68 = arith.constant dense<0.000000e+00> : vector<16x64xf32>
    %93 = tpu.matmul %91, %92, %cst_68 {dimension_numbers = #tpu.dot_dimension_numbers<[1], [0], [0], [1], [0, 0, 1, 1], [], []>} : vector<16x32xbf16>, vector<32x64xbf16>, vector<16x64xf32> -> vector<16x64xf32>
    %c0_69 = arith.constant 0 : index
    %c0_70 = arith.constant 0 : index
    %94 = vector.load %arg12[%c0_69, %c0_70] : memref<1x64xf32, #tpu.memory_space<vmem>>, vector<1x64xf32>
    %95 = vector.broadcast %94 : vector<1x64xf32> to vector<16x64xf32>
    %96 = arith.addf %93, %95 : vector<16x64xf32>
    %cst_71 = arith.constant 0.000000e+00 : f32
    %97 = vector.broadcast %cst_71 : f32 to vector<16x64xf32>
    %98 = arith.maximumf %96, %97 : vector<16x64xf32>
    %99 = arith.truncf %98 : vector<16x64xf32> to vector<16x64xbf16>
    %c0_72 = arith.constant 0 : index
    %c0_73 = arith.constant 0 : index
    %100 = vector.load %arg13[%c0_72, %c0_73] : memref<64x32xbf16, #tpu.memory_space<vmem>>, vector<64x32xbf16>
    %cst_74 = arith.constant dense<0.000000e+00> : vector<16x32xf32>
    %101 = tpu.matmul %99, %100, %cst_74 {dimension_numbers = #tpu.dot_dimension_numbers<[1], [0], [0], [1], [0, 0, 1, 1], [], []>} : vector<16x64xbf16>, vector<64x32xbf16>, vector<16x32xf32> -> vector<16x32xf32>
    %c0_75 = arith.constant 0 : index
    %c0_76 = arith.constant 0 : index
    %102 = vector.load %arg14[%c0_75, %c0_76] : memref<1x32xf32, #tpu.memory_space<vmem>>, vector<1x32xf32>
    %103 = vector.broadcast %102 : vector<1x32xf32> to vector<16x32xf32>
    %104 = arith.addf %101, %103 : vector<16x32xf32>
    %105 = arith.addf %90, %104 : vector<16x32xf32>
    %cst_77 = arith.constant dense<0.000000e+00> : vector<16xf32>
    %106 = vector.multi_reduction <add>, %105, %cst_77 [1] : vector<16x32xf32> to vector<16xf32>
    %107 = vector.shape_cast %106 : vector<16xf32> to vector<16x1xf32>
    %cst_78 = arith.constant 3.200000e+01 : f32
    %108 = vector.broadcast %cst_78 : f32 to vector<16x1xf32>
    %109 = arith.divf %107, %108 : vector<16x1xf32>
    %110 = vector.broadcast %109 : vector<16x1xf32> to vector<16x32xf32>
    %111 = arith.subf %105, %110 : vector<16x32xf32>
    %112 = arith.mulf %111, %111 : vector<16x32xf32>
    %cst_79 = arith.constant dense<0.000000e+00> : vector<16xf32>
    %113 = vector.multi_reduction <add>, %112, %cst_79 [1] : vector<16x32xf32> to vector<16xf32>
    %114 = vector.shape_cast %113 : vector<16xf32> to vector<16x1xf32>
    %cst_80 = arith.constant 3.200000e+01 : f32
    %115 = vector.broadcast %cst_80 : f32 to vector<16x1xf32>
    %116 = arith.divf %114, %115 : vector<16x1xf32>
    %117 = vector.broadcast %109 : vector<16x1xf32> to vector<16x32xf32>
    %118 = arith.subf %105, %117 : vector<16x32xf32>
    %cst_81 = arith.constant 9.99999974E-6 : f32
    %119 = vector.broadcast %cst_81 : f32 to vector<16x1xf32>
    %120 = arith.addf %116, %119 : vector<16x1xf32>
    %121 = math.rsqrt %120 : vector<16x1xf32>
    %122 = vector.broadcast %121 : vector<16x1xf32> to vector<16x32xf32>
    %123 = arith.mulf %118, %122 : vector<16x32xf32>
    %c0_82 = arith.constant 0 : index
    %c0_83 = arith.constant 0 : index
    %124 = vector.load %arg15[%c0_82, %c0_83] : memref<1x32xf32, #tpu.memory_space<vmem>>, vector<1x32xf32>
    %125 = vector.broadcast %124 : vector<1x32xf32> to vector<16x32xf32>
    %126 = arith.mulf %123, %125 : vector<16x32xf32>
    %c0_84 = arith.constant 0 : index
    %c0_85 = arith.constant 0 : index
    %127 = vector.load %arg16[%c0_84, %c0_85] : memref<1x32xf32, #tpu.memory_space<vmem>>, vector<1x32xf32>
    %128 = vector.broadcast %127 : vector<1x32xf32> to vector<16x32xf32>
    %129 = arith.addf %126, %128 : vector<16x32xf32>
    %c0_86 = arith.constant 0 : index
    %c0_87 = arith.constant 0 : index
    %c0_88 = arith.constant 0 : index
    %130 = vector.load %arg17[%c0_86, %c0_87, %c0_88] : memref<1x16x32xf32, #tpu.memory_space<vmem>>, vector<1x16x32xf32>
    %131 = vector.shape_cast %130 : vector<1x16x32xf32> to vector<16x32xf32>
    %132 = vector.shape_cast %129 : vector<16x32xf32> to vector<1x16x32xf32>
    tpu.vector_store %arg17[%c0_86, %c0_87, %c0_88], %132 {strides = array<i32>} : memref<1x16x32xf32, #tpu.memory_space<vmem>>, vector<1x16x32xf32>,
    return
  }
  func.func @transform_0(%arg0: i32) -> (i32, i32, i32) {
    %c0_i32 = arith.constant 0 : i32
    %c0_i32_0 = arith.constant 0 : i32
    %c0_i32_1 = arith.constant 0 : i32
    return %arg0, %c0_i32, %c0_i32_0 : i32, i32, i32
  }
  func.func @transform_1(%arg0: i32) -> (i32, i32, i32) {
    %c0_i32 = arith.constant 0 : i32
    %c0_i32_0 = arith.constant 0 : i32
    %c0_i32_1 = arith.constant 0 : i32
    return %arg0, %c0_i32, %c0_i32_0 : i32, i32, i32
  }
  func.func @transform_2(%arg0: i32) -> (i32, i32, i32) {
    %c0_i32 = arith.constant 0 : i32
    %c0_i32_0 = arith.constant 0 : i32
    %c0_i32_1 = arith.constant 0 : i32
    return %arg0, %c0_i32, %c0_i32_0 : i32, i32, i32
  }
  func.func @transform_3(%arg0: i32) -> (i32, i32, i32, i32) {
    %c0_i32 = arith.constant 0 : i32
    %c0_i32_0 = arith.constant 0 : i32
    %c0_i32_1 = arith.constant 0 : i32
    %c0_i32_2 = arith.constant 0 : i32
    return %arg0, %c0_i32, %c0_i32_0, %c0_i32_1 : i32, i32, i32, i32
  }
  func.func @transform_4(%arg0: i32) -> (i32, i32, i32) {
    %c0_i32 = arith.constant 0 : i32
    %c0_i32_0 = arith.constant 0 : i32
    %c0_i32_1 = arith.constant 0 : i32
    %c0_i32_2 = arith.constant 0 : i32
    return %c0_i32, %c0_i32_0, %c0_i32_1 : i32, i32, i32
  }
  func.func @transform_5(%arg0: i32) -> (i32, i32, i32) {
    %c0_i32 = arith.constant 0 : i32
    %c0_i32_0 = arith.constant 0 : i32
    %c0_i32_1 = arith.constant 0 : i32
    %c0_i32_2 = arith.constant 0 : i32
    return %c0_i32, %c0_i32_0, %c0_i32_1 : i32, i32, i32
  }
  func.func @transform_6(%arg0: i32) -> (i32, i32) {
    %c0_i32 = arith.constant 0 : i32
    %c0_i32_0 = arith.constant 0 : i32
    %c0_i32_1 = arith.constant 0 : i32
    return %c0_i32, %c0_i32_0 : i32, i32
  }
  func.func @transform_7(%arg0: i32) -> (i32, i32) {
    %c0_i32 = arith.constant 0 : i32
    %c0_i32_0 = arith.constant 0 : i32
    %c0_i32_1 = arith.constant 0 : i32
    return %c0_i32, %c0_i32_0 : i32, i32
  }
  func.func @transform_8(%arg0: i32) -> (i32, i32) {
    %c0_i32 = arith.constant 0 : i32
    %c0_i32_0 = arith.constant 0 : i32
    %c0_i32_1 = arith.constant 0 : i32
    return %c0_i32, %c0_i32_0 : i32, i32
  }
  func.func @transform_9(%arg0: i32) -> (i32, i32) {
    %c0_i32 = arith.constant 0 : i32
    %c0_i32_0 = arith.constant 0 : i32
    %c0_i32_1 = arith.constant 0 : i32
    return %c0_i32, %c0_i32_0 : i32, i32
  }
  func.func @transform_10(%arg0: i32) -> (i32, i32) {
    %c0_i32 = arith.constant 0 : i32
    %c0_i32_0 = arith.constant 0 : i32
    %c0_i32_1 = arith.constant 0 : i32
    return %c0_i32, %c0_i32_0 : i32, i32
  }
  func.func @transform_11(%arg0: i32) -> (i32, i32) {
    %c0_i32 = arith.constant 0 : i32
    %c0_i32_0 = arith.constant 0 : i32
    %c0_i32_1 = arith.constant 0 : i32
    return %c0_i32, %c0_i32_0 : i32, i32
  }
  func.func @transform_12(%arg0: i32) -> (i32, i32) {
    %c0_i32 = arith.constant 0 : i32
    %c0_i32_0 = arith.constant 0 : i32
    %c0_i32_1 = arith.constant 0 : i32
    return %c0_i32, %c0_i32_0 : i32, i32
  }
  func.func @transform_13(%arg0: i32) -> (i32, i32) {
    %c0_i32 = arith.constant 0 : i32
    %c0_i32_0 = arith.constant 0 : i32
    %c0_i32_1 = arith.constant 0 : i32
    return %c0_i32, %c0_i32_0 : i32, i32
  }
  func.func @transform_14(%arg0: i32) -> (i32, i32) {
    %c0_i32 = arith.constant 0 : i32
    %c0_i32_0 = arith.constant 0 : i32
    %c0_i32_1 = arith.constant 0 : i32
    return %c0_i32, %c0_i32_0 : i32, i32
  }
  func.func @transform_15(%arg0: i32) -> (i32, i32) {
    %c0_i32 = arith.constant 0 : i32
    %c0_i32_0 = arith.constant 0 : i32
    %c0_i32_1 = arith.constant 0 : i32
    return %c0_i32, %c0_i32_0 : i32, i32
  }
  func.func @transform_16(%arg0: i32) -> (i32, i32, i32) {
    %c0_i32 = arith.constant 0 : i32
    %c0_i32_0 = arith.constant 0 : i32
    %c0_i32_1 = arith.constant 0 : i32
    return %arg0, %c0_i32, %c0_i32_0 : i32, i32, i32
  }
}

</mosaic_0001>

<bundles_post_ra>
// kernel: run.8
= control target key start
LH: loop header
LB: loop body
LE: loop exit
PB: predicated region body
PF: predicated region fallthrough
CT: control target
= control target key end

     0   :  { %s3250_s18 = smov 0   ;;  %s4097_s0 = inlined_call_operand.vmem [shape: f32[2,64,32], index: 0, kind: input, shape index: {}]   ;;  %s4098_s1 = inlined_call_operand.vmem [shape: f32[2,64,32], index: 1, kind: input, shape index: {}]   ;;  %s4099_s2 = inlined_call_operand.vmem [shape: bf16[4,32,8], index: 2, kind: input, shape index: {}]   ;;  %s4100_s3 = inlined_call_operand.vmem [shape: f32[4,1,8], index: 3, kind: input, shape index: {}]   ;;  %s4101_s4 = inlined_call_operand.vmem [shape: bf16[4,32,8], index: 4, kind: input, shape index: {}]   ;;  %s4102_s5 = inlined_call_operand.vmem [shape: f32[4,1,8], index: 5, kind: input, shape index: {}]   ;;  %s4103_s6 = inlined_call_operand.vmem [shape: bf16[4,32,8], index: 6, kind: input, shape index: {}]   ;;  %s4104_s7 = inlined_call_operand.vmem [shape: f32[4,1,8], index: 7, kind: input, shape index: {}]   ;;  %s4105_s8 = inlined_call_operand.vmem [shape: bf16[32,32], index: 8, kind: input, shape index: {}]   ;;  %s4106_s9 = inlined_call_operand.vmem [shape: f32[1,32], index: 9, kind: input, shape index: {}]   ;;  %s4107_s10 = inlined_call_operand.vmem [shape: f32[1,32], index: 10, kind: input, shape index: {}]   ;;  %s4108_s11 = inlined_call_operand.vmem [shape: f32[1,32], index: 11, kind: input, shape index: {}]   ;;  %s4109_s12 = inlined_call_operand.vmem [shape: bf16[32,96], index: 12, kind: input, shape index: {}]   ;;  %s4110_s13 = inlined_call_operand.vmem [shape: f32[1,96], index: 13, kind: input, shape index: {}]   ;;  %s4111_s14 = inlined_call_operand.vmem [shape: f32[2,64,32], index: 14, kind: output, shape index: {0}]   ;;  %s4112_s15 = inlined_call_operand.vmem [shape: f32[2,64,96], index: 15, kind: output, shape index: {1}]  }
   0x1 LB: > { %s2610_s19 = sadd.s32 4294967295, %s3164_s18   ;;  %p2614_p0 = scmp.ge.s32.totalorder %s3164_s18, 1  ;;  %s3164_s18 = sphi %s3250_s18, %s26_s18  }
   0x2   : > { %p450_p1 = scmp.lt.s32.totalorder %s3164_s18, 3 }
   0x4   : > { %p451_p2 = pnand %p2614_p0, %p450_p1 }
   0x5   : > { %p508_p3 = scmp.lt.s32.totalorder (!%p451_p2), %s2610_s19, 1  ;;  %s3166_s17 = smov (!%p451_p2), 8  }
   0x6   : > { %454 = sbr.rel (%p451_p2) target bundleno = 3141 (0xc45), region = 76  ;;  %s3167_s20 = smov (!%p451_p2), 16  }
   0xb   : > { %v2877_v0 = vld [vmem:[%s4101_s4 + $0x8] sm:$0xff]  ;;  %v2876_v2 = vld [vmem:[%s4101_s4] sm:$0xff]  ;;  %s4114_s19 = smov (!%p508_p3, %s2610_s19), 1  ;;  %vm581_vm0 = vcmask 261120   ;;  %vm741_vm1 = vcmask 64512   ;;  %vm803_vm2 = vcmask 523264  }
   0xc   : > { %v2875_v1 = vld [vmem:[%s4099_s2 + $0x8] sm:$0xff]  ;;  %2902 = vmatpush.bf16.msra.mxu3 %v2877_v0  ;;  %649 = vmatpush.bf16.msra.mxu1 %v2877_v0  ;;  %v2874_v3 = vld [vmem:[%s4099_s2] sm:$0xff]  ;;  %s3270_s28 = sshll.u32 %s4114_s19, 6  ;;  %s3168_s19 = smov 24   ;;  %vm2122_vm3 = vcmask 130048   ;;  %vm2131_vm4 = vcmask 195584  }
   0xd   : > { %600 = vmatpush.bf16.msra.mxu0 %v2875_v1  ;;  %s3276_s16 = scalar_lea.vmem %s4097_s0, %s3270_s28  ;;  %s3282_s21 = scalar_lea.vmem %s4098_s1, %s3270_s28  ;;  %v2980_v37 = vld [vmem:[%s4102_s5] ss:$0 sm:$0xff] }
   0xe   : > { %v3285_v4 = vld [vmem:[%s3276_s16 + $0x20] sm:$0xff]  ;;  %v3288_v5 = vld [vmem:[%s3276_s16 + $0x28] sm:$0xff]  ;;  %v3315_v18 = vld [vmem:[%s3276_s16 + $0x30] sm:$0xff]  ;;  %s4023_s26 = scalar_lea.vmem %s4111_s14, %s3270_s28 }
   0xf   : > { %v541_v6 = vld [vmem:[%s3282_s21 + $0x20] sm:$0xff]  ;;  %v542_v7 = vld [vmem:[%s3282_s21 + $0x28] sm:$0xff]  ;;  %v3318_v19 = vld [vmem:[%s3276_s16 + $0x38] sm:$0xff] }
  0x10   : > { %2903 = vmatpush.bf16.msra.mxu3 %v2876_v2  ;;  %650 = vmatpush.bf16.msra.mxu1 %v2876_v2  ;;  %v549_v8 = vadd.f32 %v541_v6, %v3285_v4  ;;  %v3294_v9 = vld [vmem:[%s3276_s16] sm:$0xff]  ;;  %v3297_v10 = vld [vmem:[%s3276_s16 + $0x8] sm:$0xff]  ;;  %v550_v11 = vadd.f32 %v542_v7, %v3288_v5  ;;  %v543_v20 = vld [vmem:[%s3282_s21 + $0x30] sm:$0xff] }
  0x11   : > { %601 = vmatpush.bf16.msra.mxu0 %v2874_v3  ;;  %v537_v12 = vld [vmem:[%s3282_s21] sm:$0xff]  ;;  %v538_v13 = vld [vmem:[%s3282_s21 + $0x8] sm:$0xff]  ;;  %v544_v21 = vld [vmem:[%s3282_s21 + $0x38] sm:$0xff]  ;;  %v551_v26 = vadd.f32 %v543_v20, %v3315_v18 }
  0x12   : > { %v545_v14 = vadd.f32 %v537_v12, %v3294_v9  ;;  %v546_v15 = vadd.f32 %v538_v13, %v3297_v10  ;;  %v3304_v16 = vpack.c.bf16 %v550_v11, %v549_v8  ;;  %v3323_v22 = vld [vmem:[%s3276_s16 + $0x10] sm:$0xff]  ;;  %v3326_v23 = vld [vmem:[%s3276_s16 + $0x18] sm:$0xff]  ;;  %v552_v27 = vadd.f32 %v544_v21, %v3318_v19  ;;  %v2981_v59 = vld [vmem:[%s4100_s3] ss:$0 sm:$0xff] }
  0x13   : > { %v539_v24 = vld [vmem:[%s3282_s21 + $0x10] sm:$0xff]  ;;  %v540_v25 = vld [vmem:[%s3282_s21 + $0x18] sm:$0xff]  ;;  %v2879_v7 = vld [vmem:[%s4103_s6 + $0x8] sm:$0xff]  ;;  %v3368_v12 = vpack.c.bf16 %v3297_v10, %v3294_v9  ;;  %v3375_v21 = vpack.c.bf16 %v3326_v23, %v3323_v22 }
  0x14   : > { %v3306_v17 = vpack.c.bf16 %v546_v15, %v545_v14  ;;  %2645 = vmatmul.msk.bf16.vlgmr.msra.gmra.mxu3 %vm581_vm0, %v3304_v16  ;;  %v547_v28 = vadd.f32 %v539_v24, %v3323_v22  ;;  %v548_v29 = vadd.f32 %v540_v25, %v3326_v23  ;;  %v3334_v30 = vpack.c.bf16 %v552_v27, %v551_v26  ;;  %v2878_v8 = vld [vmem:[%s4103_s6] sm:$0xff] }
  0x15   : > { %710 = vmatpush.bf16.msra.mxu2 %v2879_v7  ;;  %v3382_v26 = vpack.c.bf16 %v3288_v5, %v3285_v4  ;;  %v3388_v22 = vpack.c.bf16 %v3318_v19, %v3315_v18 }
  0x16   : > { %2643 = vmatmul.msk.bf16.vlgmr.msra.gmra.mxu1 %vm581_vm0, %v3306_v17  ;;  %2631 = vmatmul.msk.bf16.vlgmr.msra.gmra.mxu0 %vm581_vm0, %v3306_v17  ;;  %v3336_v31 = vpack.c.bf16 %v548_v29, %v547_v28 }
  0x19   : > { %711 = vmatpush.bf16.msra.mxu2 %v2878_v8 }
  0x1c   : > { %2655 = vmatmul.msk.bf16.vlgmr.msra.gmra.mxu2 %vm581_vm0, %v3368_v12 }
  0x24   : > { %2646 = vmatmul.msk.bf16.gmra.mxu3 %vm581_vm0, %v3334_v30 }
  0x26   : > { %2644 = vmatmul.msk.bf16.gmra.mxu1 %vm581_vm0, %v3336_v31  ;;  %2632 = vmatmul.msk.bf16.gmra.mxu0 %vm581_vm0, %v3336_v31 }
  0x2c   : > { %2656 = vmatmul.msk.bf16.gmra.mxu2 %vm581_vm0, %v3375_v21 }
  0x36   : > { %2633 = vmatmul.msk.bf16.gmra.mxu0 %vm581_vm0, %v3304_v16 }
  0x3c   : > { %2657 = vmatmul.msk.bf16.gmra.mxu2 %vm581_vm0, %v3382_v26 }
  0x46   : > { %2634 = vmatmul.msk.bf16.gmra.mxu0 %vm581_vm0, %v3334_v30 }
  0x4c   : > { %2658 = vmatmul.msk.bf16.gmra.mxu2 %vm581_vm0, %v3388_v22 }
  0x93   : > { %v652_v33 = vpop.f32.mrf.mxu1  ;;  %v603_v45 = vpop.f32.mrf.mxu0 }
  0x94   : > { %v653_v54 = vadd.f32 %v2980_v37, %v652_v33  ;;  %v604_v61 = vadd.f32 %v2981_v59, %v603_v45 }
  0x97   : > { %v662_v32 = vpop.f32.mrf.mxu3 }
  0x98   : > { %v663_v46 = vadd.f32 %v2980_v37, %v662_v32 }
  0x9b   : > { %v654_v35 = vpop.f32.mrf.mxu1  ;;  %v605_v52 = vpop.f32.mrf.mxu0 }
  0x9c   : > { %v655_v55 = vadd.f32 %v2980_v37, %v654_v35  ;;  %v606_v62 = vadd.f32 %v2981_v59, %v605_v52 }
  0x9e   : > { %v737_v57 = vpack.c.bf16 %v655_v55, %v653_v54  ;;  %v733_v63 = vpack.c.bf16 %v606_v62, %v604_v61 }
  0x9f   : > { %v664_v34 = vpop.f32.mrf.mxu3 }
  0xa0   : > { %v665_v43 = vadd.f32 %v2980_v37, %v664_v34  ;;  %v755_v60 = vsel %vm741_vm1, %v737_v57, 0 }
  0xa2   : > { %v739_v47 = vpack.c.bf16 %v665_v43, %v663_v46 }
  0xa3   : > { %v657_v38 = vpop.f32.mrf.mxu1  ;;  %v608_v58 = vpop.f32.mrf.mxu0 }
  0xa4   : > { %v658_v49 = vadd.f32 %v2980_v37, %v657_v38  ;;  %v761_v51 = vsel %vm741_vm1, %v739_v47, 0  ;;  %v609_v2 = vadd.f32 %v2981_v59, %v608_v58  ;;  %v2982_v47 = vld [vmem:[%s4104_s7] ss:$0 sm:$0xff] }
  0xa7   : > { %v667_v36 = vpop.f32.mrf.mxu3 }
  0xa8   : > { %v668_v40 = vadd.f32 %v2980_v37, %v667_v36 }
  0xab   : > { %v659_v48 = vpop.f32.mrf.mxu1  ;;  %v610_v0 = vpop.f32.mrf.mxu0 }
  0xac   : > { %v660_v50 = vadd.f32 %v2980_v37, %v659_v48  ;;  %v611_v3 = vadd.f32 %v2981_v59, %v610_v0 }
  0xae   : > { %v738_v53 = vpack.c.bf16 %v660_v50, %v658_v49  ;;  %v734_v6 = vpack.c.bf16 %v611_v3, %v609_v2 }
  0xaf   : > { %v669_v39 = vpop.f32.mrf.mxu3 }
  0xb0   : > { %v670_v41 = vadd.f32 %v2980_v37, %v669_v39  ;;  %v758_v56 = vsel %vm741_vm1, %v738_v53, 0 }
  0xb2   : > { %v740_v42 = vpack.c.bf16 %v670_v41, %v668_v40  ;;  %v713_v40 = vpop.f32.mrf.mxu2 }
  0xb3   : > { %v613_v1 = vpop.f32.mrf.mxu0  ;;  %v714_v57 = vadd.f32 %v2982_v47, %v713_v40 }
  0xb4   : > { %v764_v44 = vsel %vm741_vm1, %v740_v42, 0  ;;  %v614_v13 = vadd.f32 %v2981_v59, %v613_v1 }
  0xb5   : > { %770 = vmatpush.bf16.xpose.msrb.mxu3 %v764_v44 }
  0xba   : > { %v715_v41 = vpop.f32.mrf.mxu2 }
  0xbb   : > { %v615_v11 = vpop.f32.mrf.mxu0  ;;  %v716_v58 = vadd.f32 %v2982_v47, %v715_v41 }
  0xbc   : > { %v616_v14 = vadd.f32 %v2981_v59, %v615_v11 }
  0xbd   : > { %771 = vmatpush.bf16.xpose.msrb.mxu3 %v761_v51 }
  0xbe   : > { %v735_v20 = vpack.c.bf16 %v616_v14, %v614_v13 }
  0xc2   : > { %v718_v42 = vpop.f32.mrf.mxu2 }
  0xc3   : > { %v618_v15 = vpop.f32.mrf.mxu0  ;;  %v719_v55 = vadd.f32 %v2982_v47, %v718_v42 }
  0xc4   : > { %v619_v9 = vadd.f32 %v2981_v59, %v618_v15 }
  0xc5   : > { %772 = vmatpush.bf16.xpose.msrb.mxu3 %v758_v56 }
  0xca   : > { %v720_v43 = vpop.f32.mrf.mxu2 }
  0xcb   : > { %v620_v24 = vpop.f32.mrf.mxu0  ;;  %v721_v56 = vadd.f32 %v2982_v47, %v720_v43 }
  0xcc   : > { %v621_v10 = vadd.f32 %v2981_v59, %v620_v24 }
  0xcd   : > { %773 = vmatpush.bf16.xpose.msrb.mxu3 %v755_v60  ;;  %v897_v59 = vpack.c.bf16 %v721_v56, %v719_v55  ;;  %v896_v60 = vpack.c.bf16 %v716_v58, %v714_v57 }
  0xce   : > { %v736_v25 = vpack.c.bf16 %v621_v10, %v619_v9 }
  0xd2   : > { %v723_v44 = vpop.f32.mrf.mxu2 }
  0xd3   : > { %v724_v51 = vadd.f32 %v2982_v47, %v723_v44 }
  0xd4   : > { %2659 = vmatmul.msk.bf16.vlgmr.msrb.gmra.mxu3 %vm741_vm1, %v733_v63 }
  0xda   : > { %v725_v45 = vpop.f32.mrf.mxu2 }
  0xdb   : > { %v726_v52 = vadd.f32 %v2982_v47, %v725_v45 }
  0xdd   : > { %v898_v54 = vpack.c.bf16 %v726_v52, %v724_v51 }
  0xe2   : > { %v728_v46 = vpop.f32.mrf.mxu2 }
  0xe3   : > { %v729_v49 = vadd.f32 %v2982_v47, %v728_v46 }
  0xe4   : > { %2660 = vmatmul.msk.bf16.gmra.mxu3 %vm741_vm1, %v734_v6 }
  0xea   : > { %v730_v48 = vpop.f32.mrf.mxu2 }
  0xeb   : > { %v731_v50 = vadd.f32 %v2982_v47, %v730_v48 }
  0xed   : > { %v899_v53 = vpack.c.bf16 %v731_v50, %v729_v49 }
  0xef   : > { %916 = vmatpush.bf16.msrb.mxu0 %v899_v53  ;;  %2904 = vmatpush.bf16.msrb.mxu2 %v899_v53 }
  0xf3   : > { %917 = vmatpush.bf16.msrb.mxu0 %v898_v54  ;;  %2905 = vmatpush.bf16.msrb.mxu2 %v898_v54 }
  0xf4   : > { %2661 = vmatmul.msk.bf16.gmra.mxu3 %vm741_vm1, %v735_v20 }
  0xf7   : > { %918 = vmatpush.bf16.msrb.mxu0 %v897_v59  ;;  %2906 = vmatpush.bf16.msrb.mxu2 %v897_v59 }
  0xfb   : > { %919 = vmatpush.bf16.msrb.mxu0 %v896_v60  ;;  %2907 = vmatpush.bf16.msrb.mxu2 %v896_v60 }
 0x104   : > { %2662 = vmatmul.msk.bf16.gmra.mxu3 %vm741_vm1, %v736_v25 }
 0x157   : > { %v3392_v23 = vpop.f32.mrf.mxu3 }
 0x158   : > { %v795_v15 = vmul.f32 0.35355338, %v3392_v23 }
 0x15a   : > { %v804_v25 = vsel %vm803_vm2, %v795_v15, -inf }
 0x15f   : > { %v3394_v27 = vpop.f32.mrf.mxu3 }
 0x167   : > { %v3396_v28 = vpop.f32.mrf.mxu3 }
 0x16f   : > { %v3398_v29 = vpop.f32.mrf.mxu3 }
 0x177   : > { %v785_v4 = vpop.f32.mrf.mxu3 }
 0x178   : > { %v799_v5 = vmul.f32 0.35355338, %v785_v4 }
 0x17a   : > { %v816_v32 = vsel %vm803_vm2, %v799_v5, -inf }
 0x17b   : > { %817 = vmax.xlane.f32.xlu0 %v816_v32  ;;  %v798_v32 = vmul.f32 0.35355338, %v3398_v29 }
 0x17f   : > { %v787_v33 = vpop.f32.mrf.mxu3 }
 0x180   : > { %v800_v18 = vmul.f32 0.35355338, %v787_v33 }
 0x182   : > { %v819_v19 = vsel %vm803_vm2, %v800_v18, -inf }
 0x183   : > { %820 = vmax.xlane.f32.xlu0 %v819_v19 }
 0x187   : > { %v790_v34 = vpop.f32.mrf.mxu3 }
 0x188   : > { %v801_v35 = vmul.f32 0.35355338, %v790_v34  ;;  %v797_v34 = vmul.f32 0.35355338, %v3396_v28 }
 0x18a   : > { %v822_v36 = vsel %vm803_vm2, %v801_v35, -inf }
 0x18b   : > { %823 = vmax.xlane.f32.xlu1 %v822_v36  ;;  %v2882_v36 = vld [vmem:[%s4101_s4 + $0x10] sm:$0xff] }
 0x18f   : > { %v792_v37 = vpop.f32.mrf.mxu3 }
 0x190   : > { %v802_v38 = vmul.f32 0.35355338, %v792_v37 }
 0x192   : > { %v825_v39 = vsel %vm803_vm2, %v802_v38, -inf }
 0x193   : > { %826 = vmax.xlane.f32.xlu1 %v825_v39 }
 0x1ee   : > { %v818_v61 = vpop.xlane.xlu0 %817 }
 0x1ef   : > { %v832_v62 = vsub.f32 %v799_v5, %v818_v61  ;;  %v796_v5 = vmul.f32 0.35355338, %v3394_v27  ;;  %v2883_v27 = vld [vmem:[%s4101_s4 + $0x18] sm:$0xff] }
 0x1f0   : > { %1020 = vmatpush.bf16.msra.mxu2 %v2883_v27 }
 0x1f1   : > { %v844_v63 = vmul.f32 1.442695, %v832_v62  ;;  %v807_v23 = vsel %vm803_vm2, %v796_v5, -inf }
 0x1f3   : > { %2996 = vpow2.f32 %v844_v63 }
 0x1f4   : > { %1021 = vmatpush.bf16.msra.mxu2 %v2882_v36 }
 0x1f6   : > { %v821_v0 = vpop.xlane.xlu0 %820 }
 0x1f7   : > { %v833_v1 = vsub.f32 %v800_v18, %v821_v0  ;;  %v813_v18 = vsel %vm803_vm2, %v798_v32, -inf }
 0x1f9   : > { %v2997_v2 = vpop.eup %2996  ;;  %v846_v3 = vmul.f32 1.442695, %v833_v1 }
 0x1fa   : > { %v864_v6 = vsel %vm803_vm2, %v2997_v2, 0.0 }
 0x1fb   : > { %2998 = vpow2.f32 %v846_v3  ;;  %865 = vadd.xlane.f32.xlu2 %v864_v6 }
 0x1fe   : > { %v824_v7 = vpop.xlane.xlu1 %823 }
 0x1ff   : > { %v834_v8 = vsub.f32 %v801_v35, %v824_v7  ;;  %v810_v35 = vsel %vm803_vm2, %v797_v34, -inf  ;;  %v2881_v7 = vld [vmem:[%s4099_s2 + $0x18] sm:$0xff] }
 0x200   : > { %969 = vmatpush.bf16.msrb.mxu1 %v2881_v7 }
 0x201   : > { %v2999_v11 = vpop.eup %2998  ;;  %v848_v13 = vmul.f32 1.442695, %v834_v8  ;;  %v2880_v8 = vld [vmem:[%s4099_s2 + $0x10] sm:$0xff] }
 0x202   : > { %v867_v14 = vsel %vm803_vm2, %v2999_v11, 0.0 }
 0x203   : > { %3000 = vpow2.f32 %v848_v13  ;;  %868 = vadd.xlane.f32.xlu2 %v867_v14 }
 0x204   : > { %970 = vmatpush.bf16.msrb.mxu1 %v2880_v8  ;;  %v2885_v8 = vld [vmem:[%s4103_s6 + $0x18] sm:$0xff] }
 0x205   : > { %1071 = vmatpush.bf16.msra.mxu3 %v2885_v8 }
 0x206   : > { %v827_v20 = vpop.xlane.xlu1 %826 }
 0x207   : > { %v835_v24 = vsub.f32 %v802_v38, %v827_v20  ;;  %2680 = vmatmul.msk.bf16.vlgmr.msrb.gmra.mxu1 %vm581_vm0, %v3306_v17 }
 0x209   : > { %v3001_v9 = vpop.eup %3000  ;;  %v850_v10 = vmul.f32 1.442695, %v835_v24 }
 0x20a   : > { %v870_v4 = vsel %vm803_vm2, %v3001_v9, 0.0 }
 0x20b   : > { %3002 = vpow2.f32 %v850_v10  ;;  %805 = vmax.xlane.f32.xlu2 %v804_v25  ;;  %871 = vadd.xlane.f32.xlu0 %v870_v4 }
 0x211   : > { %v3003_v33 = vpop.eup %3002 }
 0x212   : > { %v873_v19 = vsel %vm803_vm2, %v3003_v33, 0.0 }
 0x213   : > { %814 = vmax.xlane.f32.xlu2 %v813_v18  ;;  %808 = vmax.xlane.f32.xlu0 %v807_v23 }
 0x214   : > { %874 = vadd.xlane.f32.xlu1 %v873_v19 }
 0x217   : > { %2681 = vmatmul.msk.bf16.gmra.mxu1 %vm581_vm0, %v3336_v31 }
 0x21c   : > { %811 = vmax.xlane.f32.xlu1 %v810_v35 }
 0x227   : > { %2682 = vmatmul.msk.bf16.gmra.mxu1 %vm581_vm0, %v3304_v16 }
 0x237   : > { %2683 = vmatmul.msk.bf16.gmra.mxu1 %vm581_vm0, %v3334_v30 }
 0x26e   : > { %v866_v29 = vpop.xlane.xlu2 %865 }
 0x26f   : > { %3004 = vrcp.f32 %v866_v29 }
 0x275   : > { %v3005_v38 = vpop.eup %3004 }
 0x276   : > { %v869_v37 = vpop.xlane.xlu2 %868  ;;  %v888_v28 = vmul.f32 %v3005_v38, %v2997_v2 }
 0x277   : > { %3006 = vrcp.f32 %v869_v37 }
 0x27d   : > { %v3007_v39 = vpop.eup %3006 }
 0x27e   : > { %v889_v40 = vmul.f32 %v3007_v39, %v2999_v11  ;;  %v806_v41 = vpop.xlane.xlu2 %805  ;;  %v872_v42 = vpop.xlane.xlu0 %871 }
 0x27f   : > { %v828_v43 = vsub.f32 %v795_v15, %v806_v41 }
 0x280   : > { %v894_v44 = vpack.c.bf16 %v889_v40, %v888_v28  ;;  %v2983_v40 = vld [vmem:[%s4102_s5 + $0x1] ss:$0 sm:$0xff] }
 0x281   : > { %v836_v45 = vmul.f32 1.442695, %v828_v43 }
 0x282   : > { %2665 = vmatmul.msk.bf16.vlgmr.msrb.gmra.mxu2 %vm803_vm2, %v894_v44 }
 0x283   : > { %3008 = vpow2.f32 %v836_v45 }
 0x284   : > { %3010 = vrcp.f32 %v872_v42 }
 0x286   : > { %v815_v46 = vpop.xlane.xlu2 %814  ;;  %v809_v47 = vpop.xlane.xlu0 %808 }
 0x287   : > { %v831_v48 = vsub.f32 %v798_v32, %v815_v46  ;;  %v829_v49 = vsub.f32 %v796_v5, %v809_v47  ;;  %v875_v50 = vpop.xlane.xlu1 %874  ;;  %v972_v47 = vpop.f32.mrf.mxu1 }
 0x288   : > { %3012 = vrcp.f32 %v875_v50 }
 0x289   : > { %v3009_v51 = vpop.eup %3008  ;;  %v842_v52 = vmul.f32 1.442695, %v831_v48  ;;  %v838_v53 = vmul.f32 1.442695, %v829_v49 }
 0x28a   : > { %v852_v54 = vsel %vm803_vm2, %v3009_v51, 0.0  ;;  %v3011_v55 = vpop.eup %3010 }
 0x28b   : > { %3014 = vpow2.f32 %v842_v52  ;;  %853 = vadd.xlane.f32.xlu0 %v852_v54  ;;  %v890_v58 = vmul.f32 %v3011_v55, %v3001_v9 }
 0x28c   : > { %3016 = vpow2.f32 %v838_v53 }
 0x28e   : > { %v3013_v56 = vpop.eup %3012 }
 0x28f   : > { %v812_v57 = vpop.xlane.xlu1 %811  ;;  %v891_v59 = vmul.f32 %v3013_v56, %v3003_v33  ;;  %v974_v53 = vpop.f32.mrf.mxu1 }
 0x290   : > { %v830_v60 = vsub.f32 %v797_v34, %v812_v57 }
 0x291   : > { %v3015_v61 = vpop.eup %3014  ;;  %v895_v62 = vpack.c.bf16 %v891_v59, %v890_v58 }
 0x292   : > { %v3017_v63 = vpop.eup %3016  ;;  %v840_v0 = vmul.f32 1.442695, %v830_v60  ;;  %v861_v1 = vsel %vm803_vm2, %v3015_v61, 0.0  ;;  %v2984_v60 = vld [vmem:[%s4100_s3 + $0x1] ss:$0 sm:$0xff] }
 0x293   : > { %2666 = vmatmul.msk.bf16.gmra.mxu2 %vm803_vm2, %v895_v62  ;;  %862 = vadd.xlane.f32.xlu0 %v861_v1  ;;  %v855_v2 = vsel %vm803_vm2, %v3017_v63, 0.0  ;;  %v973_v62 = vadd.f32 %v2984_v60, %v972_v47 }
 0x294   : > { %3018 = vpow2.f32 %v840_v0  ;;  %856 = vadd.xlane.f32.xlu1 %v855_v2 }
 0x297   : > { %v977_v59 = vpop.f32.mrf.mxu1 }
 0x29a   : > { %v3019_v3 = vpop.eup %3018 }
 0x29b   : > { %v858_v6 = vsel %vm803_vm2, %v3019_v3, 0.0 }
 0x29c   : > { %859 = vadd.xlane.f32.xlu2 %v858_v6 }
 0x29f   : > { %v979_v1 = vpop.f32.mrf.mxu1 }
 0x2a0   : > { %v980_v6 = vadd.f32 %v2984_v60, %v979_v1 }
 0x2a3   : > { %2697 = vmatmul.msk.bf16.vlgmr.msra.gmra.mxu2 %vm581_vm0, %v3306_v17 }
 0x2a7   : > { %v982_v2 = vpop.f32.mrf.mxu1 }
 0x2b3   : > { %2698 = vmatmul.msk.bf16.gmra.mxu2 %vm581_vm0, %v3336_v31 }
 0x2c3   : > { %2699 = vmatmul.msk.bf16.gmra.mxu2 %vm581_vm0, %v3304_v16 }
 0x2d3   : > { %2700 = vmatmul.msk.bf16.gmra.mxu2 %vm581_vm0, %v3334_v30 }
 0x2fe   : > { %v854_v11 = vpop.xlane.xlu0 %853 }
 0x2ff   : > { %3020 = vrcp.f32 %v854_v11  ;;  %v2884_v11 = vld [vmem:[%s4103_s6 + $0x10] sm:$0xff] }
 0x300   : > { %1072 = vmatpush.bf16.msra.mxu3 %v2884_v11 }
 0x303   : > { %2714 = vmatmul.msk.bf16.vlgmr.msra.gmra.mxu3 %vm581_vm0, %v3368_v12 }
 0x305   : > { %v3453_v13 = vpop.f32.mrf.mxu2  ;;  %v3021_v15 = vpop.eup %3020 }
 0x306   : > { %v884_v9 = vmul.f32 %v3021_v15, %v3009_v51  ;;  %v863_v5 = vpop.xlane.xlu0 %862  ;;  %v983_v15 = vadd.f32 %v2984_v60, %v982_v2  ;;  %v2985_v2 = vld [vmem:[%s4104_s7 + $0x1] ss:$0 sm:$0xff] }
 0x307   : > { %v857_v14 = vpop.xlane.xlu1 %856 }
 0x308   : > { %3022 = vrcp.f32 %v857_v14  ;;  %v984_v14 = vpop.f32.mrf.mxu1 }
 0x30d   : > { %v3455_v20 = vpop.f32.mrf.mxu2 }
 0x30e   : > { %v3023_v24 = vpop.eup %3022 }
 0x30f   : > { %v885_v10 = vmul.f32 %v3023_v24, %v3017_v63  ;;  %v860_v25 = vpop.xlane.xlu2 %859  ;;  %v975_v63 = vadd.f32 %v2984_v60, %v974_v53  ;;  %v985_v24 = vadd.f32 %v2984_v60, %v984_v14 }
 0x310   : > { %3024 = vrcp.f32 %v860_v25 }
 0x311   : > { %v892_v4 = vpack.c.bf16 %v885_v10, %v884_v9  ;;  %3026 = vrcp.f32 %v863_v5  ;;  %v1094_v0 = vpack.c.bf16 %v975_v63, %v973_v62  ;;  %v987_v9 = vpop.f32.mrf.mxu1  ;;  %v1096_v10 = vpack.c.bf16 %v985_v24, %v983_v15 }
 0x312   : > { %v988_v5 = vadd.f32 %v2984_v60, %v987_v9 }
 0x313   : > { %2663 = vmatmul.msk.bf16.vlgmr.msrb.gmra.mxu0 %vm803_vm2, %v892_v4  ;;  %2715 = vmatmul.msk.bf16.gmra.mxu3 %vm581_vm0, %v3375_v21  ;;  %v2889_v4 = vld [vmem:[%s4101_s4 + $0x28] sm:$0xff] }
 0x314   : > { %1379 = vmatpush.bf16.msrb.mxu3 %v2889_v4 }
 0x316   : > { %v3458_v32 = vpop.f32.mrf.mxu2  ;;  %v3025_v33 = vpop.eup %3024 }
 0x317   : > { %v3027_v18 = vpop.eup %3026  ;;  %v886_v23 = vmul.f32 %v3025_v33, %v3019_v3  ;;  %v978_v3 = vadd.f32 %v2984_v60, %v977_v59 }
 0x318   : > { %v887_v34 = vmul.f32 %v3027_v18, %v3015_v61  ;;  %v2888_v18 = vld [vmem:[%s4101_s4 + $0x20] sm:$0xff] }
 0x319   : > { %v1095_v7 = vpack.c.bf16 %v980_v6, %v978_v3  ;;  %v989_v25 = vpop.f32.mrf.mxu1  ;;  %1380 = vmatpush.bf16.msrb.mxu3 %v2888_v18 }
 0x31a   : > { %v893_v35 = vpack.c.bf16 %v887_v34, %v886_v23  ;;  %v990_v33 = vadd.f32 %v2984_v60, %v989_v25 }
 0x31c   : > { %v1097_v23 = vpack.c.bf16 %v990_v33, %v988_v5 }
 0x31e   : > { %v3460_v19 = vpop.f32.mrf.mxu2 }
 0x323   : > { %2664 = vmatmul.msk.bf16.gmra.mxu0 %vm803_vm2, %v893_v35  ;;  %2716 = vmatmul.msk.bf16.gmra.mxu3 %vm581_vm0, %v3382_v26 }
 0x326   : > { %v1023_v27 = vpop.f32.mrf.mxu2 }
 0x327   : > { %v1024_v57 = vadd.f32 %v2983_v40, %v1023_v27 }
 0x32e   : > { %v1025_v29 = vpop.f32.mrf.mxu2 }
 0x32f   : > { %v1026_v55 = vadd.f32 %v2983_v40, %v1025_v29 }
 0x331   : > { %v1098_v58 = vpack.c.bf16 %v1026_v55, %v1024_v57 }
 0x333   : > { %v1115_v61 = vsel %vm741_vm1, %v1098_v58, 0  ;;  %2717 = vmatmul.msk.bf16.gmra.mxu3 %vm581_vm0, %v3388_v22 }
 0x336   : > { %v1028_v36 = vpop.f32.mrf.mxu2 }
 0x337   : > { %v1029_v52 = vadd.f32 %v2983_v40, %v1028_v36 }
 0x33e   : > { %v1030_v37 = vpop.f32.mrf.mxu2 }
 0x33f   : > { %v1031_v50 = vadd.f32 %v2983_v40, %v1030_v37 }
 0x341   : > { %v1099_v54 = vpack.c.bf16 %v1031_v50, %v1029_v52 }
 0x343   : > { %v1118_v56 = vsel %vm741_vm1, %v1099_v54, 0  ;;  %2756 = vmatmul.msk.bf16.vlgmr.msrb.gmra.mxu3 %vm581_vm0, %v3306_v17 }
 0x346   : > { %v1033_v38 = vpop.f32.mrf.mxu2 }
 0x347   : > { %v1034_v48 = vadd.f32 %v2983_v40, %v1033_v38 }
 0x34e   : > { %v1035_v39 = vpop.f32.mrf.mxu2 }
 0x34f   : > { %v1036_v45 = vadd.f32 %v2983_v40, %v1035_v39 }
 0x351   : > { %v1100_v49 = vpack.c.bf16 %v1036_v45, %v1034_v48 }
 0x353   : > { %v1121_v51 = vsel %vm741_vm1, %v1100_v49, 0  ;;  %2757 = vmatmul.msk.bf16.gmra.mxu3 %vm581_vm0, %v3336_v31 }
 0x356   : > { %v1038_v28 = vpop.f32.mrf.mxu2 }
 0x357   : > { %v1039_v42 = vadd.f32 %v2983_v40, %v1038_v28 }
 0x35e   : > { %v1040_v41 = vpop.f32.mrf.mxu2 }
 0x35f   : > { %v1041_v43 = vadd.f32 %v2983_v40, %v1040_v41 }
 0x361   : > { %v1101_v44 = vpack.c.bf16 %v1041_v43, %v1039_v42 }
 0x363   : > { %v1124_v46 = vsel %vm741_vm1, %v1101_v44, 0  ;;  %2758 = vmatmul.msk.bf16.gmra.mxu3 %vm581_vm0, %v3304_v16 }
 0x364   : > { %1130 = vmatpush.bf16.xpose.msra.mxu0 %v1124_v46 }
 0x36c   : > { %1131 = vmatpush.bf16.xpose.msra.mxu0 %v1121_v51 }
 0x373   : > { %2759 = vmatmul.msk.bf16.gmra.mxu3 %vm581_vm0, %v3334_v30 }
 0x374   : > { %1132 = vmatpush.bf16.xpose.msra.mxu0 %v1118_v56 }
 0x37c   : > { %1133 = vmatpush.bf16.xpose.msra.mxu0 %v1115_v61 }
 0x383   : > { %2718 = vmatmul.msk.bf16.vlgmr.msra.gmra.mxu0 %vm741_vm1, %v1094_v0 }
 0x386   : > { %v1074_v47 = vpop.f32.mrf.mxu3 }
 0x387   : > { %v1075_v4 = vadd.f32 %v2985_v2, %v1074_v47 }
 0x38e   : > { %v1076_v51 = vpop.f32.mrf.mxu3 }
 0x38f   : > { %v1077_v5 = vadd.f32 %v2985_v2, %v1076_v51 }
 0x390   : > { %v3497_v34 = vpop.f32.mrf.mxu0 }
 0x391   : > { %v1255_v18 = vpack.c.bf16 %v1077_v5, %v1075_v4 }
 0x393   : > { %2719 = vmatmul.msk.bf16.gmra.mxu0 %vm741_vm1, %v1095_v7 }
 0x396   : > { %v1079_v55 = vpop.f32.mrf.mxu3 }
 0x397   : > { %v1080_v15 = vadd.f32 %v2985_v2, %v1079_v55 }
 0x398   : > { %v3501_v35 = vpop.f32.mrf.mxu0 }
 0x39e   : > { %v1081_v59 = vpop.f32.mrf.mxu3 }
 0x39f   : > { %v1082_v24 = vadd.f32 %v2985_v2, %v1081_v59 }
 0x3a0   : > { %v3505_v27 = vpop.f32.mrf.mxu0 }
 0x3a1   : > { %v1256_v33 = vpack.c.bf16 %v1082_v24, %v1080_v15 }
 0x3a3   : > { %2720 = vmatmul.msk.bf16.gmra.mxu0 %vm741_vm1, %v1096_v10  ;;  %v2887_v10 = vld [vmem:[%s4099_s2 + $0x28] sm:$0xff] }
 0x3a4   : > { %1328 = vmatpush.bf16.msrb.mxu2 %v2887_v10 }
 0x3a6   : > { %v1084_v63 = vpop.f32.mrf.mxu3 }
 0x3a7   : > { %v1085_v7 = vadd.f32 %v2985_v2, %v1084_v63 }
 0x3a8   : > { %v3507_v29 = vpop.f32.mrf.mxu0 }
 0x3ae   : > { %v1086_v0 = vpop.f32.mrf.mxu3 }
 0x3af   : > { %v1087_v8 = vadd.f32 %v2985_v2, %v1086_v0 }
 0x3b1   : > { %v1257_v9 = vpack.c.bf16 %v1087_v8, %v1085_v7 }
 0x3b3   : > { %2721 = vmatmul.msk.bf16.gmra.mxu0 %vm741_vm1, %v1097_v23  ;;  %v2986_v23 = vld [vmem:[%s4102_s5 + $0x2] ss:$0 sm:$0xff] }
 0x3b6   : > { %v1089_v1 = vpop.f32.mrf.mxu3 }
 0x3b7   : > { %v1090_v3 = vadd.f32 %v2985_v2, %v1089_v1 }
 0x3be   : > { %v1091_v6 = vpop.f32.mrf.mxu3 }
 0x3bf   : > { %v1092_v11 = vadd.f32 %v2985_v2, %v1091_v6 }
 0x3c1   : > { %v1258_v14 = vpack.c.bf16 %v1092_v11, %v1090_v3 }
 0x3c3   : > { %1275 = vmatpush.bf16.msra.mxu1 %v1258_v14 }
 0x3c6   : > { %v1382_v25 = vpop.f32.mrf.mxu3 }
 0x3c7   : > { %1276 = vmatpush.bf16.msra.mxu1 %v1257_v9 }
 0x3cb   : > { %1277 = vmatpush.bf16.msra.mxu1 %v1256_v33 }
 0x3cf   : > { %1278 = vmatpush.bf16.msra.mxu1 %v1255_v18 }
 0x400   : > { %v1135_v36 = vpop.f32.mrf.mxu0 }
 0x401   : > { %v3511_v37 = vmul.f32 0.35355338, %v1135_v36  ;;  %v3554_v36 = vadd.f32 %v2986_v23, %v1382_v25 }
 0x403   : > { %v1163_v38 = vsel %vm803_vm2, %v3511_v37, -inf }
 0x404   : > { %1164 = vmax.xlane.f32.xlu1 %v1163_v38  ;;  %v1384_v38 = vpop.f32.mrf.mxu3 }
 0x408   : > { %v1137_v39 = vpop.f32.mrf.mxu0 }
 0x409   : > { %v3515_v28 = vmul.f32 0.35355338, %v1137_v39  ;;  %v3556_v39 = vadd.f32 %v2986_v23, %v1384_v38 }
 0x40b   : > { %v1166_v40 = vsel %vm803_vm2, %v3515_v28, -inf }
 0x40c   : > { %1167 = vmax.xlane.f32.xlu2 %v1166_v40  ;;  %v1457_v40 = vpack.c.bf16 %v3556_v39, %v3554_v36 }
 0x410   : > { %v1140_v41 = vpop.f32.mrf.mxu0 }
 0x411   : > { %v3521_v42 = vmul.f32 0.35355338, %v1140_v41  ;;  %v1387_v41 = vpop.f32.mrf.mxu3 }
 0x412   : > { %v1388_v38 = vadd.f32 %v2986_v23, %v1387_v41 }
 0x413   : > { %v1169_v43 = vsel %vm803_vm2, %v3521_v42, -inf }
 0x414   : > { %1170 = vmax.xlane.f32.xlu0 %v1169_v43 }
 0x418   : > { %v1142_v44 = vpop.f32.mrf.mxu0 }
 0x419   : > { %v3525_v45 = vmul.f32 0.35355338, %v1142_v44  ;;  %v1389_v44 = vpop.f32.mrf.mxu3 }
 0x41b   : > { %v1172_v46 = vsel %vm803_vm2, %v3525_v45, -inf }
 0x41c   : > { %1173 = vmax.xlane.f32.xlu1 %v1172_v46 }
 0x420   : > { %v1145_v48 = vpop.f32.mrf.mxu0 }
 0x421   : > { %v3529_v49 = vmul.f32 0.35355338, %v1145_v48  ;;  %v2886_v48 = vld [vmem:[%s4099_s2 + $0x20] sm:$0xff]  ;;  %v1392_v51 = vpop.f32.mrf.mxu3 }
 0x422   : > { %1329 = vmatpush.bf16.msrb.mxu2 %v2886_v48  ;;  %v1393_v24 = vadd.f32 %v2986_v23, %v1392_v51 }
 0x423   : > { %v1175_v50 = vsel %vm803_vm2, %v3529_v49, -inf }
 0x424   : > { %1176 = vmax.xlane.f32.xlu2 %v1175_v50 }
 0x425   : > { %2739 = vmatmul.msk.bf16.vlgmr.msrb.gmra.mxu2 %vm581_vm0, %v3306_v17 }
 0x428   : > { %v1147_v52 = vpop.f32.mrf.mxu0 }
 0x429   : > { %v3533_v53 = vmul.f32 0.35355338, %v1147_v52 }
 0x42b   : > { %v1178_v54 = vsel %vm803_vm2, %v3533_v53, -inf }
 0x42c   : > { %1179 = vmax.xlane.f32.xlu0 %v1178_v54 }
 0x430   : > { %v1150_v56 = vpop.f32.mrf.mxu0 }
 0x431   : > { %v3537_v57 = vmul.f32 0.35355338, %v1150_v56 }
 0x433   : > { %v1181_v58 = vsel %vm803_vm2, %v3537_v57, -inf }
 0x434   : > { %1182 = vmax.xlane.f32.xlu1 %v1181_v58  ;;  %v1394_v58 = vpop.f32.mrf.mxu3 }
 0x435   : > { %2740 = vmatmul.msk.bf16.gmra.mxu2 %vm581_vm0, %v3336_v31  ;;  %v1395_v9 = vadd.f32 %v2986_v23, %v1394_v58 }
 0x437   : > { %v1459_v5 = vpack.c.bf16 %v1395_v9, %v1393_v24 }
 0x438   : > { %v1152_v60 = vpop.f32.mrf.mxu0 }
 0x439   : > { %v3541_v61 = vmul.f32 0.35355338, %v1152_v60 }
 0x43b   : > { %v1184_v62 = vsel %vm803_vm2, %v3541_v61, -inf }
 0x43c   : > { %1185 = vmax.xlane.f32.xlu2 %v1184_v62  ;;  %v1397_v0 = vpop.f32.mrf.mxu3 }
 0x43d   : > { %v1398_v6 = vadd.f32 %v2986_v23, %v1397_v0 }
 0x444   : > { %v1399_v8 = vpop.f32.mrf.mxu3 }
 0x445   : > { %v1400_v14 = vadd.f32 %v2986_v23, %v1399_v8  ;;  %2741 = vmatmul.msk.bf16.gmra.mxu2 %vm581_vm0, %v3304_v16 }
 0x447   : > { %v1460_v10 = vpack.c.bf16 %v1400_v14, %v1398_v6 }
 0x449   : > { %v1483_v4 = vsel %vm741_vm1, %v1460_v10, 0 }
 0x44a   : > { %1489 = vmatpush.bf16.xpose.msrb.mxu1 %v1483_v4 }
 0x455   : > { %2742 = vmatmul.msk.bf16.gmra.mxu2 %vm581_vm0, %v3334_v30 }
 0x477   : > { %v1165_v43 = vpop.xlane.xlu1 %1164 }
 0x478   : > { %v1187_v46 = vsub.f32 %v3511_v37, %v1165_v43  ;;  %v1390_v43 = vadd.f32 %v2986_v23, %v1389_v44 }
 0x47a   : > { %v1195_v47 = vmul.f32 1.442695, %v1187_v46 }
 0x47c   : > { %3028 = vpow2.f32 %v1195_v47  ;;  %v1480_v47 = vsel %vm741_vm1, %v1459_v5, 0 }
 0x47d   : > { %1490 = vmatpush.bf16.xpose.msrb.mxu1 %v1480_v47 }
 0x47f   : > { %v1168_v50 = vpop.xlane.xlu2 %1167 }
 0x480   : > { %v1188_v52 = vsub.f32 %v3515_v28, %v1168_v50  ;;  %v1458_v50 = vpack.c.bf16 %v1390_v43, %v1388_v38 }
 0x482   : > { %v3567_v54 = vpop.eup %3028  ;;  %v1197_v55 = vmul.f32 1.442695, %v1188_v52 }
 0x483   : > { %v1211_v37 = vsel %vm803_vm2, %v3567_v54, 0.0 }
 0x484   : > { %3030 = vpow2.f32 %v1197_v55  ;;  %1212 = vadd.xlane.f32.xlu0 %v1211_v37  ;;  %v1477_v37 = vsel %vm741_vm1, %v1458_v50, 0 }
 0x485   : > { %1491 = vmatpush.bf16.xpose.msrb.mxu1 %v1477_v37 }
 0x487   : > { %v1171_v56 = vpop.xlane.xlu0 %1170 }
 0x488   : > { %v1189_v59 = vsub.f32 %v3521_v42, %v1171_v56 }
 0x48a   : > { %v3572_v60 = vpop.eup %3030  ;;  %v1199_v62 = vmul.f32 1.442695, %v1189_v59 }
 0x48b   : > { %v1214_v28 = vsel %vm803_vm2, %v3572_v60, 0.0 }
 0x48c   : > { %3032 = vpow2.f32 %v1199_v62  ;;  %1215 = vadd.xlane.f32.xlu1 %v1214_v28 }
 0x48f   : > { %v1174_v63 = vpop.xlane.xlu1 %1173 }
 0x490   : > { %v1190_v1 = vsub.f32 %v3525_v45, %v1174_v63 }
 0x492   : > { %v3579_v2 = vpop.eup %3032  ;;  %v1201_v3 = vmul.f32 1.442695, %v1190_v1 }
 0x493   : > { %v1217_v42 = vsel %vm803_vm2, %v3579_v2, 0.0 }
 0x494   : > { %3034 = vpow2.f32 %v1201_v3  ;;  %1218 = vadd.xlane.f32.xlu2 %v1217_v42 }
 0x497   : > { %v1177_v7 = vpop.xlane.xlu2 %1176 }
 0x498   : > { %v1191_v11 = vsub.f32 %v3529_v49, %v1177_v7 }
 0x49a   : > { %v3584_v15 = vpop.eup %3034  ;;  %v1203_v45 = vmul.f32 1.442695, %v1191_v11 }
 0x49b   : > { %v1220_v25 = vsel %vm803_vm2, %v3584_v15, 0.0 }
 0x49c   : > { %3036 = vpow2.f32 %v1203_v45  ;;  %1221 = vadd.xlane.f32.xlu0 %v1220_v25 }
 0x49f   : > { %v1180_v33 = vpop.xlane.xlu0 %1179 }
 0x4a0   : > { %v1192_v18 = vsub.f32 %v3533_v53, %v1180_v33 }
 0x4a2   : > { %v3037_v49 = vpop.eup %3036  ;;  %v1205_v46 = vmul.f32 1.442695, %v1192_v18 }
 0x4a3   : > { %v1223_v48 = vsel %vm803_vm2, %v3037_v49, 0.0 }
 0x4a4   : > { %3038 = vpow2.f32 %v1205_v46  ;;  %1224 = vadd.xlane.f32.xlu1 %v1223_v48 }
 0x4a7   : > { %v1183_v51 = vpop.xlane.xlu1 %1182 }
 0x4a8   : > { %v1193_v52 = vsub.f32 %v3537_v57, %v1183_v51  ;;  %v1474_v57 = vsel %vm741_vm1, %v1457_v40, 0  ;;  %v1331_v5 = vpop.f32.mrf.mxu2 }
 0x4a9   : > { %1492 = vmatpush.bf16.xpose.msrb.mxu1 %v1474_v57 }
 0x4aa   : > { %v3039_v55 = vpop.eup %3038  ;;  %v1207_v53 = vmul.f32 1.442695, %v1193_v52 }
 0x4ab   : > { %v1226_v56 = vsel %vm803_vm2, %v3039_v55, 0.0 }
 0x4ac   : > { %3040 = vpow2.f32 %v1207_v53  ;;  %1227 = vadd.xlane.f32.xlu2 %v1226_v56 }
 0x4af   : > { %v1186_v23 = vpop.xlane.xlu2 %1185 }
 0x4b0   : > { %v1194_v41 = vsub.f32 %v3541_v61, %v1186_v23  ;;  %v1333_v18 = vpop.f32.mrf.mxu2  ;;  %v2891_v23 = vld [vmem:[%s4103_s6 + $0x28] sm:$0xff] }
 0x4b1   : > { %1430 = vmatpush.bf16.msrb.mxu0 %v2891_v23 }
 0x4b2   : > { %v3041_v44 = vpop.eup %3040  ;;  %v1209_v58 = vmul.f32 1.442695, %v1194_v41  ;;  %v2890_v41 = vld [vmem:[%s4103_s6 + $0x20] sm:$0xff] }
 0x4b3   : > { %v1229_v59 = vsel %vm803_vm2, %v3041_v44, 0.0 }
 0x4b4   : > { %3042 = vpow2.f32 %v1209_v58  ;;  %1230 = vadd.xlane.f32.xlu0 %v1229_v59 }
 0x4b5   : > { %1431 = vmatpush.bf16.msrb.mxu0 %v2890_v41 }
 0x4b8   : > { %v1336_v47 = vpop.f32.mrf.mxu2  ;;  %2773 = vmatmul.msk.bf16.vlgmr.msrb.gmra.mxu0 %vm581_vm0, %v3368_v12 }
 0x4ba   : > { %v3043_v62 = vpop.eup %3042 }
 0x4bb   : > { %v1232_v28 = vsel %vm803_vm2, %v3043_v62, 0.0 }
 0x4bc   : > { %1233 = vadd.xlane.f32.xlu1 %v1232_v28 }
 0x4c0   : > { %v1338_v52 = vpop.f32.mrf.mxu2 }
 0x4c8   : > { %2774 = vmatmul.msk.bf16.gmra.mxu0 %vm581_vm0, %v3375_v21 }
 0x4d8   : > { %2775 = vmatmul.msk.bf16.gmra.mxu0 %vm581_vm0, %v3382_v26 }
 0x4e8   : > { %2776 = vmatmul.msk.bf16.gmra.mxu0 %vm581_vm0, %v3388_v22 }
 0x4f7   : > { %v1213_v61 = vpop.xlane.xlu0 %1212 }
 0x4f8   : > { %3044 = vrcp.f32 %v1213_v61 }
 0x4fe   : > { %v3045_v0 = vpop.eup %3044 }
 0x4ff   : > { %v1216_v63 = vpop.xlane.xlu1 %1215  ;;  %v1243_v3 = vmul.f32 %v3045_v0, %v3567_v54 }
 0x500   : > { %3046 = vrcp.f32 %v1216_v63 }
 0x506   : > { %v3047_v1 = vpop.eup %3046 }
 0x507   : > { %v1244_v36 = vmul.f32 %v3047_v1, %v3572_v60  ;;  %v1219_v40 = vpop.xlane.xlu2 %1218 }
 0x508   : > { %3048 = vrcp.f32 %v1219_v40  ;;  %v2895_v40 = vld [vmem:[%s4101_s4 + $0x38] sm:$0xff] }
 0x509   : > { %v1251_v39 = vpack.c.bf16 %v1244_v36, %v1243_v3  ;;  %1738 = vmatpush.bf16.msra.mxu0 %v2895_v40 }
 0x50b   : > { %2722 = vmatmul.msk.bf16.vlgmr.msra.gmra.mxu1 %vm803_vm2, %v1251_v39 }
 0x50e   : > { %v3049_v6 = vpop.eup %3048 }
 0x50f   : > { %v1222_v42 = vpop.xlane.xlu0 %1221  ;;  %v1245_v8 = vmul.f32 %v3049_v6, %v3579_v2 }
 0x510   : > { %3050 = vrcp.f32 %v1222_v42  ;;  %v2894_v42 = vld [vmem:[%s4101_s4 + $0x30] sm:$0xff] }
 0x511   : > { %1739 = vmatpush.bf16.msra.mxu0 %v2894_v42 }
 0x514   : > { %2815 = vmatmul.msk.bf16.vlgmr.msra.gmra.mxu0 %vm581_vm0, %v3306_v17 }
 0x516   : > { %v3051_v7 = vpop.eup %3050 }
 0x517   : > { %v1246_v11 = vmul.f32 %v3051_v7, %v3584_v15  ;;  %v1225_v45 = vpop.xlane.xlu1 %1224 }
 0x518   : > { %3052 = vrcp.f32 %v1225_v45 }
 0x519   : > { %v1252_v14 = vpack.c.bf16 %v1246_v11, %v1245_v8 }
 0x51b   : > { %2723 = vmatmul.msk.bf16.gmra.mxu1 %vm803_vm2, %v1252_v14 }
 0x51e   : > { %v3053_v60 = vpop.eup %3052 }
 0x51f   : > { %v1228_v54 = vpop.xlane.xlu2 %1227  ;;  %v1247_v9 = vmul.f32 %v3053_v60, %v3037_v49  ;;  %v2987_v49 = vld [vmem:[%s4100_s3 + $0x2] ss:$0 sm:$0xff] }
 0x520   : > { %3054 = vrcp.f32 %v1228_v54  ;;  %v1332_v48 = vadd.f32 %v2987_v49, %v1331_v5  ;;  %v1334_v50 = vadd.f32 %v2987_v49, %v1333_v18  ;;  %v1337_v53 = vadd.f32 %v2987_v49, %v1336_v47 }
 0x521   : > { %v1339_v37 = vadd.f32 %v2987_v49, %v1338_v52 }
 0x522   : > { %v1453_v51 = vpack.c.bf16 %v1334_v50, %v1332_v48 }
 0x523   : > { %v1454_v56 = vpack.c.bf16 %v1339_v37, %v1337_v53 }
 0x524   : > { %2816 = vmatmul.msk.bf16.gmra.mxu0 %vm581_vm0, %v3336_v31 }
 0x526   : > { %v3055_v24 = vpop.eup %3054 }
 0x527   : > { %v1248_v10 = vmul.f32 %v3055_v24, %v3039_v55  ;;  %v1231_v4 = vpop.xlane.xlu0 %1230  ;;  %v1341_v55 = vpop.f32.mrf.mxu2 }
 0x528   : > { %3056 = vrcp.f32 %v1231_v4  ;;  %v1342_v58 = vadd.f32 %v2987_v49, %v1341_v55 }
 0x529   : > { %v1253_v25 = vpack.c.bf16 %v1248_v10, %v1247_v9 }
 0x52b   : > { %2724 = vmatmul.msk.bf16.gmra.mxu1 %vm803_vm2, %v1253_v25 }
 0x52e   : > { %v3057_v15 = vpop.eup %3056 }
 0x52f   : > { %v1234_v2 = vpop.xlane.xlu1 %1233  ;;  %v1249_v38 = vmul.f32 %v3057_v15, %v3041_v44  ;;  %v1343_v44 = vpop.f32.mrf.mxu2 }
 0x530   : > { %3058 = vrcp.f32 %v1234_v2  ;;  %v1344_v57 = vadd.f32 %v2987_v49, %v1343_v44 }
 0x534   : > { %2817 = vmatmul.msk.bf16.gmra.mxu0 %vm581_vm0, %v3304_v16 }
 0x536   : > { %v3059_v33 = vpop.eup %3058 }
 0x537   : > { %v1250_v43 = vmul.f32 %v3059_v33, %v3043_v62  ;;  %v1346_v59 = vpop.f32.mrf.mxu2  ;;  %v1455_v62 = vpack.c.bf16 %v1344_v57, %v1342_v58  ;;  %v1433_v33 = vpop.f32.mrf.mxu0  ;;  %v2988_v57 = vld [vmem:[%s4104_s7 + $0x2] ss:$0 sm:$0xff] }
 0x538   : > { %v1347_v61 = vadd.f32 %v2987_v49, %v1346_v59 }
 0x539   : > { %v1254_v46 = vpack.c.bf16 %v1250_v43, %v1249_v38 }
 0x53b   : > { %2725 = vmatmul.msk.bf16.gmra.mxu1 %vm803_vm2, %v1254_v46 }
 0x53f   : > { %v1348_v28 = vpop.f32.mrf.mxu2  ;;  %v1435_v46 = vpop.f32.mrf.mxu0 }
 0x540   : > { %v1349_v63 = vadd.f32 %v2987_v49, %v1348_v28 }
 0x542   : > { %v1456_v0 = vpack.c.bf16 %v1349_v63, %v1347_v61 }
 0x544   : > { %2818 = vmatmul.msk.bf16.gmra.mxu0 %vm581_vm0, %v3334_v30 }
 0x547   : > { %v1438_v50 = vpop.f32.mrf.mxu0 }
 0x548   : > { %v1439_v40 = vadd.f32 %v2988_v57, %v1438_v50 }
 0x54b   : > { %2777 = vmatmul.msk.bf16.vlgmr.msrb.gmra.mxu1 %vm741_vm1, %v1453_v51 }
 0x54f   : > { %v1440_v53 = vpop.f32.mrf.mxu0 }
 0x550   : > { %v1441_v42 = vadd.f32 %v2988_v57, %v1440_v53  ;;  %v2892_v53 = vld [vmem:[%s4099_s2 + $0x30] sm:$0xff] }
 0x557   : > { %v1443_v41 = vpop.f32.mrf.mxu0 }
 0x558   : > { %v1444_v28 = vadd.f32 %v2988_v57, %v1443_v41 }
 0x55b   : > { %2778 = vmatmul.msk.bf16.gmra.mxu1 %vm741_vm1, %v1454_v56 }
 0x55f   : > { %v1445_v44 = vpop.f32.mrf.mxu0 }
 0x560   : > { %v1446_v61 = vadd.f32 %v2988_v57, %v1445_v44 }
 0x567   : > { %v1448_v58 = vpop.f32.mrf.mxu0 }
 0x568   : > { %v1449_v59 = vadd.f32 %v2988_v57, %v1448_v58 }
 0x56b   : > { %2779 = vmatmul.msk.bf16.gmra.mxu1 %vm741_vm1, %v1455_v62 }
 0x56f   : > { %v1450_v62 = vpop.f32.mrf.mxu0 }
 0x570   : > { %v1451_v63 = vadd.f32 %v2988_v57, %v1450_v62 }
 0x57b   : > { %2780 = vmatmul.msk.bf16.gmra.mxu1 %vm741_vm1, %v1456_v0  ;;  %v1617_v0 = vpack.c.bf16 %v1451_v63, %v1449_v59 }
 0x57d   : > { %1634 = vmatpush.bf16.msra.mxu2 %v1617_v0 }
 0x588   : > { %v3633_v1 = vpop.f32.mrf.mxu1 }
 0x590   : > { %v3635_v3 = vpop.f32.mrf.mxu1 }
 0x598   : > { %v3639_v36 = vpop.f32.mrf.mxu1 }
 0x5a0   : > { %v3641_v39 = vpop.f32.mrf.mxu1 }
 0x5a8   : > { %v3649_v6 = vpop.f32.mrf.mxu1 }
 0x5b0   : > { %v3653_v7 = vpop.f32.mrf.mxu1 }
 0x5b8   : > { %v3655_v8 = vpop.f32.mrf.mxu1 }
 0x5c0   : > { %v3659_v11 = vpop.f32.mrf.mxu1 }
 0x5c8   : > { %v1494_v14 = vpop.f32.mrf.mxu1 }
 0x5c9   : > { %v3661_v45 = vmul.f32 0.35355338, %v1494_v14  ;;  %v1616_v14 = vpack.c.bf16 %v1446_v61, %v1444_v28 }
 0x5cb   : > { %v1522_v54 = vsel %vm803_vm2, %v3661_v45, -inf  ;;  %1635 = vmatpush.bf16.msra.mxu2 %v1616_v14 }
 0x5cc   : > { %1523 = vmax.xlane.f32.xlu2 %v1522_v54  ;;  %v2893_v54 = vld [vmem:[%s4099_s2 + $0x38] sm:$0xff] }
 0x5cd   : > { %1687 = vmatpush.bf16.msra.mxu3 %v2893_v54 }
 0x5d0   : > { %v1496_v60 = vpop.f32.mrf.mxu1 }
 0x5d1   : > { %v3667_v24 = vmul.f32 0.35355338, %v1496_v60  ;;  %v1434_v60 = vadd.f32 %v2988_v57, %v1433_v33  ;;  %1688 = vmatpush.bf16.msra.mxu3 %v2892_v53 }
 0x5d3   : > { %v1525_v9 = vsel %vm803_vm2, %v3667_v24, -inf }
 0x5d4   : > { %1526 = vmax.xlane.f32.xlu0 %v1525_v9  ;;  %v1436_v9 = vadd.f32 %v2988_v57, %v1435_v46  ;;  %2798 = vmatmul.msk.bf16.vlgmr.msra.gmra.mxu3 %vm581_vm0, %v3306_v17 }
 0x5d8   : > { %v1499_v10 = vpop.f32.mrf.mxu1 }
 0x5d9   : > { %v3671_v25 = vmul.f32 0.35355338, %v1499_v10  ;;  %v1615_v10 = vpack.c.bf16 %v1441_v42, %v1439_v40 }
 0x5db   : > { %v1528_v4 = vsel %vm803_vm2, %v3671_v25, -inf  ;;  %1636 = vmatpush.bf16.msra.mxu2 %v1615_v10 }
 0x5dc   : > { %1529 = vmax.xlane.f32.xlu1 %v1528_v4  ;;  %v1741_v4 = vpop.f32.mrf.mxu0 }
 0x5e0   : > { %v1501_v5 = vpop.f32.mrf.mxu1 }
 0x5e1   : > { %v3677_v2 = vmul.f32 0.35355338, %v1501_v5  ;;  %v1614_v5 = vpack.c.bf16 %v1436_v9, %v1434_v60 }
 0x5e3   : > { %v1531_v15 = vsel %vm803_vm2, %v3677_v2, -inf  ;;  %1637 = vmatpush.bf16.msra.mxu2 %v1614_v5 }
 0x5e4   : > { %1532 = vmax.xlane.f32.xlu2 %v1531_v15  ;;  %v2989_v15 = vld [vmem:[%s4102_s5 + $0x3] ss:$0 sm:$0xff]  ;;  %2799 = vmatmul.msk.bf16.gmra.mxu3 %vm581_vm0, %v3336_v31 }
 0x5e8   : > { %v1504_v18 = vpop.f32.mrf.mxu1 }
 0x5e9   : > { %v3681_v38 = vmul.f32 0.35355338, %v1504_v18  ;;  %v3706_v18 = vadd.f32 %v2989_v15, %v1741_v4 }
 0x5eb   : > { %v1534_v43 = vsel %vm803_vm2, %v3681_v38, -inf }
 0x5ec   : > { %1535 = vmax.xlane.f32.xlu0 %v1534_v43  ;;  %v1743_v43 = vpop.f32.mrf.mxu0 }
 0x5f0   : > { %v1506_v47 = vpop.f32.mrf.mxu1 }
 0x5f1   : > { %v3685_v49 = vmul.f32 0.35355338, %v1506_v47  ;;  %v3708_v47 = vadd.f32 %v2989_v15, %v1743_v43 }
 0x5f3   : > { %v1537_v48 = vsel %vm803_vm2, %v3685_v49, -inf  ;;  %v1816_v33 = vpack.c.bf16 %v3708_v47, %v3706_v18 }
 0x5f4   : > { %1538 = vmax.xlane.f32.xlu1 %v1537_v48  ;;  %v1746_v46 = vpop.f32.mrf.mxu0  ;;  %2800 = vmatmul.msk.bf16.gmra.mxu3 %vm581_vm0, %v3304_v16 }
 0x5f8   : > { %v1509_v51 = vpop.f32.mrf.mxu1 }
 0x5f9   : > { %v3689_v52 = vmul.f32 0.35355338, %v1509_v51 }
 0x5fb   : > { %v1540_v55 = vsel %vm803_vm2, %v3689_v52, -inf }
 0x5fc   : > { %1541 = vmax.xlane.f32.xlu2 %v1540_v55  ;;  %v1748_v50 = vpop.f32.mrf.mxu0 }
 0x600   : > { %v1511_v37 = vpop.f32.mrf.mxu1 }
 0x601   : > { %v3693_v56 = vmul.f32 0.35355338, %v1511_v37 }
 0x603   : > { %v1543_v23 = vsel %vm803_vm2, %v3693_v56, -inf }
 0x604   : > { %1544 = vmax.xlane.f32.xlu0 %v1543_v23  ;;  %v1751_v23 = vpop.f32.mrf.mxu0  ;;  %2801 = vmatmul.msk.bf16.gmra.mxu3 %vm581_vm0, %v3334_v30 }
 0x605   : > { %v1752_v5 = vadd.f32 %v2989_v15, %v1751_v23  ;;  %v1749_v23 = vadd.f32 %v2989_v15, %v1748_v50 }
 0x60c   : > { %v1753_v59 = vpop.f32.mrf.mxu0 }
 0x60d   : > { %v1754_v43 = vadd.f32 %v2989_v15, %v1753_v59 }
 0x614   : > { %v1756_v63 = vpop.f32.mrf.mxu0 }
 0x615   : > { %v1757_v14 = vadd.f32 %v2989_v15, %v1756_v63 }
 0x61c   : > { %v1758_v60 = vpop.f32.mrf.mxu0 }
 0x61d   : > { %v1759_v10 = vadd.f32 %v2989_v15, %v1758_v60 }
 0x61f   : > { %v1819_v31 = vpack.c.bf16 %v1759_v10, %v1757_v14 }
 0x63f   : > { %v1524_v48 = vpop.xlane.xlu2 %1523 }
 0x640   : > { %v1546_v51 = vsub.f32 %v3661_v45, %v1524_v48 }
 0x642   : > { %v1554_v55 = vmul.f32 1.442695, %v1546_v51  ;;  %v1842_v51 = vsel %vm741_vm1, %v1819_v31, 0 }
 0x643   : > { %1848 = vmatpush.bf16.xpose.msrb.mxu2 %v1842_v51 }
 0x644   : > { %3060 = vpow2.f32 %v1554_v55  ;;  %v1818_v55 = vpack.c.bf16 %v1754_v43, %v1752_v5 }
 0x647   : > { %v1527_v37 = vpop.xlane.xlu0 %1526 }
 0x648   : > { %v1547_v41 = vsub.f32 %v3667_v24, %v1527_v37 }
 0x64a   : > { %v3719_v44 = vpop.eup %3060  ;;  %v1556_v58 = vmul.f32 1.442695, %v1547_v41  ;;  %v1747_v41 = vadd.f32 %v2989_v15, %v1746_v46 }
 0x64b   : > { %v1570_v45 = vsel %vm803_vm2, %v3719_v44, 0.0 }
 0x64c   : > { %3062 = vpow2.f32 %v1556_v58  ;;  %1571 = vadd.xlane.f32.xlu1 %v1570_v45  ;;  %v1839_v45 = vsel %vm741_vm1, %v1818_v55, 0  ;;  %v1817_v59 = vpack.c.bf16 %v1749_v23, %v1747_v41 }
 0x64d   : > { %1849 = vmatpush.bf16.xpose.msrb.mxu2 %v1839_v45 }
 0x64f   : > { %v1530_v57 = vpop.xlane.xlu1 %1529 }
 0x650   : > { %v1548_v62 = vsub.f32 %v3671_v25, %v1530_v57 }
 0x652   : > { %v3724_v28 = vpop.eup %3062  ;;  %v1558_v61 = vmul.f32 1.442695, %v1548_v62 }
 0x653   : > { %v1573_v24 = vsel %vm803_vm2, %v3724_v28, 0.0 }
 0x654   : > { %3064 = vpow2.f32 %v1558_v61  ;;  %1574 = vadd.xlane.f32.xlu2 %v1573_v24 }
 0x657   : > { %v1533_v17 = vpop.xlane.xlu2 %1532  ;;  %v1690_v23 = vpop.f32.mrf.mxu3 }
 0x658   : > { %v1549_v0 = vsub.f32 %v3677_v2, %v1533_v17  ;;  %v1836_v17 = vsel %vm741_vm1, %v1817_v59, 0 }
 0x659   : > { %1850 = vmatpush.bf16.xpose.msrb.mxu2 %v1836_v17 }
 0x65a   : > { %v3731_v40 = vpop.eup %3064  ;;  %v1560_v42 = vmul.f32 1.442695, %v1549_v0 }
 0x65b   : > { %v1576_v25 = vsel %vm803_vm2, %v3731_v40, 0.0 }
 0x65c   : > { %3066 = vpow2.f32 %v1560_v42  ;;  %1577 = vadd.xlane.f32.xlu0 %v1576_v25 }
 0x65f   : > { %v1536_v54 = vpop.xlane.xlu0 %1535  ;;  %v1692_v45 = vpop.f32.mrf.mxu3 }
 0x660   : > { %v1550_v9 = vsub.f32 %v3681_v38, %v1536_v54 }
 0x662   : > { %v3736_v4 = vpop.eup %3066  ;;  %v1562_v2 = vmul.f32 1.442695, %v1550_v9 }
 0x663   : > { %v1579_v48 = vsel %vm803_vm2, %v3736_v4, 0.0 }
 0x664   : > { %3068 = vpow2.f32 %v1562_v2  ;;  %1580 = vadd.xlane.f32.xlu1 %v1579_v48 }
 0x667   : > { %v1539_v53 = vpop.xlane.xlu1 %1538 }
 0x668   : > { %v1551_v37 = vsub.f32 %v3685_v49, %v1539_v53 }
 0x66a   : > { %v3069_v38 = vpop.eup %3068  ;;  %v1564_v58 = vmul.f32 1.442695, %v1551_v37 }
 0x66b   : > { %v1582_v57 = vsel %vm803_vm2, %v3069_v38, 0.0 }
 0x66c   : > { %3070 = vpow2.f32 %v1564_v58  ;;  %1583 = vadd.xlane.f32.xlu2 %v1582_v57 }
 0x66f   : > { %v1542_v62 = vpop.xlane.xlu2 %1541 }
 0x670   : > { %v1552_v61 = vsub.f32 %v3689_v52, %v1542_v62  ;;  %v1833_v52 = vsel %vm741_vm1, %v1816_v33, 0 }
 0x671   : > { %1851 = vmatpush.bf16.xpose.msrb.mxu2 %v1833_v52 }
 0x672   : > { %v3071_v24 = vpop.eup %3070  ;;  %v1566_v49 = vmul.f32 1.442695, %v1552_v61  ;;  %v1695_v61 = vpop.f32.mrf.mxu3 }
 0x673   : > { %v1585_v16 = vsel %vm803_vm2, %v3071_v24, 0.0 }
 0x674   : > { %3072 = vpow2.f32 %v1566_v49  ;;  %1586 = vadd.xlane.f32.xlu0 %v1585_v16 }
 0x677   : > { %v1545_v15 = vpop.xlane.xlu0 %1544 }
 0x678   : > { %v1553_v46 = vsub.f32 %v3693_v56, %v1545_v15 }
 0x67a   : > { %v3073_v50 = vpop.eup %3072  ;;  %v1568_v63 = vmul.f32 1.442695, %v1553_v46  ;;  %v1697_v17 = vpop.f32.mrf.mxu3 }
 0x67b   : > { %v1588_v0 = vsel %vm803_vm2, %v3073_v50, 0.0 }
 0x67c   : > { %3074 = vpow2.f32 %v1568_v63  ;;  %1589 = vadd.xlane.f32.xlu1 %v1588_v0 }
 0x682   : > { %v3075_v42 = vpop.eup %3074  ;;  %v1700_v15 = vpop.f32.mrf.mxu3 }
 0x683   : > { %v1591_v25 = vsel %vm803_vm2, %v3075_v42, 0.0 }
 0x684   : > { %1592 = vadd.xlane.f32.xlu2 %v1591_v25 }
 0x6bf   : > { %v1572_v56 = vpop.xlane.xlu1 %1571 }
 0x6c0   : > { %3076 = vrcp.f32 %v1572_v56 }
 0x6c6   : > { %v3077_v30 = vpop.eup %3076 }
 0x6c7   : > { %v1575_v14 = vpop.xlane.xlu2 %1574  ;;  %v1602_v60 = vmul.f32 %v3077_v30, %v3719_v44 }
 0x6c8   : > { %3078 = vrcp.f32 %v1575_v14  ;;  %v2897_v14 = vld [vmem:[%s4103_s6 + $0x38] sm:$0xff] }
 0x6c9   : > { %1789 = vmatpush.bf16.msra.mxu1 %v2897_v14 }
 0x6ce   : > { %v3079_v54 = vpop.eup %3078 }
 0x6cf   : > { %v1603_v18 = vmul.f32 %v3079_v54, %v3724_v28  ;;  %v1578_v33 = vpop.xlane.xlu0 %1577 }
 0x6d0   : > { %3080 = vrcp.f32 %v1578_v33 }
 0x6d1   : > { %v1610_v47 = vpack.c.bf16 %v1603_v18, %v1602_v60 }
 0x6d3   : > { %2781 = vmatmul.msk.bf16.vlgmr.msra.gmra.mxu2 %vm803_vm2, %v1610_v47  ;;  %v2896_v47 = vld [vmem:[%s4103_s6 + $0x30] sm:$0xff] }
 0x6d4   : > { %1790 = vmatpush.bf16.msra.mxu1 %v2896_v47 }
 0x6d6   : > { %v3081_v10 = vpop.eup %3080 }
 0x6d7   : > { %v1581_v9 = vpop.xlane.xlu1 %1580  ;;  %v1604_v5 = vmul.f32 %v3081_v10, %v3731_v40  ;;  %2832 = vmatmul.msk.bf16.vlgmr.msra.gmra.mxu1 %vm581_vm0, %v3368_v12 }
 0x6d8   : > { %3082 = vrcp.f32 %v1581_v9 }
 0x6de   : > { %v3083_v2 = vpop.eup %3082 }
 0x6df   : > { %v1605_v43 = vmul.f32 %v3083_v2, %v3736_v4  ;;  %v1584_v48 = vpop.xlane.xlu2 %1583 }
 0x6e0   : > { %3084 = vrcp.f32 %v1584_v48 }
 0x6e1   : > { %v1611_v31 = vpack.c.bf16 %v1605_v43, %v1604_v5 }
 0x6e3   : > { %2782 = vmatmul.msk.bf16.gmra.mxu2 %vm803_vm2, %v1611_v31 }
 0x6e6   : > { %v3085_v28 = vpop.eup %3084 }
 0x6e7   : > { %v1587_v44 = vpop.xlane.xlu0 %1586  ;;  %v1606_v55 = vmul.f32 %v3085_v28, %v3069_v38  ;;  %v2990_v38 = vld [vmem:[%s4100_s3 + $0x3] ss:$0 sm:$0xff]  ;;  %2833 = vmatmul.msk.bf16.gmra.mxu1 %vm581_vm0, %v3375_v21 }
 0x6e8   : > { %3086 = vrcp.f32 %v1587_v44  ;;  %v1693_v49 = vadd.f32 %v2990_v38, %v1692_v45  ;;  %v1696_v46 = vadd.f32 %v2990_v38, %v1695_v61  ;;  %v1698_v63 = vadd.f32 %v2990_v38, %v1697_v17 }
 0x6e9   : > { %v1701_v0 = vadd.f32 %v2990_v38, %v1700_v15 }
 0x6ea   : > { %v1813_v52 = vpack.c.bf16 %v1698_v63, %v1696_v46 }
 0x6ee   : > { %v3087_v51 = vpop.eup %3086 }
 0x6ef   : > { %v1607_v53 = vmul.f32 %v3087_v51, %v3071_v24  ;;  %v1590_v41 = vpop.xlane.xlu1 %1589  ;;  %v1691_v24 = vadd.f32 %v2990_v38, %v1690_v23 }
 0x6f0   : > { %3088 = vrcp.f32 %v1590_v41 }
 0x6f1   : > { %v1612_v37 = vpack.c.bf16 %v1607_v53, %v1606_v55  ;;  %v1812_v16 = vpack.c.bf16 %v1693_v49, %v1691_v24 }
 0x6f3   : > { %2783 = vmatmul.msk.bf16.gmra.mxu2 %vm803_vm2, %v1612_v37 }
 0x6f6   : > { %v3089_v4 = vpop.eup %3088 }
 0x6f7   : > { %v1593_v40 = vpop.xlane.xlu2 %1592  ;;  %v1608_v57 = vmul.f32 %v3089_v4, %v3073_v50  ;;  %v1702_v50 = vpop.f32.mrf.mxu3  ;;  %2834 = vmatmul.msk.bf16.gmra.mxu1 %vm581_vm0, %v3382_v26 }
 0x6f8   : > { %3090 = vrcp.f32 %v1593_v40 }
 0x6fe   : > { %v3091_v58 = vpop.eup %3090 }
 0x6ff   : > { %v1609_v59 = vmul.f32 %v3091_v58, %v3075_v42  ;;  %v1703_v42 = vadd.f32 %v2990_v38, %v1702_v50  ;;  %v1705_v25 = vpop.f32.mrf.mxu3 }
 0x700   : > { %v1706_v54 = vadd.f32 %v2990_v38, %v1705_v25 }
 0x701   : > { %v1613_v62 = vpack.c.bf16 %v1609_v59, %v1608_v57  ;;  %v1814_v56 = vpack.c.bf16 %v1703_v42, %v1701_v0 }
 0x703   : > { %2784 = vmatmul.msk.bf16.gmra.mxu2 %vm803_vm2, %v1613_v62 }
 0x707   : > { %v1707_v30 = vpop.f32.mrf.mxu3  ;;  %2835 = vmatmul.msk.bf16.gmra.mxu1 %vm581_vm0, %v3388_v22 }
 0x708   : > { %v1708_v60 = vadd.f32 %v2990_v38, %v1707_v30  ;;  %v2991_v30 = vld [vmem:[%s4104_s7 + $0x3] ss:$0 sm:$0xff] }
 0x70a   : > { %v1815_v18 = vpack.c.bf16 %v1708_v60, %v1706_v54 }
 0x713   : > { %2836 = vmatmul.msk.bf16.vlgmr.msrb.gmra.mxu2 %vm741_vm1, %v1812_v16 }
 0x723   : > { %2837 = vmatmul.msk.bf16.gmra.mxu2 %vm741_vm1, %v1813_v52 }
 0x733   : > { %2838 = vmatmul.msk.bf16.gmra.mxu2 %vm741_vm1, %v1814_v56 }
 0x743   : > { %2839 = vmatmul.msk.bf16.gmra.mxu2 %vm741_vm1, %v1815_v18 }
 0x754   : > { %v1792_v49 = vpop.f32.mrf.mxu1 }
 0x756   : > { %v3783_v33 = vpop.f32.mrf.mxu2 }
 0x75c   : > { %v1794_v46 = vpop.f32.mrf.mxu1 }
 0x75e   : > { %v3785_v9 = vpop.f32.mrf.mxu2 }
 0x75f   : > { %v2925_v10 = vpack.i.bf16 %v3785_v9, %v3783_v33 }
 0x764   : > { %v1797_v0 = vpop.f32.mrf.mxu1 }
 0x766   : > { %v3791_v2 = vpop.f32.mrf.mxu2 }
 0x76c   : > { %v1799_v42 = vpop.f32.mrf.mxu1 }
 0x76e   : > { %v3793_v5 = vpop.f32.mrf.mxu2 }
 0x76f   : > { %v2940_v12 = vpack.i.bf16 %v3793_v5, %v3791_v2 }
 0x774   : > { %v1802_v25 = vpop.f32.mrf.mxu1 }
 0x775   : > { %v1803_v18 = vadd.f32 %v2991_v30, %v1802_v25 }
 0x776   : > { %v3799_v21 = vpop.f32.mrf.mxu2 }
 0x77c   : > { %v1804_v56 = vpop.f32.mrf.mxu1 }
 0x77d   : > { %v1805_v47 = vadd.f32 %v2991_v30, %v1804_v56 }
 0x77e   : > { %v3801_v43 = vpop.f32.mrf.mxu2 }
 0x77f   : > { %v2955_v31 = vpack.i.bf16 %v3801_v43, %v3799_v21 }
 0x784   : > { %v1807_v14 = vpop.f32.mrf.mxu1 }
 0x785   : > { %v1808_v54 = vadd.f32 %v2991_v30, %v1807_v14 }
 0x786   : > { %v3805_v48 = vpop.f32.mrf.mxu2 }
 0x78c   : > { %v1809_v60 = vpop.f32.mrf.mxu1 }
 0x78e   : > { %v3807_v26 = vpop.f32.mrf.mxu2 }
 0x78f   : > { %v2970_v44 = vpack.i.bf16 %v3807_v26, %v3805_v48 }
 0x796   : > { %v1853_v28 = vpop.f32.mrf.mxu2 }
 0x797   : > { %v1873_v51 = vmul.f32 0.35355338, %v1853_v28  ;;  %v1810_v28 = vadd.f32 %v2991_v30, %v1809_v60 }
 0x799   : > { %v1881_v55 = vsel %vm803_vm2, %v1873_v51, -inf }
 0x79a   : > { %1882 = vmax.xlane.f32.xlu0 %v1881_v55  ;;  %v1976_v55 = vpack.c.bf16 %v1810_v28, %v1808_v54 }
 0x79c   : > { %1993 = vmatpush.bf16.msrb.mxu3 %v1976_v55 }
 0x79e   : > { %v1855_v22 = vpop.f32.mrf.mxu2 }
 0x79f   : > { %v1874_v53 = vmul.f32 0.35355338, %v1855_v22  ;;  %v1798_v22 = vadd.f32 %v2991_v30, %v1797_v0 }
 0x7a1   : > { %v1884_v37 = vsel %vm803_vm2, %v1874_v53, -inf }
 0x7a2   : > { %1885 = vmax.xlane.f32.xlu1 %v1884_v37  ;;  %v1800_v37 = vadd.f32 %v2991_v30, %v1799_v42 }
 0x7a6   : > { %v1858_v41 = vpop.f32.mrf.mxu2 }
 0x7a7   : > { %v1875_v23 = vmul.f32 0.35355338, %v1858_v41  ;;  %v1975_v41 = vpack.c.bf16 %v1805_v47, %v1803_v18 }
 0x7a9   : > { %v1887_v40 = vsel %vm803_vm2, %v1875_v23, -inf  ;;  %1994 = vmatpush.bf16.msrb.mxu3 %v1975_v41 }
 0x7aa   : > { %1888 = vmax.xlane.f32.xlu2 %v1887_v40  ;;  %v1793_v40 = vadd.f32 %v2991_v30, %v1792_v49 }
 0x7ae   : > { %v1860_v4 = vpop.f32.mrf.mxu2 }
 0x7af   : > { %v3814_v58 = vmul.f32 0.35355338, %v1860_v4  ;;  %v1795_v4 = vadd.f32 %v2991_v30, %v1794_v46 }
 0x7b1   : > { %v1890_v45 = vsel %vm803_vm2, %v3814_v58, -inf }
 0x7b2   : > { %1891 = vmax.xlane.f32.xlu0 %v1890_v45  ;;  %v1974_v45 = vpack.c.bf16 %v1800_v37, %v1798_v22 }
 0x7b4   : > { %1995 = vmatpush.bf16.msrb.mxu3 %v1974_v45 }
 0x7b6   : > { %v1863_v57 = vpop.f32.mrf.mxu2 }
 0x7b7   : > { %v3818_v59 = vmul.f32 0.35355338, %v1863_v57  ;;  %v1973_v57 = vpack.c.bf16 %v1795_v4, %v1793_v40 }
 0x7b9   : > { %v1893_v62 = vsel %vm803_vm2, %v3818_v59, -inf  ;;  %1996 = vmatpush.bf16.msrb.mxu3 %v1973_v57 }
 0x7ba   : > { %1894 = vmax.xlane.f32.xlu1 %v1893_v62 }
 0x7be   : > { %v1865_v61 = vpop.f32.mrf.mxu2 }
 0x7bf   : > { %v3822_v38 = vmul.f32 0.35355338, %v1865_v61 }
 0x7c1   : > { %v1896_v24 = vsel %vm803_vm2, %v3822_v38, -inf }
 0x7c2   : > { %1897 = vmax.xlane.f32.xlu2 %v1896_v24 }
 0x7c6   : > { %v1868_v17 = vpop.f32.mrf.mxu2 }
 0x7c7   : > { %v3826_v16 = vmul.f32 0.35355338, %v1868_v17 }
 0x7c9   : > { %v1899_v15 = vsel %vm803_vm2, %v3826_v16, -inf }
 0x7ca   : > { %1900 = vmax.xlane.f32.xlu0 %v1899_v15 }
 0x7ce   : > { %v1870_v63 = vpop.f32.mrf.mxu2 }
 0x7cf   : > { %v3830_v52 = vmul.f32 0.35355338, %v1870_v63 }
 0x7d1   : > { %v1902_v50 = vsel %vm803_vm2, %v3830_v52, -inf }
 0x7d2   : > { %1903 = vmax.xlane.f32.xlu1 %v1902_v50 }
 0x80d   : > { %v1883_v62 = vpop.xlane.xlu0 %1882 }
 0x80e   : > { %v1905_v61 = vsub.f32 %v1873_v51, %v1883_v62 }
 0x810   : > { %v1913_v24 = vmul.f32 1.442695, %v1905_v61 }
 0x812   : > { %3092 = vpow2.f32 %v1913_v24 }
 0x815   : > { %v1886_v17 = vpop.xlane.xlu1 %1885 }
 0x816   : > { %v1906_v15 = vsub.f32 %v1874_v53, %v1886_v17 }
 0x818   : > { %v3837_v63 = vpop.eup %3092  ;;  %v1915_v50 = vmul.f32 1.442695, %v1906_v15 }
 0x819   : > { %v1929_v0 = vsel %vm803_vm2, %v3837_v63, 0.0 }
 0x81a   : > { %3094 = vpow2.f32 %v1915_v50  ;;  %1930 = vadd.xlane.f32.xlu2 %v1929_v0 }
 0x81d   : > { %v1889_v49 = vpop.xlane.xlu2 %1888 }
 0x81e   : > { %v1907_v46 = vsub.f32 %v1875_v23, %v1889_v49 }
 0x820   : > { %v3841_v42 = vpop.eup %3094  ;;  %v1917_v25 = vmul.f32 1.442695, %v1907_v46 }
 0x821   : > { %v1932_v51 = vsel %vm803_vm2, %v3841_v42, 0.0 }
 0x822   : > { %3096 = vpow2.f32 %v1917_v25  ;;  %1933 = vadd.xlane.f32.xlu0 %v1932_v51 }
 0x825   : > { %v1892_v56 = vpop.xlane.xlu0 %1891 }
 0x826   : > { %v1908_v53 = vsub.f32 %v3814_v58, %v1892_v56 }
 0x828   : > { %v3846_v14 = vpop.eup %3096  ;;  %v1919_v30 = vmul.f32 1.442695, %v1908_v53 }
 0x829   : > { %v1935_v54 = vsel %vm803_vm2, %v3846_v14, 0.0 }
 0x82a   : > { %3098 = vpow2.f32 %v1919_v30  ;;  %1936 = vadd.xlane.f32.xlu1 %v1935_v54 }
 0x82d   : > { %v1895_v23 = vpop.xlane.xlu1 %1894 }
 0x82e   : > { %v1909_v60 = vsub.f32 %v3818_v59, %v1895_v23 }
 0x830   : > { %v3099_v18 = vpop.eup %3098  ;;  %v1921_v47 = vmul.f32 1.442695, %v1909_v60 }
 0x831   : > { %v1938_v28 = vsel %vm803_vm2, %v3099_v18, 0.0 }
 0x832   : > { %3100 = vpow2.f32 %v1921_v47  ;;  %1939 = vadd.xlane.f32.xlu2 %v1938_v28  ;;  %v2899_v28 = vld [vmem:[%s4105_s8 + $0x8] sm:$0xff] }
 0x833   : > { %2182 = vmatpush.bf16.msrb.mxu0 %v2899_v28 }
 0x835   : > { %v1898_v55 = vpop.xlane.xlu2 %1897 }
 0x836   : > { %v1910_v58 = vsub.f32 %v3822_v38, %v1898_v55  ;;  %v2898_v55 = vld [vmem:[%s4105_s8] sm:$0xff] }
 0x837   : > { %2183 = vmatpush.bf16.msrb.mxu0 %v2898_v55 }
 0x838   : > { %v3101_v22 = vpop.eup %3100  ;;  %v1923_v37 = vmul.f32 1.442695, %v1910_v58 }
 0x839   : > { %v1941_v41 = vsel %vm803_vm2, %v3101_v22, 0.0 }
 0x83a   : > { %3102 = vpow2.f32 %v1923_v37  ;;  %1942 = vadd.xlane.f32.xlu0 %v1941_v41 }
 0x83d   : > { %v1901_v40 = vpop.xlane.xlu0 %1900 }
 0x83e   : > { %v1911_v4 = vsub.f32 %v3826_v16, %v1901_v40  ;;  %v2920_v16 = vpack.i.bf16 %v3635_v3, %v3633_v1  ;;  %v2950_v1 = vpack.i.bf16 %v3653_v7, %v3649_v6  ;;  %v2965_v3 = vpack.i.bf16 %v3659_v11, %v3655_v8 }
 0x840   : > { %v3103_v45 = vpop.eup %3102  ;;  %v1925_v59 = vmul.f32 1.442695, %v1911_v4 }
 0x841   : > { %v1944_v57 = vsel %vm803_vm2, %v3103_v45, 0.0 }
 0x842   : > { %3104 = vpow2.f32 %v1925_v59  ;;  %1945 = vadd.xlane.f32.xlu1 %v1944_v57 }
 0x845   : > { %v1904_v62 = vpop.xlane.xlu1 %1903 }
 0x846   : > { %v1912_v61 = vsub.f32 %v3830_v52, %v1904_v62  ;;  %v2935_v52 = vpack.i.bf16 %v3641_v39, %v3639_v36 }
 0x848   : > { %v3105_v24 = vpop.eup %3104  ;;  %v1927_v38 = vmul.f32 1.442695, %v1912_v61 }
 0x849   : > { %v1947_v17 = vsel %vm803_vm2, %v3105_v24, 0.0 }
 0x84a   : > { %3106 = vpow2.f32 %v1927_v38  ;;  %1948 = vadd.xlane.f32.xlu2 %v1947_v17 }
 0x850   : > { %v3107_v15 = vpop.eup %3106 }
 0x851   : > { %v1950_v50 = vsel %vm803_vm2, %v3107_v15, 0.0 }
 0x852   : > { %1951 = vadd.xlane.f32.xlu0 %v1950_v50 }
 0x85b   : > { %2921 = vrot.lane.b32.xlu1 %v2920_v16, %s3166_s17 }
 0x862   : > { %2926 = vrot.lane.b32.xlu2 %v2925_v10, %s3167_s20 }
 0x863   : > { %2941 = vrot.lane.b32.xlu1 %v2940_v12, %s3167_s20 }
 0x86a   : > { %2936 = vrot.lane.b32.xlu2 %v2935_v52, %s3166_s17 }
 0x86b   : > { %2956 = vrot.lane.b32.xlu1 %v2955_v31, %s3167_s20 }
 0x872   : > { %2951 = vrot.lane.b32.xlu2 %v2950_v1, %s3166_s17 }
 0x873   : > { %2971 = vrot.lane.b32.xlu1 %v2970_v44, %s3167_s20 }
 0x87a   : > { %2966 = vrot.lane.b32.xlu2 %v2965_v3, %s3166_s17  ;;  %s527_s17 = scalar_lea.vmem %s4112_s15, %s3270_s28 }
 0x88d   : > { %v1931_v33 = vpop.xlane.xlu2 %1930 }
 0x88e   : > { %3108 = vrcp.f32 %v1931_v33 }
 0x894   : > { %v3109_v39 = vpop.eup %3108 }
 0x895   : > { %v1934_v36 = vpop.xlane.xlu0 %1933  ;;  %v1961_v10 = vmul.f32 %v3109_v39, %v3837_v63 }
 0x896   : > { %3110 = vrcp.f32 %v1934_v36 }
 0x89c   : > { %v3111_v9 = vpop.eup %3110 }
 0x89d   : > { %v1962_v2 = vmul.f32 %v3111_v9, %v3841_v42  ;;  %v1937_v7 = vpop.xlane.xlu1 %1936 }
 0x89e   : > { %3112 = vrcp.f32 %v1937_v7 }
 0x89f   : > { %v1969_v6 = vpack.c.bf16 %v1962_v2, %v1961_v10 }
 0x8a1   : > { %2840 = vmatmul.msk.bf16.vlgmr.msrb.gmra.mxu3 %vm803_vm2, %v1969_v6 }
 0x8a4   : > { %v3113_v12 = vpop.eup %3112 }
 0x8a5   : > { %v1940_v5 = vpop.xlane.xlu2 %1939  ;;  %v1963_v11 = vmul.f32 %v3113_v12, %v3846_v14 }
 0x8a6   : > { %3114 = vrcp.f32 %v1940_v5 }
 0x8ac   : > { %v3115_v8 = vpop.eup %3114 }
 0x8ad   : > { %v1964_v21 = vmul.f32 %v3115_v8, %v3099_v18  ;;  %v1943_v31 = vpop.xlane.xlu0 %1942 }
 0x8ae   : > { %3116 = vrcp.f32 %v1943_v31 }
 0x8af   : > { %v1970_v43 = vpack.c.bf16 %v1964_v21, %v1963_v11 }
 0x8b1   : > { %2841 = vmatmul.msk.bf16.gmra.mxu3 %vm803_vm2, %v1970_v43 }
 0x8b4   : > { %v3117_v26 = vpop.eup %3116 }
 0x8b5   : > { %v1946_v48 = vpop.xlane.xlu1 %1945  ;;  %v1965_v63 = vmul.f32 %v3117_v26, %v3101_v22 }
 0x8b6   : > { %3118 = vrcp.f32 %v1946_v48 }
 0x8bc   : > { %v3119_v44 = vpop.eup %3118 }
 0x8bd   : > { %v1966_v0 = vmul.f32 %v3119_v44, %v3103_v45  ;;  %v1949_v46 = vpop.xlane.xlu2 %1948 }
 0x8be   : > { %3120 = vrcp.f32 %v1949_v46 }
 0x8bf   : > { %v1971_v49 = vpack.c.bf16 %v1966_v0, %v1965_v63 }
 0x8c1   : > { %2842 = vmatmul.msk.bf16.gmra.mxu3 %vm803_vm2, %v1971_v49 }
 0x8c4   : > { %v3121_v25 = vpop.eup %3120 }
 0x8c5   : > { %v1952_v42 = vpop.xlane.xlu0 %1951  ;;  %v1967_v56 = vmul.f32 %v3121_v25, %v3105_v24  ;;  %v2927_v62 = vpop.permute.xlu2 %2926 }
 0x8c6   : > { %3122 = vrcp.f32 %v1952_v42  ;;  %v2929_v38 = vunpack.i.h.bf16 %v2927_v62  ;;  %v2928_v17 = vunpack.i.l.bf16 %v2927_v62  ;;  %v3142_v62 = vld [vmem:[%s3276_s16] sm:$0xff] }
 0x8cc   : > { %v3123_v51 = vpop.eup %3122 }
 0x8cd   : > { %v1968_v53 = vmul.f32 %v3123_v51, %v3107_v15  ;;  %v2922_v45 = vpop.permute.xlu1 %2921 }
 0x8ce   : > { %v2924_v59 = vunpack.i.h.bf16 %v2922_v45  ;;  %v2923_v57 = vunpack.i.l.bf16 %v2922_v45 }
 0x8cf   : > { %v1972_v14 = vpack.c.bf16 %v1968_v53, %v1967_v56 }
 0x8d0   : > { %v2115_v61 = vsel %vm741_vm1, %v3501_v35, %v2924_v59  ;;  %v2114_v24 = vsel %vm741_vm1, %v3497_v34, %v2923_v57  ;;  %v2937_v35 = vpop.permute.xlu2 %2936 }
 0x8d1   : > { %2843 = vmatmul.msk.bf16.gmra.mxu3 %vm803_vm2, %v1972_v14  ;;  %v2123_v52 = vsel %vm2122_vm3, %v2114_v24, %v2928_v17  ;;  %v2124_v1 = vsel %vm2122_vm3, %v2115_v61, %v2929_v38  ;;  %v2939_v39 = vunpack.i.h.bf16 %v2937_v35  ;;  %v2938_v9 = vunpack.i.l.bf16 %v2937_v35 }
 0x8d3   : > { %v2117_v7 = vsel %vm741_vm1, %v3507_v29, %v2939_v39  ;;  %v2116_v5 = vsel %vm741_vm1, %v3505_v27, %v2938_v9  ;;  %v3145_v39 = vld [vmem:[%s3276_s16 + $0x18] sm:$0xff] }
 0x8d5   : > { %v2942_v34 = vpop.permute.xlu1 %2941 }
 0x8d6   : > { %v2944_v10 = vunpack.i.h.bf16 %v2942_v34  ;;  %v2943_v2 = vunpack.i.l.bf16 %v2942_v34 }
 0x8d8   : > { %v2126_v11 = vsel %vm2122_vm3, %v2117_v7, %v2944_v10  ;;  %v2125_v21 = vsel %vm2122_vm3, %v2116_v5, %v2943_v2  ;;  %v2952_v26 = vpop.permute.xlu2 %2951  ;;  %v3146_v7 = vld [vmem:[%s3276_s16 + $0x20] sm:$0xff] }
 0x8d9   : > { %v2954_v63 = vunpack.i.h.bf16 %v2952_v26  ;;  %v2953_v29 = vunpack.i.l.bf16 %v2952_v26 }
 0x8db   : > { %v2119_v46 = vsel %vm741_vm1, %v3455_v20, %v2954_v63  ;;  %v2118_v42 = vsel %vm741_vm1, %v3453_v13, %v2953_v29 }
 0x8dd   : > { %v2957_v44 = vpop.permute.xlu1 %2956 }
 0x8de   : > { %v2959_v0 = vunpack.i.h.bf16 %v2957_v44  ;;  %v2958_v49 = vunpack.i.l.bf16 %v2957_v44  ;;  %v3148_v44 = vld [vmem:[%s3276_s16 + $0x30] sm:$0xff] }
 0x8e0   : > { %v2128_v56 = vsel %vm2122_vm3, %v2119_v46, %v2959_v0  ;;  %v2127_v53 = vsel %vm2122_vm3, %v2118_v42, %v2958_v49  ;;  %v3169_v0 = vmov 32.0  }
 0x8e1   : > { %3124 = vrcp.f32 %v3169_v0 }
 0x8e7   : > { %v3125_v49 = vpop.eup %3124 }
 0x8e8   : > { %vm2242_vm5 = vweird.f32 %v3125_v49 }
 0x924   : > { %v1998_v30 = vpop.f32.mrf.mxu3 }
 0x92c   : > { %v2000_v54 = vpop.f32.mrf.mxu3 }
 0x92d   : > { %v2930_v23 = vpack.i.bf16 %v2000_v54, %v1998_v30 }
 0x92f   : > { %2931 = vrot.lane.b32.xlu0 %v2930_v23, %s3168_s19  ;;  %v2967_v23 = vpop.permute.xlu2 %2966 }
 0x930   : > { %v2968_v20 = vunpack.i.l.bf16 %v2967_v23 }
 0x934   : > { %v2003_v60 = vpop.f32.mrf.mxu3 }
 0x93c   : > { %v2005_v18 = vpop.f32.mrf.mxu3 }
 0x93d   : > { %v2945_v47 = vpack.i.bf16 %v2005_v18, %v2003_v60  ;;  %v2972_v60 = vpop.permute.xlu1 %2971  ;;  %v2969_v18 = vunpack.i.h.bf16 %v2967_v23 }
 0x93e   : > { %v2973_v13 = vunpack.i.l.bf16 %v2972_v60 }
 0x93f   : > { %2946 = vrot.lane.b32.xlu0 %v2945_v47, %s3168_s19  ;;  %v2974_v47 = vunpack.i.h.bf16 %v2972_v60  ;;  %v2121_v55 = vsel %vm741_vm1, %v3460_v19, %v2969_v18  ;;  %v2992_v19 = vld [vmem:[%s4106_s9] ss:$0 sm:$0xff] }
 0x944   : > { %v2008_v58 = vpop.f32.mrf.mxu3 }
 0x94c   : > { %v2010_v22 = vpop.f32.mrf.mxu3 }
 0x94d   : > { %v2960_v37 = vpack.i.bf16 %v2010_v22, %v2008_v58  ;;  %v2120_v58 = vsel %vm741_vm1, %v3458_v32, %v2968_v20 }
 0x94f   : > { %2961 = vrot.lane.b32.xlu0 %v2960_v37, %s3168_s19 }
 0x954   : > { %v2013_v41 = vpop.f32.mrf.mxu3 }
 0x95c   : > { %v2015_v40 = vpop.f32.mrf.mxu3 }
 0x95d   : > { %v2975_v4 = vpack.i.bf16 %v2015_v40, %v2013_v41  ;;  %v2130_v41 = vsel %vm2122_vm3, %v2121_v55, %v2974_v47  ;;  %v2129_v40 = vsel %vm2122_vm3, %v2120_v58, %v2973_v13  ;;  %v3149_v13 = vld [vmem:[%s3276_s16 + $0x38] sm:$0xff] }
 0x95f   : > { %2976 = vrot.lane.b32.xlu0 %v2975_v4, %s3168_s19 }
 0x9a1   : > { %v2932_v15 = vpop.permute.xlu0 %2931 }
 0x9a2   : > { %v2934_v50 = vunpack.i.h.bf16 %v2932_v15  ;;  %v2933_v16 = vunpack.i.l.bf16 %v2932_v15  ;;  %v3143_v15 = vld [vmem:[%s3276_s16 + $0x8] sm:$0xff] }
 0x9a4   : > { %v2132_v3 = vsel %vm2131_vm4, %v2123_v52, %v2933_v16  ;;  %v2133_v33 = vsel %vm2131_vm4, %v2124_v1, %v2934_v50 }
 0x9a5   : > { %v2140_v36 = vpack.c.bf16 %v2133_v33, %v2132_v3  ;;  %v3144_v3 = vld [vmem:[%s3276_s16 + $0x10] sm:$0xff] }
 0x9a7   : > { %2852 = vmatmul.msk.bf16.vlgmr.msrb.gmra.mxu0 %vm581_vm0, %v2140_v36 }
 0x9b1   : > { %v2947_v6 = vpop.permute.xlu0 %2946 }
 0x9b2   : > { %v2949_v12 = vunpack.i.h.bf16 %v2947_v6  ;;  %v2948_v8 = vunpack.i.l.bf16 %v2947_v6 }
 0x9b4   : > { %v2134_v43 = vsel %vm2131_vm4, %v2125_v21, %v2948_v8  ;;  %v2135_v31 = vsel %vm2131_vm4, %v2126_v11, %v2949_v12  ;;  %v3147_v21 = vld [vmem:[%s3276_s16 + $0x28] sm:$0xff] }
 0x9b5   : > { %v2141_v48 = vpack.c.bf16 %v2135_v31, %v2134_v43 }
 0x9b7   : > { %2853 = vmatmul.msk.bf16.gmra.mxu0 %vm581_vm0, %v2141_v48 }
 0x9c1   : > { %v2962_v27 = vpop.permute.xlu0 %2961 }
 0x9c2   : > { %v2964_v25 = vunpack.i.h.bf16 %v2962_v27  ;;  %v2963_v51 = vunpack.i.l.bf16 %v2962_v27  ;;  %v2238_v27 = vmul.f32 32.0, %v3125_v49 }
 0x9c4   : > { %v2136_v14 = vsel %vm2131_vm4, %v2127_v53, %v2963_v51  ;;  %v2137_v30 = vsel %vm2131_vm4, %v2128_v56, %v2964_v25  ;;  %v2239_v46 = vsub.f32 1.0, %v2238_v27 }
 0x9c5   : > { %v2142_v54 = vpack.c.bf16 %v2137_v30, %v2136_v14 }
 0x9c6   : > { %v2240_v42 = vmul.f32 %v3125_v49, %v2239_v46 }
 0x9c7   : > { %2854 = vmatmul.msk.bf16.gmra.mxu0 %vm581_vm0, %v2142_v54 }
 0x9c8   : > { %v2241_v25 = vadd.f32 %v3125_v49, %v2240_v42 }
 0x9ca   : > { %v3945_v51 = vsel %vm2242_vm5, %v3125_v49, %v2241_v25 }
 0x9d1   : > { %v2977_v28 = vpop.permute.xlu0 %2976 }
 0x9d2   : > { %v2979_v22 = vunpack.i.h.bf16 %v2977_v28  ;;  %v2978_v37 = vunpack.i.l.bf16 %v2977_v28 }
 0x9d4   : > { %v2138_v4 = vsel %vm2131_vm4, %v2129_v40, %v2978_v37  ;;  %v2139_v45 = vsel %vm2131_vm4, %v2130_v41, %v2979_v22 }
 0x9d5   : > { %v2143_v59 = vpack.c.bf16 %v2139_v45, %v2138_v4 }
 0x9d7   : > { %2855 = vmatmul.msk.bf16.gmra.mxu0 %vm581_vm0, %v2143_v59 }
 0xa24   : > { %v2185_v32 = vpop.f32.mrf.mxu0 }
 0xa25   : > { %v2186_v57 = vadd.f32 %v2992_v19, %v2185_v32 }
 0xa27   : > { %v2205_v61 = vadd.f32 %v3142_v62, %v2186_v57 }
 0xa29   : > { %v2213_v24 = vsel %vm581_vm0, %v2205_v61, 0.0 }
 0xa2a   : > { %2214 = vadd.xlane.f32.xlu2 %v2213_v24 }
 0xa2c   : > { %v2187_v38 = vpop.f32.mrf.mxu0 }
 0xa2d   : > { %v2188_v17 = vadd.f32 %v2992_v19, %v2187_v38 }
 0xa2f   : > { %v2206_v50 = vadd.f32 %v3143_v15, %v2188_v17 }
 0xa31   : > { %v2216_v16 = vsel %vm581_vm0, %v2206_v50, 0.0 }
 0xa32   : > { %2217 = vadd.xlane.f32.xlu1 %v2216_v16 }
 0xa34   : > { %v2190_v52 = vpop.f32.mrf.mxu0 }
 0xa35   : > { %v2191_v1 = vadd.f32 %v2992_v19, %v2190_v52 }
 0xa37   : > { %v2207_v33 = vadd.f32 %v3144_v3, %v2191_v1 }
 0xa39   : > { %v2219_v36 = vsel %vm581_vm0, %v2207_v33, 0.0 }
 0xa3a   : > { %2220 = vadd.xlane.f32.xlu0 %v2219_v36 }
 0xa3c   : > { %v2192_v35 = vpop.f32.mrf.mxu0 }
 0xa3d   : > { %v2193_v34 = vadd.f32 %v2992_v19, %v2192_v35 }
 0xa3f   : > { %v2208_v9 = vadd.f32 %v3145_v39, %v2193_v34 }
 0xa41   : > { %v2222_v10 = vsel %vm581_vm0, %v2208_v9, 0.0 }
 0xa42   : > { %2223 = vadd.xlane.f32.xlu2 %v2222_v10  ;;  %v2901_v10 = vld [vmem:[%s4109_s12 + $0x8] sm:$0xff] }
 0xa43   : > { %2478 = vmatpush.bf16.msrb.mxu1 %v2901_v10 }
 0xa44   : > { %v2195_v2 = vpop.f32.mrf.mxu0 }
 0xa45   : > { %v2196_v6 = vadd.f32 %v2992_v19, %v2195_v2 }
 0xa47   : > { %v2209_v5 = vadd.f32 %v3146_v7, %v2196_v6  ;;  %v2900_v7 = vld [vmem:[%s4109_s12] sm:$0xff] }
 0xa48   : > { %2479 = vmatpush.bf16.msrb.mxu1 %v2900_v7 }
 0xa49   : > { %v2225_v12 = vsel %vm581_vm0, %v2209_v5, 0.0 }
 0xa4a   : > { %2226 = vadd.xlane.f32.xlu1 %v2225_v12 }
 0xa4c   : > { %v2197_v8 = vpop.f32.mrf.mxu0 }
 0xa4d   : > { %v2198_v11 = vadd.f32 %v2992_v19, %v2197_v8 }
 0xa4f   : > { %v2210_v43 = vadd.f32 %v3147_v21, %v2198_v11 }
 0xa51   : > { %v2228_v31 = vsel %vm581_vm0, %v2210_v43, 0.0 }
 0xa52   : > { %2229 = vadd.xlane.f32.xlu0 %v2228_v31 }
 0xa54   : > { %v2200_v48 = vpop.f32.mrf.mxu0 }
 0xa55   : > { %v2201_v26 = vadd.f32 %v2992_v19, %v2200_v48 }
 0xa57   : > { %v2211_v63 = vadd.f32 %v3148_v44, %v2201_v26 }
 0xa59   : > { %v2231_v29 = vsel %vm581_vm0, %v2211_v63, 0.0 }
 0xa5a   : > { %2232 = vadd.xlane.f32.xlu0 %v2231_v29 }
 0xa5c   : > { %v2202_v30 = vpop.f32.mrf.mxu0 }
 0xa5d   : > { %v2203_v23 = vadd.f32 %v2992_v19, %v2202_v30 }
 0xa5f   : > { %v2212_v28 = vadd.f32 %v3149_v13, %v2203_v23  ;;  %v4014_v23 = vld [vmem:[%s4108_s11] ss:$0 sm:$0xff] }
 0xa61   : > { %v2234_v22 = vsel %vm581_vm0, %v2212_v28, 0.0 }
 0xa9d   : > { %v2215_v56 = vpop.xlane.xlu2 %2214 }
 0xa9e   : > { %v2244_v53 = vmul.f32 %v3945_v51, %v2215_v56 }
 0xaa0   : > { %v3948_v14 = vsub.f32 %v2205_v61, %v2244_v53  ;;  %v4009_v53 = vld [vmem:[%s4107_s10] ss:$0 sm:$0xff] }
 0xaa2   : > { %v2260_v54 = vmul.f32 %v3948_v14, %v3948_v14 }
 0xaa4   : > { %v2268_v60 = vsel %vm581_vm0, %v2260_v54, 0.0 }
 0xaa5   : > { %v2218_v18 = vpop.xlane.xlu1 %2217  ;;  %2269 = vadd.xlane.f32.xlu2 %v2268_v60 }
 0xaa6   : > { %v2245_v20 = vmul.f32 %v3945_v51, %v2218_v18 }
 0xaa8   : > { %v3954_v47 = vsub.f32 %v2206_v50, %v2245_v20 }
 0xaaa   : > { %v2261_v55 = vmul.f32 %v3954_v47, %v3954_v47 }
 0xaac   : > { %v2271_v58 = vsel %vm581_vm0, %v2261_v55, 0.0 }
 0xaad   : > { %v2221_v37 = vpop.xlane.xlu0 %2220  ;;  %2272 = vadd.xlane.f32.xlu1 %v2271_v58  ;;  %2235 = vadd.xlane.f32.xlu2 %v2234_v22 }
 0xaae   : > { %v2246_v41 = vmul.f32 %v3945_v51, %v2221_v37 }
 0xab0   : > { %v3962_v40 = vsub.f32 %v2207_v33, %v2246_v41 }
 0xab2   : > { %v2262_v4 = vmul.f32 %v3962_v40, %v3962_v40 }
 0xab4   : > { %v2274_v45 = vsel %vm581_vm0, %v2262_v4, 0.0 }
 0xab5   : > { %2275 = vadd.xlane.f32.xlu1 %v2274_v45  ;;  %v2224_v59 = vpop.xlane.xlu2 %2223 }
 0xab6   : > { %v2247_v19 = vmul.f32 %v3945_v51, %v2224_v59 }
 0xab8   : > { %v3968_v32 = vsub.f32 %v2208_v9, %v2247_v19 }
 0xaba   : > { %v2263_v57 = vmul.f32 %v3968_v32, %v3968_v32 }
 0xabc   : > { %v2277_v62 = vsel %vm581_vm0, %v2263_v57, 0.0 }
 0xabd   : > { %v2227_v61 = vpop.xlane.xlu1 %2226  ;;  %2278 = vadd.xlane.f32.xlu0 %v2277_v62 }
 0xabe   : > { %v2248_v24 = vmul.f32 %v3945_v51, %v2227_v61 }
 0xac0   : > { %v3974_v38 = vsub.f32 %v2209_v5, %v2248_v24 }
 0xac2   : > { %v2264_v17 = vmul.f32 %v3974_v38, %v3974_v38 }
 0xac4   : > { %v2280_v15 = vsel %vm581_vm0, %v2264_v17, 0.0 }
 0xac5   : > { %v2230_v50 = vpop.xlane.xlu0 %2229  ;;  %2281 = vadd.xlane.f32.xlu2 %v2280_v15 }
 0xac6   : > { %v2249_v16 = vmul.f32 %v3945_v51, %v2230_v50 }
 0xac8   : > { %v3980_v52 = vsub.f32 %v2210_v43, %v2249_v16 }
 0xaca   : > { %v2265_v1 = vmul.f32 %v3980_v52, %v3980_v52 }
 0xacc   : > { %v2283_v3 = vsel %vm581_vm0, %v2265_v1, 0.0 }
 0xacd   : > { %v2233_v33 = vpop.xlane.xlu0 %2232  ;;  %2284 = vadd.xlane.f32.xlu1 %v2283_v3  ;;  %v3150_v3 = vld [vmem:[%s3282_s21] sm:$0xff] }
 0xace   : > { %v2250_v36 = vmul.f32 %v3945_v51, %v2233_v33 }
 0xad0   : > { %v3986_v35 = vsub.f32 %v2211_v63, %v2250_v36 }
 0xad2   : > { %v2266_v34 = vmul.f32 %v3986_v35, %v3986_v35 }
 0xad4   : > { %v2286_v39 = vsel %vm581_vm0, %v2266_v34, 0.0 }
 0xad5   : > { %2287 = vadd.xlane.f32.xlu0 %v2286_v39 }
 0xb18   : > { %v2270_v9 = vpop.xlane.xlu2 %2269 }
 0xb19   : > { %v2292_v2 = vmul.f32 %v2270_v9, %v3945_v51 }
 0xb1b   : > { %v2300_v6 = vadd.f32 1e-05, %v2292_v2 }
 0xb1d   : > { %3126 = vrsqrt.f32 %v2300_v6  ;;  %vm2314_vm7 = vweird.f32 %v2300_v6 }
 0xb20   : > { %v2273_v5 = vpop.xlane.xlu1 %2272  ;;  %v2236_v12 = vpop.xlane.xlu2 %2235 }
 0xb21   : > { %v2293_v8 = vmul.f32 %v2273_v5, %v3945_v51  ;;  %v2251_v11 = vmul.f32 %v3945_v51, %v2236_v12 }
 0xb23   : > { %v3127_v21 = vpop.eup %3126  ;;  %v2301_v43 = vadd.f32 1e-05, %v2293_v8  ;;  %v4000_v31 = vsub.f32 %v2212_v28, %v2251_v11 }
 0xb24   : > { %v2309_v48 = vmul.f32 %v3127_v21, %v2300_v6  ;;  %vm2315_vm6 = vweird.f32 %v3127_v21 }
 0xb25   : > { %3128 = vrsqrt.f32 %v2301_v43  ;;  %v2267_v26 = vmul.f32 %v4000_v31, %v4000_v31  ;;  %vm2316_vm8 = vmor %vm2314_vm7, %vm2315_vm6  ;;  %vm2324_vm10 = vweird.f32 %v2301_v43 }
 0xb26   : > { %v2310_v44 = vmul.f32 %v3127_v21, %v2309_v48 }
 0xb27   : > { %v2289_v63 = vsel %vm581_vm0, %v2267_v26, 0.0 }
 0xb28   : > { %v2311_v29 = vmul.f32 0.5, %v2310_v44  ;;  %v2276_v0 = vpop.xlane.xlu1 %2275  ;;  %2290 = vadd.xlane.f32.xlu2 %v2289_v63 }
 0xb29   : > { %v2294_v49 = vmul.f32 %v2276_v0, %v3945_v51 }
 0xb2a   : > { %v2312_v27 = vsub.f32 1.5, %v2311_v29 }
 0xb2b   : > { %v3129_v46 = vpop.eup %3128  ;;  %v2302_v42 = vadd.f32 1e-05, %v2294_v49 }
 0xb2c   : > { %v2313_v25 = vmul.f32 %v3127_v21, %v2312_v27  ;;  %v2319_v56 = vmul.f32 %v3129_v46, %v2301_v43  ;;  %vm2325_vm9 = vweird.f32 %v3129_v46 }
 0xb2d   : > { %3130 = vrsqrt.f32 %v2302_v42  ;;  %vm2326_vm11 = vmor %vm2324_vm10, %vm2325_vm9  ;;  %vm2334_vm13 = vweird.f32 %v2302_v42 }
 0xb2e   : > { %v2317_v30 = vsel %vm2316_vm8, %v3127_v21, %v2313_v25  ;;  %v2320_v54 = vmul.f32 %v3129_v46, %v2319_v56 }
 0xb2f   : > { %v2388_v60 = vmul.f32 %v2317_v30, %v3948_v14 }
 0xb30   : > { %v2321_v18 = vmul.f32 0.5, %v2320_v54  ;;  %v2279_v20 = vpop.xlane.xlu0 %2278 }
 0xb31   : > { %v2400_v13 = vmul.f32 %v4009_v53, %v2388_v60  ;;  %v2295_v28 = vmul.f32 %v2279_v20, %v3945_v51  ;;  %v3153_v60 = vld [vmem:[%s3282_s21 + $0x18] sm:$0xff] }
 0xb32   : > { %v2322_v55 = vsub.f32 1.5, %v2321_v18 }
 0xb33   : > { %v3131_v58 = vpop.eup %3130  ;;  %v2412_v22 = vadd.f32 %v4014_v23, %v2400_v13  ;;  %v2303_v37 = vadd.f32 1e-05, %v2295_v28 }
 0xb34   : > { %v2323_v41 = vmul.f32 %v3129_v46, %v2322_v55  ;;  %v2329_v14 = vmul.f32 %v3131_v58, %v2302_v42  ;;  %vm2335_vm12 = vweird.f32 %v3131_v58 }
 0xb35   : > { %2420 = vst.msk [vmem:[%s4023_s26] sm:$0xff] %vm581_vm0, %v2412_v22  ;;  %3132 = vrsqrt.f32 %v2303_v37  ;;  %v2428_v33 = vadd.f32 %v3150_v3, %v2412_v22  ;;  %vm2336_vm14 = vmor %vm2334_vm13, %vm2335_vm12  ;;  %vm2344_vm1 = vweird.f32 %v2303_v37 }
 0xb36   : > { %v2327_v4 = vsel %vm2326_vm11, %v3129_v46, %v2323_v41  ;;  %v2330_v45 = vmul.f32 %v3131_v58, %v2329_v14 }
 0xb37   : > { %v2389_v59 = vmul.f32 %v2327_v4, %v3954_v47  ;;  %v3151_v47 = vld [vmem:[%s3282_s21 + $0x8] sm:$0xff] }
 0xb38   : > { %v2331_v19 = vmul.f32 0.5, %v2330_v45  ;;  %v2282_v57 = vpop.xlane.xlu2 %2281 }
 0xb39   : > { %v2401_v62 = vmul.f32 %v4009_v53, %v2389_v59  ;;  %v2296_v61 = vmul.f32 %v2282_v57, %v3945_v51 }
 0xb3a   : > { %v2332_v24 = vsub.f32 1.5, %v2331_v19 }
 0xb3b   : > { %v3133_v17 = vpop.eup %3132  ;;  %v2413_v15 = vadd.f32 %v4014_v23, %v2401_v62  ;;  %v2304_v50 = vadd.f32 1e-05, %v2296_v61 }
 0xb3c   : > { %v2333_v16 = vmul.f32 %v3131_v58, %v2332_v24  ;;  %v2339_v1 = vmul.f32 %v3133_v17, %v2303_v37  ;;  %vm2345_vm15 = vweird.f32 %v3133_v17 }
 0xb3d   : > { %2421 = vst.msk [vmem:[%s4023_s26 + $0x8] sm:$0xff] %vm581_vm0, %v2413_v15  ;;  %v2429_v36 = vadd.f32 %v3151_v47, %v2413_v15  ;;  %3134 = vrsqrt.f32 %v2304_v50  ;;  %vm2346_vm2 = vmor %vm2344_vm1, %vm2345_vm15  ;;  %vm2354_vm4 = vweird.f32 %v2304_v50  ;;  %v3154_v15 = vld [vmem:[%s3282_s21 + $0x20] sm:$0xff]  ;;  %vm2501_vm15 = vcmask 785408  }
 0xb3e   : > { %v2337_v34 = vsel %vm2336_vm14, %v3131_v58, %v2333_v16  ;;  %v2340_v39 = vmul.f32 %v3133_v17, %v2339_v1  ;;  %v3155_v16 = vld [vmem:[%s3282_s21 + $0x28] sm:$0xff] }
 0xb3f   : > { %v2390_v9 = vmul.f32 %v2337_v34, %v3962_v40  ;;  %v2436_v10 = vpack.c.bf16 %v2429_v36, %v2428_v33 }
 0xb40   : > { %v2341_v2 = vmul.f32 0.5, %v2340_v39  ;;  %v2285_v6 = vpop.xlane.xlu1 %2284 }
 0xb41   : > { %v2402_v7 = vmul.f32 %v4009_v53, %v2390_v9  ;;  %v2297_v5 = vmul.f32 %v2285_v6, %v3945_v51  ;;  %2864 = vmatmul.msk.bf16.vlgmr.msrb.gmra.mxu1 %vm581_vm0, %v2436_v10 }
 0xb42   : > { %v2342_v12 = vsub.f32 1.5, %v2341_v2 }
 0xb43   : > { %v3135_v8 = vpop.eup %3134  ;;  %v2305_v11 = vadd.f32 1e-05, %v2297_v5  ;;  %v2414_v21 = vadd.f32 %v4014_v23, %v2402_v7 }
 0xb44   : > { %v2343_v43 = vmul.f32 %v3133_v17, %v2342_v12  ;;  %v2349_v48 = vmul.f32 %v3135_v8, %v2304_v50  ;;  %vm2355_vm3 = vweird.f32 %v3135_v8 }
 0xb45   : > { %3136 = vrsqrt.f32 %v2305_v11  ;;  %2422 = vst.msk [vmem:[%s4023_s26 + $0x10] sm:$0xff] %vm581_vm0, %v2414_v21  ;;  %vm2356_vm5 = vmor %vm2354_vm4, %vm2355_vm3  ;;  %vm2364_vm7 = vweird.f32 %v2305_v11 }
 0xb46   : > { %v2347_v40 = vsel %vm2346_vm2, %v3133_v17, %v2343_v43  ;;  %v2350_v26 = vmul.f32 %v3135_v8, %v2349_v48  ;;  %v3157_v48 = vld [vmem:[%s3282_s21 + $0x38] sm:$0xff] }
 0xb47   : > { %v2391_v44 = vmul.f32 %v2347_v40, %v3968_v32  ;;  %v3152_v32 = vld [vmem:[%s3282_s21 + $0x10] sm:$0xff] }
 0xb48   : > { %v2351_v63 = vmul.f32 0.5, %v2350_v26  ;;  %v2288_v29 = vpop.xlane.xlu0 %2287  ;;  %v2430_v54 = vadd.f32 %v3152_v32, %v2414_v21  ;;  %v3156_v21 = vld [vmem:[%s3282_s21 + $0x30] sm:$0xff] }
 0xb49   : > { %v2403_v0 = vmul.f32 %v4009_v53, %v2391_v44  ;;  %v2298_v49 = vmul.f32 %v2288_v29, %v3945_v51  ;;  %v2995_v44 = vld [vmem:[%s4110_s13] ss:$0 sm:$0xff] }
 0xb4a   : > { %v2352_v27 = vsub.f32 1.5, %v2351_v63 }
 0xb4b   : > { %v3137_v46 = vpop.eup %3136  ;;  %v2306_v42 = vadd.f32 1e-05, %v2298_v49  ;;  %v2415_v25 = vadd.f32 %v4014_v23, %v2403_v0 }
 0xb4c   : > { %v2353_v56 = vmul.f32 %v3135_v8, %v2352_v27  ;;  %v2359_v30 = vmul.f32 %v3137_v46, %v2305_v11  ;;  %vm2365_vm6 = vweird.f32 %v3137_v46 }
 0xb4d   : > { %3138 = vrsqrt.f32 %v2306_v42  ;;  %2423 = vst.msk [vmem:[%s4023_s26 + $0x18] sm:$0xff] %vm581_vm0, %v2415_v25  ;;  %v2431_v18 = vadd.f32 %v3153_v60, %v2415_v25  ;;  %vm2366_vm8 = vmor %vm2364_vm7, %vm2365_vm6  ;;  %vm2374_vm10 = vweird.f32 %v2306_v42 }
 0xb4e   : > { %v2357_v20 = vsel %vm2356_vm5, %v3135_v8, %v2353_v56  ;;  %v2360_v13 = vmul.f32 %v3137_v46, %v2359_v30 }
 0xb4f   : > { %v2392_v28 = vmul.f32 %v2357_v20, %v3974_v38  ;;  %v2437_v55 = vpack.c.bf16 %v2431_v18, %v2430_v54 }
 0xb50   : > { %v2361_v58 = vmul.f32 0.5, %v2360_v13 }
 0xb51   : > { %v2404_v22 = vmul.f32 %v4009_v53, %v2392_v28  ;;  %2865 = vmatmul.msk.bf16.gmra.mxu1 %vm581_vm0, %v2437_v55 }
 0xb52   : > { %v2362_v37 = vsub.f32 1.5, %v2361_v58 }
 0xb53   : > { %v3139_v41 = vpop.eup %3138  ;;  %v2416_v14 = vadd.f32 %v4014_v23, %v2404_v22 }
 0xb54   : > { %v2363_v4 = vmul.f32 %v3137_v46, %v2362_v37  ;;  %v2369_v45 = vmul.f32 %v3139_v41, %v2306_v42  ;;  %vm2375_vm9 = vweird.f32 %v3139_v41 }
 0xb55   : > { %2424 = vst.msk [vmem:[%s4023_s26 + $0x20] sm:$0xff] %vm581_vm0, %v2416_v14  ;;  %vm2376_vm11 = vmor %vm2374_vm10, %vm2375_vm9  ;;  %v2432_v50 = vadd.f32 %v3154_v15, %v2416_v14 }
 0xb56   : > { %v2367_v38 = vsel %vm2366_vm8, %v3137_v46, %v2363_v4  ;;  %v2370_v59 = vmul.f32 %v3139_v41, %v2369_v45 }
 0xb57   : > { %v2393_v19 = vmul.f32 %v2367_v38, %v3980_v52 }
 0xb58   : > { %v2371_v57 = vmul.f32 0.5, %v2370_v59 }
 0xb59   : > { %v2405_v62 = vmul.f32 %v4009_v53, %v2393_v19 }
 0xb5a   : > { %v2372_v61 = vsub.f32 1.5, %v2371_v57 }
 0xb5b   : > { %v2417_v24 = vadd.f32 %v4014_v23, %v2405_v62 }
 0xb5c   : > { %v2373_v17 = vmul.f32 %v3139_v41, %v2372_v61 }
 0xb5d   : > { %2425 = vst.msk [vmem:[%s4023_s26 + $0x28] sm:$0xff] %vm581_vm0, %v2417_v24  ;;  %v2433_v1 = vadd.f32 %v3155_v16, %v2417_v24 }
 0xb5e   : > { %v2377_v3 = vsel %vm2376_vm11, %v3139_v41, %v2373_v17 }
 0xb5f   : > { %v2394_v52 = vmul.f32 %v2377_v3, %v3986_v35  ;;  %v2438_v33 = vpack.c.bf16 %v2433_v1, %v2432_v50 }
 0xb61   : > { %v2406_v47 = vmul.f32 %v4009_v53, %v2394_v52  ;;  %2866 = vmatmul.msk.bf16.gmra.mxu1 %vm581_vm0, %v2438_v33 }
 0xb63   : > { %v2418_v36 = vadd.f32 %v4014_v23, %v2406_v47 }
 0xb65   : > { %2426 = vst.msk [vmem:[%s4023_s26 + $0x30] sm:$0xff] %vm581_vm0, %v2418_v36  ;;  %v2434_v43 = vadd.f32 %v3156_v21, %v2418_v36 }
 0xb9b   : > { %v2291_v34 = vpop.xlane.xlu2 %2290 }
 0xb9c   : > { %v2299_v39 = vmul.f32 %v2291_v34, %v3945_v51 }
 0xb9e   : > { %v2307_v9 = vadd.f32 1e-05, %v2299_v39 }
 0xba0   : > { %3140 = vrsqrt.f32 %v2307_v9  ;;  %vm2384_vm13 = vweird.f32 %v2307_v9 }
 0xba6   : > { %v3141_v10 = vpop.eup %3140 }
 0xba7   : > { %v2379_v2 = vmul.f32 %v3141_v10, %v2307_v9  ;;  %vm2385_vm12 = vweird.f32 %v3141_v10 }
 0xba8   : > { %vm2386_vm14 = vmor %vm2384_vm13, %vm2385_vm12 }
 0xba9   : > { %v2380_v35 = vmul.f32 %v3141_v10, %v2379_v2 }
 0xbab   : > { %v2381_v6 = vmul.f32 0.5, %v2380_v35 }
 0xbad   : > { %v2382_v7 = vsub.f32 1.5, %v2381_v6 }
 0xbaf   : > { %v2383_v5 = vmul.f32 %v3141_v10, %v2382_v7 }
 0xbb1   : > { %v2387_v12 = vsel %vm2386_vm14, %v3141_v10, %v2383_v5 }
 0xbb2   : > { %v2395_v8 = vmul.f32 %v2387_v12, %v4000_v31 }
 0xbb4   : > { %v2407_v51 = vmul.f32 %v4009_v53, %v2395_v8 }
 0xbb6   : > { %v2419_v11 = vadd.f32 %v4014_v23, %v2407_v51 }
 0xbb8   : > { %2427 = vst.msk [vmem:[%s4023_s26 + $0x38] sm:$0xff] %vm581_vm0, %v2419_v11  ;;  %v2435_v40 = vadd.f32 %v3157_v48, %v2419_v11 }
 0xbba   : > { %v2439_v26 = vpack.c.bf16 %v2435_v40, %v2434_v43 }
 0xbbc   : > { %2867 = vmatmul.msk.bf16.gmra.mxu1 %vm581_vm0, %v2439_v26 }
 0xbbe   : > { %v2481_v31 = vpop.f32.mrf.mxu1 }
 0xbbf   : > { %v2482_v53 = vadd.f32 %v2995_v44, %v2481_v31 }
 0xbc1   : > { %2502 = vst.msk [vmem:[%s527_s17] sm:$0xff] %vm2501_vm15, %v2482_v53 }
 0xbc6   : > { %v2483_v23 = vpop.f32.mrf.mxu1 }
 0xbc7   : > { %v2484_v63 = vadd.f32 %v2995_v44, %v2483_v23 }
 0xbc9   : > { %2503 = vst.msk [vmem:[%s527_s17 + $0x8] sm:$0xff] %vm2501_vm15, %v2484_v63 }
 0xbce   : > { %v2486_v29 = vpop.f32.mrf.mxu1 }
 0xbcf   : > { %v2487_v0 = vadd.f32 %v2995_v44, %v2486_v29 }
 0xbd1   : > { %2504 = vst.msk [vmem:[%s527_s17 + $0x10] sm:$0xff] %vm2501_vm15, %v2487_v0 }
 0xbd6   : > { %v2488_v49 = vpop.f32.mrf.mxu1 }
 0xbd7   : > { %v2489_v27 = vadd.f32 %v2995_v44, %v2488_v49 }
 0xbd9   : > { %2505 = vst.msk [vmem:[%s527_s17 + $0x18] sm:$0xff] %vm2501_vm15, %v2489_v27 }
 0xbde   : > { %v2491_v46 = vpop.f32.mrf.mxu1 }
 0xbdf   : > { %v2492_v42 = vadd.f32 %v2995_v44, %v2491_v46 }
 0xbe1   : > { %2506 = vst.msk [vmem:[%s527_s17 + $0x20] sm:$0xff] %vm2501_vm15, %v2492_v42 }
 0xbe6   : > { %v2493_v25 = vpop.f32.mrf.mxu1 }
 0xbe7   : > { %v2494_v56 = vadd.f32 %v2995_v44, %v2493_v25 }
 0xbe9   : > { %2507 = vst.msk [vmem:[%s527_s17 + $0x28] sm:$0xff] %vm2501_vm15, %v2494_v56 }
 0xc39   : > { %v2496_v30 = vpop.f32.mrf.mxu1 }
 0xc3a   : > { %v2497_v32 = vadd.f32 %v2995_v44, %v2496_v30 }
 0xc3c   : > { %2508 = vst.msk [vmem:[%s527_s17 + $0x30] sm:$0xff] %vm2501_vm15, %v2497_v32 }
 0xc41   : > { %v2498_v54 = vpop.f32.mrf.mxu1 }
 0xc42   : > { %v2499_v60 = vadd.f32 %v2995_v44, %v2498_v54 }
 0xc44   : > { %2509 = vst.msk [vmem:[%s527_s17 + $0x38] sm:$0xff] %vm2501_vm15, %v2499_v60 }
 0xc45 PF: > { %s26_s18 = sadd.s32 1, %s3164_s18  }
 0xc46   : > { %p23_p4 = scmp.ge.s32.totalorder %s26_s18, 4  }
 0xc48   :  { %25 = sbr.rel (!%p23_p4) target bundleno = 1 (0x1), region = 139 }

// kernel: run.12
= control target key start
LH: loop header
LB: loop body
LE: loop exit
PB: predicated region body
PF: predicated region fallthrough
CT: control target
= control target key end

     0   :  { %s1909_s18 = smov 0   ;;  %s2175_s0 = inlined_call_operand.vmem [shape: f32[2,16,32], index: 0, kind: input, shape index: {}]   ;;  %s2176_s1 = inlined_call_operand.vmem [shape: f32[2,16,32], index: 1, kind: input, shape index: {}]   ;;  %s2177_s2 = inlined_call_operand.vmem [shape: bf16[4,32,8], index: 2, kind: input, shape index: {}]   ;;  %s2178_s3 = inlined_call_operand.vmem [shape: f32[4,1,8], index: 3, kind: input, shape index: {}]   ;;  %s2179_s4 = inlined_call_operand.vmem [shape: bf16[4,32,8], index: 4, kind: input, shape index: {}]   ;;  %s2180_s5 = inlined_call_operand.vmem [shape: f32[4,1,8], index: 5, kind: input, shape index: {}]   ;;  %s2181_s6 = inlined_call_operand.vmem [shape: bf16[4,32,8], index: 6, kind: input, shape index: {}]   ;;  %s2182_s7 = inlined_call_operand.vmem [shape: f32[4,1,8], index: 7, kind: input, shape index: {}]   ;;  %s2183_s8 = inlined_call_operand.vmem [shape: bf16[32,32], index: 8, kind: input, shape index: {}]   ;;  %s2184_s9 = inlined_call_operand.vmem [shape: f32[1,32], index: 9, kind: input, shape index: {}]   ;;  %s2185_s10 = inlined_call_operand.vmem [shape: f32[1,32], index: 10, kind: input, shape index: {}]   ;;  %s2186_s11 = inlined_call_operand.vmem [shape: f32[1,32], index: 11, kind: input, shape index: {}]   ;;  %s2187_s12 = inlined_call_operand.vmem [shape: bf16[32,24], index: 12, kind: input, shape index: {}]   ;;  %s2188_s13 = inlined_call_operand.vmem [shape: f32[1,24], index: 13, kind: input, shape index: {}]   ;;  %s2189_s14 = inlined_call_operand.vmem [shape: f32[2,16,32], index: 14, kind: output, shape index: {0}]   ;;  %s2190_s15 = inlined_call_operand.vmem [shape: f32[2,16,24], index: 15, kind: output, shape index: {1}]  }
   0x1 LB: > { %s1510_s19 = sadd.s32 4294967295, %s1823_s18   ;;  %p1514_p0 = scmp.ge.s32.totalorder %s1823_s18, 1  ;;  %s1823_s18 = sphi %s1909_s18, %s26_s18  }
   0x2   : > { %p450_p1 = scmp.lt.s32.totalorder %s1823_s18, 3 }
   0x4   : > { %p451_p2 = pnand %p1514_p0, %p450_p1 }
   0x5   : > { %p508_p3 = scmp.lt.s32.totalorder (!%p451_p2), %s1510_s19, 1  ;;  %s1825_s17 = smov (!%p451_p2), 8  }
   0x6   : > { %454 = sbr.rel (%p451_p2) target bundleno = 2603 (0xa2b), region = 76  ;;  %s1827_s26 = smov (!%p451_p2), 24  }
   0xb   : > { %v1709_v0 = vld [vmem:[%s2177_s2 + $0x8] sm:$0xff]  ;;  %v1708_v2 = vld [vmem:[%s2177_s2] sm:$0xff]  ;;  %s2192_s19 = smov (!%p508_p3, %s1510_s19), 1  ;;  %vm557_vm0 = vcmask 261120   ;;  %vm648_vm1 = vcmask 64512   ;;  %v1717_v26 = vld [vmem:[%s2179_s4 + $0x18] sm:$0xff] }
   0xc   : > { %v1711_v1 = vld [vmem:[%s2179_s4 + $0x8] sm:$0xff]  ;;  %567 = vmatpush.bf16.msra.mxu0 %v1709_v0  ;;  %v1710_v3 = vld [vmem:[%s2179_s4] sm:$0xff]  ;;  %s1929_s28 = sshll.u32 %s2192_s19, 4  ;;  %v1716_v28 = vld [vmem:[%s2179_s4 + $0x10] sm:$0xff]  ;;  %vm671_vm2 = vcmask 130048   ;;  %s1826_s19 = smov 16  }
   0xd   : > { %601 = vmatpush.bf16.msra.mxu1 %v1711_v1  ;;  %s512_s16 = scalar_lea.vmem %s2175_s0, %s1929_s28  ;;  %s517_s21 = scalar_lea.vmem %s2176_s1, %s1929_s28  ;;  %v1764_v13 = vld [vmem:[%s2180_s5] ss:$0 sm:$0xff]  ;;  %v1713_v24 = vld [vmem:[%s2181_s6 + $0x8] sm:$0xff]  ;;  %v1715_v35 = vld [vmem:[%s2177_s2 + $0x18] sm:$0xff]  ;;  %vm1260_vm3 = vcmask 195584  }
   0xe   : > { %v1939_v4 = vld [vmem:[%s512_s16] sm:$0xff]  ;;  %v1941_v5 = vld [vmem:[%s512_s16 + $0x8] sm:$0xff]  ;;  %638 = vmatpush.bf16.msra.mxu2 %v1713_v24  ;;  %v1714_v36 = vld [vmem:[%s2177_s2 + $0x10] sm:$0xff] }
   0xf   : > { %v1943_v6 = vld [vmem:[%s517_s21] sm:$0xff]  ;;  %v1945_v7 = vld [vmem:[%s517_s21 + $0x8] sm:$0xff]  ;;  %v1976_v27 = vpack.c.bf16 %v1941_v5, %v1939_v4 }
  0x10   : > { %568 = vmatpush.bf16.msra.mxu0 %v1708_v2  ;;  %v533_v8 = vadd.f32 %v1943_v6, %v1939_v4  ;;  %v534_v9 = vadd.f32 %v1945_v7, %v1941_v5  ;;  %v1763_v17 = vld [vmem:[%s2178_s3] ss:$0 sm:$0xff]  ;;  %v1766_v54 = vld [vmem:[%s2180_s5 + $0x1] ss:$0 sm:$0xff] }
  0x11   : > { %602 = vmatpush.bf16.msra.mxu1 %v1710_v3  ;;  %v1712_v25 = vld [vmem:[%s2181_s6] sm:$0xff] }
  0x12   : > { %v1951_v10 = vpack.c.bf16 %v534_v9, %v533_v8  ;;  %639 = vmatpush.bf16.msra.mxu2 %v1712_v25  ;;  %v1765_v41 = vld [vmem:[%s2182_s7] ss:$0 sm:$0xff]  ;;  %v1767_v8 = vld [vmem:[%s2178_s3 + $0x1] ss:$0 sm:$0xff] }
  0x14   : > { %1531 = vmatmul.msk.bf16.vlgmr.msra.gmra.mxu0 %vm557_vm0, %v1951_v10  ;;  %1540 = vmatmul.msk.bf16.vlgmr.msra.gmra.mxu1 %vm557_vm0, %v1951_v10 }
  0x15   : > { %1549 = vmatmul.msk.bf16.vlgmr.msra.gmra.mxu2 %vm557_vm0, %v1976_v27  ;;  %741 = vmatpush.bf16.msrb.mxu1 %v1715_v35 }
  0x16   : > { %777 = vmatpush.bf16.msrb.mxu2 %v1717_v26  ;;  %v1721_v26 = vld [vmem:[%s2177_s2 + $0x28] sm:$0xff] }
  0x19   : > { %742 = vmatpush.bf16.msrb.mxu1 %v1714_v36 }
  0x1a   : > { %778 = vmatpush.bf16.msrb.mxu2 %v1716_v28  ;;  %v1720_v28 = vld [vmem:[%s2177_s2 + $0x20] sm:$0xff] }
  0x1e   : > { %914 = vmatpush.bf16.msra.mxu2 %v1721_v26 }
  0x22   : > { %915 = vmatpush.bf16.msra.mxu2 %v1720_v28 }
  0x24   : > { %1565 = vmatmul.msk.bf16.vlgmr.msrb.gmra.mxu1 %vm557_vm0, %v1951_v10 }
  0x25   : > { %1579 = vmatmul.msk.bf16.vlgmr.msrb.gmra.mxu2 %vm557_vm0, %v1951_v10 }
  0x35   : > { %1609 = vmatmul.msk.bf16.vlgmr.msra.gmra.mxu2 %vm557_vm0, %v1951_v10 }
  0x91   : > { %v604_v11 = vpop.f32.mrf.mxu1  ;;  %v570_v12 = vpop.f32.mrf.mxu0 }
  0x92   : > { %v605_v15 = vadd.f32 %v1764_v13, %v604_v11  ;;  %v571_v21 = vadd.f32 %v1763_v17, %v570_v12 }
  0x98   : > { %v641_v39 = vpop.f32.mrf.mxu2 }
  0x99   : > { %v606_v14 = vpop.f32.mrf.mxu1  ;;  %v572_v19 = vpop.f32.mrf.mxu0  ;;  %v642_v43 = vadd.f32 %v1765_v41, %v641_v39 }
  0x9a   : > { %v607_v16 = vadd.f32 %v1764_v13, %v606_v14  ;;  %v573_v22 = vadd.f32 %v1763_v17, %v572_v19  ;;  %v1719_v14 = vld [vmem:[%s2181_s6 + $0x18] sm:$0xff] }
  0x9c   : > { %v647_v18 = vpack.c.bf16 %v607_v16, %v605_v15  ;;  %v646_v23 = vpack.c.bf16 %v573_v22, %v571_v21  ;;  %v1718_v15 = vld [vmem:[%s2181_s6 + $0x10] sm:$0xff]  ;;  %v1723_v16 = vld [vmem:[%s2179_s4 + $0x28] sm:$0xff] }
  0x9e   : > { %v653_v20 = vsel %vm648_vm1, %v647_v18, 0  ;;  %v1722_v18 = vld [vmem:[%s2179_s4 + $0x20] sm:$0xff] }
  0x9f   : > { %662 = vmatpush.bf16.xpose.msra.mxu3 %v653_v20 }
  0xa0   : > { %v643_v45 = vpop.f32.mrf.mxu2 }
  0xa1   : > { %v644_v46 = vadd.f32 %v1765_v41, %v643_v45  ;;  %v744_v2 = vpop.f32.mrf.mxu1 }
  0xa2   : > { %v745_v11 = vadd.f32 %v1767_v8, %v744_v2  ;;  %v1724_v2 = vld [vmem:[%s2181_s6 + $0x20] sm:$0xff] }
  0xa3   : > { %v695_v50 = vpack.c.bf16 %v644_v46, %v642_v43  ;;  %v1769_v46 = vld [vmem:[%s2180_s5 + $0x2] ss:$0 sm:$0xff] }
  0xa5   : > { %706 = vmatpush.bf16.msrb.mxu0 %v695_v50 }
  0xa6   : > { %1550 = vmatmul.msk.bf16.vlgmr.msra.gmra.mxu3 %vm648_vm1, %v646_v23 }
  0xa7   : > { %813 = vmatpush.bf16.msrb.mxu3 %v1719_v14 }
  0xa8   : > { %v780_v53 = vpop.f32.mrf.mxu2 }
  0xa9   : > { %v781_v55 = vadd.f32 %v1766_v54, %v780_v53  ;;  %v746_v9 = vpop.f32.mrf.mxu1 }
  0xaa   : > { %v747_v12 = vadd.f32 %v1767_v8, %v746_v9  ;;  %v1728_v9 = vld [vmem:[%s2179_s4 + $0x30] sm:$0xff] }
  0xab   : > { %814 = vmatpush.bf16.msrb.mxu3 %v1718_v15 }
  0xac   : > { %v821_v13 = vpack.c.bf16 %v747_v12, %v745_v11 }
  0xaf   : > { %950 = vmatpush.bf16.msra.mxu3 %v1723_v16 }
  0xb0   : > { %v782_v56 = vpop.f32.mrf.mxu2 }
  0xb1   : > { %v783_v57 = vadd.f32 %v1766_v54, %v782_v56 }
  0xb3   : > { %v822_v58 = vpack.c.bf16 %v783_v57, %v781_v55  ;;  %951 = vmatpush.bf16.msra.mxu3 %v1722_v18 }
  0xb5   : > { %v827_v59 = vsel %vm648_vm1, %v822_v58, 0 }
  0xb6   : > { %836 = vmatpush.bf16.xpose.msra.mxu0 %v827_v59  ;;  %1593 = vmatmul.msk.bf16.vlgmr.msrb.gmra.mxu3 %vm557_vm0, %v1976_v27 }
  0xb8   : > { %v917_v58 = vpop.f32.mrf.mxu2 }
  0xc6   : > { %1623 = vmatmul.msk.bf16.vlgmr.msra.gmra.mxu3 %vm557_vm0, %v1951_v10 }
 0x129   : > { %v664_v29 = vpop.f32.mrf.mxu3 }
 0x12a   : > { %v669_v30 = vmul.f32 0.35355338, %v664_v29 }
 0x12c   : > { %v672_v31 = vsel %vm671_vm2, %v669_v30, -inf }
 0x12d   : > { %673 = vmax.xlane.f32.xlu0 %v672_v31 }
 0x131   : > { %v666_v32 = vpop.f32.mrf.mxu3 }
 0x132   : > { %v670_v33 = vmul.f32 0.35355338, %v666_v32 }
 0x134   : > { %v675_v34 = vsel %vm671_vm2, %v670_v33, -inf }
 0x135   : > { %676 = vmax.xlane.f32.xlu0 %v675_v34 }
 0x139   : > { %v816_v31 = vpop.f32.mrf.mxu3 }
 0x1a0   : > { %v674_v37 = vpop.xlane.xlu0 %673 }
 0x1a1   : > { %v678_v38 = vsub.f32 %v669_v30, %v674_v37  ;;  %v818_v37 = vpop.f32.mrf.mxu3 }
 0x1a3   : > { %v680_v40 = vmul.f32 1.442695, %v678_v38 }
 0x1a5   : > { %1779 = vpow2.f32 %v680_v40 }
 0x1a8   : > { %v677_v42 = vpop.xlane.xlu0 %676 }
 0x1a9   : > { %v679_v44 = vsub.f32 %v670_v33, %v677_v42  ;;  %v1768_v33 = vld [vmem:[%s2182_s7 + $0x1] ss:$0 sm:$0xff]  ;;  %v953_v45 = vpop.f32.mrf.mxu3 }
 0x1aa   : > { %v817_v35 = vadd.f32 %v1768_v33, %v816_v31  ;;  %v819_v38 = vadd.f32 %v1768_v33, %v818_v37 }
 0x1ab   : > { %v1780_v47 = vpop.eup %1779  ;;  %v682_v48 = vmul.f32 1.442695, %v679_v44 }
 0x1ac   : > { %v684_v49 = vsel %vm671_vm2, %v1780_v47, 0.0  ;;  %v868_v42 = vpack.c.bf16 %v819_v38, %v817_v35 }
 0x1ad   : > { %1781 = vpow2.f32 %v682_v48  ;;  %685 = vadd.xlane.f32.xlu1 %v684_v49  ;;  %v954_v48 = vadd.f32 %v1769_v46, %v953_v45 }
 0x1ae   : > { %879 = vmatpush.bf16.msra.mxu1 %v868_v42 }
 0x1b3   : > { %v1782_v51 = vpop.eup %1781 }
 0x1b4   : > { %v687_v52 = vsel %vm671_vm2, %v1782_v51, 0.0 }
 0x1b5   : > { %688 = vadd.xlane.f32.xlu1 %v687_v52 }
 0x220   : > { %v686_v60 = vpop.xlane.xlu1 %685 }
 0x221   : > { %1783 = vrcp.f32 %v686_v60  ;;  %v1770_v60 = vld [vmem:[%s2178_s3 + $0x2] ss:$0 sm:$0xff] }
 0x227   : > { %v1784_v62 = vpop.eup %1783 }
 0x228   : > { %v689_v61 = vpop.xlane.xlu1 %688  ;;  %v692_v0 = vmul.f32 %v1784_v62, %v1780_v47  ;;  %v955_v47 = vpop.f32.mrf.mxu3  ;;  %v918_v62 = vadd.f32 %v1770_v60, %v917_v58 }
 0x229   : > { %1785 = vrcp.f32 %v689_v61  ;;  %v956_v49 = vadd.f32 %v1769_v46, %v955_v47  ;;  %v919_v61 = vpop.f32.mrf.mxu2 }
 0x22b   : > { %v995_v50 = vpack.c.bf16 %v956_v49, %v954_v48 }
 0x22f   : > { %v1786_v63 = vpop.eup %1785 }
 0x230   : > { %v693_v1 = vmul.f32 %v1786_v63, %v1782_v51  ;;  %v1000_v51 = vsel %vm648_vm1, %v995_v50, 0  ;;  %v920_v63 = vadd.f32 %v1770_v60, %v919_v61 }
 0x231   : > { %1009 = vmatpush.bf16.xpose.msrb.mxu1 %v1000_v51 }
 0x232   : > { %v694_v3 = vpack.c.bf16 %v693_v1, %v692_v0  ;;  %v994_v0 = vpack.c.bf16 %v920_v63, %v918_v62  ;;  %v1725_v1 = vld [vmem:[%s2181_s6 + $0x28] sm:$0xff] }
 0x234   : > { %1551 = vmatmul.msk.bf16.vlgmr.msrb.gmra.mxu0 %vm671_vm2, %v694_v3  ;;  %v1729_v3 = vld [vmem:[%s2179_s4 + $0x38] sm:$0xff] }
 0x235   : > { %986 = vmatpush.bf16.msrb.mxu0 %v1725_v1  ;;  %v1731_v1 = vld [vmem:[%s2181_s6 + $0x38] sm:$0xff] }
 0x239   : > { %987 = vmatpush.bf16.msrb.mxu0 %v1724_v2  ;;  %v1730_v2 = vld [vmem:[%s2181_s6 + $0x30] sm:$0xff] }
 0x244   : > { %1594 = vmatmul.msk.bf16.vlgmr.msra.gmra.mxu0 %vm648_vm1, %v821_v13 }
 0x245   : > { %1123 = vmatpush.bf16.msra.mxu0 %v1729_v3 }
 0x249   : > { %1124 = vmatpush.bf16.msra.mxu0 %v1728_v9 }
 0x254   : > { %1637 = vmatmul.msk.bf16.vlgmr.msrb.gmra.mxu0 %vm557_vm0, %v1976_v27 }
 0x264   : > { %1667 = vmatmul.msk.bf16.vlgmr.msra.gmra.mxu0 %vm557_vm0, %v1951_v10 }
 0x2b1   : > { %v2018_v17 = vpop.f32.mrf.mxu0 }
 0x2b9   : > { %v2025_v19 = vpop.f32.mrf.mxu0 }
 0x2c1   : > { %v838_v20 = vpop.f32.mrf.mxu0 }
 0x2c2   : > { %v843_v21 = vmul.f32 0.35355338, %v838_v20 }
 0x2c4   : > { %v845_v22 = vsel %vm671_vm2, %v843_v21, -inf }
 0x2c5   : > { %846 = vmax.xlane.f32.xlu2 %v845_v22  ;;  %v1726_v22 = vld [vmem:[%s2177_s2 + $0x30] sm:$0xff] }
 0x2c9   : > { %v840_v23 = vpop.f32.mrf.mxu0 }
 0x2ca   : > { %v844_v24 = vmul.f32 0.35355338, %v840_v23 }
 0x2cc   : > { %v848_v25 = vsel %vm671_vm2, %v844_v24, -inf }
 0x2cd   : > { %849 = vmax.xlane.f32.xlu2 %v848_v25 }
 0x2d1   : > { %v989_v23 = vpop.f32.mrf.mxu0 }
 0x338   : > { %v847_v29 = vpop.xlane.xlu2 %846 }
 0x339   : > { %v851_v30 = vsub.f32 %v843_v21, %v847_v29  ;;  %v1727_v21 = vld [vmem:[%s2177_s2 + $0x38] sm:$0xff] }
 0x33a   : > { %1087 = vmatpush.bf16.msrb.mxu3 %v1727_v21 }
 0x33b   : > { %v853_v32 = vmul.f32 1.442695, %v851_v30  ;;  %v991_v30 = vpop.f32.mrf.mxu0 }
 0x33d   : > { %1787 = vpow2.f32 %v853_v32 }
 0x33e   : > { %1088 = vmatpush.bf16.msrb.mxu3 %v1726_v22 }
 0x340   : > { %v850_v34 = vpop.xlane.xlu2 %849 }
 0x341   : > { %v852_v36 = vsub.f32 %v844_v24, %v850_v34  ;;  %1653 = vmatmul.msk.bf16.vlgmr.msrb.gmra.mxu3 %vm557_vm0, %v1951_v10  ;;  %v1771_v24 = vld [vmem:[%s2182_s7 + $0x2] ss:$0 sm:$0xff] }
 0x342   : > { %v990_v28 = vadd.f32 %v1771_v24, %v989_v23  ;;  %v992_v31 = vadd.f32 %v1771_v24, %v991_v30 }
 0x343   : > { %v1788_v39 = vpop.eup %1787  ;;  %v855_v40 = vmul.f32 1.442695, %v852_v36 }
 0x344   : > { %v857_v41 = vsel %vm671_vm2, %v1788_v39, 0.0  ;;  %v1041_v32 = vpack.c.bf16 %v992_v31, %v990_v28 }
 0x345   : > { %1789 = vpow2.f32 %v855_v40  ;;  %858 = vadd.xlane.f32.xlu0 %v857_v41  ;;  %v1772_v40 = vld [vmem:[%s2180_s5 + $0x3] ss:$0 sm:$0xff] }
 0x346   : > { %1052 = vmatpush.bf16.msrb.mxu2 %v1041_v32 }
 0x34b   : > { %v1790_v43 = vpop.eup %1789 }
 0x34c   : > { %v860_v44 = vsel %vm671_vm2, %v1790_v43, 0.0 }
 0x34d   : > { %861 = vadd.xlane.f32.xlu1 %v860_v44 }
 0x3b8   : > { %v859_v52 = vpop.xlane.xlu0 %858 }
 0x3b9   : > { %1791 = vrcp.f32 %v859_v52 }
 0x3bf   : > { %v1792_v54 = vpop.eup %1791 }
 0x3c0   : > { %v862_v53 = vpop.xlane.xlu1 %861  ;;  %v865_v56 = vmul.f32 %v1792_v54, %v1788_v39  ;;  %v1126_v39 = vpop.f32.mrf.mxu0  ;;  %v1773_v54 = vld [vmem:[%s2178_s3 + $0x3] ss:$0 sm:$0xff] }
 0x3c1   : > { %1793 = vrcp.f32 %v862_v53  ;;  %v1127_v42 = vadd.f32 %v1772_v40, %v1126_v39 }
 0x3c4   : > { %v1090_v52 = vpop.f32.mrf.mxu3 }
 0x3c7   : > { %v1794_v55 = vpop.eup %1793 }
 0x3c8   : > { %v866_v57 = vmul.f32 %v1794_v55, %v1790_v43  ;;  %v1128_v41 = vpop.f32.mrf.mxu0 }
 0x3c9   : > { %v1129_v43 = vadd.f32 %v1772_v40, %v1128_v41 }
 0x3ca   : > { %v867_v59 = vpack.c.bf16 %v866_v57, %v865_v56  ;;  %v1091_v56 = vadd.f32 %v1773_v54, %v1090_v52 }
 0x3cb   : > { %v1168_v44 = vpack.c.bf16 %v1129_v43, %v1127_v42 }
 0x3cc   : > { %1595 = vmatmul.msk.bf16.vlgmr.msra.gmra.mxu1 %vm671_vm2, %v867_v59  ;;  %v1092_v55 = vpop.f32.mrf.mxu3 }
 0x3cd   : > { %v1173_v45 = vsel %vm648_vm1, %v1168_v44, 0  ;;  %v1093_v57 = vadd.f32 %v1773_v54, %v1092_v55  ;;  %1159 = vmatpush.bf16.msra.mxu1 %v1731_v1 }
 0x3ce   : > { %1182 = vmatpush.bf16.xpose.msra.mxu2 %v1173_v45 }
 0x3cf   : > { %v1167_v58 = vpack.c.bf16 %v1093_v57, %v1091_v56 }
 0x3d1   : > { %1160 = vmatpush.bf16.msra.mxu1 %v1730_v2 }
 0x3dc   : > { %1638 = vmatmul.msk.bf16.vlgmr.msrb.gmra.mxu1 %vm648_vm1, %v994_v0 }
 0x3ec   : > { %1681 = vmatmul.msk.bf16.vlgmr.msra.gmra.mxu1 %vm557_vm0, %v1976_v27 }
 0x449   : > { %v2062_v8 = vpop.f32.mrf.mxu1 }
 0x451   : > { %v2069_v11 = vpop.f32.mrf.mxu1 }
 0x452   : > { %v1748_v12 = vpack.i.bf16 %v2069_v11, %v2062_v8  ;;  %v1774_v8 = vld [vmem:[%s2182_s7 + $0x3] ss:$0 sm:$0xff] }
 0x459   : > { %v1011_v13 = vpop.f32.mrf.mxu1 }
 0x45a   : > { %v1016_v14 = vmul.f32 0.35355338, %v1011_v13 }
 0x45c   : > { %v1018_v15 = vsel %vm671_vm2, %v1016_v14, -inf }
 0x45d   : > { %1019 = vmax.xlane.f32.xlu2 %v1018_v15 }
 0x461   : > { %v1013_v16 = vpop.f32.mrf.mxu1 }
 0x462   : > { %v1017_v18 = vmul.f32 0.35355338, %v1013_v16 }
 0x464   : > { %v1021_v20 = vsel %vm671_vm2, %v1017_v18, -inf }
 0x465   : > { %1022 = vmax.xlane.f32.xlu0 %v1021_v20 }
 0x4d0   : > { %v1020_v25 = vpop.xlane.xlu2 %1019 }
 0x4d1   : > { %v1024_v26 = vsub.f32 %v1016_v14, %v1020_v25  ;;  %v1162_v25 = vpop.f32.mrf.mxu1 }
 0x4d2   : > { %v1163_v11 = vadd.f32 %v1774_v8, %v1162_v25 }
 0x4d3   : > { %v1026_v29 = vmul.f32 1.442695, %v1024_v26 }
 0x4d5   : > { %1795 = vpow2.f32 %v1026_v29 }
 0x4d8   : > { %v1023_v33 = vpop.xlane.xlu0 %1022 }
 0x4d9   : > { %v1025_v34 = vsub.f32 %v1017_v18, %v1023_v33 }
 0x4db   : > { %v1796_v35 = vpop.eup %1795  ;;  %v1028_v36 = vmul.f32 1.442695, %v1025_v34 }
 0x4dc   : > { %v1030_v10 = vsel %vm671_vm2, %v1796_v35, 0.0 }
 0x4dd   : > { %1797 = vpow2.f32 %v1028_v36  ;;  %1031 = vadd.xlane.f32.xlu1 %v1030_v10  ;;  %v1733_v36 = vld [vmem:[%s2183_s8 + $0x8] sm:$0xff]  ;;  %v1732_v10 = vld [vmem:[%s2183_s8] sm:$0xff] }
 0x4de   : > { %1293 = vmatpush.bf16.msrb.mxu0 %v1733_v36 }
 0x4e2   : > { %1294 = vmatpush.bf16.msrb.mxu0 %v1732_v10  ;;  %v1776_v10 = vld [vmem:[%s2185_s10] ss:$0 sm:$0xff] }
 0x4e3   : > { %v1798_v37 = vpop.eup %1797 }
 0x4e4   : > { %v1033_v38 = vsel %vm671_vm2, %v1798_v37, 0.0 }
 0x4e5   : > { %1034 = vadd.xlane.f32.xlu2 %v1033_v38 }
 0x550   : > { %v1032_v46 = vpop.xlane.xlu1 %1031 }
 0x551   : > { %1799 = vrcp.f32 %v1032_v46 }
 0x557   : > { %v1800_v48 = vpop.eup %1799 }
 0x558   : > { %v1035_v47 = vpop.xlane.xlu2 %1034  ;;  %v1038_v50 = vmul.f32 %v1800_v48, %v1796_v35 }
 0x559   : > { %1801 = vrcp.f32 %v1035_v47 }
 0x55f   : > { %v1802_v49 = vpop.eup %1801 }
 0x560   : > { %v1039_v51 = vmul.f32 %v1802_v49, %v1798_v37 }
 0x562   : > { %v1040_v53 = vpack.c.bf16 %v1039_v51, %v1038_v50 }
 0x564   : > { %1639 = vmatmul.msk.bf16.vlgmr.msrb.gmra.mxu2 %vm671_vm2, %v1040_v53 }
 0x574   : > { %1682 = vmatmul.msk.bf16.vlgmr.msra.gmra.mxu2 %vm648_vm1, %v1167_v58 }
 0x5e7   : > { %v1054_v59 = vpop.f32.mrf.mxu2 }
 0x5ef   : > { %v1056_v60 = vpop.f32.mrf.mxu2 }
 0x5f0   : > { %v1753_v61 = vpack.i.bf16 %v1056_v60, %v1054_v59 }
 0x5f7   : > { %v1184_v62 = vpop.f32.mrf.mxu2 }
 0x5f8   : > { %v1189_v63 = vmul.f32 0.35355338, %v1184_v62 }
 0x5fa   : > { %v1191_v0 = vsel %vm671_vm2, %v1189_v63, -inf }
 0x5fb   : > { %1192 = vmax.xlane.f32.xlu0 %v1191_v0 }
 0x5ff   : > { %v1186_v3 = vpop.f32.mrf.mxu2 }
 0x600   : > { %v1190_v9 = vmul.f32 0.35355338, %v1186_v3 }
 0x602   : > { %v1194_v13 = vsel %vm671_vm2, %v1190_v9, -inf }
 0x603   : > { %1195 = vmax.xlane.f32.xlu1 %v1194_v13 }
 0x61c   : > { %1749 = vrot.lane.b32.xlu1 %v1748_v12, %s1825_s17  ;;  %v1164_v12 = vpop.f32.mrf.mxu1  ;;  %s527_s17 = scalar_lea.vmem %s2190_s15, %s1929_s28 }
 0x61d   : > { %v1165_v26 = vadd.f32 %v1774_v8, %v1164_v12 }
 0x61f   : > { %v1214_v28 = vpack.c.bf16 %v1165_v26, %v1163_v11  ;;  %v1734_v11 = vld [vmem:[%s2187_s12] sm:$0xff] }
 0x621   : > { %1225 = vmatpush.bf16.msra.mxu3 %v1214_v28 }
 0x66e   : > { %v1193_v14 = vpop.xlane.xlu0 %1192 }
 0x66f   : > { %v1197_v15 = vsub.f32 %v1189_v63, %v1193_v14  ;;  %v1828_v63 = vmov 32.0  }
 0x671   : > { %v1199_v16 = vmul.f32 1.442695, %v1197_v15 }
 0x673   : > { %1803 = vpow2.f32 %v1199_v16 }
 0x676   : > { %v1196_v18 = vpop.xlane.xlu1 %1195 }
 0x677   : > { %v1198_v20 = vsub.f32 %v1190_v9, %v1196_v18 }
 0x679   : > { %v1804_v21 = vpop.eup %1803  ;;  %v1201_v22 = vmul.f32 1.442695, %v1198_v20 }
 0x67a   : > { %v1203_v23 = vsel %vm671_vm2, %v1804_v21, 0.0 }
 0x67b   : > { %1805 = vpow2.f32 %v1201_v22  ;;  %1204 = vadd.xlane.f32.xlu2 %v1203_v23 }
 0x681   : > { %v1806_v24 = vpop.eup %1805 }
 0x682   : > { %v1206_v27 = vsel %vm671_vm2, %v1806_v24, 0.0 }
 0x683   : > { %1207 = vadd.xlane.f32.xlu0 %v1206_v27  ;;  %v1735_v27 = vld [vmem:[%s2187_s12 + $0x8] sm:$0xff] }
 0x684   : > { %1400 = vmatpush.bf16.msrb.mxu1 %v1735_v27 }
 0x688   : > { %1401 = vmatpush.bf16.msrb.mxu1 %v1734_v11 }
 0x68e   : > { %v1750_v40 = vpop.permute.xlu1 %1749 }
 0x68f   : > { %v1752_v42 = vunpack.i.h.bf16 %v1750_v40  ;;  %v1751_v43 = vunpack.i.l.bf16 %v1750_v40 }
 0x691   : > { %v1257_v47 = vsel %vm648_vm1, %v2025_v19, %v1752_v42  ;;  %v1256_v48 = vsel %vm648_vm1, %v2018_v17, %v1751_v43  ;;  %v1775_v19 = vld [vmem:[%s2184_s9] ss:$0 sm:$0xff] }
 0x693   : > { %1754 = vrot.lane.b32.xlu2 %v1753_v61, %s1826_s19 }
 0x6ee   : > { %v1205_v29 = vpop.xlane.xlu2 %1204 }
 0x6ef   : > { %1807 = vrcp.f32 %v1205_v29 }
 0x6f5   : > { %v1808_v31 = vpop.eup %1807 }
 0x6f6   : > { %v1208_v30 = vpop.xlane.xlu0 %1207  ;;  %v1211_v33 = vmul.f32 %v1808_v31, %v1804_v21  ;;  %v1755_v41 = vpop.permute.xlu2 %1754 }
 0x6f7   : > { %1809 = vrcp.f32 %v1208_v30  ;;  %v1757_v44 = vunpack.i.h.bf16 %v1755_v41  ;;  %v1756_v45 = vunpack.i.l.bf16 %v1755_v41 }
 0x6f8   : > { %1811 = vrcp.f32 %v1828_v63 }
 0x6f9   : > { %v1258_v51 = vsel %vm671_vm2, %v1256_v48, %v1756_v45  ;;  %v1259_v52 = vsel %vm671_vm2, %v1257_v47, %v1757_v44 }
 0x6fd   : > { %v1810_v32 = vpop.eup %1809 }
 0x6fe   : > { %v1212_v34 = vmul.f32 %v1810_v32, %v1806_v24  ;;  %v1812_v0 = vpop.eup %1811 }
 0x6ff   : > { %v1310_v1 = vmul.f32 32.0, %v1812_v0  ;;  %vm1314_vm4 = vweird.f32 %v1812_v0 }
 0x700   : > { %v1213_v35 = vpack.c.bf16 %v1212_v34, %v1211_v33 }
 0x701   : > { %v1311_v2 = vsub.f32 1.0, %v1310_v1 }
 0x702   : > { %1683 = vmatmul.msk.bf16.vlgmr.msra.gmra.mxu3 %vm671_vm2, %v1213_v35 }
 0x703   : > { %v1312_v3 = vmul.f32 %v1812_v0, %v1311_v2 }
 0x705   : > { %v1313_v9 = vadd.f32 %v1812_v0, %v1312_v3 }
 0x707   : > { %v1315_v13 = vsel %vm1314_vm4, %v1812_v0, %v1313_v9 }
 0x785   : > { %v1227_v37 = vpop.f32.mrf.mxu3 }
 0x78d   : > { %v1229_v38 = vpop.f32.mrf.mxu3 }
 0x78e   : > { %v1758_v39 = vpack.i.bf16 %v1229_v38, %v1227_v37 }
 0x790   : > { %1759 = vrot.lane.b32.xlu0 %v1758_v39, %s1827_s26  ;;  %v1777_v39 = vld [vmem:[%s2186_s11] ss:$0 sm:$0xff]  ;;  %s522_s26 = scalar_lea.vmem %s2189_s14, %s1929_s28 }
 0x802   : > { %v1760_v46 = vpop.permute.xlu0 %1759 }
 0x803   : > { %v1762_v49 = vunpack.i.h.bf16 %v1760_v46  ;;  %v1761_v50 = vunpack.i.l.bf16 %v1760_v46 }
 0x805   : > { %v1261_v53 = vsel %vm1260_vm3, %v1258_v51, %v1761_v50  ;;  %v1262_v54 = vsel %vm1260_vm3, %v1259_v52, %v1762_v49 }
 0x806   : > { %v1263_v55 = vpack.c.bf16 %v1262_v54, %v1261_v53  ;;  %v1778_v53 = vld [vmem:[%s2188_s13] ss:$0 sm:$0xff] }
 0x808   : > { %1692 = vmatmul.msk.bf16.vlgmr.msrb.gmra.mxu0 %vm557_vm0, %v1263_v55 }
 0x885   : > { %v1296_v56 = vpop.f32.mrf.mxu0 }
 0x886   : > { %v1297_v57 = vadd.f32 %v1775_v19, %v1296_v56 }
 0x888   : > { %v1301_v17 = vadd.f32 %v1297_v57, %v1939_v4 }
 0x88a   : > { %v1303_v58 = vsel %vm557_vm0, %v1301_v17, 0.0 }
 0x88b   : > { %1304 = vadd.xlane.f32.xlu2 %v1303_v58 }
 0x88d   : > { %v1298_v59 = vpop.f32.mrf.mxu0 }
 0x88e   : > { %v1299_v60 = vadd.f32 %v1775_v19, %v1298_v59 }
 0x890   : > { %v1302_v61 = vadd.f32 %v1299_v60, %v1941_v5 }
 0x892   : > { %v1306_v62 = vsel %vm557_vm0, %v1302_v61, 0.0 }
 0x893   : > { %1307 = vadd.xlane.f32.xlu1 %v1306_v62 }
 0x8fe   : > { %v1305_v4 = vpop.xlane.xlu2 %1304 }
 0x8ff   : > { %v1316_v14 = vmul.f32 %v1315_v13, %v1305_v4 }
 0x901   : > { %v1318_v15 = vsub.f32 %v1301_v17, %v1316_v14 }
 0x903   : > { %v1320_v16 = vmul.f32 %v1318_v15, %v1318_v15 }
 0x905   : > { %v1322_v18 = vsel %vm557_vm0, %v1320_v16, 0.0 }
 0x906   : > { %v1308_v20 = vpop.xlane.xlu1 %1307  ;;  %1323 = vadd.xlane.f32.xlu0 %v1322_v18 }
 0x907   : > { %v1317_v5 = vmul.f32 %v1315_v13, %v1308_v20 }
 0x909   : > { %v1319_v21 = vsub.f32 %v1302_v61, %v1317_v5 }
 0x90b   : > { %v1321_v22 = vmul.f32 %v1319_v21, %v1319_v21 }
 0x90d   : > { %v1325_v23 = vsel %vm557_vm0, %v1321_v22, 0.0 }
 0x90e   : > { %1326 = vadd.xlane.f32.xlu2 %v1325_v23 }
 0x979   : > { %v1324_v24 = vpop.xlane.xlu0 %1323 }
 0x97a   : > { %v1328_v25 = vmul.f32 %v1324_v24, %v1315_v13 }
 0x97c   : > { %v1330_v8 = vadd.f32 1e-05, %v1328_v25 }
 0x97e   : > { %1813 = vrsqrt.f32 %v1330_v8  ;;  %vm1338_vm6 = vweird.f32 %v1330_v8 }
 0x981   : > { %v1327_v12 = vpop.xlane.xlu2 %1326 }
 0x982   : > { %v1329_v26 = vmul.f32 %v1327_v12, %v1315_v13 }
 0x984   : > { %v1814_v28 = vpop.eup %1813  ;;  %v1331_v29 = vadd.f32 1e-05, %v1329_v26 }
 0x985   : > { %v1333_v30 = vmul.f32 %v1814_v28, %v1330_v8  ;;  %vm1339_vm5 = vweird.f32 %v1814_v28 }
 0x986   : > { %1815 = vrsqrt.f32 %v1331_v29  ;;  %vm1340_vm7 = vmor %vm1338_vm6, %vm1339_vm5  ;;  %vm1348_vm9 = vweird.f32 %v1331_v29 }
 0x987   : > { %v1334_v31 = vmul.f32 %v1814_v28, %v1333_v30 }
 0x989   : > { %v1335_v32 = vmul.f32 0.5, %v1334_v31 }
 0x98b   : > { %v1336_v33 = vsub.f32 1.5, %v1335_v32 }
 0x98c   : > { %v1816_v34 = vpop.eup %1815 }
 0x98d   : > { %v1337_v35 = vmul.f32 %v1814_v28, %v1336_v33  ;;  %v1343_v36 = vmul.f32 %v1816_v34, %v1331_v29  ;;  %vm1349_vm8 = vweird.f32 %v1816_v34 }
 0x98e   : > { %vm1350_vm10 = vmor %vm1348_vm9, %vm1349_vm8 }
 0x98f   : > { %v1341_v37 = vsel %vm1340_vm7, %v1814_v28, %v1337_v35  ;;  %v1344_v38 = vmul.f32 %v1816_v34, %v1343_v36 }
 0x990   : > { %v1352_v40 = vmul.f32 %v1341_v37, %v1318_v15 }
 0x991   : > { %v1345_v41 = vmul.f32 0.5, %v1344_v38 }
 0x992   : > { %v1358_v42 = vmul.f32 %v1776_v10, %v1352_v40 }
 0x993   : > { %v1346_v43 = vsub.f32 1.5, %v1345_v41 }
 0x994   : > { %v1364_v44 = vadd.f32 %v1777_v39, %v1358_v42 }
 0x995   : > { %v1347_v45 = vmul.f32 %v1816_v34, %v1346_v43 }
 0x996   : > { %1366 = vst.msk [vmem:[%s522_s26] sm:$0xff] %vm557_vm0, %v1364_v44  ;;  %v1368_v50 = vadd.f32 %v1364_v44, %v1943_v6 }
 0x997   : > { %v1351_v46 = vsel %vm1350_vm10, %v1816_v34, %v1347_v45 }
 0x998   : > { %v1353_v47 = vmul.f32 %v1351_v46, %v1319_v21 }
 0x99a   : > { %v1359_v48 = vmul.f32 %v1776_v10, %v1353_v47 }
 0x99c   : > { %v1365_v49 = vadd.f32 %v1777_v39, %v1359_v48 }
 0x99e   : > { %1367 = vst.msk [vmem:[%s522_s26 + $0x8] sm:$0xff] %vm557_vm0, %v1365_v49  ;;  %v1369_v51 = vadd.f32 %v1365_v49, %v1945_v7 }
 0x9a0   : > { %v1370_v52 = vpack.c.bf16 %v1369_v51, %v1368_v50 }
 0x9a2   : > { %1701 = vmatmul.msk.bf16.vlgmr.msrb.gmra.mxu1 %vm557_vm0, %v1370_v52 }
 0xa1f   : > { %v1403_v54 = vpop.f32.mrf.mxu1 }
 0xa20   : > { %v1404_v55 = vadd.f32 %v1778_v53, %v1403_v54 }
 0xa22   : > { %1408 = vst.msk [vmem:[%s527_s17] sm:$0xff] %vm1260_vm3, %v1404_v55 }
 0xa27   : > { %v1405_v19 = vpop.f32.mrf.mxu1 }
 0xa28   : > { %v1406_v56 = vadd.f32 %v1778_v53, %v1405_v19 }
 0xa2a   : > { %1409 = vst.msk [vmem:[%s527_s17 + $0x8] sm:$0xff] %vm1260_vm3, %v1406_v56 }
 0xa2b PF: > { %s26_s18 = sadd.s32 1, %s1823_s18  }
 0xa2c   : > { %p23_p4 = scmp.ge.s32.totalorder %s26_s18, 4  }
 0xa2e   :  { %25 = sbr.rel (!%p23_p4) target bundleno = 1 (0x1), region = 139 }

// kernel: run.9
= control target key start
LH: loop header
LB: loop body
LE: loop exit
PB: predicated region body
PF: predicated region fallthrough
CT: control target
= control target key end

     0   :  { %s2546_s21 = smov 0   ;;  %s3132_s0 = inlined_call_operand.vmem [shape: f32[2,64,32], index: 0, kind: input, shape index: {}]   ;;  %s3133_s1 = inlined_call_operand.vmem [shape: f32[2,64,32], index: 1, kind: input, shape index: {}]   ;;  %s3134_s2 = inlined_call_operand.vmem [shape: f32[2,64,1], index: 2, kind: input, shape index: {}]   ;;  %s3135_s3 = inlined_call_operand.vmem [shape: bf16[2,4,64,64], index: 3, kind: input, shape index: {}]   ;;  %s3136_s4 = inlined_call_operand.vmem [shape: bf16[4,32,8], index: 4, kind: input, shape index: {}]   ;;  %s3137_s5 = inlined_call_operand.vmem [shape: f32[4,1,8], index: 5, kind: input, shape index: {}]   ;;  %s3138_s6 = inlined_call_operand.vmem [shape: bf16[32,32], index: 6, kind: input, shape index: {}]   ;;  %s3139_s7 = inlined_call_operand.vmem [shape: f32[1,32], index: 7, kind: input, shape index: {}]   ;;  %s3140_s8 = inlined_call_operand.vmem [shape: f32[1,32], index: 8, kind: input, shape index: {}]   ;;  %s3141_s9 = inlined_call_operand.vmem [shape: f32[1,32], index: 9, kind: input, shape index: {}]   ;;  %s3142_s10 = inlined_call_operand.vmem [shape: bf16[32,64], index: 10, kind: input, shape index: {}]   ;;  %s3143_s11 = inlined_call_operand.vmem [shape: f32[1,64], index: 11, kind: input, shape index: {}]   ;;  %s3144_s12 = inlined_call_operand.vmem [shape: bf16[64,32], index: 12, kind: input, shape index: {}]   ;;  %s3145_s13 = inlined_call_operand.vmem [shape: f32[1,32], index: 13, kind: input, shape index: {}]   ;;  %s3146_s14 = inlined_call_operand.vmem [shape: f32[1,32], index: 14, kind: input, shape index: {}]   ;;  %s3147_s15 = inlined_call_operand.vmem [shape: f32[1,32], index: 15, kind: input, shape index: {}]   ;;  %s3148_s16 = inlined_call_operand.vmem [shape: f32[2,64,32], index: 16, kind: output, shape index: {}]  }
   0x1   :  { %3149 = sst [smem:[#allocation2_spill]] %s3132_s0 }
   0x2 LB: > { %s2058_s22 = sadd.s32 4294967295, %s2454_s21   ;;  %p2062_p0 = scmp.ge.s32.totalorder %s2454_s21, 1  ;;  %s2454_s21 = sphi %s2546_s21, %s26_s21  }
   0x3   : > { %p492_p1 = scmp.lt.s32.totalorder %s2454_s21, 3 }
   0x5   : > { %p493_p2 = pnand %p2062_p0, %p492_p1 }
   0x6   : > { %p557_p3 = scmp.lt.s32.totalorder (!%p493_p2), %s2058_s22, 1  ;;  %s2457_s30 = smov (!%p493_p2), 8  }
   0x7   : > { %496 = sbr.rel (%p493_p2) target bundleno = 1790 (0x6fe), region = 84  ;;  %s2459_s20 = smov (!%p493_p2), 24  }
   0xc   : > { %v2292_v0 = vld [vmem:[%s3136_s4 + $0x8] sm:$0xff]  ;;  %v2298_v1 = vld [vmem:[%s3136_s4 + $0x18] sm:$0xff]  ;;  %v2456_v2 = vmov 0   ;;  %v2291_v3 = vld [vmem:[%s3136_s4] sm:$0xff]  ;;  %s3152_s22 = smov (!%p557_p3, %s2058_s22), 1  ;;  %vm631_vm0 = vcmask 261120  }
   0xd   : > { %2340 = vset.pattern.permute.xlu0 %v2456_v2  ;;  %2341 = vset.pattern.permute.xlu1 %v2456_v2  ;;  %v2297_v4 = vld [vmem:[%s3136_s4 + $0x10] sm:$0xff]  ;;  %s2569_s0 = sshll.u32 %s3152_s22, 6  ;;  %v2304_v18 = vld [vmem:[%s3136_s4 + $0x28] sm:$0xff]  ;;  %v2303_v19 = vld [vmem:[%s3136_s4 + $0x20] sm:$0xff]  ;;  %vm753_vm1 = vcmask 523264   ;;  %vm1290_vm2 = vcmask 64512  }
   0xe   : > { %650 = vmatpush.bf16.msra.mxu0 %v2292_v0  ;;  %823 = vmatpush.bf16.msra.mxu2 %v2298_v1  ;;  %s2575_s19 = scalar_lea.vmem %s3134_s2, %s2569_s0  ;;  %s2582_s24 = scalar_lea.vmem %s3133_s1, %s2569_s0  ;;  %v2403_v43 = vld [vmem:[%s3137_s5] ss:$0 sm:$0xff]  ;;  %v2404_v61 = vld [vmem:[%s3137_s5 + $0x1] ss:$0 sm:$0xff]  ;;  %vm1299_vm3 = vcmask 130048   ;;  %vm1308_vm4 = vcmask 195584  }
   0xf   : > { %2342 = vset.pattern.permute.xlu2 %v2456_v2  ;;  %v605_v5 = vld [vmem:[%s2575_s19 + $0x30] sm:$0xff]  ;;  %v603_v6 = vld [vmem:[%s2575_s19 + $0x20] sm:$0xff]  ;;  %v592_v8 = vld [vmem:[%s2582_s24 + $0x8] sm:$0xff]  ;;  %s3085_s18 = scalar_lea.vmem %s3148_s16, %s2569_s0 }
  0x10   : > { %705 = vperm.xlu0 %2340, %v605_v5   ;;  %v591_v7 = vld [vmem:[%s2582_s24] sm:$0xff]  ;;  %695 = vperm.xlu1 %2341, %v603_v6   ;;  %v606_v10 = vld [vmem:[%s2575_s19 + $0x38] sm:$0xff]  ;;  %v604_v11 = vld [vmem:[%s2575_s19 + $0x28] sm:$0xff] }
  0x11   : > { %v2587_v9 = vpack.c.bf16 %v592_v8, %v591_v7  ;;  %v593_v12 = vld [vmem:[%s2582_s24 + $0x10] sm:$0xff]  ;;  %v594_v13 = vld [vmem:[%s2582_s24 + $0x18] sm:$0xff]  ;;  %v599_v14 = vld [vmem:[%s2575_s19] sm:$0xff] }
  0x12   : > { %651 = vmatpush.bf16.msra.mxu0 %v2291_v3  ;;  %824 = vmatpush.bf16.msra.mxu2 %v2297_v4  ;;  %v600_v15 = vld [vmem:[%s2575_s19 + $0x8] sm:$0xff]  ;;  %v2599_v16 = vpack.c.bf16 %v594_v13, %v593_v12  ;;  %v601_v17 = vld [vmem:[%s2575_s19 + $0x10] sm:$0xff]  ;;  %v602_v20 = vld [vmem:[%s2575_s19 + $0x18] sm:$0xff]  ;;  %s2289_s19 = sshll.u32 %s3152_s22, 7 }
  0x13   : > { %685 = vperm.xlu2 %2342, %v601_v17   ;;  %v595_v21 = vld [vmem:[%s2582_s24 + $0x20] sm:$0xff]  ;;  %v596_v22 = vld [vmem:[%s2582_s24 + $0x28] sm:$0xff]  ;;  %v597_v24 = vld [vmem:[%s2582_s24 + $0x30] sm:$0xff] }
  0x14   : > { %v2615_v23 = vpack.c.bf16 %v596_v22, %v595_v21  ;;  %v598_v25 = vld [vmem:[%s2582_s24 + $0x38] sm:$0xff]  ;;  %s2677_s24 = scalar_lea.vmem %s3135_s3, %s2289_s19  ;;  %s2458_s19 = smov 16  }
  0x15   : > { %2081 = vmatmul.msk.bf16.vlgmr.msra.gmra.mxu0 %vm631_vm0, %v2587_v9  ;;  %2118 = vmatmul.msk.bf16.vlgmr.msra.gmra.mxu2 %vm631_vm0, %v2587_v9  ;;  %v2623_v26 = vpack.c.bf16 %v598_v25, %v597_v24 }
  0x16   : > { %956 = vmatpush.bf16.msrb.mxu0 %v2304_v18  ;;  %v2310_v18 = vld [vmem:[%s3136_s4 + $0x38] sm:$0xff] }
  0x18   : > { %710 = vperm.xlu0 %2340, %v606_v10   ;;  %700 = vperm.xlu1 %2341, %v604_v11  }
  0x1a   : > { %957 = vmatpush.bf16.msrb.mxu0 %v2303_v19 }
  0x1b   : > { %690 = vperm.xlu2 %2342, %v602_v20  }
  0x20   : > { %675 = vperm.xlu0 %2340, %v599_v14   ;;  %680 = vperm.xlu1 %2341, %v600_v15  }
  0x25   : > { %2082 = vmatmul.msk.bf16.gmra.mxu0 %vm631_vm0, %v2599_v16  ;;  %2119 = vmatmul.msk.bf16.gmra.mxu2 %vm631_vm0, %v2599_v16 }
  0x35   : > { %2083 = vmatmul.msk.bf16.gmra.mxu0 %vm631_vm0, %v2615_v23  ;;  %2120 = vmatmul.msk.bf16.gmra.mxu2 %vm631_vm0, %v2615_v23 }
  0x45   : > { %2084 = vmatmul.msk.bf16.gmra.mxu0 %vm631_vm0, %v2623_v26  ;;  %2121 = vmatmul.msk.bf16.gmra.mxu2 %vm631_vm0, %v2623_v26 }
  0x55   : > { %2163 = vmatmul.msk.bf16.vlgmr.msrb.gmra.mxu0 %vm631_vm0, %v2587_v9 }
  0x65   : > { %2164 = vmatmul.msk.bf16.gmra.mxu0 %vm631_vm0, %v2599_v16 }
  0x6d   : > { %v2645_v42 = vpop.permute.xlu2 %685 }
  0x75   : > { %2165 = vmatmul.msk.bf16.gmra.mxu0 %vm631_vm0, %v2615_v23  ;;  %v2657_v57 = vpop.permute.xlu2 %690 }
  0x82   : > { %v2641_v38 = vpop.permute.xlu1 %695  ;;  %v2643_v40 = vpop.permute.xlu0 %705 }
  0x85   : > { %2166 = vmatmul.msk.bf16.gmra.mxu0 %vm631_vm0, %v2623_v26 }
  0x8a   : > { %v2650_v46 = vpop.permute.xlu1 %700  ;;  %v2652_v50 = vpop.permute.xlu0 %710 }
  0x92   : > { %v653_v27 = vpop.f32.mrf.mxu0  ;;  %v2666_v2 = vpop.permute.xlu1 %680 }
  0x93   : > { %v654_v4 = vadd.f32 %v2403_v43, %v653_v27  ;;  %v2670_v6 = vpop.permute.xlu0 %675  ;;  %v2293_v27 = vld [vmem:[%s2677_s24] sm:$0xff] }
  0x95   : > { %v713_v14 = vmul.f32 %v2670_v6, %v654_v4 }
  0x98   : > { %v2637_v28 = vpop.f32.mrf.mxu2 }
  0x9a   : > { %v655_v29 = vpop.f32.mrf.mxu0 }
  0x9b   : > { %v656_v63 = vadd.f32 %v2403_v43, %v655_v29  ;;  %v2294_v29 = vld [vmem:[%s2677_s24 + $0x8] sm:$0xff] }
  0x9d   : > { %v714_v10 = vmul.f32 %v2666_v2, %v656_v63 }
  0x9f   : > { %v729_v20 = vpack.c.bf16 %v714_v10, %v713_v14  ;;  %v2306_v14 = vld [vmem:[%s2677_s24 + $0x48] sm:$0xff] }
  0xa0   : > { %v2639_v30 = vpop.f32.mrf.mxu2 }
  0xa2   : > { %v658_v31 = vpop.f32.mrf.mxu0 }
  0xa3   : > { %v659_v58 = vadd.f32 %v2403_v43, %v658_v31  ;;  %v2309_v31 = vld [vmem:[%s3136_s4 + $0x30] sm:$0xff] }
  0xa5   : > { %v715_v5 = vmul.f32 %v2645_v42, %v659_v58 }
  0xa8   : > { %v831_v32 = vpop.f32.mrf.mxu2 }
  0xa9   : > { %v832_v19 = vadd.f32 %v2404_v61, %v831_v32  ;;  %v827_v32 = vadd.f32 %v2404_v61, %v2637_v28 }
  0xaa   : > { %v660_v33 = vpop.f32.mrf.mxu0 }
  0xab   : > { %v661_v54 = vadd.f32 %v2403_v43, %v660_v33  ;;  %v829_v33 = vadd.f32 %v2404_v61, %v2639_v30 }
  0xad   : > { %v716_v1 = vmul.f32 %v2657_v57, %v661_v54  ;;  %v847_v28 = vmul.f32 %v829_v33, %v2666_v2 }
  0xaf   : > { %v730_v8 = vpack.c.bf16 %v716_v1, %v715_v5 }
  0xb0   : > { %v833_v34 = vpop.f32.mrf.mxu2 }
  0xb1   : > { %v834_v21 = vadd.f32 %v2404_v61, %v833_v34  ;;  %v848_v34 = vmul.f32 %v832_v19, %v2645_v42 }
  0xb2   : > { %v663_v35 = vpop.f32.mrf.mxu0 }
  0xb3   : > { %v664_v51 = vadd.f32 %v2403_v43, %v663_v35  ;;  %v849_v35 = vmul.f32 %v834_v21, %v2657_v57 }
  0xb5   : > { %v717_v59 = vmul.f32 %v2641_v38, %v664_v51  ;;  %v2405_v51 = vld [vmem:[%s3137_s5 + $0x2] ss:$0 sm:$0xff] }
  0xb8   : > { %v836_v36 = vpop.f32.mrf.mxu2 }
  0xb9   : > { %v837_v11 = vadd.f32 %v2404_v61, %v836_v36 }
  0xba   : > { %v665_v37 = vpop.f32.mrf.mxu0 }
  0xbb   : > { %v666_v48 = vadd.f32 %v2403_v43, %v665_v37  ;;  %v850_v22 = vmul.f32 %v837_v11, %v2641_v38 }
  0xbd   : > { %v718_v55 = vmul.f32 %v2650_v46, %v666_v48  ;;  %v2296_v48 = vld [vmem:[%s2677_s24 + $0x18] sm:$0xff] }
  0xbf   : > { %v731_v0 = vpack.c.bf16 %v718_v55, %v717_v59 }
  0xc0   : > { %v838_v39 = vpop.f32.mrf.mxu2 }
  0xc1   : > { %v839_v12 = vadd.f32 %v2404_v61, %v838_v39  ;;  %v846_v39 = vmul.f32 %v827_v32, %v2670_v6 }
  0xc2   : > { %v668_v41 = vpop.f32.mrf.mxu0 }
  0xc3   : > { %v669_v45 = vadd.f32 %v2403_v43, %v668_v41  ;;  %v851_v24 = vmul.f32 %v839_v12, %v2650_v46  ;;  %v864_v41 = vpack.c.bf16 %v849_v35, %v848_v34  ;;  %v863_v30 = vpack.c.bf16 %v847_v28, %v846_v39  ;;  %v2300_v12 = vld [vmem:[%s2677_s24 + $0x28] sm:$0xff] }
  0xc5   : > { %v719_v52 = vmul.f32 %v2643_v40, %v669_v45  ;;  %v865_v36 = vpack.c.bf16 %v851_v24, %v850_v22 }
  0xc8   : > { %v841_v44 = vpop.f32.mrf.mxu2 }
  0xc9   : > { %v842_v7 = vadd.f32 %v2404_v61, %v841_v44  ;;  %v2295_v44 = vld [vmem:[%s2677_s24 + $0x10] sm:$0xff] }
  0xca   : > { %v670_v47 = vpop.f32.mrf.mxu0 }
  0xcb   : > { %v671_v49 = vadd.f32 %v2403_v43, %v670_v47  ;;  %v852_v15 = vmul.f32 %v842_v7, %v2643_v40 }
  0xcd   : > { %v720_v53 = vmul.f32 %v2652_v50, %v671_v49 }
  0xcf   : > { %v732_v56 = vpack.c.bf16 %v720_v53, %v719_v52 }
  0xd0   : > { %v843_v60 = vpop.f32.mrf.mxu2 }
  0xd1   : > { %770 = vmatpush.bf16.msra.mxu1 %v732_v56  ;;  %2323 = vmatpush.bf16.msra.mxu3 %v732_v56  ;;  %v844_v3 = vadd.f32 %v2404_v61, %v843_v60  ;;  %v2299_v56 = vld [vmem:[%s2677_s24 + $0x20] sm:$0xff] }
  0xd2   : > { %v2663_v62 = vpop.f32.mrf.mxu0 }
  0xd3   : > { %v853_v13 = vmul.f32 %v844_v3, %v2652_v50  ;;  %v960_v5 = vadd.f32 %v2405_v51, %v2663_v62  ;;  %v2301_v62 = vld [vmem:[%s2677_s24 + $0x30] sm:$0xff] }
  0xd5   : > { %771 = vmatpush.bf16.msra.mxu1 %v731_v0  ;;  %2324 = vmatpush.bf16.msra.mxu3 %v731_v0  ;;  %v866_v25 = vpack.c.bf16 %v853_v13, %v852_v15  ;;  %v979_v10 = vmul.f32 %v960_v5, %v2670_v6  ;;  %v2305_v13 = vld [vmem:[%s2677_s24 + $0x40] sm:$0xff]  ;;  %v2302_v15 = vld [vmem:[%s2677_s24 + $0x38] sm:$0xff] }
  0xd9   : > { %772 = vmatpush.bf16.msra.mxu1 %v730_v8  ;;  %2325 = vmatpush.bf16.msra.mxu3 %v730_v8 }
  0xda   : > { %v961_v17 = vpop.f32.mrf.mxu0 }
  0xdb   : > { %v962_v1 = vadd.f32 %v2405_v51, %v961_v17  ;;  %v2307_v17 = vld [vmem:[%s2677_s24 + $0x50] sm:$0xff] }
  0xdd   : > { %773 = vmatpush.bf16.msra.mxu1 %v729_v20  ;;  %2326 = vmatpush.bf16.msra.mxu3 %v729_v20  ;;  %v980_v8 = vmul.f32 %v962_v1, %v2666_v2 }
  0xdf   : > { %v996_v11 = vpack.c.bf16 %v980_v8, %v979_v10 }
  0xe0   : > { %2101 = vmatmul.msk.bf16.vlgmr.msra.gmra.mxu1 %vm753_vm1, %v2293_v27  ;;  %2102 = vmatmul.msk.bf16.vlgmr.msra.gmra.mxu3 %vm753_vm1, %v2294_v29 }
  0xe1   : > { %903 = vmatpush.bf16.msrb.mxu3 %v866_v25  ;;  %1089 = vmatpush.bf16.msrb.mxu1 %v2310_v18  ;;  %v2308_v18 = vld [vmem:[%s2677_s24 + $0x58] sm:$0xff] }
  0xe2   : > { %v964_v37 = vpop.f32.mrf.mxu0 }
  0xe5   : > { %904 = vmatpush.bf16.msrb.mxu3 %v865_v36  ;;  %1090 = vmatpush.bf16.msrb.mxu1 %v2309_v31 }
  0xe9   : > { %905 = vmatpush.bf16.msrb.mxu3 %v864_v41  ;;  %v2406_v41 = vld [vmem:[%s3137_s5 + $0x3] ss:$0 sm:$0xff] }
  0xea   : > { %v966_v43 = vpop.f32.mrf.mxu0 }
  0xeb   : > { %v967_v60 = vadd.f32 %v2405_v51, %v966_v43 }
  0xed   : > { %906 = vmatpush.bf16.msrb.mxu3 %v863_v30  ;;  %v982_v3 = vmul.f32 %v967_v60, %v2657_v57 }
  0xf0   : > { %2103 = vmatmul.msk.bf16.gmra.mxu3 %vm753_vm1, %v2295_v44  ;;  %2208 = vmatmul.msk.bf16.vlgmr.msrb.gmra.mxu1 %vm631_vm0, %v2587_v9 }
  0xf2   : > { %v969_v45 = vpop.f32.mrf.mxu0 }
  0xf3   : > { %v970_v58 = vadd.f32 %v2405_v51, %v969_v45 }
  0xf5   : > { %v983_v0 = vmul.f32 %v970_v58, %v2641_v38 }
  0xfa   : > { %v971_v47 = vpop.f32.mrf.mxu0 }
  0xfb   : > { %v972_v54 = vadd.f32 %v2405_v51, %v971_v47 }
  0xfd   : > { %v984_v61 = vmul.f32 %v972_v54, %v2650_v46 }
  0xff   : > { %v998_v4 = vpack.c.bf16 %v984_v61, %v983_v0 }
 0x100   : > { %2104 = vmatmul.msk.bf16.gmra.mxu3 %vm753_vm1, %v2296_v48  ;;  %2209 = vmatmul.msk.bf16.gmra.mxu1 %vm631_vm0, %v2599_v16  ;;  %v965_v16 = vadd.f32 %v2405_v51, %v964_v37 }
 0x102   : > { %v974_v49 = vpop.f32.mrf.mxu0  ;;  %v981_v7 = vmul.f32 %v965_v16, %v2645_v42 }
 0x103   : > { %v975_v52 = vadd.f32 %v2405_v51, %v974_v49 }
 0x105   : > { %v985_v9 = vmul.f32 %v975_v52, %v2643_v40 }
 0x10a   : > { %v976_v53 = vpop.f32.mrf.mxu0 }
 0x10b   : > { %v977_v55 = vadd.f32 %v2405_v51, %v976_v53 }
 0x10d   : > { %v986_v59 = vmul.f32 %v977_v55, %v2652_v50 }
 0x10f   : > { %v999_v63 = vpack.c.bf16 %v986_v59, %v985_v9 }
 0x110   : > { %2146 = vmatmul.msk.bf16.vlgmr.msrb.gmra.mxu3 %vm753_vm1, %v2299_v56  ;;  %2210 = vmatmul.msk.bf16.gmra.mxu1 %vm631_vm0, %v2615_v23  ;;  %v997_v23 = vpack.c.bf16 %v982_v3, %v981_v7  ;;  %v2311_v7 = vld [vmem:[%s2677_s24 + $0x60] sm:$0xff] }
 0x111   : > { %1036 = vmatpush.bf16.msrb.mxu2 %v999_v63 }
 0x115   : > { %1037 = vmatpush.bf16.msrb.mxu2 %v998_v4 }
 0x119   : > { %1038 = vmatpush.bf16.msrb.mxu2 %v997_v23 }
 0x11d   : > { %1039 = vmatpush.bf16.msrb.mxu2 %v996_v11  ;;  %v2312_v11 = vld [vmem:[%s2677_s24 + $0x68] sm:$0xff] }
 0x120   : > { %2147 = vmatmul.msk.bf16.gmra.mxu3 %vm753_vm1, %v2300_v12  ;;  %2191 = vmatmul.msk.bf16.vlgmr.msrb.gmra.mxu2 %vm753_vm1, %v2305_v13 }
 0x121   : > { %2211 = vmatmul.msk.bf16.gmra.mxu1 %vm631_vm0, %v2623_v26 }
 0x130   : > { %2148 = vmatmul.msk.bf16.gmra.mxu3 %vm753_vm1, %v2301_v62  ;;  %2192 = vmatmul.msk.bf16.gmra.mxu2 %vm753_vm1, %v2306_v14 }
 0x140   : > { %2149 = vmatmul.msk.bf16.gmra.mxu3 %vm753_vm1, %v2302_v15  ;;  %2193 = vmatmul.msk.bf16.gmra.mxu2 %vm753_vm1, %v2307_v17  ;;  %v2313_v15 = vld [vmem:[%s2677_s24 + $0x70] sm:$0xff] }
 0x150   : > { %2194 = vmatmul.msk.bf16.gmra.mxu2 %vm753_vm1, %v2308_v18 }
 0x15d   : > { %v2739_v19 = vpop.f32.mrf.mxu1 }
 0x163   : > { %v2741_v20 = vpop.f32.mrf.mxu3 }
 0x165   : > { %v2743_v26 = vpop.f32.mrf.mxu1 }
 0x16b   : > { %v2745_v21 = vpop.f32.mrf.mxu3 }
 0x16d   : > { %v1092_v22 = vpop.f32.mrf.mxu1 }
 0x173   : > { %v2747_v24 = vpop.f32.mrf.mxu3 }
 0x175   : > { %v1094_v25 = vpop.f32.mrf.mxu1 }
 0x17b   : > { %v2749_v27 = vpop.f32.mrf.mxu3 }
 0x17d   : > { %v1097_v29 = vpop.f32.mrf.mxu1 }
 0x17e   : > { %v1098_v60 = vadd.f32 %v2406_v41, %v1097_v29 }
 0x180   : > { %v1114_v16 = vmul.f32 %v1098_v60, %v2645_v42 }
 0x183   : > { %v2751_v31 = vpop.f32.mrf.mxu3 }
 0x185   : > { %v1099_v32 = vpop.f32.mrf.mxu1 }
 0x186   : > { %v1100_v53 = vadd.f32 %v2406_v41, %v1099_v32 }
 0x18b   : > { %v2753_v33 = vpop.f32.mrf.mxu3 }
 0x18d   : > { %v1102_v34 = vpop.f32.mrf.mxu1 }
 0x18e   : > { %v1103_v49 = vadd.f32 %v2406_v41, %v1102_v34 }
 0x190   : > { %v1116_v61 = vmul.f32 %v1103_v49, %v2641_v38 }
 0x193   : > { %v908_v35 = vpop.f32.mrf.mxu3 }
 0x195   : > { %v1104_v36 = vpop.f32.mrf.mxu1 }
 0x196   : > { %v1105_v47 = vadd.f32 %v2406_v41, %v1104_v36 }
 0x198   : > { %v1117_v54 = vmul.f32 %v1105_v47, %v2650_v46  ;;  %v1093_v46 = vadd.f32 %v2406_v41, %v1092_v22  ;;  %v2314_v22 = vld [vmem:[%s2677_s24 + $0x78] sm:$0xff] }
 0x19a   : > { %v1131_v63 = vpack.c.bf16 %v1117_v54, %v1116_v61  ;;  %v1112_v4 = vmul.f32 %v1093_v46, %v2670_v6 }
 0x19b   : > { %v910_v37 = vpop.f32.mrf.mxu3 }
 0x19c   : > { %v2343_v39 = vpack.i.bf16 %v910_v37, %v908_v35  ;;  %v2316_v37 = vld [vmem:[%s3138_s6 + $0x8] sm:$0xff] }
 0x19d   : > { %1359 = vmatpush.bf16.msra.mxu0 %v2316_v37 }
 0x19e   : > { %v1107_v28 = vpop.f32.mrf.mxu1  ;;  %2344 = vrot.lane.b32.xlu2 %v2343_v39, %s2457_s30 }
 0x19f   : > { %v1108_v44 = vadd.f32 %v2406_v41, %v1107_v28 }
 0x1a1   : > { %v1118_v51 = vmul.f32 %v1108_v44, %v2643_v40  ;;  %v1095_v40 = vadd.f32 %v2406_v41, %v1094_v25 }
 0x1a3   : > { %v913_v30 = vpop.f32.mrf.mxu3  ;;  %v1041_v43 = vpop.f32.mrf.mxu2  ;;  %v1113_v0 = vmul.f32 %v1095_v40, %v2666_v2 }
 0x1a5   : > { %v1129_v5 = vpack.c.bf16 %v1113_v0, %v1112_v4 }
 0x1a6   : > { %v1109_v45 = vpop.f32.mrf.mxu1 }
 0x1a7   : > { %v1110_v48 = vadd.f32 %v2406_v41, %v1109_v45  ;;  %v2315_v45 = vld [vmem:[%s3138_s6] sm:$0xff] }
 0x1a8   : > { %1360 = vmatpush.bf16.msra.mxu0 %v2315_v45 }
 0x1a9   : > { %v1119_v52 = vmul.f32 %v1110_v48, %v2652_v50  ;;  %v1115_v50 = vmul.f32 %v1100_v53, %v2657_v57 }
 0x1ab   : > { %v1132_v55 = vpack.c.bf16 %v1119_v52, %v1118_v51  ;;  %v915_v56 = vpop.f32.mrf.mxu3  ;;  %v1043_v58 = vpop.f32.mrf.mxu2  ;;  %v1130_v38 = vpack.c.bf16 %v1115_v50, %v1114_v16 }
 0x1ac   : > { %v2358_v9 = vpack.i.bf16 %v915_v56, %v913_v30  ;;  %v2348_v59 = vpack.i.bf16 %v1043_v58, %v1041_v43 }
 0x1ad   : > { %1169 = vmatpush.bf16.msra.mxu3 %v1132_v55 }
 0x1ae   : > { %2349 = vrot.lane.b32.xlu0 %v2348_v59, %s2458_s19  ;;  %2359 = vrot.lane.b32.xlu2 %v2358_v9, %s2457_s30 }
 0x1b1   : > { %1170 = vmatpush.bf16.msra.mxu3 %v1131_v63 }
 0x1b3   : > { %v918_v1 = vpop.f32.mrf.mxu3  ;;  %v1046_v3 = vpop.f32.mrf.mxu2 }
 0x1b5   : > { %1171 = vmatpush.bf16.msra.mxu3 %v1130_v38 }
 0x1b9   : > { %1172 = vmatpush.bf16.msra.mxu3 %v1129_v5 }
 0x1bb   : > { %v920_v8 = vpop.f32.mrf.mxu3  ;;  %v1048_v23 = vpop.f32.mrf.mxu2 }
 0x1bc   : > { %v2373_v57 = vpack.i.bf16 %v920_v8, %v918_v1  ;;  %v2363_v10 = vpack.i.bf16 %v1048_v23, %v1046_v3  ;;  %2236 = vmatmul.msk.bf16.vlgmr.msra.gmra.mxu3 %vm753_vm1, %v2311_v7 }
 0x1be   : > { %2364 = vrot.lane.b32.xlu0 %v2363_v10, %s2458_s19  ;;  %2374 = vrot.lane.b32.xlu2 %v2373_v57, %s2457_s30 }
 0x1c3   : > { %v923_v42 = vpop.f32.mrf.mxu3  ;;  %v1051_v2 = vpop.f32.mrf.mxu2 }
 0x1cb   : > { %v925_v6 = vpop.f32.mrf.mxu3  ;;  %v1053_v12 = vpop.f32.mrf.mxu2 }
 0x1cc   : > { %v2388_v13 = vpack.i.bf16 %v925_v6, %v923_v42  ;;  %v2378_v62 = vpack.i.bf16 %v1053_v12, %v1051_v2  ;;  %2237 = vmatmul.msk.bf16.gmra.mxu3 %vm753_vm1, %v2312_v11 }
 0x1ce   : > { %2379 = vrot.lane.b32.xlu0 %v2378_v62, %s2458_s19  ;;  %2389 = vrot.lane.b32.xlu2 %v2388_v13, %s2457_s30  ;;  %s3150_s30 = sld [smem:[#allocation2_spill]] }
 0x1d3   : > { %v1056_v14 = vpop.f32.mrf.mxu2 }
 0x1d4   : > { %s2831_s17 = scalar_lea.vmem %s3150_s30, %s2569_s0 }
 0x1db   : > { %v1058_v17 = vpop.f32.mrf.mxu2 }
 0x1dc   : > { %v2393_v18 = vpack.i.bf16 %v1058_v17, %v1056_v14  ;;  %2238 = vmatmul.msk.bf16.gmra.mxu3 %vm753_vm1, %v2313_v15 }
 0x1de   : > { %2394 = vrot.lane.b32.xlu0 %v2393_v18, %s2458_s19 }
 0x1ec   : > { %2239 = vmatmul.msk.bf16.gmra.mxu3 %vm753_vm1, %v2314_v22 }
 0x1f8   : > { %v2345_v47 = vpop.permute.xlu2 %2344 }
 0x1f9   : > { %v2347_v49 = vunpack.i.h.bf16 %v2345_v47  ;;  %v2346_v51 = vunpack.i.l.bf16 %v2345_v47 }
 0x1fb   : > { %v1291_v55 = vsel %vm1290_vm2, %v2739_v19, %v2346_v51  ;;  %v1292_v56 = vsel %vm1290_vm2, %v2743_v26, %v2347_v49  ;;  %v583_v49 = vld [vmem:[%s2831_s17] sm:$0xff] }
 0x208   : > { %v2360_v63 = vpop.permute.xlu2 %2359 }
 0x209   : > { %v2362_v16 = vunpack.i.h.bf16 %v2360_v63  ;;  %v2361_v19 = vunpack.i.l.bf16 %v2360_v63 }
 0x20b   : > { %v1294_v3 = vsel %vm1290_vm2, %v2745_v21, %v2362_v16  ;;  %v1293_v38 = vsel %vm1290_vm2, %v2741_v20, %v2361_v19 }
 0x218   : > { %v2375_v42 = vpop.permute.xlu2 %2374 }
 0x219   : > { %v2377_v11 = vunpack.i.h.bf16 %v2375_v42  ;;  %v2376_v21 = vunpack.i.l.bf16 %v2375_v42  ;;  %v589_v42 = vld [vmem:[%s2831_s17 + $0x30] sm:$0xff] }
 0x21b   : > { %v1296_v13 = vsel %vm1290_vm2, %v2749_v27, %v2377_v11  ;;  %v1295_v62 = vsel %vm1290_vm2, %v2747_v24, %v2376_v21 }
 0x220   : > { %v2350_v48 = vpop.permute.xlu0 %2349 }
 0x221   : > { %v2352_v52 = vunpack.i.h.bf16 %v2350_v48  ;;  %v2351_v53 = vunpack.i.l.bf16 %v2350_v48 }
 0x223   : > { %v1300_v59 = vsel %vm1299_vm3, %v1291_v55, %v2351_v53  ;;  %v1301_v60 = vsel %vm1299_vm3, %v1292_v56, %v2352_v52  ;;  %v584_v55 = vld [vmem:[%s2831_s17 + $0x8] sm:$0xff] }
 0x230   : > { %v2365_v46 = vpop.permute.xlu0 %2364 }
 0x231   : > { %v2367_v0 = vunpack.i.h.bf16 %v2365_v46  ;;  %v2366_v1 = vunpack.i.l.bf16 %v2365_v46  ;;  %v586_v46 = vld [vmem:[%s2831_s17 + $0x18] sm:$0xff] }
 0x233   : > { %v1302_v7 = vsel %vm1299_vm3, %v1293_v38, %v2366_v1  ;;  %v1303_v8 = vsel %vm1299_vm3, %v1294_v3, %v2367_v0 }
 0x23f   : > { %v1174_v25 = vpop.f32.mrf.mxu3 }
 0x240   : > { %v2380_v2 = vpop.permute.xlu0 %2379 }
 0x241   : > { %v2382_v6 = vunpack.i.h.bf16 %v2380_v2  ;;  %v2381_v12 = vunpack.i.l.bf16 %v2380_v2 }
 0x243   : > { %v1304_v17 = vsel %vm1299_vm3, %v1295_v62, %v2381_v12  ;;  %v1305_v18 = vsel %vm1299_vm3, %v1296_v13, %v2382_v6  ;;  %v590_v12 = vld [vmem:[%s2831_s17 + $0x38] sm:$0xff]  ;;  %v2460_v62 = vmov 32.0  }
 0x244   : > { %2414 = vrcp.f32 %v2460_v62 }
 0x247   : > { %v1176_v29 = vpop.f32.mrf.mxu3 }
 0x248   : > { %v2353_v32 = vpack.i.bf16 %v1176_v29, %v1174_v25 }
 0x24a   : > { %2354 = vrot.lane.b32.xlu1 %v2353_v32, %s2459_s20  ;;  %v2390_v32 = vpop.permute.xlu2 %2389 }
 0x24b   : > { %v2391_v27 = vunpack.i.l.bf16 %v2390_v32 }
 0x24f   : > { %v1179_v34 = vpop.f32.mrf.mxu3 }
 0x257   : > { %v1181_v35 = vpop.f32.mrf.mxu3 }
 0x258   : > { %v2368_v36 = vpack.i.bf16 %v1181_v35, %v1179_v34  ;;  %v2395_v34 = vpop.permute.xlu0 %2394  ;;  %v2392_v35 = vunpack.i.h.bf16 %v2390_v32 }
 0x259   : > { %v2396_v24 = vunpack.i.l.bf16 %v2395_v34 }
 0x25a   : > { %2369 = vrot.lane.b32.xlu1 %v2368_v36, %s2459_s20  ;;  %v2397_v36 = vunpack.i.h.bf16 %v2395_v34 }
 0x25f   : > { %v1184_v39 = vpop.f32.mrf.mxu3 }
 0x267   : > { %v1186_v28 = vpop.f32.mrf.mxu3 }
 0x268   : > { %v2383_v41 = vpack.i.bf16 %v1186_v28, %v1184_v39  ;;  %v1298_v39 = vsel %vm1290_vm2, %v2753_v33, %v2392_v35  ;;  %v1297_v28 = vsel %vm1290_vm2, %v2751_v31, %v2391_v27  ;;  %v2407_v33 = vld [vmem:[%s3139_s7] ss:$0 sm:$0xff] }
 0x26a   : > { %2384 = vrot.lane.b32.xlu1 %v2383_v41, %s2459_s20 }
 0x26f   : > { %v1189_v30 = vpop.f32.mrf.mxu3 }
 0x277   : > { %v1191_v43 = vpop.f32.mrf.mxu3 }
 0x278   : > { %v2398_v44 = vpack.i.bf16 %v1191_v43, %v1189_v30  ;;  %v1306_v43 = vsel %vm1299_vm3, %v1297_v28, %v2396_v24 }
 0x27a   : > { %2399 = vrot.lane.b32.xlu1 %v2398_v44, %s2459_s20  ;;  %v1307_v44 = vsel %vm1299_vm3, %v1298_v39, %v2397_v36 }
 0x2bc   : > { %v2355_v54 = vpop.permute.xlu1 %2354 }
 0x2bd   : > { %v2357_v58 = vunpack.i.h.bf16 %v2355_v54  ;;  %v2356_v9 = vunpack.i.l.bf16 %v2355_v54 }
 0x2bf   : > { %v1310_v61 = vsel %vm1308_vm4, %v1301_v60, %v2357_v58  ;;  %v1309_v40 = vsel %vm1308_vm4, %v1300_v59, %v2356_v9  ;;  %v585_v60 = vld [vmem:[%s2831_s17 + $0x10] sm:$0xff] }
 0x2c0   : > { %v1317_v50 = vpack.c.bf16 %v1310_v61, %v1309_v40 }
 0x2c2   : > { %2248 = vmatmul.msk.bf16.vlgmr.msra.gmra.mxu0 %vm631_vm0, %v1317_v50 }
 0x2cc   : > { %v2370_v26 = vpop.permute.xlu1 %2369 }
 0x2cd   : > { %v2372_v4 = vunpack.i.h.bf16 %v2370_v26  ;;  %v2371_v5 = vunpack.i.l.bf16 %v2370_v26  ;;  %v587_v26 = vld [vmem:[%s2831_s17 + $0x20] sm:$0xff] }
 0x2cf   : > { %v1311_v23 = vsel %vm1308_vm4, %v1302_v7, %v2371_v5  ;;  %v1312_v57 = vsel %vm1308_vm4, %v1303_v8, %v2372_v4  ;;  %v588_v7 = vld [vmem:[%s2831_s17 + $0x28] sm:$0xff] }
 0x2d0   : > { %v1318_v10 = vpack.c.bf16 %v1312_v57, %v1311_v23 }
 0x2d2   : > { %2249 = vmatmul.msk.bf16.gmra.mxu0 %vm631_vm0, %v1318_v10 }
 0x2dc   : > { %v2385_v20 = vpop.permute.xlu1 %2384 }
 0x2dd   : > { %v2387_v14 = vunpack.i.h.bf16 %v2385_v20  ;;  %v2386_v15 = vunpack.i.l.bf16 %v2385_v20 }
 0x2df   : > { %v1313_v22 = vsel %vm1308_vm4, %v1304_v17, %v2386_v15  ;;  %v1314_v25 = vsel %vm1308_vm4, %v1305_v18, %v2387_v14  ;;  %v2415_v14 = vpop.eup %2414 }
 0x2e0   : > { %v1319_v29 = vpack.c.bf16 %v1314_v25, %v1313_v22  ;;  %v1415_v15 = vmul.f32 32.0, %v2415_v14  ;;  %vm1419_vm5 = vweird.f32 %v2415_v14 }
 0x2e2   : > { %2250 = vmatmul.msk.bf16.gmra.mxu0 %vm631_vm0, %v1319_v29  ;;  %v1416_v17 = vsub.f32 1.0, %v1415_v15 }
 0x2e4   : > { %v1417_v18 = vmul.f32 %v2415_v14, %v1416_v17 }
 0x2e6   : > { %v1418_v22 = vadd.f32 %v2415_v14, %v1417_v18 }
 0x2e8   : > { %v2850_v25 = vsel %vm1419_vm5, %v2415_v14, %v1418_v22 }
 0x2ec   : > { %v2400_v37 = vpop.permute.xlu1 %2399 }
 0x2ed   : > { %v2402_v41 = vunpack.i.h.bf16 %v2400_v37  ;;  %v2401_v30 = vunpack.i.l.bf16 %v2400_v37 }
 0x2ef   : > { %v1315_v45 = vsel %vm1308_vm4, %v1306_v43, %v2401_v30  ;;  %v1316_v47 = vsel %vm1308_vm4, %v1307_v44, %v2402_v41 }
 0x2f0   : > { %v1320_v48 = vpack.c.bf16 %v1316_v47, %v1315_v45 }
 0x2f2   : > { %2251 = vmatmul.msk.bf16.gmra.mxu0 %vm631_vm0, %v1320_v48 }
 0x33f   : > { %v1362_v31 = vpop.f32.mrf.mxu0 }
 0x340   : > { %v1363_v51 = vadd.f32 %v2407_v33, %v1362_v31 }
 0x342   : > { %v1382_v52 = vadd.f32 %v1363_v51, %v583_v49 }
 0x344   : > { %v1390_v53 = vsel %vm631_vm0, %v1382_v52, 0.0 }
 0x345   : > { %1391 = vadd.xlane.f32.xlu2 %v1390_v53 }
 0x347   : > { %v1364_v54 = vpop.f32.mrf.mxu0 }
 0x348   : > { %v1365_v56 = vadd.f32 %v2407_v33, %v1364_v54 }
 0x34a   : > { %v1383_v58 = vadd.f32 %v1365_v56, %v584_v55 }
 0x34c   : > { %v1393_v9 = vsel %vm631_vm0, %v1383_v58, 0.0 }
 0x34d   : > { %1394 = vadd.xlane.f32.xlu0 %v1393_v9 }
 0x34f   : > { %v1367_v59 = vpop.f32.mrf.mxu0 }
 0x350   : > { %v1368_v61 = vadd.f32 %v2407_v33, %v1367_v59 }
 0x352   : > { %v1384_v40 = vadd.f32 %v1368_v61, %v585_v60 }
 0x354   : > { %v1396_v50 = vsel %vm631_vm0, %v1384_v40, 0.0 }
 0x355   : > { %1397 = vadd.xlane.f32.xlu1 %v1396_v50 }
 0x357   : > { %v1369_v63 = vpop.f32.mrf.mxu0 }
 0x358   : > { %v1370_v16 = vadd.f32 %v2407_v33, %v1369_v63 }
 0x35a   : > { %v1385_v19 = vadd.f32 %v1370_v16, %v586_v46 }
 0x35c   : > { %v1399_v0 = vsel %vm631_vm0, %v1385_v19, 0.0 }
 0x35d   : > { %1400 = vadd.xlane.f32.xlu2 %v1399_v0 }
 0x35f   : > { %v1372_v1 = vpop.f32.mrf.mxu0 }
 0x360   : > { %v1373_v3 = vadd.f32 %v2407_v33, %v1372_v1 }
 0x362   : > { %v1386_v38 = vadd.f32 %v1373_v3, %v587_v26  ;;  %v2317_v26 = vld [vmem:[%s3142_s10] sm:$0xff] }
 0x364   : > { %v1402_v4 = vsel %vm631_vm0, %v1386_v38, 0.0 }
 0x365   : > { %1403 = vadd.xlane.f32.xlu2 %v1402_v4 }
 0x367   : > { %v1374_v5 = vpop.f32.mrf.mxu0 }
 0x368   : > { %v1375_v8 = vadd.f32 %v2407_v33, %v1374_v5 }
 0x36a   : > { %v1387_v23 = vadd.f32 %v1375_v8, %v588_v7 }
 0x36c   : > { %v1405_v57 = vsel %vm631_vm0, %v1387_v23, 0.0 }
 0x36d   : > { %1406 = vadd.xlane.f32.xlu0 %v1405_v57 }
 0x36f   : > { %v1377_v10 = vpop.f32.mrf.mxu0 }
 0x370   : > { %v1378_v2 = vadd.f32 %v2407_v33, %v1377_v10 }
 0x372   : > { %v1388_v11 = vadd.f32 %v1378_v2, %v589_v42 }
 0x374   : > { %v1408_v21 = vsel %vm631_vm0, %v1388_v11, 0.0 }
 0x375   : > { %1409 = vadd.xlane.f32.xlu0 %v1408_v21 }
 0x377   : > { %v1379_v6 = vpop.f32.mrf.mxu0 }
 0x378   : > { %v1380_v20 = vadd.f32 %v2407_v33, %v1379_v6 }
 0x37a   : > { %v2848_v13 = vadd.f32 %v1380_v20, %v590_v12 }
 0x37c   : > { %v1411_v41 = vsel %vm631_vm0, %v2848_v13, 0.0 }
 0x3b8   : > { %v1392_v29 = vpop.xlane.xlu2 %1391 }
 0x3b9   : > { %v1421_v32 = vmul.f32 %v2850_v25, %v1392_v29 }
 0x3bb   : > { %v2853_v34 = vsub.f32 %v1382_v52, %v1421_v32 }
 0x3bd   : > { %v1437_v35 = vmul.f32 %v2853_v34, %v2853_v34 }
 0x3bf   : > { %v1445_v27 = vsel %vm631_vm0, %v1437_v35, 0.0 }
 0x3c0   : > { %v1395_v36 = vpop.xlane.xlu0 %1394  ;;  %1446 = vadd.xlane.f32.xlu1 %v1445_v27 }
 0x3c1   : > { %v1422_v24 = vmul.f32 %v2850_v25, %v1395_v36  ;;  %v2916_v36 = vld [vmem:[%s3140_s8] ss:$0 sm:$0xff] }
 0x3c3   : > { %v2859_v37 = vsub.f32 %v1383_v58, %v1422_v24 }
 0x3c5   : > { %v1438_v39 = vmul.f32 %v2859_v37, %v2859_v37 }
 0x3c7   : > { %v1448_v28 = vsel %vm631_vm0, %v1438_v39, 0.0 }
 0x3c8   : > { %v1398_v30 = vpop.xlane.xlu1 %1397  ;;  %1449 = vadd.xlane.f32.xlu2 %v1448_v28  ;;  %1412 = vadd.xlane.f32.xlu1 %v1411_v41 }
 0x3c9   : > { %v1423_v43 = vmul.f32 %v2850_v25, %v1398_v30 }
 0x3cb   : > { %v2867_v44 = vsub.f32 %v1384_v40, %v1423_v43 }
 0x3cd   : > { %v1439_v45 = vmul.f32 %v2867_v44, %v2867_v44 }
 0x3cf   : > { %v1451_v47 = vsel %vm631_vm0, %v1439_v45, 0.0  ;;  %v2922_v45 = vld [vmem:[%s3141_s9] ss:$0 sm:$0xff] }
 0x3d0   : > { %1452 = vadd.xlane.f32.xlu2 %v1451_v47  ;;  %v1401_v48 = vpop.xlane.xlu2 %1400 }
 0x3d1   : > { %v1424_v33 = vmul.f32 %v2850_v25, %v1401_v48 }
 0x3d3   : > { %v2873_v31 = vsub.f32 %v1385_v19, %v1424_v33  ;;  %v2318_v19 = vld [vmem:[%s3142_s10 + $0x8] sm:$0xff] }
 0x3d4   : > { %1639 = vmatpush.bf16.msra.mxu2 %v2318_v19 }
 0x3d5   : > { %v1440_v49 = vmul.f32 %v2873_v31, %v2873_v31 }
 0x3d7   : > { %v1454_v51 = vsel %vm631_vm0, %v1440_v49, 0.0 }
 0x3d8   : > { %1455 = vadd.xlane.f32.xlu0 %v1454_v51  ;;  %v1404_v52 = vpop.xlane.xlu2 %1403  ;;  %1640 = vmatpush.bf16.msra.mxu2 %v2317_v26 }
 0x3d9   : > { %v1425_v53 = vmul.f32 %v2850_v25, %v1404_v52 }
 0x3db   : > { %v2879_v54 = vsub.f32 %v1386_v38, %v1425_v53 }
 0x3dd   : > { %v1441_v55 = vmul.f32 %v2879_v54, %v2879_v54 }
 0x3df   : > { %v1457_v56 = vsel %vm631_vm0, %v1441_v55, 0.0 }
 0x3e0   : > { %v1407_v58 = vpop.xlane.xlu0 %1406  ;;  %1458 = vadd.xlane.f32.xlu1 %v1457_v56 }
 0x3e1   : > { %v1426_v9 = vmul.f32 %v2850_v25, %v1407_v58 }
 0x3e3   : > { %v2885_v59 = vsub.f32 %v1387_v23, %v1426_v9 }
 0x3e5   : > { %v1442_v60 = vmul.f32 %v2885_v59, %v2885_v59 }
 0x3e7   : > { %v1460_v61 = vsel %vm631_vm0, %v1442_v60, 0.0 }
 0x3e8   : > { %v1410_v40 = vpop.xlane.xlu0 %1409  ;;  %1461 = vadd.xlane.f32.xlu2 %v1460_v61 }
 0x3e9   : > { %v1427_v50 = vmul.f32 %v2850_v25, %v1410_v40 }
 0x3eb   : > { %v2891_v63 = vsub.f32 %v1388_v11, %v1427_v50 }
 0x3ed   : > { %v1443_v46 = vmul.f32 %v2891_v63, %v2891_v63 }
 0x3ef   : > { %v1463_v16 = vsel %vm631_vm0, %v1443_v46, 0.0 }
 0x3f0   : > { %1464 = vadd.xlane.f32.xlu0 %v1463_v16 }
 0x433   : > { %v1447_v0 = vpop.xlane.xlu1 %1446 }
 0x434   : > { %v1469_v1 = vmul.f32 %v1447_v0, %v2850_v25 }
 0x436   : > { %v1477_v3 = vadd.f32 1e-05, %v1469_v1 }
 0x438   : > { %2416 = vrsqrt.f32 %v1477_v3  ;;  %vm1491_vm7 = vweird.f32 %v1477_v3 }
 0x43b   : > { %v1413_v38 = vpop.xlane.xlu1 %1412  ;;  %v1450_v4 = vpop.xlane.xlu2 %1449 }
 0x43c   : > { %v1428_v5 = vmul.f32 %v2850_v25, %v1413_v38  ;;  %v1470_v7 = vmul.f32 %v1450_v4, %v2850_v25 }
 0x43e   : > { %v2417_v8 = vpop.eup %2416  ;;  %v2906_v23 = vsub.f32 %v2848_v13, %v1428_v5  ;;  %v1478_v57 = vadd.f32 1e-05, %v1470_v7 }
 0x43f   : > { %v1486_v10 = vmul.f32 %v2417_v8, %v1477_v3  ;;  %vm1492_vm6 = vweird.f32 %v2417_v8 }
 0x440   : > { %2418 = vrsqrt.f32 %v1478_v57  ;;  %v1444_v42 = vmul.f32 %v2906_v23, %v2906_v23  ;;  %vm1493_vm8 = vmor %vm1491_vm7, %vm1492_vm6  ;;  %vm1501_vm10 = vweird.f32 %v1478_v57 }
 0x441   : > { %v1487_v2 = vmul.f32 %v2417_v8, %v1486_v10 }
 0x442   : > { %v1466_v11 = vsel %vm631_vm0, %v1444_v42, 0.0 }
 0x443   : > { %v1488_v21 = vmul.f32 0.5, %v1487_v2  ;;  %1467 = vadd.xlane.f32.xlu1 %v1466_v11  ;;  %v1453_v6 = vpop.xlane.xlu2 %1452 }
 0x444   : > { %v1471_v12 = vmul.f32 %v1453_v6, %v2850_v25 }
 0x445   : > { %v1489_v20 = vsub.f32 1.5, %v1488_v21 }
 0x446   : > { %v2419_v62 = vpop.eup %2418  ;;  %v1479_v14 = vadd.f32 1e-05, %v1471_v12 }
 0x447   : > { %v1490_v15 = vmul.f32 %v2417_v8, %v1489_v20  ;;  %v1496_v13 = vmul.f32 %v2419_v62, %v1478_v57  ;;  %vm1502_vm9 = vweird.f32 %v2419_v62 }
 0x448   : > { %2420 = vrsqrt.f32 %v1479_v14  ;;  %vm1503_vm11 = vmor %vm1501_vm10, %vm1502_vm9  ;;  %vm1511_vm13 = vweird.f32 %v1479_v14 }
 0x449   : > { %v1497_v17 = vmul.f32 %v2419_v62, %v1496_v13  ;;  %v1494_v18 = vsel %vm1493_vm8, %v2417_v8, %v1490_v15 }
 0x44a   : > { %v1565_v24 = vmul.f32 %v1494_v18, %v2853_v34 }
 0x44b   : > { %v1498_v22 = vmul.f32 0.5, %v1497_v17  ;;  %v1456_v29 = vpop.xlane.xlu0 %1455 }
 0x44c   : > { %v1472_v32 = vmul.f32 %v1456_v29, %v2850_v25  ;;  %v1577_v47 = vmul.f32 %v2916_v36, %v1565_v24 }
 0x44d   : > { %v1499_v35 = vsub.f32 1.5, %v1498_v22 }
 0x44e   : > { %v2421_v27 = vpop.eup %2420  ;;  %v1480_v39 = vadd.f32 1e-05, %v1472_v32  ;;  %v2929_v55 = vadd.f32 %v2922_v45, %v1577_v47 }
 0x44f   : > { %v1500_v28 = vmul.f32 %v2419_v62, %v1499_v35  ;;  %v1506_v41 = vmul.f32 %v2421_v27, %v1479_v14  ;;  %vm1512_vm12 = vweird.f32 %v2421_v27 }
 0x450   : > { %2422 = vrsqrt.f32 %v1480_v39  ;;  %vm1513_vm14 = vmor %vm1511_vm13, %vm1512_vm12  ;;  %vm1521_vm2 = vweird.f32 %v1480_v39 }
 0x451   : > { %v1504_v30 = vsel %vm1503_vm11, %v2419_v62, %v1500_v28  ;;  %v1507_v43 = vmul.f32 %v2421_v27, %v1506_v41 }
 0x452   : > { %v1566_v48 = vmul.f32 %v1504_v30, %v2859_v37 }
 0x453   : > { %v1508_v33 = vmul.f32 0.5, %v1507_v43  ;;  %v1459_v49 = vpop.xlane.xlu1 %1458 }
 0x454   : > { %v1578_v34 = vmul.f32 %v2916_v36, %v1566_v48  ;;  %v1473_v51 = vmul.f32 %v1459_v49, %v2850_v25 }
 0x455   : > { %v1509_v52 = vsub.f32 1.5, %v1508_v33  ;;  %v2322_v33 = vld [vmem:[%s3144_s12 + $0x18] sm:$0xff] }
 0x456   : > { %v2423_v53 = vpop.eup %2422  ;;  %v2932_v56 = vadd.f32 %v2922_v45, %v1578_v34  ;;  %v1481_v58 = vadd.f32 1e-05, %v1473_v51  ;;  %1726 = vmatpush.bf16.msra.mxu1 %v2322_v33  ;;  %v2321_v34 = vld [vmem:[%s3144_s12 + $0x10] sm:$0xff] }
 0x457   : > { %v1510_v9 = vmul.f32 %v2421_v27, %v1509_v52  ;;  %v1516_v60 = vmul.f32 %v2423_v53, %v1480_v39  ;;  %vm1522_vm15 = vweird.f32 %v2423_v53 }
 0x458   : > { %2424 = vrsqrt.f32 %v1481_v58  ;;  %v1597_v37 = vpack.c.bf16 %v2932_v56, %v2929_v55  ;;  %vm1523_vm3 = vmor %vm1521_vm2, %vm1522_vm15  ;;  %vm1531_vm5 = vweird.f32 %v1481_v58 }
 0x459   : > { %v1517_v61 = vmul.f32 %v2423_v53, %v1516_v60  ;;  %v1514_v40 = vsel %vm1513_vm14, %v2421_v27, %v1510_v9 }
 0x45a   : > { %2260 = vmatmul.msk.bf16.vlgmr.msra.gmra.mxu2 %vm631_vm0, %v1597_v37  ;;  %v1567_v1 = vmul.f32 %v1514_v40, %v2867_v44  ;;  %1727 = vmatpush.bf16.msra.mxu1 %v2321_v34 }
 0x45b   : > { %v1518_v50 = vmul.f32 0.5, %v1517_v61  ;;  %v1462_v46 = vpop.xlane.xlu2 %1461  ;;  %v2319_v61 = vld [vmem:[%s3144_s12] sm:$0xff] }
 0x45c   : > { %v1474_v16 = vmul.f32 %v1462_v46, %v2850_v25  ;;  %v1579_v8 = vmul.f32 %v2916_v36, %v1567_v1 }
 0x45d   : > { %v1519_v19 = vsub.f32 1.5, %v1518_v50 }
 0x45e   : > { %v2425_v0 = vpop.eup %2424  ;;  %v1482_v26 = vadd.f32 1e-05, %v1474_v16  ;;  %v2943_v11 = vadd.f32 %v2922_v45, %v1579_v8 }
 0x45f   : > { %v1520_v3 = vmul.f32 %v2423_v53, %v1519_v19  ;;  %v1526_v38 = vmul.f32 %v2425_v0, %v1481_v58  ;;  %vm1532_vm4 = vweird.f32 %v2425_v0  ;;  %v2320_v58 = vld [vmem:[%s3144_s12 + $0x8] sm:$0xff] }
 0x460   : > { %2426 = vrsqrt.f32 %v1482_v26  ;;  %vm1533_vm6 = vmor %vm1531_vm5, %vm1532_vm4  ;;  %vm1541_vm8 = vweird.f32 %v1482_v26  ;;  %1728 = vmatpush.bf16.msra.mxu1 %v2320_v58 }
 0x461   : > { %v1524_v4 = vsel %vm1523_vm3, %v2423_v53, %v1520_v3  ;;  %v1527_v5 = vmul.f32 %v2425_v0, %v1526_v38 }
 0x462   : > { %v1568_v7 = vmul.f32 %v1524_v4, %v2873_v31 }
 0x463   : > { %v1528_v57 = vmul.f32 0.5, %v1527_v5 }
 0x464   : > { %v1580_v10 = vmul.f32 %v2916_v36, %v1568_v7  ;;  %1729 = vmatpush.bf16.msra.mxu1 %v2319_v61 }
 0x465   : > { %v1529_v42 = vsub.f32 1.5, %v1528_v57 }
 0x466   : > { %v2427_v2 = vpop.eup %2426  ;;  %v2946_v44 = vadd.f32 %v2922_v45, %v1580_v10 }
 0x467   : > { %v1530_v21 = vmul.f32 %v2425_v0, %v1529_v42  ;;  %v1536_v6 = vmul.f32 %v2427_v2, %v1482_v26  ;;  %vm1542_vm7 = vweird.f32 %v2427_v2 }
 0x468   : > { %v1598_v12 = vpack.c.bf16 %v2946_v44, %v2943_v11  ;;  %vm1543_vm9 = vmor %vm1541_vm8, %vm1542_vm7 }
 0x469   : > { %v1537_v31 = vmul.f32 %v2427_v2, %v1536_v6  ;;  %v1534_v20 = vsel %vm1533_vm6, %v2425_v0, %v1530_v21 }
 0x46a   : > { %2261 = vmatmul.msk.bf16.gmra.mxu2 %vm631_vm0, %v1598_v12  ;;  %v1569_v15 = vmul.f32 %v1534_v20, %v2879_v54  ;;  %v1465_v54 = vpop.xlane.xlu0 %1464 }
 0x46b   : > { %v1538_v62 = vmul.f32 0.5, %v1537_v31  ;;  %v1475_v24 = vmul.f32 %v1465_v54, %v2850_v25 }
 0x46c   : > { %v1581_v22 = vmul.f32 %v2916_v36, %v1569_v15 }
 0x46d   : > { %v1539_v14 = vsub.f32 1.5, %v1538_v62  ;;  %v1483_v39 = vadd.f32 1e-05, %v1475_v24 }
 0x46e   : > { %v2956_v32 = vadd.f32 %v2922_v45, %v1581_v22 }
 0x46f   : > { %v1540_v13 = vmul.f32 %v2427_v2, %v1539_v14  ;;  %2428 = vrsqrt.f32 %v1483_v39  ;;  %vm1551_vm11 = vweird.f32 %v1483_v39 }
 0x471   : > { %v1544_v17 = vsel %vm1543_vm9, %v2427_v2, %v1540_v13 }
 0x472   : > { %v1570_v18 = vmul.f32 %v1544_v17, %v2885_v59 }
 0x474   : > { %v1582_v29 = vmul.f32 %v2916_v36, %v1570_v18 }
 0x475   : > { %v2429_v59 = vpop.eup %2428 }
 0x476   : > { %v2959_v35 = vadd.f32 %v2922_v45, %v1582_v29  ;;  %v1546_v28 = vmul.f32 %v2429_v59, %v1483_v39  ;;  %vm1552_vm10 = vweird.f32 %v2429_v59 }
 0x477   : > { %vm1553_vm12 = vmor %vm1551_vm11, %vm1552_vm10 }
 0x478   : > { %v1599_v27 = vpack.c.bf16 %v2959_v35, %v2956_v32  ;;  %v1547_v41 = vmul.f32 %v2429_v59, %v1546_v28 }
 0x47a   : > { %2262 = vmatmul.msk.bf16.gmra.mxu2 %vm631_vm0, %v1599_v27  ;;  %v1548_v48 = vmul.f32 0.5, %v1547_v41 }
 0x47c   : > { %v1549_v49 = vsub.f32 1.5, %v1548_v48 }
 0x47e   : > { %v1550_v52 = vmul.f32 %v2429_v59, %v1549_v49 }
 0x480   : > { %v1554_v60 = vsel %vm1553_vm12, %v2429_v59, %v1550_v52  ;;  %v2411_v59 = vld [vmem:[%s3145_s13] ss:$0 sm:$0xff] }
 0x481   : > { %v1571_v50 = vmul.f32 %v1554_v60, %v2891_v63 }
 0x483   : > { %v1583_v0 = vmul.f32 %v2916_v36, %v1571_v50 }
 0x485   : > { %v2983_v26 = vadd.f32 %v2922_v45, %v1583_v0 }
 0x4b6   : > { %v1468_v30 = vpop.xlane.xlu1 %1467 }
 0x4b7   : > { %v1476_v43 = vmul.f32 %v1468_v30, %v2850_v25 }
 0x4b9   : > { %v1484_v47 = vadd.f32 1e-05, %v1476_v43 }
 0x4bb   : > { %2430 = vrsqrt.f32 %v1484_v47  ;;  %vm1561_vm14 = vweird.f32 %v1484_v47 }
 0x4c1   : > { %v2431_v51 = vpop.eup %2430 }
 0x4c2   : > { %v1556_v53 = vmul.f32 %v2431_v51, %v1484_v47  ;;  %vm1562_vm13 = vweird.f32 %v2431_v51 }
 0x4c3   : > { %vm1563_vm15 = vmor %vm1561_vm14, %vm1562_vm13 }
 0x4c4   : > { %v1557_v9 = vmul.f32 %v2431_v51, %v1556_v53 }
 0x4c6   : > { %v1558_v37 = vmul.f32 0.5, %v1557_v9 }
 0x4c8   : > { %v1559_v40 = vsub.f32 1.5, %v1558_v37 }
 0x4ca   : > { %v1560_v46 = vmul.f32 %v2431_v51, %v1559_v40 }
 0x4cc   : > { %v1564_v16 = vsel %vm1563_vm15, %v2431_v51, %v1560_v46 }
 0x4cd   : > { %v1572_v19 = vmul.f32 %v1564_v16, %v2906_v23  ;;  %v2410_v23 = vld [vmem:[%s3143_s11] ss:$0 sm:$0xff] }
 0x4cf   : > { %v1584_v1 = vmul.f32 %v2916_v36, %v1572_v19 }
 0x4d1   : > { %v2986_v3 = vadd.f32 %v2922_v45, %v1584_v1 }
 0x4d3   : > { %v1600_v63 = vpack.c.bf16 %v2986_v3, %v2983_v26 }
 0x4d5   : > { %2263 = vmatmul.msk.bf16.gmra.mxu2 %vm631_vm0, %v1600_v63 }
 0x4dd   : > { %v1642_v38 = vpop.f32.mrf.mxu2 }
 0x4de   : > { %v1643_v4 = vadd.f32 %v2410_v23, %v1642_v38 }
 0x4e0   : > { %v1662_v36 = vmax.f32 %v1643_v4, 0.0 }
 0x4e5   : > { %v1644_v5 = vpop.f32.mrf.mxu2 }
 0x4e6   : > { %v1645_v7 = vadd.f32 %v2410_v23, %v1644_v5 }
 0x4e8   : > { %v1663_v8 = vmax.f32 %v1645_v7, 0.0 }
 0x4ea   : > { %v1670_v57 = vpack.c.bf16 %v1663_v8, %v1662_v36 }
 0x4ec   : > { %2280 = vmatmul.msk.bf16.vlgmr.msra.gmra.mxu1 %vm753_vm1, %v1670_v57 }
 0x4ed   : > { %v1647_v45 = vpop.f32.mrf.mxu2 }
 0x4ee   : > { %v1648_v10 = vadd.f32 %v2410_v23, %v1647_v45 }
 0x4f0   : > { %v1664_v21 = vmax.f32 %v1648_v10, 0.0 }
 0x4f5   : > { %v1649_v42 = vpop.f32.mrf.mxu2 }
 0x4f6   : > { %v1650_v2 = vadd.f32 %v2410_v23, %v1649_v42 }
 0x4f8   : > { %v1665_v6 = vmax.f32 %v1650_v2, 0.0 }
 0x4fa   : > { %v1671_v12 = vpack.c.bf16 %v1665_v6, %v1664_v21 }
 0x4fc   : > { %2281 = vmatmul.msk.bf16.gmra.mxu1 %vm753_vm1, %v1671_v12 }
 0x4fd   : > { %v1652_v31 = vpop.f32.mrf.mxu2 }
 0x4fe   : > { %v1653_v20 = vadd.f32 %v2410_v23, %v1652_v31 }
 0x500   : > { %v1666_v15 = vmax.f32 %v1653_v20, 0.0 }
 0x505   : > { %v1654_v62 = vpop.f32.mrf.mxu2 }
 0x506   : > { %v1655_v14 = vadd.f32 %v2410_v23, %v1654_v62 }
 0x508   : > { %v1667_v13 = vmax.f32 %v1655_v14, 0.0 }
 0x50a   : > { %v1672_v17 = vpack.c.bf16 %v1667_v13, %v1666_v15 }
 0x50c   : > { %2282 = vmatmul.msk.bf16.gmra.mxu1 %vm753_vm1, %v1672_v17 }
 0x558   : > { %v1657_v18 = vpop.f32.mrf.mxu2 }
 0x559   : > { %v1658_v22 = vadd.f32 %v2410_v23, %v1657_v18 }
 0x55b   : > { %v1668_v54 = vmax.f32 %v1658_v22, 0.0 }
 0x560   : > { %v1659_v29 = vpop.f32.mrf.mxu2 }
 0x561   : > { %v1660_v27 = vadd.f32 %v2410_v23, %v1659_v29 }
 0x563   : > { %v1669_v24 = vmax.f32 %v1660_v27, 0.0 }
 0x565   : > { %v1673_v39 = vpack.c.bf16 %v1669_v24, %v1668_v54 }
 0x567   : > { %2283 = vmatmul.msk.bf16.gmra.mxu1 %vm753_vm1, %v1673_v39 }
 0x569   : > { %v1731_v28 = vpop.f32.mrf.mxu1 }
 0x56a   : > { %v1732_v41 = vadd.f32 %v2411_v59, %v1731_v28 }
 0x56c   : > { %v1751_v30 = vadd.f32 %v1732_v41, %v2929_v55 }
 0x56e   : > { %v1759_v43 = vsel %vm631_vm0, %v1751_v30, 0.0 }
 0x56f   : > { %1760 = vadd.xlane.f32.xlu2 %v1759_v43 }
 0x571   : > { %v1733_v47 = vpop.f32.mrf.mxu1 }
 0x572   : > { %v1734_v48 = vadd.f32 %v2411_v59, %v1733_v47 }
 0x574   : > { %v1752_v33 = vadd.f32 %v1734_v48, %v2932_v56 }
 0x576   : > { %v1762_v49 = vsel %vm631_vm0, %v1752_v33, 0.0 }
 0x577   : > { %1763 = vadd.xlane.f32.xlu0 %v1762_v49 }
 0x579   : > { %v1736_v34 = vpop.f32.mrf.mxu1 }
 0x57a   : > { %v1737_v51 = vadd.f32 %v2411_v59, %v1736_v34 }
 0x57c   : > { %v1753_v52 = vadd.f32 %v1737_v51, %v2943_v11 }
 0x57e   : > { %v1765_v53 = vsel %vm631_vm0, %v1753_v52, 0.0 }
 0x57f   : > { %1766 = vadd.xlane.f32.xlu1 %v1765_v53 }
 0x581   : > { %v1738_v58 = vpop.f32.mrf.mxu1 }
 0x582   : > { %v1739_v9 = vadd.f32 %v2411_v59, %v1738_v58 }
 0x584   : > { %v1754_v55 = vadd.f32 %v1739_v9, %v2946_v44 }
 0x586   : > { %v1768_v60 = vsel %vm631_vm0, %v1754_v55, 0.0 }
 0x587   : > { %1769 = vadd.xlane.f32.xlu2 %v1768_v60 }
 0x589   : > { %v1741_v37 = vpop.f32.mrf.mxu1 }
 0x58a   : > { %v1742_v61 = vadd.f32 %v2411_v59, %v1741_v37 }
 0x58c   : > { %v1755_v56 = vadd.f32 %v1742_v61, %v2956_v32 }
 0x58e   : > { %v1771_v40 = vsel %vm631_vm0, %v1755_v56, 0.0 }
 0x58f   : > { %1772 = vadd.xlane.f32.xlu0 %v1771_v40 }
 0x591   : > { %v1743_v50 = vpop.f32.mrf.mxu1 }
 0x592   : > { %v1744_v46 = vadd.f32 %v2411_v59, %v1743_v50 }
 0x594   : > { %v1756_v11 = vadd.f32 %v1744_v46, %v2959_v35 }
 0x596   : > { %v1774_v16 = vsel %vm631_vm0, %v1756_v11, 0.0 }
 0x597   : > { %1775 = vadd.xlane.f32.xlu1 %v1774_v16 }
 0x5e2   : > { %v1761_v19 = vpop.xlane.xlu2 %1760 }
 0x5e3   : > { %v1783_v44 = vmul.f32 %v1761_v19, %v2850_v25 }
 0x5e4   : > { %v1746_v0 = vpop.f32.mrf.mxu1 }
 0x5e5   : > { %v3014_v1 = vsub.f32 %v1751_v30, %v1783_v44  ;;  %v1747_v63 = vadd.f32 %v2411_v59, %v1746_v0  ;;  %v3071_v0 = vld [vmem:[%s3146_s14] ss:$0 sm:$0xff] }
 0x5e7   : > { %v1757_v38 = vadd.f32 %v1747_v63, %v2983_v26  ;;  %v1799_v32 = vmul.f32 %v3014_v1, %v3014_v1 }
 0x5e9   : > { %v1777_v23 = vsel %vm631_vm0, %v1757_v38, 0.0  ;;  %v1807_v4 = vsel %vm631_vm0, %v1799_v32, 0.0  ;;  %v3076_v32 = vld [vmem:[%s3147_s15] ss:$0 sm:$0xff] }
 0x5ea   : > { %v1764_v35 = vpop.xlane.xlu0 %1763  ;;  %1778 = vadd.xlane.f32.xlu2 %v1777_v23  ;;  %1808 = vadd.xlane.f32.xlu1 %v1807_v4 }
 0x5eb   : > { %v1784_v5 = vmul.f32 %v1764_v35, %v2850_v25 }
 0x5ec   : > { %v1748_v7 = vpop.f32.mrf.mxu1 }
 0x5ed   : > { %v3022_v36 = vsub.f32 %v1752_v33, %v1784_v5  ;;  %v1749_v8 = vadd.f32 %v2411_v59, %v1748_v7 }
 0x5ef   : > { %v1800_v57 = vmul.f32 %v3022_v36, %v3022_v36  ;;  %v1758_v26 = vadd.f32 %v1749_v8, %v2986_v3 }
 0x5f1   : > { %v1810_v45 = vsel %vm631_vm0, %v1800_v57, 0.0  ;;  %v1780_v10 = vsel %vm631_vm0, %v1758_v26, 0.0 }
 0x5f2   : > { %v1767_v42 = vpop.xlane.xlu1 %1766  ;;  %1811 = vadd.xlane.f32.xlu2 %v1810_v45  ;;  %1781 = vadd.xlane.f32.xlu0 %v1780_v10 }
 0x5f3   : > { %v1785_v2 = vmul.f32 %v1767_v42, %v2850_v25 }
 0x5f5   : > { %v3030_v21 = vsub.f32 %v1753_v52, %v1785_v2 }
 0x5f7   : > { %v1801_v6 = vmul.f32 %v3030_v21, %v3030_v21 }
 0x5f9   : > { %v1813_v12 = vsel %vm631_vm0, %v1801_v6, 0.0 }
 0x5fa   : > { %1814 = vadd.xlane.f32.xlu0 %v1813_v12  ;;  %v1770_v31 = vpop.xlane.xlu2 %1769 }
 0x5fb   : > { %v1786_v3 = vmul.f32 %v1770_v31, %v2850_v25 }
 0x5fd   : > { %v3036_v20 = vsub.f32 %v1754_v55, %v1786_v3 }
 0x5ff   : > { %v1802_v62 = vmul.f32 %v3036_v20, %v3036_v20 }
 0x601   : > { %v1816_v14 = vsel %vm631_vm0, %v1802_v62, 0.0 }
 0x602   : > { %v1773_v15 = vpop.xlane.xlu0 %1772  ;;  %1817 = vadd.xlane.f32.xlu1 %v1816_v14 }
 0x603   : > { %v1787_v13 = vmul.f32 %v1773_v15, %v2850_v25 }
 0x605   : > { %v3042_v17 = vsub.f32 %v1755_v56, %v1787_v13 }
 0x607   : > { %v1803_v18 = vmul.f32 %v3042_v17, %v3042_v17 }
 0x609   : > { %v1819_v22 = vsel %vm631_vm0, %v1803_v18, 0.0 }
 0x60a   : > { %v1776_v29 = vpop.xlane.xlu1 %1775  ;;  %1820 = vadd.xlane.f32.xlu2 %v1819_v22 }
 0x60b   : > { %v1788_v27 = vmul.f32 %v1776_v29, %v2850_v25 }
 0x60d   : > { %v3048_v54 = vsub.f32 %v1756_v11, %v1788_v27 }
 0x60f   : > { %v1804_v24 = vmul.f32 %v3048_v54, %v3048_v54 }
 0x611   : > { %v1822_v39 = vsel %vm631_vm0, %v1804_v24, 0.0 }
 0x612   : > { %1823 = vadd.xlane.f32.xlu0 %v1822_v39 }
 0x65d   : > { %v1809_v59 = vpop.xlane.xlu1 %1808  ;;  %v1779_v28 = vpop.xlane.xlu2 %1778 }
 0x65e   : > { %v1831_v41 = vmul.f32 %v1809_v59, %v2850_v25  ;;  %v1789_v30 = vmul.f32 %v1779_v28, %v2850_v25 }
 0x660   : > { %v1839_v43 = vadd.f32 1e-05, %v1831_v41  ;;  %v3055_v47 = vsub.f32 %v1757_v38, %v1789_v30 }
 0x662   : > { %2432 = vrsqrt.f32 %v1839_v43  ;;  %v1805_v48 = vmul.f32 %v3055_v47, %v3055_v47  ;;  %vm1853_vm2 = vweird.f32 %v1839_v43 }
 0x664   : > { %v1825_v33 = vsel %vm631_vm0, %v1805_v48, 0.0 }
 0x665   : > { %v1782_v49 = vpop.xlane.xlu0 %1781  ;;  %1826 = vadd.xlane.f32.xlu1 %v1825_v33  ;;  %v1812_v34 = vpop.xlane.xlu2 %1811 }
 0x666   : > { %v1790_v51 = vmul.f32 %v1782_v49, %v2850_v25  ;;  %v1832_v52 = vmul.f32 %v1812_v34, %v2850_v25 }
 0x668   : > { %v2433_v53 = vpop.eup %2432  ;;  %v3062_v58 = vsub.f32 %v1758_v26, %v1790_v51  ;;  %v1840_v9 = vadd.f32 1e-05, %v1832_v52 }
 0x669   : > { %v1848_v55 = vmul.f32 %v2433_v53, %v1839_v43  ;;  %vm1854_vm1 = vweird.f32 %v2433_v53 }
 0x66a   : > { %2434 = vrsqrt.f32 %v1840_v9  ;;  %v1806_v60 = vmul.f32 %v3062_v58, %v3062_v58  ;;  %vm1855_vm3 = vmor %vm1853_vm2, %vm1854_vm1  ;;  %vm1863_vm5 = vweird.f32 %v1840_v9 }
 0x66b   : > { %v1849_v37 = vmul.f32 %v2433_v53, %v1848_v55 }
 0x66c   : > { %v1828_v61 = vsel %vm631_vm0, %v1806_v60, 0.0 }
 0x66d   : > { %v1850_v56 = vmul.f32 0.5, %v1849_v37  ;;  %1829 = vadd.xlane.f32.xlu2 %v1828_v61  ;;  %v1815_v40 = vpop.xlane.xlu0 %1814 }
 0x66e   : > { %v1833_v50 = vmul.f32 %v1815_v40, %v2850_v25 }
 0x66f   : > { %v1851_v46 = vsub.f32 1.5, %v1850_v56 }
 0x670   : > { %v2435_v11 = vpop.eup %2434  ;;  %v1841_v16 = vadd.f32 1e-05, %v1833_v50 }
 0x671   : > { %v1852_v19 = vmul.f32 %v2433_v53, %v1851_v46  ;;  %v1858_v44 = vmul.f32 %v2435_v11, %v1840_v9  ;;  %vm1864_vm4 = vweird.f32 %v2435_v11 }
 0x672   : > { %2436 = vrsqrt.f32 %v1841_v16  ;;  %vm1865_vm6 = vmor %vm1863_vm5, %vm1864_vm4  ;;  %vm1873_vm8 = vweird.f32 %v1841_v16 }
 0x673   : > { %v1856_v63 = vsel %vm1855_vm3, %v2433_v53, %v1852_v19  ;;  %v1859_v38 = vmul.f32 %v2435_v11, %v1858_v44 }
 0x674   : > { %v1927_v23 = vmul.f32 %v1856_v63, %v3014_v1 }
 0x675   : > { %v1860_v4 = vmul.f32 0.5, %v1859_v38  ;;  %v1818_v35 = vpop.xlane.xlu1 %1817 }
 0x676   : > { %v1939_v5 = vmul.f32 %v3071_v0, %v1927_v23  ;;  %v1834_v7 = vmul.f32 %v1818_v35, %v2850_v25 }
 0x677   : > { %v1861_v8 = vsub.f32 1.5, %v1860_v4 }
 0x678   : > { %v2437_v57 = vpop.eup %2436  ;;  %v1951_v26 = vadd.f32 %v3076_v32, %v1939_v5  ;;  %v1842_v45 = vadd.f32 1e-05, %v1834_v7 }
 0x679   : > { %v1862_v10 = vmul.f32 %v2435_v11, %v1861_v8  ;;  %v1868_v1 = vmul.f32 %v2437_v57, %v1841_v16  ;;  %vm1874_vm7 = vweird.f32 %v2437_v57 }
 0x67a   : > { %1959 = vst.msk [vmem:[%s3085_s18] sm:$0xff] %vm631_vm0, %v1951_v26  ;;  %2438 = vrsqrt.f32 %v1842_v45  ;;  %vm1875_vm9 = vmor %vm1873_vm8, %vm1874_vm7  ;;  %vm1883_vm11 = vweird.f32 %v1842_v45 }
 0x67b   : > { %v1866_v42 = vsel %vm1865_vm6, %v2435_v11, %v1862_v10  ;;  %v1869_v2 = vmul.f32 %v2437_v57, %v1868_v1 }
 0x67c   : > { %v1928_v6 = vmul.f32 %v1866_v42, %v3022_v36 }
 0x67d   : > { %v1870_v12 = vmul.f32 0.5, %v1869_v2  ;;  %v1821_v31 = vpop.xlane.xlu2 %1820 }
 0x67e   : > { %v1940_v3 = vmul.f32 %v3071_v0, %v1928_v6  ;;  %v1835_v62 = vmul.f32 %v1821_v31, %v2850_v25 }
 0x67f   : > { %v1871_v14 = vsub.f32 1.5, %v1870_v12 }
 0x680   : > { %v2439_v15 = vpop.eup %2438  ;;  %v1952_v13 = vadd.f32 %v3076_v32, %v1940_v3  ;;  %v1843_v18 = vadd.f32 1e-05, %v1835_v62 }
 0x681   : > { %v1872_v22 = vmul.f32 %v2437_v57, %v1871_v14  ;;  %v1878_v29 = vmul.f32 %v2439_v15, %v1842_v45  ;;  %vm1884_vm10 = vweird.f32 %v2439_v15 }
 0x682   : > { %1960 = vst.msk [vmem:[%s3085_s18 + $0x8] sm:$0xff] %vm631_vm0, %v1952_v13  ;;  %2440 = vrsqrt.f32 %v1843_v18  ;;  %vm1885_vm12 = vmor %vm1883_vm11, %vm1884_vm10  ;;  %vm1893_vm14 = vweird.f32 %v1843_v18 }
 0x683   : > { %v1876_v36 = vsel %vm1875_vm9, %v2437_v57, %v1872_v22  ;;  %v1879_v27 = vmul.f32 %v2439_v15, %v1878_v29 }
 0x684   : > { %v1929_v24 = vmul.f32 %v1876_v36, %v3030_v21 }
 0x685   : > { %v1880_v39 = vmul.f32 0.5, %v1879_v27  ;;  %v1824_v59 = vpop.xlane.xlu0 %1823 }
 0x686   : > { %v1941_v28 = vmul.f32 %v3071_v0, %v1929_v24  ;;  %v1836_v41 = vmul.f32 %v1824_v59, %v2850_v25 }
 0x687   : > { %v1881_v30 = vsub.f32 1.5, %v1880_v39 }
 0x688   : > { %v2441_v43 = vpop.eup %2440  ;;  %v1953_v48 = vadd.f32 %v3076_v32, %v1941_v28  ;;  %v1844_v33 = vadd.f32 1e-05, %v1836_v41 }
 0x689   : > { %v1882_v49 = vmul.f32 %v2439_v15, %v1881_v30  ;;  %v1888_v34 = vmul.f32 %v2441_v43, %v1843_v18  ;;  %vm1894_vm13 = vweird.f32 %v2441_v43 }
 0x68a   : > { %1961 = vst.msk [vmem:[%s3085_s18 + $0x10] sm:$0xff] %vm631_vm0, %v1953_v48  ;;  %2442 = vrsqrt.f32 %v1844_v33  ;;  %vm1895_vm15 = vmor %vm1893_vm14, %vm1894_vm13  ;;  %vm1903_vm2 = vweird.f32 %v1844_v33 }
 0x68b   : > { %v1886_v21 = vsel %vm1885_vm12, %v2439_v15, %v1882_v49  ;;  %v1889_v51 = vmul.f32 %v2441_v43, %v1888_v34 }
 0x68c   : > { %v1930_v52 = vmul.f32 %v1886_v21, %v3036_v20 }
 0x68d   : > { %v1890_v53 = vmul.f32 0.5, %v1889_v51 }
 0x68e   : > { %v1942_v9 = vmul.f32 %v3071_v0, %v1930_v52 }
 0x68f   : > { %v1891_v55 = vsub.f32 1.5, %v1890_v53 }
 0x690   : > { %v2443_v60 = vpop.eup %2442  ;;  %v1954_v37 = vadd.f32 %v3076_v32, %v1942_v9 }
 0x691   : > { %v1892_v61 = vmul.f32 %v2441_v43, %v1891_v55  ;;  %v1898_v56 = vmul.f32 %v2443_v60, %v1844_v33  ;;  %vm1904_vm1 = vweird.f32 %v2443_v60 }
 0x692   : > { %1962 = vst.msk [vmem:[%s3085_s18 + $0x18] sm:$0xff] %vm631_vm0, %v1954_v37  ;;  %vm1905_vm3 = vmor %vm1903_vm2, %vm1904_vm1 }
 0x693   : > { %v1896_v40 = vsel %vm1895_vm15, %v2441_v43, %v1892_v61  ;;  %v1899_v50 = vmul.f32 %v2443_v60, %v1898_v56 }
 0x694   : > { %v1931_v20 = vmul.f32 %v1896_v40, %v3042_v17 }
 0x695   : > { %v1900_v46 = vmul.f32 0.5, %v1899_v50 }
 0x696   : > { %v1943_v11 = vmul.f32 %v3071_v0, %v1931_v20 }
 0x697   : > { %v1901_v16 = vsub.f32 1.5, %v1900_v46 }
 0x698   : > { %v1955_v19 = vadd.f32 %v3076_v32, %v1943_v11 }
 0x699   : > { %v1902_v44 = vmul.f32 %v2443_v60, %v1901_v16 }
 0x69a   : > { %1963 = vst.msk [vmem:[%s3085_s18 + $0x20] sm:$0xff] %vm631_vm0, %v1955_v19 }
 0x69b   : > { %v1906_v63 = vsel %vm1905_vm3, %v2443_v60, %v1902_v44 }
 0x69c   : > { %v1932_v38 = vmul.f32 %v1906_v63, %v3048_v54 }
 0x69e   : > { %v1944_v23 = vmul.f32 %v3071_v0, %v1932_v38 }
 0x6a0   : > { %v1956_v4 = vadd.f32 %v3076_v32, %v1944_v23 }
 0x6a2   : > { %1964 = vst.msk [vmem:[%s3085_s18 + $0x28] sm:$0xff] %vm631_vm0, %v1956_v4 }
 0x6d8   : > { %v1827_v17 = vpop.xlane.xlu1 %1826 }
 0x6d9   : > { %v1837_v35 = vmul.f32 %v1827_v17, %v2850_v25 }
 0x6db   : > { %v1845_v5 = vadd.f32 1e-05, %v1837_v35 }
 0x6dd   : > { %2444 = vrsqrt.f32 %v1845_v5  ;;  %vm1913_vm5 = vweird.f32 %v1845_v5 }
 0x6e0   : > { %v1830_v7 = vpop.xlane.xlu2 %1829 }
 0x6e1   : > { %v1838_v8 = vmul.f32 %v1830_v7, %v2850_v25 }
 0x6e3   : > { %v2445_v57 = vpop.eup %2444  ;;  %v1846_v26 = vadd.f32 1e-05, %v1838_v8 }
 0x6e4   : > { %v1908_v45 = vmul.f32 %v2445_v57, %v1845_v5  ;;  %vm1914_vm4 = vweird.f32 %v2445_v57 }
 0x6e5   : > { %2446 = vrsqrt.f32 %v1846_v26  ;;  %vm1915_vm6 = vmor %vm1913_vm5, %vm1914_vm4  ;;  %vm1923_vm8 = vweird.f32 %v1846_v26 }
 0x6e6   : > { %v1909_v10 = vmul.f32 %v2445_v57, %v1908_v45 }
 0x6e8   : > { %v1910_v54 = vmul.f32 0.5, %v1909_v10 }
 0x6ea   : > { %v1911_v1 = vsub.f32 1.5, %v1910_v54 }
 0x6eb   : > { %v2447_v42 = vpop.eup %2446 }
 0x6ec   : > { %v1912_v2 = vmul.f32 %v2445_v57, %v1911_v1  ;;  %v1918_v6 = vmul.f32 %v2447_v42, %v1846_v26  ;;  %vm1924_vm7 = vweird.f32 %v2447_v42 }
 0x6ed   : > { %vm1925_vm9 = vmor %vm1923_vm8, %vm1924_vm7 }
 0x6ee   : > { %v1916_v12 = vsel %vm1915_vm6, %v2445_v57, %v1912_v2  ;;  %v1919_v31 = vmul.f32 %v2447_v42, %v1918_v6 }
 0x6ef   : > { %v1933_v3 = vmul.f32 %v1916_v12, %v3055_v47 }
 0x6f0   : > { %v1920_v25 = vmul.f32 0.5, %v1919_v31 }
 0x6f1   : > { %v1945_v62 = vmul.f32 %v3071_v0, %v1933_v3 }
 0x6f2   : > { %v1921_v14 = vsub.f32 1.5, %v1920_v25 }
 0x6f3   : > { %v1957_v15 = vadd.f32 %v3076_v32, %v1945_v62 }
 0x6f4   : > { %v1922_v13 = vmul.f32 %v2447_v42, %v1921_v14 }
 0x6f5   : > { %1965 = vst.msk [vmem:[%s3085_s18 + $0x30] sm:$0xff] %vm631_vm0, %v1957_v15 }
 0x6f6   : > { %v1926_v18 = vsel %vm1925_vm9, %v2447_v42, %v1922_v13 }
 0x6f7   : > { %v1934_v22 = vmul.f32 %v1926_v18, %v3062_v58 }
 0x6f9   : > { %v1946_v29 = vmul.f32 %v3071_v0, %v1934_v22 }
 0x6fb   : > { %v1958_v36 = vadd.f32 %v3076_v32, %v1946_v29 }
 0x6fd   : > { %1966 = vst.msk [vmem:[%s3085_s18 + $0x38] sm:$0xff] %vm631_vm0, %v1958_v36 }
 0x6fe PF: > { %s26_s21 = sadd.s32 1, %s2454_s21  }
 0x6ff   : > { %p23_p4 = scmp.ge.s32.totalorder %s26_s21, 4  }
 0x701   :  { %25 = sbr.rel (!%p23_p4) target bundleno = 2 (0x2), region = 132 }

// kernel: run.13
= control target key start
LH: loop header
LB: loop body
LE: loop exit
PB: predicated region body
PF: predicated region fallthrough
CT: control target
= control target key end

     0   :  { %s1705_s21 = smov 0   ;;  %s1958_s0 = inlined_call_operand.vmem [shape: f32[2,16,32], index: 0, kind: input, shape index: {}]   ;;  %s1959_s1 = inlined_call_operand.vmem [shape: f32[2,64,32], index: 1, kind: input, shape index: {}]   ;;  %s1960_s2 = inlined_call_operand.vmem [shape: f32[2,64,1], index: 2, kind: input, shape index: {}]   ;;  %s1961_s3 = inlined_call_operand.vmem [shape: bf16[2,4,16,64], index: 3, kind: input, shape index: {}]   ;;  %s1962_s4 = inlined_call_operand.vmem [shape: bf16[4,32,8], index: 4, kind: input, shape index: {}]   ;;  %s1963_s5 = inlined_call_operand.vmem [shape: f32[4,1,8], index: 5, kind: input, shape index: {}]   ;;  %s1964_s6 = inlined_call_operand.vmem [shape: bf16[32,32], index: 6, kind: input, shape index: {}]   ;;  %s1965_s7 = inlined_call_operand.vmem [shape: f32[1,32], index: 7, kind: input, shape index: {}]   ;;  %s1966_s8 = inlined_call_operand.vmem [shape: f32[1,32], index: 8, kind: input, shape index: {}]   ;;  %s1967_s9 = inlined_call_operand.vmem [shape: f32[1,32], index: 9, kind: input, shape index: {}]   ;;  %s1968_s10 = inlined_call_operand.vmem [shape: bf16[32,64], index: 10, kind: input, shape index: {}]   ;;  %s1969_s11 = inlined_call_operand.vmem [shape: f32[1,64], index: 11, kind: input, shape index: {}]   ;;  %s1970_s12 = inlined_call_operand.vmem [shape: bf16[64,32], index: 12, kind: input, shape index: {}]   ;;  %s1971_s13 = inlined_call_operand.vmem [shape: f32[1,32], index: 13, kind: input, shape index: {}]   ;;  %s1972_s14 = inlined_call_operand.vmem [shape: f32[1,32], index: 14, kind: input, shape index: {}]   ;;  %s1973_s15 = inlined_call_operand.vmem [shape: f32[1,32], index: 15, kind: input, shape index: {}]   ;;  %s1974_s16 = inlined_call_operand.vmem [shape: f32[2,16,32], index: 16, kind: output, shape index: {}]  }
   0x1   :  { %1975 = sst [smem:[#allocation2_spill]] %s1958_s0 }
   0x2 LB: > { %s1389_s22 = sadd.s32 4294967295, %s1613_s21   ;;  %p1393_p0 = scmp.ge.s32.totalorder %s1613_s21, 1  ;;  %s1613_s21 = sphi %s1705_s21, %s26_s21  }
   0x3   : > { %p492_p1 = scmp.lt.s32.totalorder %s1613_s21, 3 }
   0x5   : > { %p493_p2 = pnand %p1393_p0, %p492_p1 }
   0x6   : > { %p557_p3 = scmp.lt.s32.totalorder (!%p493_p2), %s1389_s22, 1 }
   0x7   : > { %496 = sbr.rel (%p493_p2) target bundleno = 1891 (0x763), region = 84 }
   0xc   : > { %v1536_v0 = vld [vmem:[%s1962_s4 + $0x8] sm:$0xff]  ;;  %v1539_v1 = vld [vmem:[%s1962_s4 + $0x18] sm:$0xff]  ;;  %v1615_v2 = vmov 0   ;;  %v1535_v3 = vld [vmem:[%s1962_s4] sm:$0xff]  ;;  %s1978_s22 = smov (!%p557_p3, %s1389_s22), 1  ;;  %vm625_vm0 = vcmask 261120  }
   0xd   : > { %1568 = vset.pattern.permute.xlu0 %v1615_v2  ;;  %1569 = vset.pattern.permute.xlu1 %v1615_v2  ;;  %v1538_v4 = vld [vmem:[%s1962_s4 + $0x10] sm:$0xff]  ;;  %s1531_s0 = sshll.u32 %s1978_s22, 6  ;;  %v1586_v41 = vld [vmem:[%s1963_s5] ss:$0 sm:$0xff]  ;;  %v1587_v49 = vld [vmem:[%s1963_s5 + $0x1] ss:$0 sm:$0xff] }
   0xe   : > { %644 = vmatpush.bf16.msra.mxu0 %v1536_v0  ;;  %772 = vmatpush.bf16.msra.mxu2 %v1539_v1  ;;  %s571_s19 = scalar_lea.vmem %s1960_s2, %s1531_s0  ;;  %s1734_s24 = scalar_lea.vmem %s1959_s1, %s1531_s0  ;;  %vm726_vm1 = vcmask 523264   ;;  %vm1032_vm2 = vcmask 64512   ;;  %vm1035_vm3 = vcmask 130048   ;;  %vm1038_vm4 = vcmask 195584  }
   0xf   : > { %1570 = vset.pattern.permute.xlu2 %v1615_v2  ;;  %v599_v5 = vld [vmem:[%s571_s19 + $0x30] sm:$0xff]  ;;  %v585_v6 = vld [vmem:[%s1734_s24] sm:$0xff]  ;;  %v586_v7 = vld [vmem:[%s1734_s24 + $0x8] sm:$0xff]  ;;  %s1533_s29 = sshll.u32 %s1978_s22, 5  ;;  %s1617_s0 = smov 16  }
  0x10   : > { %699 = vperm.xlu0 %1568, %v599_v5   ;;  %v1738_v8 = vpack.c.bf16 %v586_v7, %v585_v6  ;;  %v597_v9 = vld [vmem:[%s571_s19 + $0x20] sm:$0xff]  ;;  %v600_v10 = vld [vmem:[%s571_s19 + $0x38] sm:$0xff]  ;;  %v598_v11 = vld [vmem:[%s571_s19 + $0x28] sm:$0xff]  ;;  %s1808_s17 = scalar_lea.vmem %s1961_s3, %s1533_s29 }
  0x11   : > { %689 = vperm.xlu1 %1569, %v597_v9   ;;  %v587_v12 = vld [vmem:[%s1734_s24 + $0x10] sm:$0xff]  ;;  %v588_v13 = vld [vmem:[%s1734_s24 + $0x18] sm:$0xff]  ;;  %v593_v14 = vld [vmem:[%s571_s19] sm:$0xff] }
  0x12   : > { %645 = vmatpush.bf16.msra.mxu0 %v1535_v3  ;;  %773 = vmatpush.bf16.msra.mxu2 %v1538_v4  ;;  %v1746_v15 = vpack.c.bf16 %v588_v13, %v587_v12  ;;  %v594_v16 = vld [vmem:[%s571_s19 + $0x8] sm:$0xff]  ;;  %v595_v17 = vld [vmem:[%s571_s19 + $0x10] sm:$0xff]  ;;  %v596_v18 = vld [vmem:[%s571_s19 + $0x18] sm:$0xff] }
  0x13   : > { %679 = vperm.xlu2 %1570, %v595_v17   ;;  %v589_v19 = vld [vmem:[%s1734_s24 + $0x20] sm:$0xff]  ;;  %v590_v20 = vld [vmem:[%s1734_s24 + $0x28] sm:$0xff]  ;;  %v591_v22 = vld [vmem:[%s1734_s24 + $0x30] sm:$0xff] }
  0x14   : > { %v1754_v21 = vpack.c.bf16 %v590_v20, %v589_v19  ;;  %v592_v23 = vld [vmem:[%s1734_s24 + $0x38] sm:$0xff]  ;;  %s1616_s24 = smov 8  }
  0x15   : > { %1412 = vmatmul.msk.bf16.vlgmr.msra.gmra.mxu0 %vm625_vm0, %v1738_v8  ;;  %1434 = vmatmul.msk.bf16.vlgmr.msra.gmra.mxu2 %vm625_vm0, %v1738_v8  ;;  %v1762_v24 = vpack.c.bf16 %v592_v23, %v591_v22 }
  0x18   : > { %704 = vperm.xlu0 %1568, %v600_v10  }
  0x19   : > { %694 = vperm.xlu1 %1569, %v598_v11  }
  0x1b   : > { %684 = vperm.xlu2 %1570, %v596_v18  }
  0x20   : > { %669 = vperm.xlu0 %1568, %v593_v14  }
  0x21   : > { %674 = vperm.xlu1 %1569, %v594_v16  }
  0x25   : > { %1413 = vmatmul.msk.bf16.gmra.mxu0 %vm625_vm0, %v1746_v15  ;;  %1435 = vmatmul.msk.bf16.gmra.mxu2 %vm625_vm0, %v1746_v15 }
  0x35   : > { %1414 = vmatmul.msk.bf16.gmra.mxu0 %vm625_vm0, %v1754_v21  ;;  %1436 = vmatmul.msk.bf16.gmra.mxu2 %vm625_vm0, %v1754_v21 }
  0x45   : > { %1415 = vmatmul.msk.bf16.gmra.mxu0 %vm625_vm0, %v1762_v24  ;;  %1437 = vmatmul.msk.bf16.gmra.mxu2 %vm625_vm0, %v1762_v24 }
  0x6d   : > { %v1772_v40 = vpop.permute.xlu2 %679 }
  0x75   : > { %v1787_v58 = vpop.permute.xlu2 %684 }
  0x82   : > { %v1770_v38 = vpop.permute.xlu0 %699 }
  0x83   : > { %v1768_v36 = vpop.permute.xlu1 %689 }
  0x8a   : > { %v1779_v46 = vpop.permute.xlu0 %704 }
  0x8b   : > { %v1777_v44 = vpop.permute.xlu1 %694 }
  0x92   : > { %v647_v25 = vpop.f32.mrf.mxu0  ;;  %v1796_v10 = vpop.permute.xlu0 %669 }
  0x93   : > { %v648_v5 = vadd.f32 %v1586_v41, %v647_v25  ;;  %v1793_v6 = vpop.permute.xlu1 %674 }
  0x95   : > { %v707_v19 = vmul.f32 %v1796_v10, %v648_v5 }
  0x98   : > { %v775_v26 = vpop.f32.mrf.mxu2 }
  0x99   : > { %v776_v18 = vadd.f32 %v1587_v49, %v775_v26  ;;  %v1542_v26 = vld [vmem:[%s1962_s4 + $0x28] sm:$0xff] }
  0x9a   : > { %v649_v27 = vpop.f32.mrf.mxu0 }
  0x9b   : > { %v650_v0 = vadd.f32 %v1586_v41, %v649_v27 }
  0x9d   : > { %v708_v17 = vmul.f32 %v1793_v6, %v650_v0 }
  0x9f   : > { %v717_v27 = vpack.c.bf16 %v708_v17, %v707_v19  ;;  %v1544_v17 = vld [vmem:[%s1962_s4 + $0x30] sm:$0xff] }
  0xa0   : > { %v777_v28 = vpop.f32.mrf.mxu2 }
  0xa1   : > { %v778_v20 = vadd.f32 %v1587_v49, %v777_v28  ;;  %v1537_v28 = vld [vmem:[%s1808_s17] sm:$0xff] }
  0xa2   : > { %v652_v29 = vpop.f32.mrf.mxu0 }
  0xa3   : > { %v653_v57 = vadd.f32 %v1586_v41, %v652_v29  ;;  %v795_v29 = vmul.f32 %v776_v18, %v1796_v10 }
  0xa5   : > { %v709_v9 = vmul.f32 %v1772_v40, %v653_v57 }
  0xa8   : > { %v780_v30 = vpop.f32.mrf.mxu2 }
  0xa9   : > { %v781_v7 = vadd.f32 %v1587_v49, %v780_v30  ;;  %v796_v30 = vmul.f32 %v778_v20, %v1793_v6 }
  0xaa   : > { %v654_v31 = vpop.f32.mrf.mxu0 }
  0xab   : > { %v655_v53 = vadd.f32 %v1586_v41, %v654_v31  ;;  %v797_v22 = vmul.f32 %v781_v7, %v1772_v40 }
  0xad   : > { %v710_v4 = vmul.f32 %v1787_v58, %v655_v53 }
  0xaf   : > { %v718_v16 = vpack.c.bf16 %v710_v4, %v709_v9 }
  0xb0   : > { %v782_v32 = vpop.f32.mrf.mxu2 }
  0xb1   : > { %v783_v11 = vadd.f32 %v1587_v49, %v782_v32  ;;  %v1541_v32 = vld [vmem:[%s1962_s4 + $0x20] sm:$0xff] }
  0xb2   : > { %v657_v33 = vpop.f32.mrf.mxu0 }
  0xb3   : > { %v658_v50 = vadd.f32 %v1586_v41, %v657_v33  ;;  %v798_v23 = vmul.f32 %v783_v11, %v1787_v58  ;;  %v806_v33 = vpack.c.bf16 %v796_v30, %v795_v29 }
  0xb5   : > { %v711_v60 = vmul.f32 %v1768_v36, %v658_v50  ;;  %v807_v31 = vpack.c.bf16 %v798_v23, %v797_v22 }
  0xb8   : > { %v785_v34 = vpop.f32.mrf.mxu2 }
  0xb9   : > { %v786_v61 = vadd.f32 %v1587_v49, %v785_v34  ;;  %v1540_v34 = vld [vmem:[%s1808_s17 + $0x8] sm:$0xff] }
  0xba   : > { %v659_v35 = vpop.f32.mrf.mxu0 }
  0xbb   : > { %v660_v47 = vadd.f32 %v1586_v41, %v659_v35  ;;  %v799_v12 = vmul.f32 %v786_v61, %v1768_v36 }
  0xbd   : > { %v712_v54 = vmul.f32 %v1777_v44, %v660_v47 }
  0xbf   : > { %v719_v1 = vpack.c.bf16 %v712_v54, %v711_v60 }
  0xc0   : > { %v787_v37 = vpop.f32.mrf.mxu2 }
  0xc1   : > { %v788_v62 = vadd.f32 %v1587_v49, %v787_v37 }
  0xc2   : > { %v662_v39 = vpop.f32.mrf.mxu0 }
  0xc3   : > { %v663_v43 = vadd.f32 %v1586_v41, %v662_v39  ;;  %v800_v13 = vmul.f32 %v788_v62, %v1777_v44 }
  0xc5   : > { %v713_v51 = vmul.f32 %v1770_v38, %v663_v43  ;;  %v808_v25 = vpack.c.bf16 %v800_v13, %v799_v12  ;;  %v1545_v13 = vld [vmem:[%s1962_s4 + $0x38] sm:$0xff] }
  0xc8   : > { %v790_v42 = vpop.f32.mrf.mxu2 }
  0xc9   : > { %v791_v55 = vadd.f32 %v1587_v49, %v790_v42 }
  0xca   : > { %v664_v45 = vpop.f32.mrf.mxu0 }
  0xcb   : > { %v665_v48 = vadd.f32 %v1586_v41, %v664_v45  ;;  %v801_v2 = vmul.f32 %v791_v55, %v1770_v38 }
  0xcd   : > { %v714_v52 = vmul.f32 %v1779_v46, %v665_v48 }
  0xcf   : > { %v720_v56 = vpack.c.bf16 %v714_v52, %v713_v51  ;;  %v1588_v52 = vld [vmem:[%s1963_s5 + $0x2] ss:$0 sm:$0xff] }
  0xd0   : > { %v792_v59 = vpop.f32.mrf.mxu2 }
  0xd1   : > { %v793_v63 = vadd.f32 %v1587_v49, %v792_v59  ;;  %734 = vmatpush.bf16.msra.mxu1 %v720_v56 }
  0xd3   : > { %v802_v3 = vmul.f32 %v793_v63, %v1779_v46 }
  0xd5   : > { %735 = vmatpush.bf16.msra.mxu1 %v719_v1  ;;  %v809_v14 = vpack.c.bf16 %v802_v3, %v801_v2 }
  0xd7   : > { %822 = vmatpush.bf16.msra.mxu3 %v809_v14 }
  0xd9   : > { %736 = vmatpush.bf16.msra.mxu1 %v718_v16  ;;  %v1543_v16 = vld [vmem:[%s1808_s17 + $0x10] sm:$0xff] }
  0xdb   : > { %823 = vmatpush.bf16.msra.mxu3 %v808_v25 }
  0xdd   : > { %737 = vmatpush.bf16.msra.mxu1 %v717_v27 }
  0xdf   : > { %824 = vmatpush.bf16.msra.mxu3 %v807_v31 }
  0xe0   : > { %1420 = vmatmul.msk.bf16.vlgmr.msra.gmra.mxu1 %vm726_vm1, %v1537_v28 }
  0xe1   : > { %860 = vmatpush.bf16.msrb.mxu1 %v1542_v26 }
  0xe3   : > { %825 = vmatpush.bf16.msra.mxu3 %v806_v33 }
  0xe5   : > { %861 = vmatpush.bf16.msrb.mxu1 %v1541_v32 }
  0xe6   : > { %1444 = vmatmul.msk.bf16.vlgmr.msra.gmra.mxu3 %vm726_vm1, %v1540_v34 }
  0xf0   : > { %1458 = vmatmul.msk.bf16.vlgmr.msrb.gmra.mxu1 %vm625_vm0, %v1738_v8 }
 0x100   : > { %1459 = vmatmul.msk.bf16.gmra.mxu1 %vm625_vm0, %v1746_v15 }
 0x110   : > { %1460 = vmatmul.msk.bf16.gmra.mxu1 %vm625_vm0, %v1754_v21 }
 0x120   : > { %1461 = vmatmul.msk.bf16.gmra.mxu1 %vm625_vm0, %v1762_v24 }
 0x15d   : > { %v1830_v35 = vpop.f32.mrf.mxu1 }
 0x165   : > { %v1832_v37 = vpop.f32.mrf.mxu1 }
 0x169   : > { %v827_v39 = vpop.f32.mrf.mxu3 }
 0x16d   : > { %v863_v41 = vpop.f32.mrf.mxu1 }
 0x16e   : > { %v864_v5 = vadd.f32 %v1588_v52, %v863_v41 }
 0x170   : > { %v883_v12 = vmul.f32 %v864_v5, %v1796_v10 }
 0x171   : > { %v829_v42 = vpop.f32.mrf.mxu3 }
 0x172   : > { %v1571_v43 = vpack.i.bf16 %v829_v42, %v827_v39 }
 0x174   : > { %1572 = vrot.lane.b32.xlu2 %v1571_v43, %s1616_s24  ;;  %s1618_s24 = smov 24  }
 0x175   : > { %v865_v45 = vpop.f32.mrf.mxu1 }
 0x176   : > { %v866_v2 = vadd.f32 %v1588_v52, %v865_v45 }
 0x178   : > { %v884_v9 = vmul.f32 %v866_v2, %v1793_v6 }
 0x17a   : > { %v894_v14 = vpack.c.bf16 %v884_v9, %v883_v12 }
 0x17d   : > { %v868_v47 = vpop.f32.mrf.mxu1 }
 0x17e   : > { %v869_v0 = vadd.f32 %v1588_v52, %v868_v47 }
 0x180   : > { %v885_v7 = vmul.f32 %v869_v0, %v1772_v40 }
 0x185   : > { %v870_v48 = vpop.f32.mrf.mxu1 }
 0x186   : > { %v871_v61 = vadd.f32 %v1588_v52, %v870_v48 }
 0x188   : > { %v886_v3 = vmul.f32 %v871_v61, %v1787_v58 }
 0x18a   : > { %v895_v11 = vpack.c.bf16 %v886_v3, %v885_v7  ;;  %v1590_v7 = vld [vmem:[%s1965_s7] ss:$0 sm:$0xff] }
 0x18d   : > { %v873_v49 = vpop.f32.mrf.mxu1 }
 0x18e   : > { %v874_v57 = vadd.f32 %v1588_v52, %v873_v49 }
 0x190   : > { %v887_v1 = vmul.f32 %v874_v57, %v1768_v36 }
 0x195   : > { %v875_v50 = vpop.f32.mrf.mxu1 }
 0x196   : > { %v876_v55 = vadd.f32 %v1588_v52, %v875_v50 }
 0x198   : > { %v888_v62 = vmul.f32 %v876_v55, %v1777_v44 }
 0x19a   : > { %v896_v4 = vpack.c.bf16 %v888_v62, %v887_v1 }
 0x19d   : > { %v878_v51 = vpop.f32.mrf.mxu1 }
 0x19e   : > { %v879_v53 = vadd.f32 %v1588_v52, %v878_v51 }
 0x1a0   : > { %v889_v59 = vmul.f32 %v879_v53, %v1770_v38 }
 0x1a5   : > { %v880_v54 = vpop.f32.mrf.mxu1 }
 0x1a6   : > { %v881_v56 = vadd.f32 %v1588_v52, %v880_v54  ;;  %v1546_v52 = vld [vmem:[%s1808_s17 + $0x18] sm:$0xff]  ;;  %s1530_s17 = sshll.u32 %s1978_s22, 4 }
 0x1a7   : > { %s581_s23 = scalar_lea.vmem %s1974_s16, %s1530_s17 }
 0x1a8   : > { %v890_v60 = vmul.f32 %v881_v56, %v1779_v46 }
 0x1aa   : > { %v897_v63 = vpack.c.bf16 %v890_v60, %v889_v59 }
 0x1ac   : > { %910 = vmatpush.bf16.msrb.mxu3 %v897_v63 }
 0x1b0   : > { %911 = vmatpush.bf16.msrb.mxu3 %v896_v4 }
 0x1b4   : > { %912 = vmatpush.bf16.msrb.mxu3 %v895_v11 }
 0x1b8   : > { %913 = vmatpush.bf16.msrb.mxu3 %v894_v14 }
 0x1bb   : > { %1468 = vmatmul.msk.bf16.vlgmr.msrb.gmra.mxu3 %vm726_vm1, %v1543_v16 }
 0x1bc   : > { %948 = vmatpush.bf16.msra.mxu3 %v1545_v13 }
 0x1c0   : > { %949 = vmatpush.bf16.msra.mxu3 %v1544_v17 }
 0x1cb   : > { %1482 = vmatmul.msk.bf16.vlgmr.msra.gmra.mxu3 %vm625_vm0, %v1738_v8 }
 0x1db   : > { %1483 = vmatmul.msk.bf16.gmra.mxu3 %vm625_vm0, %v1746_v15  ;;  %v1589_v15 = vld [vmem:[%s1963_s5 + $0x3] ss:$0 sm:$0xff] }
 0x1eb   : > { %1484 = vmatmul.msk.bf16.gmra.mxu3 %vm625_vm0, %v1754_v21 }
 0x1fb   : > { %1485 = vmatmul.msk.bf16.gmra.mxu3 %vm625_vm0, %v1762_v24 }
 0x23e   : > { %v915_v18 = vpop.f32.mrf.mxu3 }
 0x246   : > { %v917_v19 = vpop.f32.mrf.mxu3 }
 0x247   : > { %v1576_v20 = vpack.i.bf16 %v917_v19, %v915_v18  ;;  %v1619_v19 = vmov 32.0  }
 0x248   : > { %1597 = vrcp.f32 %v1619_v19 }
 0x249   : > { %1577 = vrot.lane.b32.xlu0 %v1576_v20, %s1617_s0  ;;  %s1976_s0 = sld [smem:[#allocation2_spill]] }
 0x24e   : > { %v951_v22 = vpop.f32.mrf.mxu3  ;;  %v1598_v20 = vpop.eup %1597 }
 0x24f   : > { %v952_v49 = vadd.f32 %v1589_v15, %v951_v22  ;;  %s561_s18 = scalar_lea.vmem %s1976_s0, %s1530_s17  ;;  %v1088_v22 = vmul.f32 32.0, %v1598_v20  ;;  %vm1092_vm5 = vweird.f32 %v1598_v20 }
 0x250   : > { %v584_v14 = vld [vmem:[%s561_s18 + $0x8] sm:$0xff] }
 0x251   : > { %v971_v51 = vmul.f32 %v952_v49, %v1796_v10  ;;  %v1573_v10 = vpop.permute.xlu2 %1572 }
 0x252   : > { %v1575_v55 = vunpack.i.h.bf16 %v1573_v10  ;;  %v1574_v56 = vunpack.i.l.bf16 %v1573_v10  ;;  %v1591_v10 = vld [vmem:[%s1966_s8] ss:$0 sm:$0xff] }
 0x254   : > { %v1033_v61 = vsel %vm1032_vm2, %v1830_v35, %v1574_v56  ;;  %v1034_v62 = vsel %vm1032_vm2, %v1832_v37, %v1575_v55  ;;  %v583_v37 = vld [vmem:[%s561_s18] sm:$0xff] }
 0x256   : > { %v953_v23 = vpop.f32.mrf.mxu3 }
 0x257   : > { %v954_v45 = vadd.f32 %v1589_v15, %v953_v23  ;;  %v1089_v23 = vsub.f32 1.0, %v1088_v22 }
 0x25e   : > { %v956_v25 = vpop.f32.mrf.mxu3 }
 0x25f   : > { %v957_v42 = vadd.f32 %v1589_v15, %v956_v25  ;;  %v1090_v25 = vmul.f32 %v1598_v20, %v1089_v23 }
 0x261   : > { %v973_v50 = vmul.f32 %v957_v42, %v1772_v40  ;;  %v1549_v42 = vld [vmem:[%s1968_s10] sm:$0xff] }
 0x266   : > { %v958_v26 = vpop.f32.mrf.mxu3 }
 0x267   : > { %v959_v34 = vadd.f32 %v1589_v15, %v958_v26  ;;  %v1091_v26 = vadd.f32 %v1598_v20, %v1090_v25 }
 0x269   : > { %v974_v47 = vmul.f32 %v959_v34, %v1787_v58  ;;  %v1550_v34 = vld [vmem:[%s1968_s10 + $0x8] sm:$0xff] }
 0x26e   : > { %v961_v27 = vpop.f32.mrf.mxu3 }
 0x26f   : > { %v962_v31 = vadd.f32 %v1589_v15, %v961_v27  ;;  %v1894_v27 = vsel %vm1092_vm5, %v1598_v20, %v1091_v26 }
 0x271   : > { %v975_v43 = vmul.f32 %v962_v31, %v1768_v36  ;;  %v1548_v36 = vld [vmem:[%s1964_s6 + $0x8] sm:$0xff] }
 0x272   : > { %1071 = vmatpush.bf16.msrb.mxu2 %v1548_v36 }
 0x276   : > { %v963_v8 = vpop.f32.mrf.mxu3 }
 0x277   : > { %v964_v30 = vadd.f32 %v1589_v15, %v963_v8 }
 0x279   : > { %v976_v39 = vmul.f32 %v964_v30, %v1777_v44 }
 0x27b   : > { %v984_v48 = vpack.c.bf16 %v976_v39, %v975_v43 }
 0x27e   : > { %v966_v28 = vpop.f32.mrf.mxu3 }
 0x27f   : > { %v967_v21 = vadd.f32 %v1589_v15, %v966_v28 }
 0x281   : > { %v977_v32 = vmul.f32 %v967_v21, %v1770_v38  ;;  %v972_v38 = vmul.f32 %v954_v45, %v1793_v6  ;;  %v1547_v6 = vld [vmem:[%s1964_s6] sm:$0xff] }
 0x282   : > { %1072 = vmatpush.bf16.msrb.mxu2 %v1547_v6 }
 0x283   : > { %v982_v44 = vpack.c.bf16 %v972_v38, %v971_v51 }
 0x286   : > { %v968_v29 = vpop.f32.mrf.mxu3 }
 0x287   : > { %v969_v24 = vadd.f32 %v1589_v15, %v968_v29 }
 0x289   : > { %v978_v33 = vmul.f32 %v969_v24, %v1779_v46  ;;  %v983_v46 = vpack.c.bf16 %v974_v47, %v973_v50 }
 0x28b   : > { %v985_v41 = vpack.c.bf16 %v978_v33, %v977_v32 }
 0x28d   : > { %998 = vmatpush.bf16.msrb.mxu0 %v985_v41 }
 0x291   : > { %999 = vmatpush.bf16.msrb.mxu0 %v984_v48 }
 0x295   : > { %1000 = vmatpush.bf16.msrb.mxu0 %v983_v46 }
 0x299   : > { %1001 = vmatpush.bf16.msrb.mxu0 %v982_v44 }
 0x29c   : > { %1492 = vmatmul.msk.bf16.vlgmr.msrb.gmra.mxu0 %vm726_vm1, %v1546_v52 }
 0x29d   : > { %1174 = vmatpush.bf16.msra.mxu0 %v1550_v34 }
 0x2a1   : > { %1175 = vmatpush.bf16.msra.mxu0 %v1549_v42 }
 0x2bb   : > { %v1578_v54 = vpop.permute.xlu0 %1577 }
 0x2bc   : > { %v1580_v57 = vunpack.i.h.bf16 %v1578_v54  ;;  %v1579_v59 = vunpack.i.l.bf16 %v1578_v54 }
 0x2be   : > { %v1037_v1 = vsel %vm1035_vm3, %v1034_v62, %v1580_v57  ;;  %v1036_v2 = vsel %vm1035_vm3, %v1033_v61, %v1579_v59  ;;  %v1592_v57 = vld [vmem:[%s1967_s9] ss:$0 sm:$0xff] }
 0x319   : > { %v1003_v58 = vpop.f32.mrf.mxu0 }
 0x321   : > { %v1005_v53 = vpop.f32.mrf.mxu0 }
 0x322   : > { %v1581_v40 = vpack.i.bf16 %v1005_v53, %v1003_v58 }
 0x324   : > { %1582 = vrot.lane.b32.xlu1 %v1581_v40, %s1618_s24 }
 0x396   : > { %v1583_v60 = vpop.permute.xlu1 %1582 }
 0x397   : > { %v1585_v63 = vunpack.i.h.bf16 %v1583_v60  ;;  %v1584_v0 = vunpack.i.l.bf16 %v1583_v60 }
 0x399   : > { %v1040_v3 = vsel %vm1038_vm4, %v1037_v1, %v1585_v63  ;;  %v1039_v4 = vsel %vm1038_vm4, %v1036_v2, %v1584_v0  ;;  %v1554_v1 = vld [vmem:[%s1970_s12 + $0x18] sm:$0xff]  ;;  %v1553_v2 = vld [vmem:[%s1970_s12 + $0x10] sm:$0xff] }
 0x39a   : > { %v1041_v5 = vpack.c.bf16 %v1040_v3, %v1039_v4  ;;  %1228 = vmatpush.bf16.msra.mxu2 %v1554_v1  ;;  %v1552_v3 = vld [vmem:[%s1970_s12 + $0x8] sm:$0xff]  ;;  %v1551_v4 = vld [vmem:[%s1970_s12] sm:$0xff] }
 0x39c   : > { %1501 = vmatmul.msk.bf16.vlgmr.msrb.gmra.mxu2 %vm625_vm0, %v1041_v5 }
 0x39e   : > { %1229 = vmatpush.bf16.msra.mxu2 %v1553_v2 }
 0x3a2   : > { %1230 = vmatpush.bf16.msra.mxu2 %v1552_v3 }
 0x3a6   : > { %1231 = vmatpush.bf16.msra.mxu2 %v1551_v4 }
 0x41f   : > { %v1074_v35 = vpop.f32.mrf.mxu2 }
 0x420   : > { %v1075_v9 = vadd.f32 %v1590_v7, %v1074_v35 }
 0x422   : > { %v1079_v11 = vadd.f32 %v1075_v9, %v583_v37 }
 0x424   : > { %v1081_v12 = vsel %vm625_vm0, %v1079_v11, 0.0 }
 0x425   : > { %1082 = vadd.xlane.f32.xlu2 %v1081_v12 }
 0x427   : > { %v1076_v13 = vpop.f32.mrf.mxu2 }
 0x428   : > { %v1077_v16 = vadd.f32 %v1590_v7, %v1076_v13  ;;  %v1593_v7 = vld [vmem:[%s1969_s11] ss:$0 sm:$0xff] }
 0x42a   : > { %v1080_v17 = vadd.f32 %v1077_v16, %v584_v14  ;;  %v1594_v14 = vld [vmem:[%s1971_s13] ss:$0 sm:$0xff] }
 0x42c   : > { %v1084_v18 = vsel %vm625_vm0, %v1080_v17, 0.0 }
 0x42d   : > { %1085 = vadd.xlane.f32.xlu0 %v1084_v18 }
 0x498   : > { %v1083_v8 = vpop.xlane.xlu2 %1082 }
 0x499   : > { %v1094_v28 = vmul.f32 %v1894_v27, %v1083_v8 }
 0x49b   : > { %v1096_v15 = vsub.f32 %v1079_v11, %v1094_v28 }
 0x49d   : > { %v1098_v21 = vmul.f32 %v1096_v15, %v1096_v15 }
 0x49f   : > { %v1100_v29 = vsel %vm625_vm0, %v1098_v21, 0.0 }
 0x4a0   : > { %v1086_v30 = vpop.xlane.xlu0 %1085  ;;  %1101 = vadd.xlane.f32.xlu1 %v1100_v29 }
 0x4a1   : > { %v1095_v24 = vmul.f32 %v1894_v27, %v1086_v30 }
 0x4a3   : > { %v1097_v31 = vsub.f32 %v1080_v17, %v1095_v24 }
 0x4a5   : > { %v1099_v32 = vmul.f32 %v1097_v31, %v1097_v31 }
 0x4a7   : > { %v1103_v33 = vsel %vm625_vm0, %v1099_v32, 0.0 }
 0x4a8   : > { %1104 = vadd.xlane.f32.xlu2 %v1103_v33 }
 0x513   : > { %v1102_v39 = vpop.xlane.xlu1 %1101 }
 0x514   : > { %v1106_v41 = vmul.f32 %v1102_v39, %v1894_v27 }
 0x516   : > { %v1108_v43 = vadd.f32 1e-05, %v1106_v41 }
 0x518   : > { %1599 = vrsqrt.f32 %v1108_v43  ;;  %vm1116_vm7 = vweird.f32 %v1108_v43 }
 0x51b   : > { %v1105_v45 = vpop.xlane.xlu2 %1104 }
 0x51c   : > { %v1107_v47 = vmul.f32 %v1105_v45, %v1894_v27 }
 0x51e   : > { %v1600_v48 = vpop.eup %1599  ;;  %v1109_v49 = vadd.f32 1e-05, %v1107_v47 }
 0x51f   : > { %v1111_v50 = vmul.f32 %v1600_v48, %v1108_v43  ;;  %vm1117_vm6 = vweird.f32 %v1600_v48 }
 0x520   : > { %1601 = vrsqrt.f32 %v1109_v49  ;;  %vm1118_vm8 = vmor %vm1116_vm7, %vm1117_vm6  ;;  %vm1126_vm10 = vweird.f32 %v1109_v49 }
 0x521   : > { %v1112_v38 = vmul.f32 %v1600_v48, %v1111_v50 }
 0x523   : > { %v1113_v46 = vmul.f32 0.5, %v1112_v38 }
 0x525   : > { %v1114_v51 = vsub.f32 1.5, %v1113_v46 }
 0x526   : > { %v1602_v44 = vpop.eup %1601 }
 0x527   : > { %v1115_v52 = vmul.f32 %v1600_v48, %v1114_v51  ;;  %v1121_v36 = vmul.f32 %v1602_v44, %v1109_v49  ;;  %vm1127_vm9 = vweird.f32 %v1602_v44 }
 0x528   : > { %vm1128_vm11 = vmor %vm1126_vm10, %vm1127_vm9 }
 0x529   : > { %v1122_v58 = vmul.f32 %v1602_v44, %v1121_v36  ;;  %v1119_v53 = vsel %vm1118_vm8, %v1600_v48, %v1115_v52  ;;  %v1596_v36 = vld [vmem:[%s1973_s15] ss:$0 sm:$0xff] }
 0x52a   : > { %v1130_v54 = vmul.f32 %v1119_v53, %v1096_v15 }
 0x52b   : > { %v1123_v40 = vmul.f32 0.5, %v1122_v58 }
 0x52c   : > { %v1136_v59 = vmul.f32 %v1591_v10, %v1130_v54 }
 0x52d   : > { %v1124_v6 = vsub.f32 1.5, %v1123_v40 }
 0x52e   : > { %v1142_v62 = vadd.f32 %v1592_v57, %v1136_v59 }
 0x52f   : > { %v1125_v55 = vmul.f32 %v1602_v44, %v1124_v6 }
 0x531   : > { %v1129_v56 = vsel %vm1128_vm11, %v1602_v44, %v1125_v55  ;;  %v1595_v44 = vld [vmem:[%s1972_s14] ss:$0 sm:$0xff] }
 0x532   : > { %v1131_v60 = vmul.f32 %v1129_v56, %v1097_v31 }
 0x534   : > { %v1137_v61 = vmul.f32 %v1591_v10, %v1131_v60 }
 0x536   : > { %v1143_v63 = vadd.f32 %v1592_v57, %v1137_v61 }
 0x538   : > { %v1144_v0 = vpack.c.bf16 %v1143_v63, %v1142_v62 }
 0x53a   : > { %1510 = vmatmul.msk.bf16.vlgmr.msra.gmra.mxu0 %vm625_vm0, %v1144_v0 }
 0x5b7   : > { %v1177_v5 = vpop.f32.mrf.mxu0 }
 0x5b8   : > { %v1178_v35 = vadd.f32 %v1593_v7, %v1177_v5 }
 0x5ba   : > { %v1182_v11 = vmax.f32 %v1178_v35, 0.0 }
 0x5bf   : > { %v1179_v37 = vpop.f32.mrf.mxu0 }
 0x5c0   : > { %v1180_v9 = vadd.f32 %v1593_v7, %v1179_v37 }
 0x5c2   : > { %v1183_v12 = vmax.f32 %v1180_v9, 0.0 }
 0x5c4   : > { %v1184_v13 = vpack.c.bf16 %v1183_v12, %v1182_v11 }
 0x5c6   : > { %1527 = vmatmul.msk.bf16.vlgmr.msra.gmra.mxu2 %vm726_vm1, %v1184_v13 }
 0x649   : > { %v1233_v16 = vpop.f32.mrf.mxu2 }
 0x64a   : > { %v1234_v17 = vadd.f32 %v1594_v14, %v1233_v16 }
 0x64c   : > { %v1238_v18 = vadd.f32 %v1234_v17, %v1142_v62 }
 0x64e   : > { %v1240_v19 = vsel %vm625_vm0, %v1238_v18, 0.0 }
 0x64f   : > { %1241 = vadd.xlane.f32.xlu2 %v1240_v19 }
 0x651   : > { %v1235_v20 = vpop.f32.mrf.mxu2 }
 0x652   : > { %v1236_v22 = vadd.f32 %v1594_v14, %v1235_v20 }
 0x654   : > { %v1239_v23 = vadd.f32 %v1236_v22, %v1143_v63 }
 0x656   : > { %v1243_v25 = vsel %vm625_vm0, %v1239_v23, 0.0 }
 0x657   : > { %1244 = vadd.xlane.f32.xlu0 %v1243_v25 }
 0x6c2   : > { %v1242_v26 = vpop.xlane.xlu2 %1241 }
 0x6c3   : > { %v1246_v8 = vmul.f32 %v1242_v26, %v1894_v27 }
 0x6c5   : > { %v1248_v28 = vsub.f32 %v1238_v18, %v1246_v8 }
 0x6c7   : > { %v1250_v15 = vmul.f32 %v1248_v28, %v1248_v28 }
 0x6c9   : > { %v1252_v21 = vsel %vm625_vm0, %v1250_v15, 0.0 }
 0x6ca   : > { %v1245_v29 = vpop.xlane.xlu0 %1244  ;;  %1253 = vadd.xlane.f32.xlu1 %v1252_v21 }
 0x6cb   : > { %v1247_v30 = vmul.f32 %v1245_v29, %v1894_v27 }
 0x6cd   : > { %v1249_v24 = vsub.f32 %v1239_v23, %v1247_v30 }
 0x6cf   : > { %v1251_v31 = vmul.f32 %v1249_v24, %v1249_v24 }
 0x6d1   : > { %v1255_v32 = vsel %vm625_vm0, %v1251_v31, 0.0 }
 0x6d2   : > { %1256 = vadd.xlane.f32.xlu2 %v1255_v32 }
 0x73d   : > { %v1254_v33 = vpop.xlane.xlu1 %1253 }
 0x73e   : > { %v1258_v34 = vmul.f32 %v1254_v33, %v1894_v27 }
 0x740   : > { %v1260_v39 = vadd.f32 1e-05, %v1258_v34 }
 0x742   : > { %1603 = vrsqrt.f32 %v1260_v39  ;;  %vm1268_vm13 = vweird.f32 %v1260_v39 }
 0x745   : > { %v1257_v41 = vpop.xlane.xlu2 %1256 }
 0x746   : > { %v1259_v42 = vmul.f32 %v1257_v41, %v1894_v27 }
 0x748   : > { %v1604_v43 = vpop.eup %1603  ;;  %v1261_v45 = vadd.f32 1e-05, %v1259_v42 }
 0x749   : > { %v1263_v47 = vmul.f32 %v1604_v43, %v1260_v39  ;;  %vm1269_vm12 = vweird.f32 %v1604_v43 }
 0x74a   : > { %1605 = vrsqrt.f32 %v1261_v45  ;;  %vm1270_vm14 = vmor %vm1268_vm13, %vm1269_vm12  ;;  %vm1278_vm1 = vweird.f32 %v1261_v45 }
 0x74b   : > { %v1264_v48 = vmul.f32 %v1604_v43, %v1263_v47 }
 0x74d   : > { %v1265_v49 = vmul.f32 0.5, %v1264_v48 }
 0x74f   : > { %v1266_v50 = vsub.f32 1.5, %v1265_v49 }
 0x750   : > { %v1606_v38 = vpop.eup %1605 }
 0x751   : > { %v1267_v46 = vmul.f32 %v1604_v43, %v1266_v50  ;;  %v1273_v51 = vmul.f32 %v1606_v38, %v1261_v45  ;;  %vm1279_vm15 = vweird.f32 %v1606_v38 }
 0x752   : > { %vm1280_vm2 = vmor %vm1278_vm1, %vm1279_vm15 }
 0x753   : > { %v1271_v52 = vsel %vm1270_vm14, %v1604_v43, %v1267_v46  ;;  %v1274_v27 = vmul.f32 %v1606_v38, %v1273_v51 }
 0x754   : > { %v1282_v58 = vmul.f32 %v1271_v52, %v1248_v28 }
 0x755   : > { %v1275_v53 = vmul.f32 0.5, %v1274_v27 }
 0x756   : > { %v1288_v40 = vmul.f32 %v1595_v44, %v1282_v58 }
 0x757   : > { %v1276_v6 = vsub.f32 1.5, %v1275_v53 }
 0x758   : > { %v1294_v10 = vadd.f32 %v1596_v36, %v1288_v40 }
 0x759   : > { %v1277_v54 = vmul.f32 %v1606_v38, %v1276_v6 }
 0x75a   : > { %1296 = vst.msk [vmem:[%s581_s23] sm:$0xff] %vm625_vm0, %v1294_v10 }
 0x75b   : > { %v1281_v55 = vsel %vm1280_vm2, %v1606_v38, %v1277_v54 }
 0x75c   : > { %v1283_v56 = vmul.f32 %v1281_v55, %v1249_v24 }
 0x75e   : > { %v1289_v57 = vmul.f32 %v1595_v44, %v1283_v56 }
 0x760   : > { %v1295_v59 = vadd.f32 %v1596_v36, %v1289_v57 }
 0x762   : > { %1297 = vst.msk [vmem:[%s581_s23 + $0x8] sm:$0xff] %vm625_vm0, %v1295_v59 }
 0x763 PF: > { %s26_s21 = sadd.s32 1, %s1613_s21  }
 0x764   : > { %p23_p4 = scmp.ge.s32.totalorder %s26_s21, 4  }
 0x766   :  { %25 = sbr.rel (!%p23_p4) target bundleno = 2 (0x2), region = 132 }

// kernel: run.15
= control target key start
LH: loop header
LB: loop body
LE: loop exit
PB: predicated region body
PF: predicated region fallthrough
CT: control target
= control target key end

     0   :  { %s2135_s0 = inlined_call_operand.vmem [shape: f32[2,16,32], index: 0, kind: input, shape index: {}]   ;;  %s2136_s1 = inlined_call_operand.vmem [shape: f32[2,64,32], index: 1, kind: input, shape index: {}]   ;;  %s2137_s2 = inlined_call_operand.vmem [shape: f32[2,64,1], index: 2, kind: input, shape index: {}]   ;;  %s2138_s3 = inlined_call_operand.vmem [shape: bf16[2,4,16,64], index: 3, kind: input, shape index: {}]   ;;  %s2139_s4 = inlined_call_operand.vmem [shape: bf16[4,32,8], index: 4, kind: input, shape index: {}]   ;;  %s2140_s5 = inlined_call_operand.vmem [shape: f32[4,1,8], index: 5, kind: input, shape index: {}]   ;;  %s2141_s6 = inlined_call_operand.vmem [shape: bf16[32,32], index: 6, kind: input, shape index: {}]   ;;  %s2142_s7 = inlined_call_operand.vmem [shape: f32[1,32], index: 7, kind: input, shape index: {}]   ;;  %s2143_s8 = inlined_call_operand.vmem [shape: f32[1,32], index: 8, kind: input, shape index: {}]   ;;  %s2144_s9 = inlined_call_operand.vmem [shape: f32[1,32], index: 9, kind: input, shape index: {}]   ;;  %s2145_s10 = inlined_call_operand.vmem [shape: bf16[32,64], index: 10, kind: input, shape index: {}]   ;;  %s2146_s11 = inlined_call_operand.vmem [shape: f32[1,64], index: 11, kind: input, shape index: {}]   ;;  %s2147_s12 = inlined_call_operand.vmem [shape: bf16[64,32], index: 12, kind: input, shape index: {}]   ;;  %s2148_s13 = inlined_call_operand.vmem [shape: f32[1,32], index: 13, kind: input, shape index: {}]   ;;  %s2149_s14 = inlined_call_operand.vmem [shape: f32[1,32], index: 14, kind: input, shape index: {}]   ;;  %s2150_s15 = inlined_call_operand.vmem [shape: f32[1,32], index: 15, kind: input, shape index: {}]   ;;  %s2151_s16 = inlined_call_operand.hbm [shape: f32[2,16,32], index: 16, kind: output, shape index: {}]  }
   0x1   :  { %2158 = sst [smem:[#allocation10_spill]] %s2135_s0 }
   0x2   :  { %2159 = sst [smem:[#allocation11_spill]] %s2136_s1 }
   0x3   :  { %2160 = sst [smem:[#allocation12_spill]] %s2137_s2 }
   0x4   :  { %21 = vsyncpa [#allocation3], 0 }
   0x5   :  { %23 = vsyncpa [#allocation3 + $0x1], 0  ;;  %s1816_s21 = smov 0   ;;  %s1818_s22 = smov 0  }
   0x6   :  { %s1820_s23 = smov 0   ;;  %s1822_s24 = smov 0  }
   0x7 LB: > { %2161 = sst [smem:[#allocation5_spill]] %s1711_s21  ;;  %s1837_s25 = sadd.s32 4294967295, %s1723_s24   ;;  %s1723_s24 = sphi %s1822_s24, %s2174_s24   ;;  %s1719_s23 = sphi %s1820_s23, %s2179_s23   ;;  %s1715_s22 = sphi %s1818_s22, %s2178_s22   ;;  %s1711_s21 = sphi %s1816_s21, %s2177_s21  }
   0x8   : > { %2162 = sst [smem:[#allocation6_spill]] %s1719_s23  ;;  %s1410_s26 = sadd.s32 4294967294, %s1723_s24  }
   0x9   : > { %s1841_s27 = sadd.s32 1, %s1723_s24   ;;  %s392_s28 = sadd.s32 1, %s1719_s23 }
   0xa   : > { %2163 = sst [smem:[#allocation7_spill]] %s1841_s27  ;;  %s389_s29 = ssub.s32 %s1723_s24, %s1841_s27 }
   0xb   : > { %p402_p0 = scmp.ne.s32.totalorder %s1719_s23, %s1715_s22  ;;  %p390_p1 = scmp.eq.s32.totalorder %s389_s29, 0 }
   0xc   : > { %p403_p2 = scmp.eq.s32.totalorder %s1837_s25, 1  ;;  %p408_p3 = scmp.ne.s32.totalorder %s1715_s22, %s1711_s21 }
   0xd   : > { %p409_p4 = scmp.eq.s32.totalorder %s1410_s26, 1  ;;  %p1413_p7 = scmp.ge.s32.totalorder %s1723_s24, 1 }
   0xe   : > { %s1852_s30 = scalar_select %p390_p1, %s1719_s23, %s392_s28  }
   0xf   : > { %p1854_p5 = por %p403_p2, %p402_p0  ;;  %p1858_p6 = por %p409_p4, %p408_p3 }
  0x10   : > { %2164 = sst [smem:[#allocation8_spill]] %s1852_s30  ;;  %p495_p8 = scmp.lt.s32.totalorder %s1723_s24, 3 }
  0x11   : > { %s2166_s17 = scalar_select %p1858_p6, 1, 0 }
  0x12   : > { %p496_p9 = pnand %p1413_p7, %p495_p8 }
  0x13   : > { %2167 = sst [smem:[#allocation9_spill]] %s2166_s17  ;;  %p560_p10 = scmp.lt.s32.totalorder (!%p496_p9), %s1837_s25, 1 }
  0x14   : > { %499 = sbr.rel (%p496_p9) target bundleno = 1907 (0x773), region = 84  ;;  %s2168_s2 = sld [smem:[#allocation12_spill]] (!%p496_p9) }
  0x15   : > { %s2169_s1 = sld [smem:[#allocation11_spill]] (!%p496_p9)  ;;  %s1727_s21 = smov (!%p496_p9), 16  }
  0x16   : > { %s2170_s29 = sld [smem:[#allocation10_spill]] (!%p496_p9)  ;;  %s1576_s30 = sshll.u32 (!%p496_p9), %s1837_s25, 4 }
  0x17   : > { %s1308_s26 = scalar_lea.hbm (!%p496_p9), %s2151_s16, %s1576_s30 }
  0x19   : > { %v1557_v0 = vld [vmem:[%s2139_s4 + $0x8] sm:$0xff]  ;;  %v1560_v1 = vld [vmem:[%s2139_s4 + $0x18] sm:$0xff]  ;;  %v1725_v2 = vmov 0   ;;  %v1556_v3 = vld [vmem:[%s2139_s4] sm:$0xff]  ;;  %s1878_s18 = scalar_select %p560_p10, %s1837_s25, 1  ;;  %vm623_vm0 = vcmask 261120  }
  0x1a   : > { %1622 = vset.pattern.permute.xlu0 %v1725_v2  ;;  %1623 = vset.pattern.permute.xlu1 %v1725_v2  ;;  %v1559_v4 = vld [vmem:[%s2139_s4 + $0x10] sm:$0xff]  ;;  %v1640_v41 = vld [vmem:[%s2140_s5] ss:$0 sm:$0xff]  ;;  %v1641_v49 = vld [vmem:[%s2140_s5 + $0x1] ss:$0 sm:$0xff]  ;;  %vm724_vm1 = vcmask 523264  }
  0x1b   : > { %642 = vmatpush.bf16.msra.mxu0 %v1557_v0  ;;  %770 = vmatpush.bf16.msra.mxu2 %v1560_v1  ;;  %s1553_s19 = sshll.u32 %s1878_s18, 6  ;;  %s1555_s17 = sshll.u32 %s1878_s18, 5  ;;  %vm1030_vm2 = vcmask 64512   ;;  %vm1033_vm3 = vcmask 130048   ;;  %vm1036_vm4 = vcmask 195584  }
  0x1c   : > { %1624 = vset.pattern.permute.xlu2 %v1725_v2  ;;  %s574_s27 = scalar_lea.vmem %s2168_s2, %s1553_s19  ;;  %s1887_s28 = scalar_lea.vmem %s2169_s1, %s1553_s19 }
  0x1d   : > { %v597_v5 = vld [vmem:[%s574_s27 + $0x30] sm:$0xff]  ;;  %v583_v6 = vld [vmem:[%s1887_s28] sm:$0xff]  ;;  %v584_v7 = vld [vmem:[%s1887_s28 + $0x8] sm:$0xff]  ;;  %s1961_s20 = scalar_lea.vmem %s2138_s3, %s1555_s17  ;;  %s1728_s19 = smov 24  }
  0x1e   : > { %697 = vperm.xlu0 %1622, %v597_v5   ;;  %v1891_v8 = vpack.c.bf16 %v584_v7, %v583_v6  ;;  %v595_v9 = vld [vmem:[%s574_s27 + $0x20] sm:$0xff]  ;;  %v598_v10 = vld [vmem:[%s574_s27 + $0x38] sm:$0xff]  ;;  %v596_v11 = vld [vmem:[%s574_s27 + $0x28] sm:$0xff] }
  0x1f   : > { %643 = vmatpush.bf16.msra.mxu0 %v1556_v3  ;;  %771 = vmatpush.bf16.msra.mxu2 %v1559_v4  ;;  %v585_v12 = vld [vmem:[%s1887_s28 + $0x10] sm:$0xff]  ;;  %v586_v13 = vld [vmem:[%s1887_s28 + $0x18] sm:$0xff]  ;;  %v591_v14 = vld [vmem:[%s574_s27] sm:$0xff] }
  0x20   : > { %687 = vperm.xlu1 %1623, %v595_v9   ;;  %v1899_v15 = vpack.c.bf16 %v586_v13, %v585_v12  ;;  %v592_v16 = vld [vmem:[%s574_s27 + $0x8] sm:$0xff]  ;;  %v593_v17 = vld [vmem:[%s574_s27 + $0x10] sm:$0xff]  ;;  %v594_v18 = vld [vmem:[%s574_s27 + $0x18] sm:$0xff]  ;;  %s2157_s27 = smov 8  }
  0x21   : > { %677 = vperm.xlu2 %1624, %v593_v17   ;;  %v587_v19 = vld [vmem:[%s1887_s28 + $0x20] sm:$0xff]  ;;  %v588_v20 = vld [vmem:[%s1887_s28 + $0x28] sm:$0xff]  ;;  %v589_v22 = vld [vmem:[%s1887_s28 + $0x30] sm:$0xff] }
  0x22   : > { %1431 = vmatmul.msk.bf16.vlgmr.msra.gmra.mxu0 %vm623_vm0, %v1891_v8  ;;  %1453 = vmatmul.msk.bf16.vlgmr.msra.gmra.mxu2 %vm623_vm0, %v1891_v8  ;;  %v1907_v21 = vpack.c.bf16 %v588_v20, %v587_v19  ;;  %v590_v23 = vld [vmem:[%s1887_s28 + $0x38] sm:$0xff] }
  0x23   : > { %v1915_v24 = vpack.c.bf16 %v590_v23, %v589_v22 }
  0x26   : > { %702 = vperm.xlu0 %1622, %v598_v10  }
  0x28   : > { %692 = vperm.xlu1 %1623, %v596_v11  }
  0x29   : > { %682 = vperm.xlu2 %1624, %v594_v18  }
  0x2e   : > { %667 = vperm.xlu0 %1622, %v591_v14  }
  0x30   : > { %672 = vperm.xlu1 %1623, %v592_v16  }
  0x32   : > { %1432 = vmatmul.msk.bf16.gmra.mxu0 %vm623_vm0, %v1899_v15  ;;  %1454 = vmatmul.msk.bf16.gmra.mxu2 %vm623_vm0, %v1899_v15 }
  0x42   : > { %1433 = vmatmul.msk.bf16.gmra.mxu0 %vm623_vm0, %v1907_v21  ;;  %1455 = vmatmul.msk.bf16.gmra.mxu2 %vm623_vm0, %v1907_v21 }
  0x52   : > { %1434 = vmatmul.msk.bf16.gmra.mxu0 %vm623_vm0, %v1915_v24  ;;  %1456 = vmatmul.msk.bf16.gmra.mxu2 %vm623_vm0, %v1915_v24 }
  0x7b   : > { %v1925_v40 = vpop.permute.xlu2 %677 }
  0x83   : > { %v1940_v58 = vpop.permute.xlu2 %682 }
  0x90   : > { %v1923_v38 = vpop.permute.xlu0 %697 }
  0x92   : > { %v1921_v36 = vpop.permute.xlu1 %687 }
  0x98   : > { %v1932_v46 = vpop.permute.xlu0 %702 }
  0x9a   : > { %v1930_v44 = vpop.permute.xlu1 %692 }
  0x9f   : > { %v645_v25 = vpop.f32.mrf.mxu0 }
  0xa0   : > { %v646_v5 = vadd.f32 %v1640_v41, %v645_v25  ;;  %v1949_v10 = vpop.permute.xlu0 %667 }
  0xa2   : > { %v1946_v6 = vpop.permute.xlu1 %672  ;;  %v705_v19 = vmul.f32 %v1949_v10, %v646_v5 }
  0xa5   : > { %v773_v26 = vpop.f32.mrf.mxu2 }
  0xa6   : > { %v774_v18 = vadd.f32 %v1641_v49, %v773_v26  ;;  %v1563_v26 = vld [vmem:[%s2139_s4 + $0x28] sm:$0xff] }
  0xa7   : > { %v647_v27 = vpop.f32.mrf.mxu0 }
  0xa8   : > { %v648_v0 = vadd.f32 %v1640_v41, %v647_v27 }
  0xaa   : > { %v706_v17 = vmul.f32 %v1946_v6, %v648_v0 }
  0xac   : > { %v715_v27 = vpack.c.bf16 %v706_v17, %v705_v19  ;;  %v1565_v17 = vld [vmem:[%s2139_s4 + $0x30] sm:$0xff] }
  0xad   : > { %v775_v28 = vpop.f32.mrf.mxu2 }
  0xae   : > { %v776_v20 = vadd.f32 %v1641_v49, %v775_v28  ;;  %v1558_v28 = vld [vmem:[%s1961_s20] sm:$0xff] }
  0xaf   : > { %v650_v29 = vpop.f32.mrf.mxu0 }
  0xb0   : > { %v651_v57 = vadd.f32 %v1640_v41, %v650_v29  ;;  %v793_v29 = vmul.f32 %v774_v18, %v1949_v10 }
  0xb2   : > { %v707_v9 = vmul.f32 %v1925_v40, %v651_v57 }
  0xb5   : > { %v778_v30 = vpop.f32.mrf.mxu2 }
  0xb6   : > { %v779_v7 = vadd.f32 %v1641_v49, %v778_v30  ;;  %v794_v30 = vmul.f32 %v776_v20, %v1946_v6 }
  0xb7   : > { %v652_v31 = vpop.f32.mrf.mxu0 }
  0xb8   : > { %v653_v53 = vadd.f32 %v1640_v41, %v652_v31  ;;  %v795_v22 = vmul.f32 %v779_v7, %v1925_v40 }
  0xba   : > { %v708_v4 = vmul.f32 %v1940_v58, %v653_v53 }
  0xbc   : > { %v716_v16 = vpack.c.bf16 %v708_v4, %v707_v9 }
  0xbd   : > { %v780_v32 = vpop.f32.mrf.mxu2 }
  0xbe   : > { %v781_v11 = vadd.f32 %v1641_v49, %v780_v32  ;;  %v1562_v32 = vld [vmem:[%s2139_s4 + $0x20] sm:$0xff] }
  0xbf   : > { %v655_v33 = vpop.f32.mrf.mxu0 }
  0xc0   : > { %v656_v50 = vadd.f32 %v1640_v41, %v655_v33  ;;  %v796_v23 = vmul.f32 %v781_v11, %v1940_v58  ;;  %v804_v33 = vpack.c.bf16 %v794_v30, %v793_v29 }
  0xc2   : > { %v709_v60 = vmul.f32 %v1921_v36, %v656_v50  ;;  %v805_v31 = vpack.c.bf16 %v796_v23, %v795_v22 }
  0xc5   : > { %v783_v34 = vpop.f32.mrf.mxu2 }
  0xc6   : > { %v784_v61 = vadd.f32 %v1641_v49, %v783_v34  ;;  %v1561_v34 = vld [vmem:[%s1961_s20 + $0x8] sm:$0xff] }
  0xc7   : > { %v657_v35 = vpop.f32.mrf.mxu0 }
  0xc8   : > { %v658_v47 = vadd.f32 %v1640_v41, %v657_v35  ;;  %v797_v12 = vmul.f32 %v784_v61, %v1921_v36 }
  0xca   : > { %v710_v54 = vmul.f32 %v1930_v44, %v658_v47 }
  0xcc   : > { %v717_v1 = vpack.c.bf16 %v710_v54, %v709_v60 }
  0xcd   : > { %v785_v37 = vpop.f32.mrf.mxu2 }
  0xce   : > { %v786_v62 = vadd.f32 %v1641_v49, %v785_v37 }
  0xcf   : > { %v660_v39 = vpop.f32.mrf.mxu0 }
  0xd0   : > { %v661_v43 = vadd.f32 %v1640_v41, %v660_v39  ;;  %v798_v13 = vmul.f32 %v786_v62, %v1930_v44 }
  0xd2   : > { %v711_v51 = vmul.f32 %v1923_v38, %v661_v43  ;;  %v806_v25 = vpack.c.bf16 %v798_v13, %v797_v12  ;;  %v1566_v13 = vld [vmem:[%s2139_s4 + $0x38] sm:$0xff] }
  0xd5   : > { %v788_v42 = vpop.f32.mrf.mxu2 }
  0xd6   : > { %v789_v55 = vadd.f32 %v1641_v49, %v788_v42 }
  0xd7   : > { %v662_v45 = vpop.f32.mrf.mxu0 }
  0xd8   : > { %v663_v48 = vadd.f32 %v1640_v41, %v662_v45  ;;  %v799_v2 = vmul.f32 %v789_v55, %v1923_v38 }
  0xda   : > { %v712_v52 = vmul.f32 %v1932_v46, %v663_v48 }
  0xdc   : > { %v718_v56 = vpack.c.bf16 %v712_v52, %v711_v51  ;;  %v1642_v52 = vld [vmem:[%s2140_s5 + $0x2] ss:$0 sm:$0xff] }
  0xdd   : > { %v790_v59 = vpop.f32.mrf.mxu2 }
  0xde   : > { %v791_v63 = vadd.f32 %v1641_v49, %v790_v59  ;;  %732 = vmatpush.bf16.msra.mxu1 %v718_v56 }
  0xe0   : > { %v800_v3 = vmul.f32 %v791_v63, %v1932_v46 }
  0xe2   : > { %733 = vmatpush.bf16.msra.mxu1 %v717_v1  ;;  %v807_v14 = vpack.c.bf16 %v800_v3, %v799_v2 }
  0xe4   : > { %820 = vmatpush.bf16.msra.mxu3 %v807_v14 }
  0xe6   : > { %734 = vmatpush.bf16.msra.mxu1 %v716_v16  ;;  %v1564_v16 = vld [vmem:[%s1961_s20 + $0x10] sm:$0xff] }
  0xe8   : > { %821 = vmatpush.bf16.msra.mxu3 %v806_v25 }
  0xea   : > { %735 = vmatpush.bf16.msra.mxu1 %v715_v27 }
  0xec   : > { %822 = vmatpush.bf16.msra.mxu3 %v805_v31 }
  0xed   : > { %1439 = vmatmul.msk.bf16.vlgmr.msra.gmra.mxu1 %vm724_vm1, %v1558_v28 }
  0xee   : > { %858 = vmatpush.bf16.msrb.mxu1 %v1563_v26 }
  0xf0   : > { %823 = vmatpush.bf16.msra.mxu3 %v804_v33 }
  0xf2   : > { %859 = vmatpush.bf16.msrb.mxu1 %v1562_v32 }
  0xf3   : > { %1463 = vmatmul.msk.bf16.vlgmr.msra.gmra.mxu3 %vm724_vm1, %v1561_v34 }
  0xfd   : > { %1477 = vmatmul.msk.bf16.vlgmr.msrb.gmra.mxu1 %vm623_vm0, %v1891_v8 }
 0x10d   : > { %1478 = vmatmul.msk.bf16.gmra.mxu1 %vm623_vm0, %v1899_v15 }
 0x11d   : > { %1479 = vmatmul.msk.bf16.gmra.mxu1 %vm623_vm0, %v1907_v21 }
 0x12d   : > { %1480 = vmatmul.msk.bf16.gmra.mxu1 %vm623_vm0, %v1915_v24 }
 0x16a   : > { %v1983_v35 = vpop.f32.mrf.mxu1 }
 0x172   : > { %v1985_v37 = vpop.f32.mrf.mxu1 }
 0x176   : > { %v825_v39 = vpop.f32.mrf.mxu3 }
 0x17a   : > { %v861_v41 = vpop.f32.mrf.mxu1 }
 0x17b   : > { %v862_v5 = vadd.f32 %v1642_v52, %v861_v41 }
 0x17d   : > { %v881_v12 = vmul.f32 %v862_v5, %v1949_v10 }
 0x17e   : > { %v827_v42 = vpop.f32.mrf.mxu3 }
 0x17f   : > { %v1625_v43 = vpack.i.bf16 %v827_v42, %v825_v39 }
 0x181   : > { %1626 = vrot.lane.b32.xlu2 %v1625_v43, %s2157_s27 }
 0x182   : > { %v863_v45 = vpop.f32.mrf.mxu1 }
 0x183   : > { %v864_v2 = vadd.f32 %v1642_v52, %v863_v45 }
 0x185   : > { %v882_v9 = vmul.f32 %v864_v2, %v1946_v6 }
 0x187   : > { %v892_v14 = vpack.c.bf16 %v882_v9, %v881_v12 }
 0x18a   : > { %v866_v47 = vpop.f32.mrf.mxu1 }
 0x18b   : > { %v867_v0 = vadd.f32 %v1642_v52, %v866_v47 }
 0x18d   : > { %v883_v7 = vmul.f32 %v867_v0, %v1925_v40 }
 0x192   : > { %v868_v48 = vpop.f32.mrf.mxu1 }
 0x193   : > { %v869_v61 = vadd.f32 %v1642_v52, %v868_v48 }
 0x195   : > { %v884_v3 = vmul.f32 %v869_v61, %v1940_v58 }
 0x197   : > { %v893_v11 = vpack.c.bf16 %v884_v3, %v883_v7  ;;  %v1644_v7 = vld [vmem:[%s2142_s7] ss:$0 sm:$0xff] }
 0x19a   : > { %v871_v49 = vpop.f32.mrf.mxu1 }
 0x19b   : > { %v872_v57 = vadd.f32 %v1642_v52, %v871_v49 }
 0x19d   : > { %v885_v1 = vmul.f32 %v872_v57, %v1921_v36 }
 0x1a2   : > { %v873_v50 = vpop.f32.mrf.mxu1 }
 0x1a3   : > { %v874_v55 = vadd.f32 %v1642_v52, %v873_v50 }
 0x1a5   : > { %v886_v62 = vmul.f32 %v874_v55, %v1930_v44 }
 0x1a7   : > { %v894_v4 = vpack.c.bf16 %v886_v62, %v885_v1 }
 0x1aa   : > { %v876_v51 = vpop.f32.mrf.mxu1 }
 0x1ab   : > { %v877_v53 = vadd.f32 %v1642_v52, %v876_v51 }
 0x1ad   : > { %v887_v59 = vmul.f32 %v877_v53, %v1923_v38 }
 0x1b2   : > { %v878_v54 = vpop.f32.mrf.mxu1 }
 0x1b3   : > { %v879_v56 = vadd.f32 %v1642_v52, %v878_v54  ;;  %v1567_v52 = vld [vmem:[%s1961_s20 + $0x18] sm:$0xff]  ;;  %s1552_s20 = sshll.u32 %s1878_s18, 4  ;;  %s557_s18 = sand.u32 1, %s1715_s22  }
 0x1b4   : > { %s1414_s23 = sshll.u32 %s557_s18, 4  ;;  %s1297_s25 = scalar_lea.sflag [#allocation3], %s557_s18 }
 0x1b5   : > { %v888_v60 = vmul.f32 %v879_v56, %v1932_v46  ;;  %s559_s17 = scalar_lea.vmem [#allocation2], %s1414_s23 }
 0x1b6   : > { %s1309_s28 = sshll.u32 %s559_s17, 4  ;;  %s1310_s28 = int_to_ptr.vmem [resolvable:$true] %s1309_s28 }
 0x1b7   : > { %v895_v63 = vpack.c.bf16 %v888_v60, %v887_v59 }
 0x1b9   : > { %908 = vmatpush.bf16.msrb.mxu3 %v895_v63 }
 0x1bd   : > { %909 = vmatpush.bf16.msrb.mxu3 %v894_v4 }
 0x1c1   : > { %910 = vmatpush.bf16.msrb.mxu3 %v893_v11 }
 0x1c5   : > { %911 = vmatpush.bf16.msrb.mxu3 %v892_v14 }
 0x1c8   : > { %1487 = vmatmul.msk.bf16.vlgmr.msrb.gmra.mxu3 %vm724_vm1, %v1564_v16 }
 0x1c9   : > { %946 = vmatpush.bf16.msra.mxu3 %v1566_v13 }
 0x1cd   : > { %947 = vmatpush.bf16.msra.mxu3 %v1565_v17 }
 0x1d8   : > { %1501 = vmatmul.msk.bf16.vlgmr.msra.gmra.mxu3 %vm623_vm0, %v1891_v8 }
 0x1e8   : > { %1502 = vmatmul.msk.bf16.gmra.mxu3 %vm623_vm0, %v1899_v15  ;;  %v1643_v15 = vld [vmem:[%s2140_s5 + $0x3] ss:$0 sm:$0xff] }
 0x1f8   : > { %1503 = vmatmul.msk.bf16.gmra.mxu3 %vm623_vm0, %v1907_v21 }
 0x208   : > { %1504 = vmatmul.msk.bf16.gmra.mxu3 %vm623_vm0, %v1915_v24 }
 0x24b   : > { %v913_v18 = vpop.f32.mrf.mxu3 }
 0x253   : > { %v915_v19 = vpop.f32.mrf.mxu3 }
 0x254   : > { %v1630_v20 = vpack.i.bf16 %v915_v19, %v913_v18  ;;  %v1729_v19 = vmov 32.0  }
 0x255   : > { %1651 = vrcp.f32 %v1729_v19 }
 0x256   : > { %1631 = vrot.lane.b32.xlu0 %v1630_v20, %s1727_s21 }
 0x25b   : > { %v949_v22 = vpop.f32.mrf.mxu3  ;;  %v1652_v20 = vpop.eup %1651 }
 0x25c   : > { %v950_v49 = vadd.f32 %v1643_v15, %v949_v22  ;;  %v1086_v22 = vmul.f32 32.0, %v1652_v20  ;;  %vm1090_vm5 = vweird.f32 %v1652_v20 }
 0x25e   : > { %v969_v51 = vmul.f32 %v950_v49, %v1949_v10  ;;  %v1627_v10 = vpop.permute.xlu2 %1626 }
 0x25f   : > { %v1629_v55 = vunpack.i.h.bf16 %v1627_v10  ;;  %v1628_v56 = vunpack.i.l.bf16 %v1627_v10  ;;  %v1645_v10 = vld [vmem:[%s2143_s8] ss:$0 sm:$0xff] }
 0x261   : > { %v1031_v61 = vsel %vm1030_vm2, %v1983_v35, %v1628_v56  ;;  %v1032_v62 = vsel %vm1030_vm2, %v1985_v37, %v1629_v55 }
 0x263   : > { %v951_v23 = vpop.f32.mrf.mxu3 }
 0x264   : > { %v952_v45 = vadd.f32 %v1643_v15, %v951_v23  ;;  %v1087_v23 = vsub.f32 1.0, %v1086_v22 }
 0x26b   : > { %v954_v25 = vpop.f32.mrf.mxu3 }
 0x26c   : > { %v955_v42 = vadd.f32 %v1643_v15, %v954_v25  ;;  %v1088_v25 = vmul.f32 %v1652_v20, %v1087_v23 }
 0x26e   : > { %v971_v50 = vmul.f32 %v955_v42, %v1925_v40  ;;  %v1570_v42 = vld [vmem:[%s2145_s10] sm:$0xff] }
 0x273   : > { %v956_v26 = vpop.f32.mrf.mxu3 }
 0x274   : > { %v957_v34 = vadd.f32 %v1643_v15, %v956_v26  ;;  %v1089_v26 = vadd.f32 %v1652_v20, %v1088_v25 }
 0x276   : > { %v972_v47 = vmul.f32 %v957_v34, %v1940_v58  ;;  %v1571_v34 = vld [vmem:[%s2145_s10 + $0x8] sm:$0xff] }
 0x27b   : > { %v959_v27 = vpop.f32.mrf.mxu3 }
 0x27c   : > { %v960_v31 = vadd.f32 %v1643_v15, %v959_v27  ;;  %v2046_v27 = vsel %vm1090_vm5, %v1652_v20, %v1089_v26 }
 0x27e   : > { %v973_v43 = vmul.f32 %v960_v31, %v1921_v36  ;;  %v1569_v36 = vld [vmem:[%s2141_s6 + $0x8] sm:$0xff] }
 0x27f   : > { %1069 = vmatpush.bf16.msrb.mxu2 %v1569_v36 }
 0x283   : > { %v961_v8 = vpop.f32.mrf.mxu3 }
 0x284   : > { %v962_v30 = vadd.f32 %v1643_v15, %v961_v8 }
 0x286   : > { %v974_v39 = vmul.f32 %v962_v30, %v1930_v44 }
 0x288   : > { %v982_v48 = vpack.c.bf16 %v974_v39, %v973_v43 }
 0x28b   : > { %v964_v28 = vpop.f32.mrf.mxu3 }
 0x28c   : > { %v965_v21 = vadd.f32 %v1643_v15, %v964_v28 }
 0x28e   : > { %v975_v32 = vmul.f32 %v965_v21, %v1923_v38  ;;  %v970_v38 = vmul.f32 %v952_v45, %v1946_v6  ;;  %v1568_v6 = vld [vmem:[%s2141_s6] sm:$0xff] }
 0x28f   : > { %1070 = vmatpush.bf16.msrb.mxu2 %v1568_v6 }
 0x290   : > { %v980_v44 = vpack.c.bf16 %v970_v38, %v969_v51 }
 0x293   : > { %v966_v29 = vpop.f32.mrf.mxu3 }
 0x294   : > { %v967_v24 = vadd.f32 %v1643_v15, %v966_v29 }
 0x296   : > { %v976_v33 = vmul.f32 %v967_v24, %v1932_v46  ;;  %v981_v46 = vpack.c.bf16 %v972_v47, %v971_v50 }
 0x298   : > { %v983_v41 = vpack.c.bf16 %v976_v33, %v975_v32 }
 0x29a   : > { %996 = vmatpush.bf16.msrb.mxu0 %v983_v41 }
 0x29e   : > { %997 = vmatpush.bf16.msrb.mxu0 %v982_v48 }
 0x2a2   : > { %998 = vmatpush.bf16.msrb.mxu0 %v981_v46 }
 0x2a6   : > { %999 = vmatpush.bf16.msrb.mxu0 %v980_v44 }
 0x2a9   : > { %1511 = vmatmul.msk.bf16.vlgmr.msrb.gmra.mxu0 %vm724_vm1, %v1567_v52 }
 0x2aa   : > { %1172 = vmatpush.bf16.msra.mxu0 %v1571_v34 }
 0x2ae   : > { %1173 = vmatpush.bf16.msra.mxu0 %v1570_v42 }
 0x2c8   : > { %v1632_v54 = vpop.permute.xlu0 %1631 }
 0x2c9   : > { %v1634_v57 = vunpack.i.h.bf16 %v1632_v54  ;;  %v1633_v59 = vunpack.i.l.bf16 %v1632_v54 }
 0x2cb   : > { %v1035_v1 = vsel %vm1033_vm3, %v1032_v62, %v1634_v57  ;;  %v1034_v2 = vsel %vm1033_vm3, %v1031_v61, %v1633_v59  ;;  %v1646_v57 = vld [vmem:[%s2144_s9] ss:$0 sm:$0xff] }
 0x326   : > { %v1001_v58 = vpop.f32.mrf.mxu0 }
 0x32e   : > { %v1003_v53 = vpop.f32.mrf.mxu0 }
 0x32f   : > { %v1635_v40 = vpack.i.bf16 %v1003_v53, %v1001_v58 }
 0x331   : > { %1636 = vrot.lane.b32.xlu1 %v1635_v40, %s1728_s19  ;;  %s564_s19 = scalar_lea.vmem %s2170_s29, %s1552_s20  ;;  %s1311_s20 = sshll.u32 %s1308_s26, 4  ;;  %s1312_s20 = int_to_ptr.hbm [resolvable:$true] %s1311_s20 }
 0x332   : > { %v581_v37 = vld [vmem:[%s564_s19] sm:$0xff]  ;;  %v582_v14 = vld [vmem:[%s564_s19 + $0x8] sm:$0xff]  ;;  %s1675_s21 = sshra.s32 %s1312_s20, 4  ;;  %s1681_s19 = scalar_lea.hbm %s2151_s16, 32  ;;  %s1676_s21 = int_to_ptr.hbm [resolvable:$true] %s1675_s21 }
 0x333   : > { %s1677_s23 = scalar_lea.hbm %s1676_s21, 16  ;;  %p1682_p0 = scmp.lt.s32.totalorder %s1676_s21, %s2151_s16 }
 0x334   : > { %p1678_p11 = scmp.ne.s32.totalorder %s1676_s21, %s1677_s23  ;;  %p1683_p1 = scmp.lt.s32.totalorder %s1681_s19, %s1677_s23 }
 0x336   : > { %p1679_p12 = pnand %p1678_p11, %p1854_p5  ;;  %p1684_p2 = por %p1683_p1, %p1682_p0 }
 0x338   : > { %p1680_p13 = pneg %p1679_p12 }
 0x33a   : > { %p1685_p3 = pnand %p1684_p2, %p1680_p13 }
 0x3a3   : > { %v1637_v60 = vpop.permute.xlu1 %1636 }
 0x3a4   : > { %v1639_v63 = vunpack.i.h.bf16 %v1637_v60  ;;  %v1638_v0 = vunpack.i.l.bf16 %v1637_v60 }
 0x3a6   : > { %v1038_v3 = vsel %vm1036_vm4, %v1035_v1, %v1639_v63  ;;  %v1037_v4 = vsel %vm1036_vm4, %v1034_v2, %v1638_v0  ;;  %v1575_v1 = vld [vmem:[%s2147_s12 + $0x18] sm:$0xff]  ;;  %v1574_v2 = vld [vmem:[%s2147_s12 + $0x10] sm:$0xff] }
 0x3a7   : > { %v1039_v5 = vpack.c.bf16 %v1038_v3, %v1037_v4  ;;  %1226 = vmatpush.bf16.msra.mxu2 %v1575_v1  ;;  %v1573_v3 = vld [vmem:[%s2147_s12 + $0x8] sm:$0xff]  ;;  %v1572_v4 = vld [vmem:[%s2147_s12] sm:$0xff] }
 0x3a9   : > { %1520 = vmatmul.msk.bf16.vlgmr.msrb.gmra.mxu2 %vm623_vm0, %v1039_v5 }
 0x3ab   : > { %1227 = vmatpush.bf16.msra.mxu2 %v1574_v2 }
 0x3af   : > { %1228 = vmatpush.bf16.msra.mxu2 %v1573_v3 }
 0x3b3   : > { %1229 = vmatpush.bf16.msra.mxu2 %v1572_v4 }
 0x42c   : > { %v1072_v35 = vpop.f32.mrf.mxu2 }
 0x42d   : > { %v1073_v9 = vadd.f32 %v1644_v7, %v1072_v35 }
 0x42f   : > { %v1077_v11 = vadd.f32 %v1073_v9, %v581_v37 }
 0x431   : > { %v1079_v12 = vsel %vm623_vm0, %v1077_v11, 0.0 }
 0x432   : > { %1080 = vadd.xlane.f32.xlu2 %v1079_v12 }
 0x434   : > { %v1074_v13 = vpop.f32.mrf.mxu2 }
 0x435   : > { %v1075_v16 = vadd.f32 %v1644_v7, %v1074_v13  ;;  %v1647_v7 = vld [vmem:[%s2146_s11] ss:$0 sm:$0xff] }
 0x437   : > { %v1078_v17 = vadd.f32 %v1075_v16, %v582_v14  ;;  %v1648_v14 = vld [vmem:[%s2148_s13] ss:$0 sm:$0xff] }
 0x439   : > { %v1082_v18 = vsel %vm623_vm0, %v1078_v17, 0.0 }
 0x43a   : > { %1083 = vadd.xlane.f32.xlu0 %v1082_v18 }
 0x4a5   : > { %v1081_v8 = vpop.xlane.xlu2 %1080 }
 0x4a6   : > { %v1092_v28 = vmul.f32 %v2046_v27, %v1081_v8 }
 0x4a8   : > { %v1094_v15 = vsub.f32 %v1077_v11, %v1092_v28 }
 0x4aa   : > { %v1096_v21 = vmul.f32 %v1094_v15, %v1094_v15 }
 0x4ac   : > { %v1098_v29 = vsel %vm623_vm0, %v1096_v21, 0.0 }
 0x4ad   : > { %v1084_v30 = vpop.xlane.xlu0 %1083  ;;  %1099 = vadd.xlane.f32.xlu1 %v1098_v29 }
 0x4ae   : > { %v1093_v24 = vmul.f32 %v2046_v27, %v1084_v30 }
 0x4b0   : > { %v1095_v31 = vsub.f32 %v1078_v17, %v1093_v24 }
 0x4b2   : > { %v1097_v32 = vmul.f32 %v1095_v31, %v1095_v31 }
 0x4b4   : > { %v1101_v33 = vsel %vm623_vm0, %v1097_v32, 0.0 }
 0x4b5   : > { %1102 = vadd.xlane.f32.xlu2 %v1101_v33 }
 0x520   : > { %v1100_v39 = vpop.xlane.xlu1 %1099 }
 0x521   : > { %v1104_v41 = vmul.f32 %v1100_v39, %v2046_v27 }
 0x523   : > { %v1106_v43 = vadd.f32 1e-05, %v1104_v41 }
 0x525   : > { %1653 = vrsqrt.f32 %v1106_v43  ;;  %vm1114_vm7 = vweird.f32 %v1106_v43 }
 0x528   : > { %v1103_v45 = vpop.xlane.xlu2 %1102 }
 0x529   : > { %v1105_v47 = vmul.f32 %v1103_v45, %v2046_v27 }
 0x52b   : > { %v1654_v48 = vpop.eup %1653  ;;  %v1107_v49 = vadd.f32 1e-05, %v1105_v47 }
 0x52c   : > { %v1109_v50 = vmul.f32 %v1654_v48, %v1106_v43  ;;  %vm1115_vm6 = vweird.f32 %v1654_v48 }
 0x52d   : > { %1655 = vrsqrt.f32 %v1107_v49  ;;  %vm1116_vm8 = vmor %vm1114_vm7, %vm1115_vm6  ;;  %vm1124_vm10 = vweird.f32 %v1107_v49 }
 0x52e   : > { %v1110_v38 = vmul.f32 %v1654_v48, %v1109_v50 }
 0x530   : > { %v1111_v46 = vmul.f32 0.5, %v1110_v38 }
 0x532   : > { %v1112_v51 = vsub.f32 1.5, %v1111_v46 }
 0x533   : > { %v1656_v44 = vpop.eup %1655 }
 0x534   : > { %v1113_v52 = vmul.f32 %v1654_v48, %v1112_v51  ;;  %v1119_v36 = vmul.f32 %v1656_v44, %v1107_v49  ;;  %vm1125_vm9 = vweird.f32 %v1656_v44 }
 0x535   : > { %vm1126_vm11 = vmor %vm1124_vm10, %vm1125_vm9 }
 0x536   : > { %v1120_v58 = vmul.f32 %v1656_v44, %v1119_v36  ;;  %v1117_v53 = vsel %vm1116_vm8, %v1654_v48, %v1113_v52  ;;  %v1650_v36 = vld [vmem:[%s2150_s15] ss:$0 sm:$0xff] }
 0x537   : > { %v1128_v54 = vmul.f32 %v1117_v53, %v1094_v15 }
 0x538   : > { %v1121_v40 = vmul.f32 0.5, %v1120_v58 }
 0x539   : > { %v1134_v59 = vmul.f32 %v1645_v10, %v1128_v54 }
 0x53a   : > { %v1122_v6 = vsub.f32 1.5, %v1121_v40 }
 0x53b   : > { %v1140_v62 = vadd.f32 %v1646_v57, %v1134_v59 }
 0x53c   : > { %v1123_v55 = vmul.f32 %v1656_v44, %v1122_v6 }
 0x53e   : > { %v1127_v56 = vsel %vm1126_vm11, %v1656_v44, %v1123_v55  ;;  %v1649_v44 = vld [vmem:[%s2149_s14] ss:$0 sm:$0xff] }
 0x53f   : > { %v1129_v60 = vmul.f32 %v1127_v56, %v1095_v31 }
 0x541   : > { %v1135_v61 = vmul.f32 %v1645_v10, %v1129_v60 }
 0x543   : > { %v1141_v63 = vadd.f32 %v1646_v57, %v1135_v61 }
 0x545   : > { %v1142_v0 = vpack.c.bf16 %v1141_v63, %v1140_v62 }
 0x547   : > { %1529 = vmatmul.msk.bf16.vlgmr.msra.gmra.mxu0 %vm623_vm0, %v1142_v0 }
 0x5c4   : > { %v1175_v5 = vpop.f32.mrf.mxu0 }
 0x5c5   : > { %v1176_v35 = vadd.f32 %v1647_v7, %v1175_v5 }
 0x5c7   : > { %v1180_v11 = vmax.f32 %v1176_v35, 0.0 }
 0x5cc   : > { %v1177_v37 = vpop.f32.mrf.mxu0 }
 0x5cd   : > { %v1178_v9 = vadd.f32 %v1647_v7, %v1177_v37 }
 0x5cf   : > { %v1181_v12 = vmax.f32 %v1178_v9, 0.0 }
 0x5d1   : > { %v1182_v13 = vpack.c.bf16 %v1181_v12, %v1180_v11 }
 0x5d3   : > { %1546 = vmatmul.msk.bf16.vlgmr.msra.gmra.mxu2 %vm724_vm1, %v1182_v13 }
 0x656   : > { %v1231_v16 = vpop.f32.mrf.mxu2 }
 0x657   : > { %v1232_v17 = vadd.f32 %v1648_v14, %v1231_v16 }
 0x659   : > { %v1236_v18 = vadd.f32 %v1232_v17, %v1140_v62 }
 0x65b   : > { %v1238_v19 = vsel %vm623_vm0, %v1236_v18, 0.0 }
 0x65c   : > { %1239 = vadd.xlane.f32.xlu2 %v1238_v19 }
 0x65e   : > { %v1233_v20 = vpop.f32.mrf.mxu2 }
 0x65f   : > { %v1234_v22 = vadd.f32 %v1648_v14, %v1233_v20 }
 0x661   : > { %v1237_v23 = vadd.f32 %v1234_v22, %v1141_v63 }
 0x663   : > { %v1241_v25 = vsel %vm623_vm0, %v1237_v23, 0.0 }
 0x664   : > { %1242 = vadd.xlane.f32.xlu0 %v1241_v25 }
 0x6cf   : > { %v1240_v26 = vpop.xlane.xlu2 %1239 }
 0x6d0   : > { %v1244_v8 = vmul.f32 %v1240_v26, %v2046_v27 }
 0x6d2   : > { %v1246_v28 = vsub.f32 %v1236_v18, %v1244_v8 }
 0x6d4   : > { %v1248_v15 = vmul.f32 %v1246_v28, %v1246_v28 }
 0x6d6   : > { %v1250_v21 = vsel %vm623_vm0, %v1248_v15, 0.0 }
 0x6d7   : > { %v1243_v29 = vpop.xlane.xlu0 %1242  ;;  %1251 = vadd.xlane.f32.xlu1 %v1250_v21 }
 0x6d8   : > { %v1245_v30 = vmul.f32 %v1243_v29, %v2046_v27 }
 0x6da   : > { %v1247_v24 = vsub.f32 %v1237_v23, %v1245_v30 }
 0x6dc   : > { %v1249_v31 = vmul.f32 %v1247_v24, %v1247_v24 }
 0x6de   : > { %v1253_v32 = vsel %vm623_vm0, %v1249_v31, 0.0 }
 0x6df   : > { %1254 = vadd.xlane.f32.xlu2 %v1253_v32 }
 0x74a   : > { %v1252_v33 = vpop.xlane.xlu1 %1251 }
 0x74b   : > { %v1256_v34 = vmul.f32 %v1252_v33, %v2046_v27 }
 0x74d   : > { %v1258_v39 = vadd.f32 1e-05, %v1256_v34 }
 0x74f   : > { %1657 = vrsqrt.f32 %v1258_v39  ;;  %vm1266_vm13 = vweird.f32 %v1258_v39 }
 0x752   : > { %v1255_v41 = vpop.xlane.xlu2 %1254 }
 0x753   : > { %v1257_v42 = vmul.f32 %v1255_v41, %v2046_v27 }
 0x755   : > { %v1658_v43 = vpop.eup %1657  ;;  %v1259_v45 = vadd.f32 1e-05, %v1257_v42 }
 0x756   : > { %v1261_v47 = vmul.f32 %v1658_v43, %v1258_v39  ;;  %vm1267_vm12 = vweird.f32 %v1658_v43 }
 0x757   : > { %1659 = vrsqrt.f32 %v1259_v45  ;;  %vm1268_vm14 = vmor %vm1266_vm13, %vm1267_vm12  ;;  %vm1276_vm1 = vweird.f32 %v1259_v45 }
 0x758   : > { %v1262_v48 = vmul.f32 %v1658_v43, %v1261_v47 }
 0x75a   : > { %v1263_v49 = vmul.f32 0.5, %v1262_v48 }
 0x75c   : > { %v1264_v50 = vsub.f32 1.5, %v1263_v49 }
 0x75d   : > { %v1660_v38 = vpop.eup %1659 }
 0x75e   : > { %v1265_v46 = vmul.f32 %v1658_v43, %v1264_v50  ;;  %v1271_v51 = vmul.f32 %v1660_v38, %v1259_v45  ;;  %vm1277_vm15 = vweird.f32 %v1660_v38 }
 0x75f   : > { %vm1278_vm2 = vmor %vm1276_vm1, %vm1277_vm15 }
 0x760   : > { %v1269_v27 = vsel %vm1268_vm14, %v1658_v43, %v1265_v46  ;;  %v1272_v52 = vmul.f32 %v1660_v38, %v1271_v51 }
 0x761   : > { %v1280_v58 = vmul.f32 %v1269_v27, %v1246_v28 }
 0x762   : > { %v1273_v53 = vmul.f32 0.5, %v1272_v52 }
 0x763   : > { %v1286_v40 = vmul.f32 %v1649_v44, %v1280_v58 }
 0x764   : > { %v1274_v6 = vsub.f32 1.5, %v1273_v53 }
 0x765   : > { %v1292_v10 = vadd.f32 %v1650_v36, %v1286_v40 }
 0x766   : > { %v1275_v54 = vmul.f32 %v1660_v38, %v1274_v6 }
 0x767   : > { %1294 = vst.msk [vmem:[%s559_s17] sm:$0xff] %vm623_vm0, %v1292_v10 }
 0x768   : > { %v1279_v55 = vsel %vm1278_vm2, %v1660_v38, %v1275_v54 }
 0x769   : > { %v1281_v56 = vmul.f32 %v1279_v55, %v1247_v24 }
 0x76b   : > { %v1287_v57 = vmul.f32 %v1649_v44, %v1281_v56 }
 0x76d   : > { %v1293_v59 = vadd.f32 %v1650_v36, %v1287_v57 }
 0x76f   : > { %1295 = vst.msk [vmem:[%s559_s17 + $0x8] sm:$0xff] %vm623_vm0, %v1293_v59 }
 0x770   : > { %1688 = shalt.err (!%p1685_p3)
}
 0x771   : > { %s1730_s18 = smov 128   ;;  %s2171_s17 = smov 8  }
 0x772   : > { %1577 = dma.vmem_to_hbm [thread:$0]  (%p1854_p5), %s1310_s28, 256, %s1312_s20, %s1297_s25, %s1730_s18, %s1730_s18, %s2171_s17  }
 0x773 PF: > { %s2172_s1 = sld [smem:[#allocation5_spill]]  ;;  %p1583_p4 = scmp.ge.s32.totalorder %s1723_s24, 2 }
 0x775   : > { %p1580_p7 = pnand %p1583_p4, %p1858_p6 }
 0x777   : > { %p1581_p8 = pneg %p1580_p7 }
 0x779   : > { %s1326_s29 = sand.u32 1, %s2172_s1  }
 0x77a   : > { %s1327_s27 = scalar_lea.sflag [#allocation3], %s1326_s29 }
 0x77b   : > { %1706 = dma.done.wait (%p1581_p8), %s1327_s27, 256  }
 0x77c   : > { %1708 = vsyncadd (%p1581_p8), %s1327_s27, 4294967040  ;;  %s2174_s24 = sld [smem:[#allocation7_spill]]  ;;  %s2177_s21 = smov %s1715_s22 }
 0x77d   : > { %s2175_s23 = sld [smem:[#allocation6_spill]] }
 0x77e   : > { %s2176_s30 = sld [smem:[#allocation8_spill]] }
 0x782   : > { %p26_p9 = scmp.ge.s32.totalorder %s2174_s24, 4  }
 0x783   : > { %s2178_s22 = smov %s2175_s23 }
 0x784   : > { %s2179_s23 = smov %s2176_s30  ;;  %28 = sbr.rel (!%p26_p9) target bundleno = 7 (0x7), region = 137 }
 0x789   :  { %1333 = vsyncpa [#allocation3], 1 }
 0x78a   :  { %1335 = vsyncpa [#allocation3 + $0x1], 1 }

</bundles_post_ra>
